<compile_context>
chip_gen: v5e
topology: v5e:2x2
jax: 0.10.0
libtpu: 0.0.40
codegen_flags: <defaults>
</compile_context>

<pallas_src>
import functools
import math

import numpy as np
import jax
import jax.numpy as jnp
from jax import lax
from jax.experimental import pallas as pl
from jax.experimental.pallas import tpu as pltpu


# ----------------------------------------------------------------------------
# calculate_theta2 re-implemented without sympy/scipy:
# theta[i][j] = coeff of x^j in (x/2)^i (1 - x/2)^(d-i) / Beta(i+1, d+1-i)
# ----------------------------------------------------------------------------
def calculate_theta2(d):
    thetas = []
    for i in range(d + 1):
        beta = math.factorial(i) * math.factorial(d - i) / math.factorial(d + 1)
        coeffs = []
        for j in range(d + 1):
            if j < i:
                c = 0.0
            else:
                c = math.comb(d - i, j - i) * ((-1.0) ** (j - i)) / (2.0 ** j)
            coeffs.append(c / beta)
        thetas.append(coeffs)
    return thetas


# ----------------------------------------------------------------------------
# Fused forward kernel (grid=(1,); adjacencies streamed from HBM as int8 slabs)
# ----------------------------------------------------------------------------
def _adadgnn_kernel(ks, use_blockdiag,
                    x_ref, adj_g_hbm, adj_k_hbm, adj_n_hbm, dinv_ref,
                    theta_ref, ld_ref, wc_ref, bc_ref,
                    w1_ref, b1_ref, w2_ref, b2_ref,
                    wproj_ref, bproj_ref,
                    wa1_ref, ba1_ref, wa2_ref,
                    w4_ref, b4_ref,
                    out_ref,
                    abuf, dma_sem, h3_s, feat_s, h0_s, src3_s, hcomp_s):
    f32 = jnp.float32
    n = x_ref.shape[0]
    tr = abuf.shape[1]
    num_tiles = n // tr
    h3w = h3_s.shape[1]
    h_dim = h3w // 3
    agg_dt = src3_s.dtype

    adj_refs = (adj_g_hbm, adj_k_hbm, adj_n_hbm)

    # Static schedule of streamed aggregation passes (branch index per pass);
    # drives the cross-pass first-slab prefetch chain and slot parity.
    sched = [b for b in range(3) for _k in range(1, ks[b])]
    start_slots = [(i * num_tiles) % 2 for i in range(len(sched))]

    def start_slab(adj_hbm, row0, slot):
        pltpu.make_async_copy(adj_hbm.at[pl.ds(row0, tr)], abuf.at[slot],
                              dma_sem.at[slot]).start()

    def wait_slab(adj_hbm, slot):
        pltpu.make_async_copy(adj_hbm.at[pl.ds(0, tr)], abuf.at[slot],
                              dma_sem.at[slot]).wait()

    def stream(pass_idx, tile_body):
        adj_hbm = adj_refs[sched[pass_idx]]
        s0 = start_slots[pass_idx]

        def body(r, carry):
            slot = lax.rem(r + s0, 2)
            wait_slab(adj_hbm, slot)

            @pl.when(r + 1 < num_tiles)
            def _():
                start_slab(adj_hbm, pl.multiple_of((r + 1) * tr, tr), 1 - slot)

            tile_body(pl.multiple_of(r * tr, tr), abuf[slot])
            return carry

        lax.fori_loop(0, num_tiles, body, 0)

        # Hide the next pass's pipeline fill: fetch its first slab into the
        # buffer slot the next pass consumes first (guaranteed free by now).
        if pass_idx + 1 < len(sched):
            start_slab(adj_refs[sched[pass_idx + 1]], 0,
                       start_slots[pass_idx + 1])

    # Prime the very first streamed pass so its fill hides behind the MLP/k=0.
    if sched:
        start_slab(adj_refs[sched[0]], 0, start_slots[0])

    # ---- trunk MLP: linear -> relu -> linear2 -> relu ------------------------
    # TODO(synk): nn.Dropout treated as identity (eval mode); training-mode
    #             dropout masks are not reproduced.
    h = jnp.dot(x_ref[...], w1_ref[...], preferred_element_type=f32) + b1_ref[...]
    h = jnp.maximum(h, 0.0)
    h = jnp.dot(h, w2_ref[...], preferred_element_type=f32) + b2_ref[...]
    h = jnp.maximum(h, 0.0)
    # component-major [h|h|h]: built once, reused by every branch / every k
    # (no lane concats inside any streamed inner loop).
    h3_s[...] = jnp.concatenate([h, h, h], axis=1)

    # TODO(synk): on v7x the 3 independent graph branches could be split across
    #             the two TensorCores (core_map / core_parallel semantics);
    #             kept single-core here for portability across v5e/v6e/v7x.
    pass_idx = 0
    for b in range(3):
        n_theta = ks[b]
        dinv_b = dinv_ref[b]                                    # (N, 1)

        # -- k = 0: h0_c = Linear_c(theta_c[0] * ld_c[0] * h) ------------------
        scale0 = theta_ref[b, 0] * ld_ref[b, 0]                 # (1, 3H)
        if use_blockdiag:
            # small H: one (N,3H)@(3H,3H) block-diagonal matmul
            h0_s[...] = (jnp.dot(h3_s[...] * scale0, wc_ref[b],
                                 preferred_element_type=f32) + bc_ref[b])
        else:
            # H % 128 == 0: 3 aligned per-component matmuls, no zero FLOPs
            hsc = h3_s[...] * scale0
            bcb = bc_ref[b]
            for c in range(3):
                lo, hi = c * h_dim, (c + 1) * h_dim
                h0_s[:, lo:hi] = (jnp.dot(hsc[:, lo:hi], wc_ref[b, c],
                                          preferred_element_type=f32)
                                  + bcb[:, lo:hi])

        # -- k >= 1: streamed Laplacian recurrence, 3H lane-batched ------------
        for k in range(1, n_theta):
            src_ref = h3_s if k == 1 else feat_s
            src3_s[...] = (src_ref[...] * dinv_b).astype(agg_dt)
            ldk = ld_ref[b, k]                                  # (1, 3H)
            thk = theta_ref[b, k]
            write_feat = k < n_theta - 1

            def k_body(row0, slab, src_ref=src_ref, ldk=ldk, thk=thk,
                       write_feat=write_feat, b=b):
                rows = pl.ds(row0, tr)
                # int8 slab -> matmul dtype on the VPU right before the MXU.
                slab_w = slab.astype(f32).astype(agg_dt)
                agg3 = jnp.dot(slab_w, src3_s[...],
                               preferred_element_type=f32)      # (tr, 3H)
                dinv_rows = dinv_ref[b, rows, :]                # (tr, 1)
                feat_new = src_ref[rows, :] - (agg3 * dinv_rows) * ldk
                h0_s[rows, :] = h0_s[rows, :] + thk * feat_new
                if write_feat:
                    feat_s[rows, :] = feat_new

            stream(pass_idx, k_body)
            pass_idx += 1

        # -- branch projection: concat(h0_0,h0_1,h0_2) @ Wproj + b, relu -------
        proj = (jnp.dot(h0_s[...], wproj_ref[b], preferred_element_type=f32)
                + bproj_ref[b])
        hcomp_s[b] = jnp.maximum(proj, 0.0)

    # ---- ComponentAttention over the 3 branch embeddings + final linear ------
    wa1 = wa1_ref[...]
    ba1 = ba1_ref[...]
    wa2 = wa2_ref[...]
    scores = []
    for b in range(3):
        t = jnp.tanh(jnp.dot(hcomp_s[b], wa1, preferred_element_type=f32) + ba1)
        s = jnp.sum(t * wa2, axis=1, keepdims=True)             # (N, 1)
        scores.append(jnp.mean(s, axis=0, keepdims=True))       # (1, 1)
    m = jnp.maximum(jnp.maximum(scores[0], scores[1]), scores[2])
    e = [jnp.exp(s - m) for s in scores]
    inv_den = 1.0 / (e[0] + e[1] + e[2])
    emb = ((e[0] * inv_den) * hcomp_s[0] + (e[1] * inv_den) * hcomp_s[1]
           + (e[2] * inv_den) * hcomp_s[2])
    logits = jnp.dot(emb, w4_ref[...], preferred_element_type=f32) + b4_ref[...]

    # lane-dense writeback: single unmasked 128-wide store; wrapper slices it.
    nc = w4_ref.shape[1]
    pad = out_ref.shape[1] - h_dim - nc
    pieces = [emb, logits]
    if pad > 0:
        pieces.append(jnp.zeros((n, pad), f32))
    out_ref[...] = jnp.concatenate(pieces, axis=1)


# ----------------------------------------------------------------------------
# Wrapper helpers
# ----------------------------------------------------------------------------
def _round_up(v, m):
    return ((v + m - 1) // m) * m


def _padded_bytes(shape, dtype):
    """VMEM footprint after (sublane, 128)-lane tiling (e.g. (N,1) f32 -> 512N)."""
    itemsize = np.dtype(dtype).itemsize
    sublane = {4: 8, 2: 16, 1: 32}.get(itemsize, 8)
    dims = (1, 1) + tuple(int(d) for d in shape)
    lead = 1
    for d in dims[:-2]:
        lead *= d
    return lead * _round_up(dims[-2], sublane) * _round_up(dims[-1], 128) * itemsize


def _vmem_capacity_bytes():
    try:
        info = pltpu.get_tpu_info()
        cap = getattr(info, "vmem_capacity_bytes", None)
        if cap:
            return int(cap)
    except Exception:
        pass
    return 64 << 20            # conservative (v7x-sized) fallback


def _pick_tile_rows(n, resident_bytes, cap):
    if n <= 512:
        return n
    n_pad = _round_up(n, 128)
    budget = max(cap - resident_bytes - (16 << 20), 4 << 20)
    tr_cap = max(32, min(1024, budget // (2 * n_pad)))
    best = None
    tr = 32
    while tr <= min(n, 1024):
        if n % tr == 0 and tr <= tr_cap:
            best = tr
        tr += 32
    # no 32-aligned divisor fits -> fall back to one full-height slab
    return best if best is not None else n


def _vmem_limit_bytes(scratch_bytes, io_bytes, cap):
    est = scratch_bytes + 2 * io_bytes          # full-array I/O is double-buffered
    est = (est * 3) // 2 + (8 << 20)            # kernel temporaries + slack
    return int(min(max(est, 32 << 20), max(cap - (2 << 20), 16 << 20)))


# ----------------------------------------------------------------------------
# Wrapper
# ----------------------------------------------------------------------------
def adadgnn_forward(x, adj_g, adj_k, adj_n, params, thetas_branches,
                    tile_rows=None, agg_dtype=jnp.bfloat16):
    """Fused AdaDGNN_neg forward. Returns (logits, emb).

    agg_dtype: dtype of the streamed aggregation matmul operands (bf16 default;
    pass jnp.float32 for reference-grade numerics — the adjacency stays int8 in
    HBM either way so the dominant HBM stream is unchanged).
    """
    n, in_feats = x.shape
    h = params['w1_t'].shape[1]
    nc = params['w4_t'].shape[1]
    h3 = 3 * h
    outw = max(128, _round_up(h + nc, 128))
    use_blockdiag = (h % 128 != 0)
    cap = _vmem_capacity_bytes()

    # 0/1 adjacencies are exact in int8: quarters HBM traffic vs f32 and halves
    # slab VMEM vs bf16. TODO(synk): a CSR / scalar-prefetch gather variant
    # would change the O(N^2) roofline entirely for genuinely sparse graphs.
    adjs = [a.astype(jnp.int8) for a in (adj_g, adj_k, adj_n)]
    # D^{-1/2} precomputed here (rides on the XLA cast) instead of spending a
    # full in-kernel O(N^2) streaming pass per branch.
    dinv = jnp.stack([
        (jnp.maximum(jnp.sum(a, axis=1, keepdims=True), 1.0) ** -0.5)
        for a in (adj_g, adj_k, adj_n)]).astype(jnp.float32)        # (3, N, 1)

    # stacked per-branch constants / parameters (component-major along 3H lanes)
    theta_np = np.zeros((3, 3, 1, h3), np.float32)
    ks = []
    for b in range(3):
        klen = len(thetas_branches[b][0])
        assert 1 <= klen <= 3
        ks.append(klen)
        for c in range(3):
            assert len(thetas_branches[b][c]) == klen
            for kk in range(klen):
                theta_np[b, kk, 0, c * h:(c + 1) * h] = thetas_branches[b][c][kk]
    theta_st = jnp.asarray(theta_np)

    ld_r = params['ld'].reshape(3, 3, 3, h)                # (branch, comp, k, H)
    ld_st = jnp.transpose(ld_r, (0, 2, 1, 3)).reshape(3, 3, 1, h3)
    bc_st = params['bc'].reshape(3, 1, h3)

    wc_r = params['wc'].reshape(3, 3, h, h)
    if use_blockdiag:
        zero = jnp.zeros((h, h), jnp.float32)
        wc_arg = jnp.stack([
            jnp.concatenate([
                jnp.concatenate([wc_r[b, c] if cc == c else zero
                                 for cc in range(3)], axis=1)
                for c in range(3)], axis=0)
            for b in range(3)])                            # (3, 3H, 3H)
    else:
        wc_arg = wc_r                                      # (3, 3, H, H)

    dense = [theta_st, ld_st, wc_arg, bc_st,
             params['w1_t'], params['b1'], params['w2_t'], params['b2'],
             params['wproj'], params['bproj'],
             params['wa1_t'], params['ba1'], params['wa2'],
             params['w4_t'], params['b4']]

    # node-resident scratch (everything except the adjacency slab buffers)
    resident = (3 * _padded_bytes((n, h3), jnp.float32)        # h3_s, feat_s, h0_s
                + _padded_bytes((n, h3), agg_dtype)            # src3_s
                + _padded_bytes((3, n, h), jnp.float32))       # hcomp_s

    if tile_rows is None:
        tile_rows = _pick_tile_rows(n, resident, cap)
    assert n % tile_rows == 0, "N must be a multiple of tile_rows"
    assert tile_rows == n or tile_rows % 32 == 0, (
        "tile_rows must be a multiple of 32 (int8 sublane tile) or equal N")

    io = (_padded_bytes((n, in_feats), jnp.float32)
          + _padded_bytes(dinv.shape, jnp.float32)
          + _padded_bytes((n, outw), jnp.float32)
          + sum(_padded_bytes(a.shape, a.dtype) for a in dense))
    scratch_bytes = resident + _padded_bytes((2, tile_rows, n), jnp.int8)
    vmem_limit = _vmem_limit_bytes(scratch_bytes, io, cap)

    def full_spec(a):
        return pl.BlockSpec(a.shape, lambda i, nd=a.ndim: (0,) * nd)

    in_specs = ([full_spec(x)]
                + [pl.BlockSpec(memory_space=pl.ANY)] * 3
                + [full_spec(dinv)]
                + [full_spec(a) for a in dense])

    grid_spec = pltpu.PrefetchScalarGridSpec(
        num_scalar_prefetch=0,
        grid=(1,),
        in_specs=in_specs,
        out_specs=pl.BlockSpec((n, outw), lambda i: (0, 0)),
        scratch_shapes=[
            pltpu.VMEM((2, tile_rows, n), jnp.int8),   # adjacency slab double buffer
            pltpu.SemaphoreType.DMA((2,)),
            pltpu.VMEM((n, h3), jnp.float32),          # [h|h|h]
            pltpu.VMEM((n, h3), jnp.float32),          # per-component feats
            pltpu.VMEM((n, h3), jnp.float32),          # h0 accumulator
            pltpu.VMEM((n, h3), agg_dtype),            # aggregation matmul operand
            pltpu.VMEM((3, n, h), jnp.float32),        # branch embeddings
        ])

    kernel = functools.partial(_adadgnn_kernel, tuple(ks), use_blockdiag)
    out = pl.pallas_call(
        kernel,
        out_shape=jax.ShapeDtypeStruct((n, outw), jnp.float32),
        grid_spec=grid_spec,
        compiler_params=pltpu.CompilerParams(
            dimension_semantics=("arbitrary",),
            vmem_limit_bytes=vmem_limit),
    )(x, adjs[0], adjs[1], adjs[2], dinv, *dense)

    emb = out[:, :h]
    logits = out[:, h:h + nc]
    return logits, emb


# ----------------------------------------------------------------------------
# Deterministic parameter init (shapes per AdaDGNN_neg.__init__)
# ----------------------------------------------------------------------------
def init_params(key, in_feats, h_feats, num_classes):
    keys = iter(jax.random.split(key, 64))

    def linear_t(fan_in, fan_out, bias=True):
        bound = 1.0 / math.sqrt(fan_in)
        w_t = jax.random.uniform(next(keys), (fan_in, fan_out), jnp.float32,
                                 -bound, bound)
        b = (jax.random.uniform(next(keys), (1, fan_out), jnp.float32,
                                -bound, bound) if bias else None)
        return w_t, b

    p = {}
    p['w1_t'], p['b1'] = linear_t(in_feats, h_feats)          # self.linear
    p['w2_t'], p['b2'] = linear_t(h_feats, h_feats)           # self.linear2

    # 9 PolyConvs (3 for g, 3 for knng, 3 for neg_knng)
    limit = math.sqrt(6.0 / (h_feats + h_feats))              # xavier_uniform
    lds, wcs, bcs = [], [], []
    for _ in range(9):
        lds.append(jax.random.uniform(next(keys), (3, h_feats), jnp.float32))
        wcs.append(jax.random.uniform(next(keys), (h_feats, h_feats),
                                      jnp.float32, -limit, limit))
        bcs.append(jnp.zeros((h_feats,), jnp.float32))
    p['ld'] = jnp.stack(lds)                                  # (9, 3, H)
    p['wc'] = jnp.stack(wcs)                                  # (9, H, H) (in, out)
    p['bc'] = jnp.stack(bcs)                                  # (9, H)

    # linear3 / linear_knn / linear_neg_knn : (3H -> H)
    wps, bps = [], []
    for _ in range(3):
        w_t, b = linear_t(3 * h_feats, h_feats)
        wps.append(w_t)
        bps.append(b)
    p['wproj'] = jnp.stack(wps)                               # (3, 3H, H)
    p['bproj'] = jnp.stack(bps)                               # (3, 1, H)

    p['wa1_t'], p['ba1'] = linear_t(h_feats, h_feats)         # comp_att.project[0]
    bound = 1.0 / math.sqrt(h_feats)
    p['wa2'] = jax.random.uniform(next(keys), (1, h_feats), jnp.float32,
                                  -bound, bound)              # project[2], no bias
    p['w4_t'], p['b4'] = linear_t(h_feats, num_classes)       # self.linear4
    return p


# ----------------------------------------------------------------------------
# Pure-JAX reference (mirrors the PyTorch forward) for validation
# ----------------------------------------------------------------------------
def reference_forward(x, adjs, p, thetas_branches):
    hp = lax.Precision.HIGHEST

    def lin(z, w_t, b=None):
        y = jnp.dot(z, w_t, precision=hp)
        return y if b is None else y + b

    h = jax.nn.relu(lin(x, p['w1_t'], p['b1']))
    h = jax.nn.relu(lin(h, p['w2_t'], p['b2']))

    def dinv(adj):
        return jnp.maximum(jnp.sum(adj, 1, keepdims=True), 1.0) ** -0.5

    def polyconv(adj, di, feat, theta, ld, w_t, bias):
        h0 = lin(theta[0] * feat * ld[0:1], w_t, bias)
        for k in range(1, len(theta)):
            agg = jnp.dot(adj, feat * di, precision=hp)
            feat = feat - (agg * di) * ld[k:k + 1]
            h0 = h0 + theta[k] * feat
        return h0

    comps = []
    for b in range(3):
        adj = adjs[b]
        di = dinv(adj)
        outs = [polyconv(adj, di, h, thetas_branches[b][c],
                         p['ld'][b * 3 + c], p['wc'][b * 3 + c],
                         p['bc'][b * 3 + c][None, :]) for c in range(3)]
        comps.append(jax.nn.relu(lin(jnp.concatenate(outs, -1),
                                     p['wproj'][b], p['bproj'][b])))

    z = jnp.stack(comps, axis=1)                              # (N, 3, H)
    t = jnp.tanh(jnp.einsum('nch,hk->nck', z, p['wa1_t'], precision=hp)
                 + p['ba1'])
    w = jnp.sum(t * p['wa2'], axis=-1, keepdims=True).mean(0)  # (3, 1)
    beta = jax.nn.softmax(w, axis=0)
    emb = (beta[None] * z).sum(1)
    logits = lin(emb, p['w4_t'], p['b4'])
    return logits, emb


if __name__ == "__main__":
    # small shapes: N=128 nodes (2 row-slab tiles -> exercises the DMA pipeline
    # and the cross-pass prefetch chain), in_feats=16, h_feats=32, classes=2.
    N, IN, H, NC = 128, 16, 32, 2
    key = jax.random.PRNGKey(0)
    kx, kg, kk, kn, kp = jax.random.split(key, 5)

    x = jax.random.normal(kx, (N, IN), jnp.float32)

    def rand_sym_adj(k, prob):
        a = jax.random.bernoulli(k, prob, (N, N)).astype(jnp.float32)
        a = jnp.maximum(a, a.T)                               # undirected
        return a * (1.0 - jnp.eye(N, dtype=jnp.float32))      # no self loops

    adj_g = rand_sym_adj(kg, 0.30)    # self.g
    adj_k = rand_sym_adj(kk, 0.20)    # self.knng
    adj_n = rand_sym_adj(kn, 0.15)    # self.neg_knng

    params = init_params(kp, IN, H, NC)
    thetas_g = calculate_theta2(d=2)              # [[3,-3,.75],[0,3,-1.5],[0,0,.75]]
    thetas_branches = [thetas_g, [[1.0] * 3] * 3, [[1.0] * 3] * 3]

    logits, emb = adadgnn_forward(x, adj_g, adj_k, adj_n, params,
                                  thetas_branches, tile_rows=64)
    jax.block_until_ready((logits, emb))

    ref_logits, ref_emb = reference_forward(x, (adj_g, adj_k, adj_n), params,
                                            thetas_branches)
    np.testing.assert_allclose(np.asarray(logits), np.asarray(ref_logits),
                               rtol=2e-2, atol=2e-2)
    np.testing.assert_allclose(np.asarray(emb), np.asarray(ref_emb),
                               rtol=2e-2, atol=2e-2)
    print("KERNEL_OK")
</pallas_src>

<mosaic_0001>
module attributes {stable_mosaic.version = 11 : i64} {
  func.func @_adadgnn_kernel(%arg0: i32, %arg1: memref<128x16xf32, #tpu.memory_space<vmem>>, %arg2: memref<128x128xi8, #tpu.memory_space<any>>, %arg3: memref<128x128xi8, #tpu.memory_space<any>>, %arg4: memref<128x128xi8, #tpu.memory_space<any>>, %arg5: memref<3x128x1xf32, #tpu.memory_space<vmem>>, %arg6: memref<3x3x1x96xf32, #tpu.memory_space<vmem>>, %arg7: memref<3x3x1x96xf32, #tpu.memory_space<vmem>>, %arg8: memref<3x96x96xf32, #tpu.memory_space<vmem>>, %arg9: memref<3x1x96xf32, #tpu.memory_space<vmem>>, %arg10: memref<16x32xf32, #tpu.memory_space<vmem>>, %arg11: memref<1x32xf32, #tpu.memory_space<vmem>>, %arg12: memref<32x32xf32, #tpu.memory_space<vmem>>, %arg13: memref<1x32xf32, #tpu.memory_space<vmem>>, %arg14: memref<3x96x32xf32, #tpu.memory_space<vmem>>, %arg15: memref<3x1x32xf32, #tpu.memory_space<vmem>>, %arg16: memref<32x32xf32, #tpu.memory_space<vmem>>, %arg17: memref<1x32xf32, #tpu.memory_space<vmem>>, %arg18: memref<1x32xf32, #tpu.memory_space<vmem>>, %arg19: memref<32x2xf32, #tpu.memory_space<vmem>>, %arg20: memref<1x2xf32, #tpu.memory_space<vmem>>, %arg21: memref<128x128xf32, #tpu.memory_space<vmem>>, %arg22: memref<2x64x128xi8, #tpu.memory_space<vmem>>, %arg23: memref<2x!tpu.dma_semaphore, #tpu.memory_space<semaphore_mem>>, %arg24: memref<128x96xf32, #tpu.memory_space<vmem>>, %arg25: memref<128x96xf32, #tpu.memory_space<vmem>>, %arg26: memref<128x96xf32, #tpu.memory_space<vmem>>, %arg27: memref<128x96xbf16, #tpu.memory_space<vmem>>, %arg28: memref<3x128x32xf32, #tpu.memory_space<vmem>>) attributes {dimension_semantics = [#tpu.dimension_semantics<arbitrary>], iteration_bounds = array<i64: 1>, scalar_prefetch = 0 : i64, scratch_operands = 7 : i64, tpu.core_type = #tpu.core_type<tc>, window_params = [{pipeline_mode = #tpu.pipeline_mode<synchronous>, transform_indices = @transform_0, window_bounds = array<i64: 128, 16>}, {}, {}, {}, {pipeline_mode = #tpu.pipeline_mode<synchronous>, transform_indices = @transform_4, window_bounds = array<i64: 3, 128, 1>}, {pipeline_mode = #tpu.pipeline_mode<synchronous>, transform_indices = @transform_5, window_bounds = array<i64: 3, 3, 1, 96>}, {pipeline_mode = #tpu.pipeline_mode<synchronous>, transform_indices = @transform_6, window_bounds = array<i64: 3, 3, 1, 96>}, {pipeline_mode = #tpu.pipeline_mode<synchronous>, transform_indices = @transform_7, window_bounds = array<i64: 3, 96, 96>}, {pipeline_mode = #tpu.pipeline_mode<synchronous>, transform_indices = @transform_8, window_bounds = array<i64: 3, 1, 96>}, {pipeline_mode = #tpu.pipeline_mode<synchronous>, transform_indices = @transform_9, window_bounds = array<i64: 16, 32>}, {pipeline_mode = #tpu.pipeline_mode<synchronous>, transform_indices = @transform_10, window_bounds = array<i64: 1, 32>}, {pipeline_mode = #tpu.pipeline_mode<synchronous>, transform_indices = @transform_11, window_bounds = array<i64: 32, 32>}, {pipeline_mode = #tpu.pipeline_mode<synchronous>, transform_indices = @transform_12, window_bounds = array<i64: 1, 32>}, {pipeline_mode = #tpu.pipeline_mode<synchronous>, transform_indices = @transform_13, window_bounds = array<i64: 3, 96, 32>}, {pipeline_mode = #tpu.pipeline_mode<synchronous>, transform_indices = @transform_14, window_bounds = array<i64: 3, 1, 32>}, {pipeline_mode = #tpu.pipeline_mode<synchronous>, transform_indices = @transform_15, window_bounds = array<i64: 32, 32>}, {pipeline_mode = #tpu.pipeline_mode<synchronous>, transform_indices = @transform_16, window_bounds = array<i64: 1, 32>}, {pipeline_mode = #tpu.pipeline_mode<synchronous>, transform_indices = @transform_17, window_bounds = array<i64: 1, 32>}, {pipeline_mode = #tpu.pipeline_mode<synchronous>, transform_indices = @transform_18, window_bounds = array<i64: 32, 2>}, {pipeline_mode = #tpu.pipeline_mode<synchronous>, transform_indices = @transform_19, window_bounds = array<i64: 1, 2>}, {pipeline_mode = #tpu.pipeline_mode<synchronous>, transform_indices = @transform_20, window_bounds = array<i64: 128, 128>}]} {
    %c0_i32 = arith.constant 0 : i32
    %c0_i32_0 = arith.constant 0 : i32
    %c0_i32_1 = arith.constant 0 : i32
    %c0_i32_2 = arith.constant 0 : i32
    %0 = tpu.memref_slice %arg2[%c0_i32_1, %c0_i32_2] : memref<128x128xi8, #tpu.memory_space<any>> -> memref<64x128xi8, #tpu.memory_space<any>>
    %c0_i32_3 = arith.constant 0 : i32
    %c0_i32_4 = arith.constant 0 : i32
    %1 = tpu.memref_slice %arg22[%c0_i32, %c0_i32_3, %c0_i32_4] : memref<2x64x128xi8, #tpu.memory_space<vmem>> -> memref<1x64x128xi8, #tpu.memory_space<vmem>>
    %2 = tpu.memref_squeeze %1 : memref<1x64x128xi8, #tpu.memory_space<vmem>> -> memref<64x128xi8, #tpu.memory_space<vmem>>
    %3 = tpu.memref_slice %arg23[%c0_i32_0] : memref<2x!tpu.dma_semaphore, #tpu.memory_space<semaphore_mem>> -> memref<1x!tpu.dma_semaphore, #tpu.memory_space<semaphore_mem>>
    %4 = tpu.memref_squeeze %3 : memref<1x!tpu.dma_semaphore, #tpu.memory_space<semaphore_mem>> -> memref<!tpu.dma_semaphore, #tpu.memory_space<semaphore_mem>>
    tpu.enqueue_dma source(%0 : memref<64x128xi8, #tpu.memory_space<any>>) target(%2 : memref<64x128xi8, #tpu.memory_space<vmem>>) target_semaphore(%4 : memref<!tpu.dma_semaphore, #tpu.memory_space<semaphore_mem>>)
    %c0 = arith.constant 0 : index
    %c0_5 = arith.constant 0 : index
    %5 = vector.load %arg1[%c0, %c0_5] : memref<128x16xf32, #tpu.memory_space<vmem>>, vector<128x16xf32>
    %c0_6 = arith.constant 0 : index
    %c0_7 = arith.constant 0 : index
    %6 = vector.load %arg10[%c0_6, %c0_7] : memref<16x32xf32, #tpu.memory_space<vmem>>, vector<16x32xf32>
    %cst = arith.constant dense<0.000000e+00> : vector<128x32xf32>
    %7 = tpu.matmul %5, %6, %cst {dimension_numbers = #tpu.dot_dimension_numbers<[1], [0], [0], [1], [0, 0, 1, 1], [], []>} : vector<128x16xf32>, vector<16x32xf32>, vector<128x32xf32> -> vector<128x32xf32>
    %c0_8 = arith.constant 0 : index
    %c0_9 = arith.constant 0 : index
    %8 = vector.load %arg11[%c0_8, %c0_9] : memref<1x32xf32, #tpu.memory_space<vmem>>, vector<1x32xf32>
    %9 = vector.broadcast %8 : vector<1x32xf32> to vector<128x32xf32>
    %10 = arith.addf %7, %9 : vector<128x32xf32>
    %cst_10 = arith.constant 0.000000e+00 : f32
    %11 = vector.broadcast %cst_10 : f32 to vector<128x32xf32>
    %12 = arith.maximumf %10, %11 : vector<128x32xf32>
    %c0_11 = arith.constant 0 : index
    %c0_12 = arith.constant 0 : index
    %13 = vector.load %arg12[%c0_11, %c0_12] : memref<32x32xf32, #tpu.memory_space<vmem>>, vector<32x32xf32>
    %cst_13 = arith.constant dense<0.000000e+00> : vector<128x32xf32>
    %14 = tpu.matmul %12, %13, %cst_13 {dimension_numbers = #tpu.dot_dimension_numbers<[1], [0], [0], [1], [0, 0, 1, 1], [], []>} : vector<128x32xf32>, vector<32x32xf32>, vector<128x32xf32> -> vector<128x32xf32>
    %c0_14 = arith.constant 0 : index
    %c0_15 = arith.constant 0 : index
    %15 = vector.load %arg13[%c0_14, %c0_15] : memref<1x32xf32, #tpu.memory_space<vmem>>, vector<1x32xf32>
    %16 = vector.broadcast %15 : vector<1x32xf32> to vector<128x32xf32>
    %17 = arith.addf %14, %16 : vector<128x32xf32>
    %cst_16 = arith.constant 0.000000e+00 : f32
    %18 = vector.broadcast %cst_16 : f32 to vector<128x32xf32>
    %19 = arith.maximumf %17, %18 : vector<128x32xf32>
    %20 = tpu.concatenate %19, %19, %19 in 1 : vector<128x32xf32>, vector<128x32xf32>, vector<128x32xf32> -> vector<128x96xf32>
    %c0_17 = arith.constant 0 : index
    %c0_18 = arith.constant 0 : index
    %21 = vector.load %arg24[%c0_17, %c0_18] : memref<128x96xf32, #tpu.memory_space<vmem>>, vector<128x96xf32>
    tpu.vector_store %arg24[%c0_17, %c0_18], %20 {strides = array<i32>} : memref<128x96xf32, #tpu.memory_space<vmem>>, vector<128x96xf32>,
    %c0_19 = arith.constant 0 : index
    %c0_20 = arith.constant 0 : index
    %c0_21 = arith.constant 0 : index
    %22 = vector.load %arg5[%c0_19, %c0_20, %c0_21] : memref<3x128x1xf32, #tpu.memory_space<vmem>>, vector<1x128x1xf32>
    %23 = vector.shape_cast %22 : vector<1x128x1xf32> to vector<128x1xf32>
    %c0_22 = arith.constant 0 : index
    %c0_23 = arith.constant 0 : index
    %c0_24 = arith.constant 0 : index
    %c0_25 = arith.constant 0 : index
    %24 = vector.load %arg6[%c0_22, %c0_23, %c0_24, %c0_25] : memref<3x3x1x96xf32, #tpu.memory_space<vmem>>, vector<1x1x1x96xf32>
    %25 = vector.shape_cast %24 : vector<1x1x1x96xf32> to vector<1x96xf32>
    %c0_26 = arith.constant 0 : index
    %c0_27 = arith.constant 0 : index
    %c0_28 = arith.constant 0 : index
    %c0_29 = arith.constant 0 : index
    %26 = vector.load %arg7[%c0_26, %c0_27, %c0_28, %c0_29] : memref<3x3x1x96xf32, #tpu.memory_space<vmem>>, vector<1x1x1x96xf32>
    %27 = vector.shape_cast %26 : vector<1x1x1x96xf32> to vector<1x96xf32>
    %28 = arith.mulf %25, %27 : vector<1x96xf32>
    %c0_30 = arith.constant 0 : index
    %c0_31 = arith.constant 0 : index
    %29 = vector.load %arg24[%c0_30, %c0_31] : memref<128x96xf32, #tpu.memory_space<vmem>>, vector<128x96xf32>
    %30 = vector.broadcast %28 : vector<1x96xf32> to vector<128x96xf32>
    %31 = arith.mulf %29, %30 : vector<128x96xf32>
    %c0_32 = arith.constant 0 : index
    %c0_33 = arith.constant 0 : index
    %c0_34 = arith.constant 0 : index
    %32 = vector.load %arg8[%c0_32, %c0_33, %c0_34] : memref<3x96x96xf32, #tpu.memory_space<vmem>>, vector<1x96x96xf32>
    %33 = vector.shape_cast %32 : vector<1x96x96xf32> to vector<96x96xf32>
    %cst_35 = arith.constant dense<0.000000e+00> : vector<128x96xf32>
    %34 = tpu.matmul %31, %33, %cst_35 {dimension_numbers = #tpu.dot_dimension_numbers<[1], [0], [0], [1], [0, 0, 1, 1], [], []>} : vector<128x96xf32>, vector<96x96xf32>, vector<128x96xf32> -> vector<128x96xf32>
    %c0_36 = arith.constant 0 : index
    %c0_37 = arith.constant 0 : index
    %c0_38 = arith.constant 0 : index
    %35 = vector.load %arg9[%c0_36, %c0_37, %c0_38] : memref<3x1x96xf32, #tpu.memory_space<vmem>>, vector<1x1x96xf32>
    %36 = vector.shape_cast %35 : vector<1x1x96xf32> to vector<1x96xf32>
    %37 = vector.broadcast %36 : vector<1x96xf32> to vector<128x96xf32>
    %38 = arith.addf %34, %37 : vector<128x96xf32>
    %c0_39 = arith.constant 0 : index
    %c0_40 = arith.constant 0 : index
    %39 = vector.load %arg26[%c0_39, %c0_40] : memref<128x96xf32, #tpu.memory_space<vmem>>, vector<128x96xf32>
    tpu.vector_store %arg26[%c0_39, %c0_40], %38 {strides = array<i32>} : memref<128x96xf32, #tpu.memory_space<vmem>>, vector<128x96xf32>,
    %c0_41 = arith.constant 0 : index
    %c0_42 = arith.constant 0 : index
    %40 = vector.load %arg24[%c0_41, %c0_42] : memref<128x96xf32, #tpu.memory_space<vmem>>, vector<128x96xf32>
    %41 = vector.broadcast %23 : vector<128x1xf32> to vector<128x96xf32>
    %42 = arith.mulf %40, %41 : vector<128x96xf32>
    %43 = arith.truncf %42 : vector<128x96xf32> to vector<128x96xbf16>
    %c0_43 = arith.constant 0 : index
    %c0_44 = arith.constant 0 : index
    %44 = vector.load %arg27[%c0_43, %c0_44] : memref<128x96xbf16, #tpu.memory_space<vmem>>, vector<128x96xbf16>
    tpu.vector_store %arg27[%c0_43, %c0_44], %43 {strides = array<i32>} : memref<128x96xbf16, #tpu.memory_space<vmem>>, vector<128x96xbf16>,
    %c0_45 = arith.constant 0 : index
    %c1 = arith.constant 1 : index
    %c0_46 = arith.constant 0 : index
    %c0_47 = arith.constant 0 : index
    %45 = vector.load %arg7[%c0_45, %c1, %c0_46, %c0_47] : memref<3x3x1x96xf32, #tpu.memory_space<vmem>>, vector<1x1x1x96xf32>
    %46 = vector.shape_cast %45 : vector<1x1x1x96xf32> to vector<1x96xf32>
    %c0_48 = arith.constant 0 : index
    %c1_49 = arith.constant 1 : index
    %c0_50 = arith.constant 0 : index
    %c0_51 = arith.constant 0 : index
    %47 = vector.load %arg6[%c0_48, %c1_49, %c0_50, %c0_51] : memref<3x3x1x96xf32, #tpu.memory_space<vmem>>, vector<1x1x1x96xf32>
    %48 = vector.shape_cast %47 : vector<1x1x1x96xf32> to vector<1x96xf32>
    %c0_i32_52 = arith.constant 0 : i32
    %c2_i32 = arith.constant 2 : i32
    %49 = arith.addi %c0_i32_52, %c2_i32 : i32
    %c1_i32 = arith.constant 1 : i32
    scf.for %arg29 = %c0_i32_52 to %49 step %c1_i32  : i32 {
      %c0_i32_291 = arith.constant 0 : i32
      %282 = arith.addi %arg29, %c0_i32_291 : i32
      %c2_i32_292 = arith.constant 2 : i32
      %283 = arith.remsi %282, %c2_i32_292 : i32
      %c0_i32_293 = arith.constant 0 : i32
      %c0_i32_294 = arith.constant 0 : i32
      %284 = tpu.memref_slice %arg2[%c0_i32_293, %c0_i32_294] : memref<128x128xi8, #tpu.memory_space<any>> -> memref<64x128xi8, #tpu.memory_space<any>>
      %c0_i32_295 = arith.constant 0 : i32
      %c0_i32_296 = arith.constant 0 : i32
      %285 = tpu.memref_slice %arg22[%283, %c0_i32_295, %c0_i32_296] : memref<2x64x128xi8, #tpu.memory_space<vmem>> -> memref<1x64x128xi8, #tpu.memory_space<vmem>>
      %286 = tpu.memref_squeeze %285 : memref<1x64x128xi8, #tpu.memory_space<vmem>> -> memref<64x128xi8, #tpu.memory_space<vmem>>
      %287 = tpu.memref_slice %arg23[%283] : memref<2x!tpu.dma_semaphore, #tpu.memory_space<semaphore_mem>> -> memref<1x!tpu.dma_semaphore, #tpu.memory_space<semaphore_mem>>
      %288 = tpu.memref_squeeze %287 : memref<1x!tpu.dma_semaphore, #tpu.memory_space<semaphore_mem>> -> memref<!tpu.dma_semaphore, #tpu.memory_space<semaphore_mem>>
      tpu.wait_dma2 semaphore(%288 : memref<!tpu.dma_semaphore, #tpu.memory_space<semaphore_mem>>) src(%284 : memref<64x128xi8, #tpu.memory_space<any>>) dst(%286 : memref<64x128xi8, #tpu.memory_space<vmem>>)
      %c1_i32_297 = arith.constant 1 : i32
      %289 = arith.addi %arg29, %c1_i32_297 : i32
      %c2_i32_298 = arith.constant 2 : i32
      %290 = arith.cmpi slt, %289, %c2_i32_298 : i32
      %291 = arith.extui %290 : i1 to i32
      %c0_i32_299 = arith.constant 0 : i32
      %292 = arith.cmpi ne, %291, %c0_i32_299 : i32
      scf.if %292 {
        %c1_i32_311 = arith.constant 1 : i32
        %321 = arith.addi %arg29, %c1_i32_311 : i32
        %c64_i32_312 = arith.constant 64 : i32
        %322 = arith.muli %321, %c64_i32_312 : i32
        %323 = tpu.assume_multiple %322, 64 : i32
        %c1_i32_313 = arith.constant 1 : i32
        %324 = arith.subi %c1_i32_313, %283 : i32
        %c0_i32_314 = arith.constant 0 : i32
        %325 = tpu.memref_slice %arg2[%323, %c0_i32_314] : memref<128x128xi8, #tpu.memory_space<any>> -> memref<64x128xi8, #tpu.memory_space<any>>
        %c0_i32_315 = arith.constant 0 : i32
        %c0_i32_316 = arith.constant 0 : i32
        %326 = tpu.memref_slice %arg22[%324, %c0_i32_315, %c0_i32_316] : memref<2x64x128xi8, #tpu.memory_space<vmem>> -> memref<1x64x128xi8, #tpu.memory_space<vmem>>
        %327 = tpu.memref_squeeze %326 : memref<1x64x128xi8, #tpu.memory_space<vmem>> -> memref<64x128xi8, #tpu.memory_space<vmem>>
        %328 = tpu.memref_slice %arg23[%324] : memref<2x!tpu.dma_semaphore, #tpu.memory_space<semaphore_mem>> -> memref<1x!tpu.dma_semaphore, #tpu.memory_space<semaphore_mem>>
        %329 = tpu.memref_squeeze %328 : memref<1x!tpu.dma_semaphore, #tpu.memory_space<semaphore_mem>> -> memref<!tpu.dma_semaphore, #tpu.memory_space<semaphore_mem>>
        tpu.enqueue_dma source(%325 : memref<64x128xi8, #tpu.memory_space<any>>) target(%327 : memref<64x128xi8, #tpu.memory_space<vmem>>) target_semaphore(%329 : memref<!tpu.dma_semaphore, #tpu.memory_space<semaphore_mem>>)
      } else {
      }
      %c64_i32 = arith.constant 64 : i32
      %293 = arith.muli %arg29, %c64_i32 : i32
      %294 = tpu.assume_multiple %293, 64 : i32
      %295 = arith.index_cast %283 : i32 to index
      %c0_300 = arith.constant 0 : index
      %c0_301 = arith.constant 0 : index
      %296 = vector.load %arg22[%295, %c0_300, %c0_301] : memref<2x64x128xi8, #tpu.memory_space<vmem>>, vector<1x64x128xi8>
      %297 = vector.shape_cast %296 : vector<1x64x128xi8> to vector<64x128xi8>
      %298 = arith.sitofp %297 : vector<64x128xi8> to vector<64x128xf32>
      %299 = arith.truncf %298 : vector<64x128xf32> to vector<64x128xbf16>
      %c0_302 = arith.constant 0 : index
      %c0_303 = arith.constant 0 : index
      %300 = vector.load %arg27[%c0_302, %c0_303] : memref<128x96xbf16, #tpu.memory_space<vmem>>, vector<128x96xbf16>
      %cst_304 = arith.constant dense<0.000000e+00> : vector<64x96xf32>
      %301 = tpu.matmul %299, %300, %cst_304 {dimension_numbers = #tpu.dot_dimension_numbers<[1], [0], [0], [1], [0, 0, 1, 1], [], []>} : vector<64x128xbf16>, vector<128x96xbf16>, vector<64x96xf32> -> vector<64x96xf32>
      %c0_305 = arith.constant 0 : index
      %302 = arith.index_cast %294 : i32 to index
      %c0_306 = arith.constant 0 : index
      %303 = vector.load %arg5[%c0_305, %302, %c0_306] : memref<3x128x1xf32, #tpu.memory_space<vmem>>, vector<1x64x1xf32>
      %304 = vector.shape_cast %303 : vector<1x64x1xf32> to vector<64x1xf32>
      %305 = arith.index_cast %294 : i32 to index
      %c0_307 = arith.constant 0 : index
      %306 = vector.load %arg24[%305, %c0_307] : memref<128x96xf32, #tpu.memory_space<vmem>>, vector<64x96xf32>
      %307 = vector.broadcast %304 : vector<64x1xf32> to vector<64x96xf32>
      %308 = arith.mulf %301, %307 : vector<64x96xf32>
      %309 = vector.broadcast %46 : vector<1x96xf32> to vector<64x96xf32>
      %310 = arith.mulf %308, %309 : vector<64x96xf32>
      %311 = arith.subf %306, %310 : vector<64x96xf32>
      %312 = arith.index_cast %294 : i32 to index
      %c0_308 = arith.constant 0 : index
      %313 = vector.load %arg26[%312, %c0_308] : memref<128x96xf32, #tpu.memory_space<vmem>>, vector<64x96xf32>
      %314 = vector.broadcast %48 : vector<1x96xf32> to vector<64x96xf32>
      %315 = arith.mulf %314, %311 : vector<64x96xf32>
      %316 = arith.addf %313, %315 : vector<64x96xf32>
      %317 = arith.index_cast %294 : i32 to index
      %c0_309 = arith.constant 0 : index
      %318 = vector.load %arg26[%317, %c0_309] : memref<128x96xf32, #tpu.memory_space<vmem>>, vector<64x96xf32>
      tpu.vector_store %arg26[%317, %c0_309], %316 {strides = array<i32>} : memref<128x96xf32, #tpu.memory_space<vmem>>, vector<64x96xf32>,
      %319 = arith.index_cast %294 : i32 to index
      %c0_310 = arith.constant 0 : index
      %320 = vector.load %arg25[%319, %c0_310] : memref<128x96xf32, #tpu.memory_space<vmem>>, vector<64x96xf32>
      tpu.vector_store %arg25[%319, %c0_310], %311 {strides = array<i32>} : memref<128x96xf32, #tpu.memory_space<vmem>>, vector<64x96xf32>,
    }
    %c2_i32_53 = arith.constant 2 : i32
    %c0_i32_54 = arith.constant 0 : i32
    %c0_i32_55 = arith.constant 0 : i32
    %c0_i32_56 = arith.constant 0 : i32
    %c0_i32_57 = arith.constant 0 : i32
    %50 = tpu.memref_slice %arg2[%c0_i32_56, %c0_i32_57] : memref<128x128xi8, #tpu.memory_space<any>> -> memref<64x128xi8, #tpu.memory_space<any>>
    %c0_i32_58 = arith.constant 0 : i32
    %c0_i32_59 = arith.constant 0 : i32
    %51 = tpu.memref_slice %arg22[%c0_i32_54, %c0_i32_58, %c0_i32_59] : memref<2x64x128xi8, #tpu.memory_space<vmem>> -> memref<1x64x128xi8, #tpu.memory_space<vmem>>
    %52 = tpu.memref_squeeze %51 : memref<1x64x128xi8, #tpu.memory_space<vmem>> -> memref<64x128xi8, #tpu.memory_space<vmem>>
    %53 = tpu.memref_slice %arg23[%c0_i32_55] : memref<2x!tpu.dma_semaphore, #tpu.memory_space<semaphore_mem>> -> memref<1x!tpu.dma_semaphore, #tpu.memory_space<semaphore_mem>>
    %54 = tpu.memref_squeeze %53 : memref<1x!tpu.dma_semaphore, #tpu.memory_space<semaphore_mem>> -> memref<!tpu.dma_semaphore, #tpu.memory_space<semaphore_mem>>
    tpu.enqueue_dma source(%50 : memref<64x128xi8, #tpu.memory_space<any>>) target(%52 : memref<64x128xi8, #tpu.memory_space<vmem>>) target_semaphore(%54 : memref<!tpu.dma_semaphore, #tpu.memory_space<semaphore_mem>>)
    %c0_60 = arith.constant 0 : index
    %c0_61 = arith.constant 0 : index
    %55 = vector.load %arg25[%c0_60, %c0_61] : memref<128x96xf32, #tpu.memory_space<vmem>>, vector<128x96xf32>
    %56 = vector.broadcast %23 : vector<128x1xf32> to vector<128x96xf32>
    %57 = arith.mulf %55, %56 : vector<128x96xf32>
    %58 = arith.truncf %57 : vector<128x96xf32> to vector<128x96xbf16>
    %c0_62 = arith.constant 0 : index
    %c0_63 = arith.constant 0 : index
    %59 = vector.load %arg27[%c0_62, %c0_63] : memref<128x96xbf16, #tpu.memory_space<vmem>>, vector<128x96xbf16>
    tpu.vector_store %arg27[%c0_62, %c0_63], %58 {strides = array<i32>} : memref<128x96xbf16, #tpu.memory_space<vmem>>, vector<128x96xbf16>,
    %c0_64 = arith.constant 0 : index
    %c2 = arith.constant 2 : index
    %c0_65 = arith.constant 0 : index
    %c0_66 = arith.constant 0 : index
    %60 = vector.load %arg7[%c0_64, %c2, %c0_65, %c0_66] : memref<3x3x1x96xf32, #tpu.memory_space<vmem>>, vector<1x1x1x96xf32>
    %61 = vector.shape_cast %60 : vector<1x1x1x96xf32> to vector<1x96xf32>
    %c0_67 = arith.constant 0 : index
    %c2_68 = arith.constant 2 : index
    %c0_69 = arith.constant 0 : index
    %c0_70 = arith.constant 0 : index
    %62 = vector.load %arg6[%c0_67, %c2_68, %c0_69, %c0_70] : memref<3x3x1x96xf32, #tpu.memory_space<vmem>>, vector<1x1x1x96xf32>
    %63 = vector.shape_cast %62 : vector<1x1x1x96xf32> to vector<1x96xf32>
    %c0_i32_71 = arith.constant 0 : i32
    %c2_i32_72 = arith.constant 2 : i32
    %64 = arith.addi %c0_i32_71, %c2_i32_72 : i32
    %c1_i32_73 = arith.constant 1 : i32
    scf.for %arg29 = %c0_i32_71 to %64 step %c1_i32_73  : i32 {
      %c0_i32_291 = arith.constant 0 : i32
      %282 = arith.addi %arg29, %c0_i32_291 : i32
      %c2_i32_292 = arith.constant 2 : i32
      %283 = arith.remsi %282, %c2_i32_292 : i32
      %c0_i32_293 = arith.constant 0 : i32
      %c0_i32_294 = arith.constant 0 : i32
      %284 = tpu.memref_slice %arg2[%c0_i32_293, %c0_i32_294] : memref<128x128xi8, #tpu.memory_space<any>> -> memref<64x128xi8, #tpu.memory_space<any>>
      %c0_i32_295 = arith.constant 0 : i32
      %c0_i32_296 = arith.constant 0 : i32
      %285 = tpu.memref_slice %arg22[%283, %c0_i32_295, %c0_i32_296] : memref<2x64x128xi8, #tpu.memory_space<vmem>> -> memref<1x64x128xi8, #tpu.memory_space<vmem>>
      %286 = tpu.memref_squeeze %285 : memref<1x64x128xi8, #tpu.memory_space<vmem>> -> memref<64x128xi8, #tpu.memory_space<vmem>>
      %287 = tpu.memref_slice %arg23[%283] : memref<2x!tpu.dma_semaphore, #tpu.memory_space<semaphore_mem>> -> memref<1x!tpu.dma_semaphore, #tpu.memory_space<semaphore_mem>>
      %288 = tpu.memref_squeeze %287 : memref<1x!tpu.dma_semaphore, #tpu.memory_space<semaphore_mem>> -> memref<!tpu.dma_semaphore, #tpu.memory_space<semaphore_mem>>
      tpu.wait_dma2 semaphore(%288 : memref<!tpu.dma_semaphore, #tpu.memory_space<semaphore_mem>>) src(%284 : memref<64x128xi8, #tpu.memory_space<any>>) dst(%286 : memref<64x128xi8, #tpu.memory_space<vmem>>)
      %c1_i32_297 = arith.constant 1 : i32
      %289 = arith.addi %arg29, %c1_i32_297 : i32
      %c2_i32_298 = arith.constant 2 : i32
      %290 = arith.cmpi slt, %289, %c2_i32_298 : i32
      %291 = arith.extui %290 : i1 to i32
      %c0_i32_299 = arith.constant 0 : i32
      %292 = arith.cmpi ne, %291, %c0_i32_299 : i32
      scf.if %292 {
        %c1_i32_310 = arith.constant 1 : i32
        %319 = arith.addi %arg29, %c1_i32_310 : i32
        %c64_i32_311 = arith.constant 64 : i32
        %320 = arith.muli %319, %c64_i32_311 : i32
        %321 = tpu.assume_multiple %320, 64 : i32
        %c1_i32_312 = arith.constant 1 : i32
        %322 = arith.subi %c1_i32_312, %283 : i32
        %c0_i32_313 = arith.constant 0 : i32
        %323 = tpu.memref_slice %arg2[%321, %c0_i32_313] : memref<128x128xi8, #tpu.memory_space<any>> -> memref<64x128xi8, #tpu.memory_space<any>>
        %c0_i32_314 = arith.constant 0 : i32
        %c0_i32_315 = arith.constant 0 : i32
        %324 = tpu.memref_slice %arg22[%322, %c0_i32_314, %c0_i32_315] : memref<2x64x128xi8, #tpu.memory_space<vmem>> -> memref<1x64x128xi8, #tpu.memory_space<vmem>>
        %325 = tpu.memref_squeeze %324 : memref<1x64x128xi8, #tpu.memory_space<vmem>> -> memref<64x128xi8, #tpu.memory_space<vmem>>
        %326 = tpu.memref_slice %arg23[%322] : memref<2x!tpu.dma_semaphore, #tpu.memory_space<semaphore_mem>> -> memref<1x!tpu.dma_semaphore, #tpu.memory_space<semaphore_mem>>
        %327 = tpu.memref_squeeze %326 : memref<1x!tpu.dma_semaphore, #tpu.memory_space<semaphore_mem>> -> memref<!tpu.dma_semaphore, #tpu.memory_space<semaphore_mem>>
        tpu.enqueue_dma source(%323 : memref<64x128xi8, #tpu.memory_space<any>>) target(%325 : memref<64x128xi8, #tpu.memory_space<vmem>>) target_semaphore(%327 : memref<!tpu.dma_semaphore, #tpu.memory_space<semaphore_mem>>)
      } else {
      }
      %c64_i32 = arith.constant 64 : i32
      %293 = arith.muli %arg29, %c64_i32 : i32
      %294 = tpu.assume_multiple %293, 64 : i32
      %295 = arith.index_cast %283 : i32 to index
      %c0_300 = arith.constant 0 : index
      %c0_301 = arith.constant 0 : index
      %296 = vector.load %arg22[%295, %c0_300, %c0_301] : memref<2x64x128xi8, #tpu.memory_space<vmem>>, vector<1x64x128xi8>
      %297 = vector.shape_cast %296 : vector<1x64x128xi8> to vector<64x128xi8>
      %298 = arith.sitofp %297 : vector<64x128xi8> to vector<64x128xf32>
      %299 = arith.truncf %298 : vector<64x128xf32> to vector<64x128xbf16>
      %c0_302 = arith.constant 0 : index
      %c0_303 = arith.constant 0 : index
      %300 = vector.load %arg27[%c0_302, %c0_303] : memref<128x96xbf16, #tpu.memory_space<vmem>>, vector<128x96xbf16>
      %cst_304 = arith.constant dense<0.000000e+00> : vector<64x96xf32>
      %301 = tpu.matmul %299, %300, %cst_304 {dimension_numbers = #tpu.dot_dimension_numbers<[1], [0], [0], [1], [0, 0, 1, 1], [], []>} : vector<64x128xbf16>, vector<128x96xbf16>, vector<64x96xf32> -> vector<64x96xf32>
      %c0_305 = arith.constant 0 : index
      %302 = arith.index_cast %294 : i32 to index
      %c0_306 = arith.constant 0 : index
      %303 = vector.load %arg5[%c0_305, %302, %c0_306] : memref<3x128x1xf32, #tpu.memory_space<vmem>>, vector<1x64x1xf32>
      %304 = vector.shape_cast %303 : vector<1x64x1xf32> to vector<64x1xf32>
      %305 = arith.index_cast %294 : i32 to index
      %c0_307 = arith.constant 0 : index
      %306 = vector.load %arg25[%305, %c0_307] : memref<128x96xf32, #tpu.memory_space<vmem>>, vector<64x96xf32>
      %307 = vector.broadcast %304 : vector<64x1xf32> to vector<64x96xf32>
      %308 = arith.mulf %301, %307 : vector<64x96xf32>
      %309 = vector.broadcast %61 : vector<1x96xf32> to vector<64x96xf32>
      %310 = arith.mulf %308, %309 : vector<64x96xf32>
      %311 = arith.subf %306, %310 : vector<64x96xf32>
      %312 = arith.index_cast %294 : i32 to index
      %c0_308 = arith.constant 0 : index
      %313 = vector.load %arg26[%312, %c0_308] : memref<128x96xf32, #tpu.memory_space<vmem>>, vector<64x96xf32>
      %314 = vector.broadcast %63 : vector<1x96xf32> to vector<64x96xf32>
      %315 = arith.mulf %314, %311 : vector<64x96xf32>
      %316 = arith.addf %313, %315 : vector<64x96xf32>
      %317 = arith.index_cast %294 : i32 to index
      %c0_309 = arith.constant 0 : index
      %318 = vector.load %arg26[%317, %c0_309] : memref<128x96xf32, #tpu.memory_space<vmem>>, vector<64x96xf32>
      tpu.vector_store %arg26[%317, %c0_309], %316 {strides = array<i32>} : memref<128x96xf32, #tpu.memory_space<vmem>>, vector<64x96xf32>,
    }
    %c2_i32_74 = arith.constant 2 : i32
    %c0_i32_75 = arith.constant 0 : i32
    %c0_i32_76 = arith.constant 0 : i32
    %c0_i32_77 = arith.constant 0 : i32
    %c0_i32_78 = arith.constant 0 : i32
    %65 = tpu.memref_slice %arg3[%c0_i32_77, %c0_i32_78] : memref<128x128xi8, #tpu.memory_space<any>> -> memref<64x128xi8, #tpu.memory_space<any>>
    %c0_i32_79 = arith.constant 0 : i32
    %c0_i32_80 = arith.constant 0 : i32
    %66 = tpu.memref_slice %arg22[%c0_i32_75, %c0_i32_79, %c0_i32_80] : memref<2x64x128xi8, #tpu.memory_space<vmem>> -> memref<1x64x128xi8, #tpu.memory_space<vmem>>
    %67 = tpu.memref_squeeze %66 : memref<1x64x128xi8, #tpu.memory_space<vmem>> -> memref<64x128xi8, #tpu.memory_space<vmem>>
    %68 = tpu.memref_slice %arg23[%c0_i32_76] : memref<2x!tpu.dma_semaphore, #tpu.memory_space<semaphore_mem>> -> memref<1x!tpu.dma_semaphore, #tpu.memory_space<semaphore_mem>>
    %69 = tpu.memref_squeeze %68 : memref<1x!tpu.dma_semaphore, #tpu.memory_space<semaphore_mem>> -> memref<!tpu.dma_semaphore, #tpu.memory_space<semaphore_mem>>
    tpu.enqueue_dma source(%65 : memref<64x128xi8, #tpu.memory_space<any>>) target(%67 : memref<64x128xi8, #tpu.memory_space<vmem>>) target_semaphore(%69 : memref<!tpu.dma_semaphore, #tpu.memory_space<semaphore_mem>>)
    %c0_81 = arith.constant 0 : index
    %c0_82 = arith.constant 0 : index
    %70 = vector.load %arg26[%c0_81, %c0_82] : memref<128x96xf32, #tpu.memory_space<vmem>>, vector<128x96xf32>
    %c0_83 = arith.constant 0 : index
    %c0_84 = arith.constant 0 : index
    %c0_85 = arith.constant 0 : index
    %71 = vector.load %arg14[%c0_83, %c0_84, %c0_85] : memref<3x96x32xf32, #tpu.memory_space<vmem>>, vector<1x96x32xf32>
    %72 = vector.shape_cast %71 : vector<1x96x32xf32> to vector<96x32xf32>
    %cst_86 = arith.constant dense<0.000000e+00> : vector<128x32xf32>
    %73 = tpu.matmul %70, %72, %cst_86 {dimension_numbers = #tpu.dot_dimension_numbers<[1], [0], [0], [1], [0, 0, 1, 1], [], []>} : vector<128x96xf32>, vector<96x32xf32>, vector<128x32xf32> -> vector<128x32xf32>
    %c0_87 = arith.constant 0 : index
    %c0_88 = arith.constant 0 : index
    %c0_89 = arith.constant 0 : index
    %74 = vector.load %arg15[%c0_87, %c0_88, %c0_89] : memref<3x1x32xf32, #tpu.memory_space<vmem>>, vector<1x1x32xf32>
    %75 = vector.shape_cast %74 : vector<1x1x32xf32> to vector<1x32xf32>
    %76 = vector.broadcast %75 : vector<1x32xf32> to vector<128x32xf32>
    %77 = arith.addf %73, %76 : vector<128x32xf32>
    %cst_90 = arith.constant 0.000000e+00 : f32
    %78 = vector.broadcast %cst_90 : f32 to vector<128x32xf32>
    %79 = arith.maximumf %77, %78 : vector<128x32xf32>
    %c0_91 = arith.constant 0 : index
    %c0_92 = arith.constant 0 : index
    %c0_93 = arith.constant 0 : index
    %80 = vector.load %arg28[%c0_91, %c0_92, %c0_93] : memref<3x128x32xf32, #tpu.memory_space<vmem>>, vector<1x128x32xf32>
    %81 = vector.shape_cast %80 : vector<1x128x32xf32> to vector<128x32xf32>
    %82 = vector.shape_cast %79 : vector<128x32xf32> to vector<1x128x32xf32>
    tpu.vector_store %arg28[%c0_91, %c0_92, %c0_93], %82 {strides = array<i32>} : memref<3x128x32xf32, #tpu.memory_space<vmem>>, vector<1x128x32xf32>,
    %c1_94 = arith.constant 1 : index
    %c0_95 = arith.constant 0 : index
    %c0_96 = arith.constant 0 : index
    %83 = vector.load %arg5[%c1_94, %c0_95, %c0_96] : memref<3x128x1xf32, #tpu.memory_space<vmem>>, vector<1x128x1xf32>
    %84 = vector.shape_cast %83 : vector<1x128x1xf32> to vector<128x1xf32>
    %c1_97 = arith.constant 1 : index
    %c0_98 = arith.constant 0 : index
    %c0_99 = arith.constant 0 : index
    %c0_100 = arith.constant 0 : index
    %85 = vector.load %arg6[%c1_97, %c0_98, %c0_99, %c0_100] : memref<3x3x1x96xf32, #tpu.memory_space<vmem>>, vector<1x1x1x96xf32>
    %86 = vector.shape_cast %85 : vector<1x1x1x96xf32> to vector<1x96xf32>
    %c1_101 = arith.constant 1 : index
    %c0_102 = arith.constant 0 : index
    %c0_103 = arith.constant 0 : index
    %c0_104 = arith.constant 0 : index
    %87 = vector.load %arg7[%c1_101, %c0_102, %c0_103, %c0_104] : memref<3x3x1x96xf32, #tpu.memory_space<vmem>>, vector<1x1x1x96xf32>
    %88 = vector.shape_cast %87 : vector<1x1x1x96xf32> to vector<1x96xf32>
    %89 = arith.mulf %86, %88 : vector<1x96xf32>
    %c0_105 = arith.constant 0 : index
    %c0_106 = arith.constant 0 : index
    %90 = vector.load %arg24[%c0_105, %c0_106] : memref<128x96xf32, #tpu.memory_space<vmem>>, vector<128x96xf32>
    %91 = vector.broadcast %89 : vector<1x96xf32> to vector<128x96xf32>
    %92 = arith.mulf %90, %91 : vector<128x96xf32>
    %c1_107 = arith.constant 1 : index
    %c0_108 = arith.constant 0 : index
    %c0_109 = arith.constant 0 : index
    %93 = vector.load %arg8[%c1_107, %c0_108, %c0_109] : memref<3x96x96xf32, #tpu.memory_space<vmem>>, vector<1x96x96xf32>
    %94 = vector.shape_cast %93 : vector<1x96x96xf32> to vector<96x96xf32>
    %cst_110 = arith.constant dense<0.000000e+00> : vector<128x96xf32>
    %95 = tpu.matmul %92, %94, %cst_110 {dimension_numbers = #tpu.dot_dimension_numbers<[1], [0], [0], [1], [0, 0, 1, 1], [], []>} : vector<128x96xf32>, vector<96x96xf32>, vector<128x96xf32> -> vector<128x96xf32>
    %c1_111 = arith.constant 1 : index
    %c0_112 = arith.constant 0 : index
    %c0_113 = arith.constant 0 : index
    %96 = vector.load %arg9[%c1_111, %c0_112, %c0_113] : memref<3x1x96xf32, #tpu.memory_space<vmem>>, vector<1x1x96xf32>
    %97 = vector.shape_cast %96 : vector<1x1x96xf32> to vector<1x96xf32>
    %98 = vector.broadcast %97 : vector<1x96xf32> to vector<128x96xf32>
    %99 = arith.addf %95, %98 : vector<128x96xf32>
    %c0_114 = arith.constant 0 : index
    %c0_115 = arith.constant 0 : index
    %100 = vector.load %arg26[%c0_114, %c0_115] : memref<128x96xf32, #tpu.memory_space<vmem>>, vector<128x96xf32>
    tpu.vector_store %arg26[%c0_114, %c0_115], %99 {strides = array<i32>} : memref<128x96xf32, #tpu.memory_space<vmem>>, vector<128x96xf32>,
    %c0_116 = arith.constant 0 : index
    %c0_117 = arith.constant 0 : index
    %101 = vector.load %arg24[%c0_116, %c0_117] : memref<128x96xf32, #tpu.memory_space<vmem>>, vector<128x96xf32>
    %102 = vector.broadcast %84 : vector<128x1xf32> to vector<128x96xf32>
    %103 = arith.mulf %101, %102 : vector<128x96xf32>
    %104 = arith.truncf %103 : vector<128x96xf32> to vector<128x96xbf16>
    %c0_118 = arith.constant 0 : index
    %c0_119 = arith.constant 0 : index
    %105 = vector.load %arg27[%c0_118, %c0_119] : memref<128x96xbf16, #tpu.memory_space<vmem>>, vector<128x96xbf16>
    tpu.vector_store %arg27[%c0_118, %c0_119], %104 {strides = array<i32>} : memref<128x96xbf16, #tpu.memory_space<vmem>>, vector<128x96xbf16>,
    %c1_120 = arith.constant 1 : index
    %c1_121 = arith.constant 1 : index
    %c0_122 = arith.constant 0 : index
    %c0_123 = arith.constant 0 : index
    %106 = vector.load %arg7[%c1_120, %c1_121, %c0_122, %c0_123] : memref<3x3x1x96xf32, #tpu.memory_space<vmem>>, vector<1x1x1x96xf32>
    %107 = vector.shape_cast %106 : vector<1x1x1x96xf32> to vector<1x96xf32>
    %c1_124 = arith.constant 1 : index
    %c1_125 = arith.constant 1 : index
    %c0_126 = arith.constant 0 : index
    %c0_127 = arith.constant 0 : index
    %108 = vector.load %arg6[%c1_124, %c1_125, %c0_126, %c0_127] : memref<3x3x1x96xf32, #tpu.memory_space<vmem>>, vector<1x1x1x96xf32>
    %109 = vector.shape_cast %108 : vector<1x1x1x96xf32> to vector<1x96xf32>
    %c0_i32_128 = arith.constant 0 : i32
    %c2_i32_129 = arith.constant 2 : i32
    %110 = arith.addi %c0_i32_128, %c2_i32_129 : i32
    %c1_i32_130 = arith.constant 1 : i32
    scf.for %arg29 = %c0_i32_128 to %110 step %c1_i32_130  : i32 {
      %c0_i32_291 = arith.constant 0 : i32
      %282 = arith.addi %arg29, %c0_i32_291 : i32
      %c2_i32_292 = arith.constant 2 : i32
      %283 = arith.remsi %282, %c2_i32_292 : i32
      %c0_i32_293 = arith.constant 0 : i32
      %c0_i32_294 = arith.constant 0 : i32
      %284 = tpu.memref_slice %arg3[%c0_i32_293, %c0_i32_294] : memref<128x128xi8, #tpu.memory_space<any>> -> memref<64x128xi8, #tpu.memory_space<any>>
      %c0_i32_295 = arith.constant 0 : i32
      %c0_i32_296 = arith.constant 0 : i32
      %285 = tpu.memref_slice %arg22[%283, %c0_i32_295, %c0_i32_296] : memref<2x64x128xi8, #tpu.memory_space<vmem>> -> memref<1x64x128xi8, #tpu.memory_space<vmem>>
      %286 = tpu.memref_squeeze %285 : memref<1x64x128xi8, #tpu.memory_space<vmem>> -> memref<64x128xi8, #tpu.memory_space<vmem>>
      %287 = tpu.memref_slice %arg23[%283] : memref<2x!tpu.dma_semaphore, #tpu.memory_space<semaphore_mem>> -> memref<1x!tpu.dma_semaphore, #tpu.memory_space<semaphore_mem>>
      %288 = tpu.memref_squeeze %287 : memref<1x!tpu.dma_semaphore, #tpu.memory_space<semaphore_mem>> -> memref<!tpu.dma_semaphore, #tpu.memory_space<semaphore_mem>>
      tpu.wait_dma2 semaphore(%288 : memref<!tpu.dma_semaphore, #tpu.memory_space<semaphore_mem>>) src(%284 : memref<64x128xi8, #tpu.memory_space<any>>) dst(%286 : memref<64x128xi8, #tpu.memory_space<vmem>>)
      %c1_i32_297 = arith.constant 1 : i32
      %289 = arith.addi %arg29, %c1_i32_297 : i32
      %c2_i32_298 = arith.constant 2 : i32
      %290 = arith.cmpi slt, %289, %c2_i32_298 : i32
      %291 = arith.extui %290 : i1 to i32
      %c0_i32_299 = arith.constant 0 : i32
      %292 = arith.cmpi ne, %291, %c0_i32_299 : i32
      scf.if %292 {
        %c1_i32_311 = arith.constant 1 : i32
        %321 = arith.addi %arg29, %c1_i32_311 : i32
        %c64_i32_312 = arith.constant 64 : i32
        %322 = arith.muli %321, %c64_i32_312 : i32
        %323 = tpu.assume_multiple %322, 64 : i32
        %c1_i32_313 = arith.constant 1 : i32
        %324 = arith.subi %c1_i32_313, %283 : i32
        %c0_i32_314 = arith.constant 0 : i32
        %325 = tpu.memref_slice %arg3[%323, %c0_i32_314] : memref<128x128xi8, #tpu.memory_space<any>> -> memref<64x128xi8, #tpu.memory_space<any>>
        %c0_i32_315 = arith.constant 0 : i32
        %c0_i32_316 = arith.constant 0 : i32
        %326 = tpu.memref_slice %arg22[%324, %c0_i32_315, %c0_i32_316] : memref<2x64x128xi8, #tpu.memory_space<vmem>> -> memref<1x64x128xi8, #tpu.memory_space<vmem>>
        %327 = tpu.memref_squeeze %326 : memref<1x64x128xi8, #tpu.memory_space<vmem>> -> memref<64x128xi8, #tpu.memory_space<vmem>>
        %328 = tpu.memref_slice %arg23[%324] : memref<2x!tpu.dma_semaphore, #tpu.memory_space<semaphore_mem>> -> memref<1x!tpu.dma_semaphore, #tpu.memory_space<semaphore_mem>>
        %329 = tpu.memref_squeeze %328 : memref<1x!tpu.dma_semaphore, #tpu.memory_space<semaphore_mem>> -> memref<!tpu.dma_semaphore, #tpu.memory_space<semaphore_mem>>
        tpu.enqueue_dma source(%325 : memref<64x128xi8, #tpu.memory_space<any>>) target(%327 : memref<64x128xi8, #tpu.memory_space<vmem>>) target_semaphore(%329 : memref<!tpu.dma_semaphore, #tpu.memory_space<semaphore_mem>>)
      } else {
      }
      %c64_i32 = arith.constant 64 : i32
      %293 = arith.muli %arg29, %c64_i32 : i32
      %294 = tpu.assume_multiple %293, 64 : i32
      %295 = arith.index_cast %283 : i32 to index
      %c0_300 = arith.constant 0 : index
      %c0_301 = arith.constant 0 : index
      %296 = vector.load %arg22[%295, %c0_300, %c0_301] : memref<2x64x128xi8, #tpu.memory_space<vmem>>, vector<1x64x128xi8>
      %297 = vector.shape_cast %296 : vector<1x64x128xi8> to vector<64x128xi8>
      %298 = arith.sitofp %297 : vector<64x128xi8> to vector<64x128xf32>
      %299 = arith.truncf %298 : vector<64x128xf32> to vector<64x128xbf16>
      %c0_302 = arith.constant 0 : index
      %c0_303 = arith.constant 0 : index
      %300 = vector.load %arg27[%c0_302, %c0_303] : memref<128x96xbf16, #tpu.memory_space<vmem>>, vector<128x96xbf16>
      %cst_304 = arith.constant dense<0.000000e+00> : vector<64x96xf32>
      %301 = tpu.matmul %299, %300, %cst_304 {dimension_numbers = #tpu.dot_dimension_numbers<[1], [0], [0], [1], [0, 0, 1, 1], [], []>} : vector<64x128xbf16>, vector<128x96xbf16>, vector<64x96xf32> -> vector<64x96xf32>
      %c1_305 = arith.constant 1 : index
      %302 = arith.index_cast %294 : i32 to index
      %c0_306 = arith.constant 0 : index
      %303 = vector.load %arg5[%c1_305, %302, %c0_306] : memref<3x128x1xf32, #tpu.memory_space<vmem>>, vector<1x64x1xf32>
      %304 = vector.shape_cast %303 : vector<1x64x1xf32> to vector<64x1xf32>
      %305 = arith.index_cast %294 : i32 to index
      %c0_307 = arith.constant 0 : index
      %306 = vector.load %arg24[%305, %c0_307] : memref<128x96xf32, #tpu.memory_space<vmem>>, vector<64x96xf32>
      %307 = vector.broadcast %304 : vector<64x1xf32> to vector<64x96xf32>
      %308 = arith.mulf %301, %307 : vector<64x96xf32>
      %309 = vector.broadcast %107 : vector<1x96xf32> to vector<64x96xf32>
      %310 = arith.mulf %308, %309 : vector<64x96xf32>
      %311 = arith.subf %306, %310 : vector<64x96xf32>
      %312 = arith.index_cast %294 : i32 to index
      %c0_308 = arith.constant 0 : index
      %313 = vector.load %arg26[%312, %c0_308] : memref<128x96xf32, #tpu.memory_space<vmem>>, vector<64x96xf32>
      %314 = vector.broadcast %109 : vector<1x96xf32> to vector<64x96xf32>
      %315 = arith.mulf %314, %311 : vector<64x96xf32>
      %316 = arith.addf %313, %315 : vector<64x96xf32>
      %317 = arith.index_cast %294 : i32 to index
      %c0_309 = arith.constant 0 : index
      %318 = vector.load %arg26[%317, %c0_309] : memref<128x96xf32, #tpu.memory_space<vmem>>, vector<64x96xf32>
      tpu.vector_store %arg26[%317, %c0_309], %316 {strides = array<i32>} : memref<128x96xf32, #tpu.memory_space<vmem>>, vector<64x96xf32>,
      %319 = arith.index_cast %294 : i32 to index
      %c0_310 = arith.constant 0 : index
      %320 = vector.load %arg25[%319, %c0_310] : memref<128x96xf32, #tpu.memory_space<vmem>>, vector<64x96xf32>
      tpu.vector_store %arg25[%319, %c0_310], %311 {strides = array<i32>} : memref<128x96xf32, #tpu.memory_space<vmem>>, vector<64x96xf32>,
    }
    %c2_i32_131 = arith.constant 2 : i32
    %c0_i32_132 = arith.constant 0 : i32
    %c0_i32_133 = arith.constant 0 : i32
    %c0_i32_134 = arith.constant 0 : i32
    %c0_i32_135 = arith.constant 0 : i32
    %111 = tpu.memref_slice %arg3[%c0_i32_134, %c0_i32_135] : memref<128x128xi8, #tpu.memory_space<any>> -> memref<64x128xi8, #tpu.memory_space<any>>
    %c0_i32_136 = arith.constant 0 : i32
    %c0_i32_137 = arith.constant 0 : i32
    %112 = tpu.memref_slice %arg22[%c0_i32_132, %c0_i32_136, %c0_i32_137] : memref<2x64x128xi8, #tpu.memory_space<vmem>> -> memref<1x64x128xi8, #tpu.memory_space<vmem>>
    %113 = tpu.memref_squeeze %112 : memref<1x64x128xi8, #tpu.memory_space<vmem>> -> memref<64x128xi8, #tpu.memory_space<vmem>>
    %114 = tpu.memref_slice %arg23[%c0_i32_133] : memref<2x!tpu.dma_semaphore, #tpu.memory_space<semaphore_mem>> -> memref<1x!tpu.dma_semaphore, #tpu.memory_space<semaphore_mem>>
    %115 = tpu.memref_squeeze %114 : memref<1x!tpu.dma_semaphore, #tpu.memory_space<semaphore_mem>> -> memref<!tpu.dma_semaphore, #tpu.memory_space<semaphore_mem>>
    tpu.enqueue_dma source(%111 : memref<64x128xi8, #tpu.memory_space<any>>) target(%113 : memref<64x128xi8, #tpu.memory_space<vmem>>) target_semaphore(%115 : memref<!tpu.dma_semaphore, #tpu.memory_space<semaphore_mem>>)
    %c0_138 = arith.constant 0 : index
    %c0_139 = arith.constant 0 : index
    %116 = vector.load %arg25[%c0_138, %c0_139] : memref<128x96xf32, #tpu.memory_space<vmem>>, vector<128x96xf32>
    %117 = vector.broadcast %84 : vector<128x1xf32> to vector<128x96xf32>
    %118 = arith.mulf %116, %117 : vector<128x96xf32>
    %119 = arith.truncf %118 : vector<128x96xf32> to vector<128x96xbf16>
    %c0_140 = arith.constant 0 : index
    %c0_141 = arith.constant 0 : index
    %120 = vector.load %arg27[%c0_140, %c0_141] : memref<128x96xbf16, #tpu.memory_space<vmem>>, vector<128x96xbf16>
    tpu.vector_store %arg27[%c0_140, %c0_141], %119 {strides = array<i32>} : memref<128x96xbf16, #tpu.memory_space<vmem>>, vector<128x96xbf16>,
    %c1_142 = arith.constant 1 : index
    %c2_143 = arith.constant 2 : index
    %c0_144 = arith.constant 0 : index
    %c0_145 = arith.constant 0 : index
    %121 = vector.load %arg7[%c1_142, %c2_143, %c0_144, %c0_145] : memref<3x3x1x96xf32, #tpu.memory_space<vmem>>, vector<1x1x1x96xf32>
    %122 = vector.shape_cast %121 : vector<1x1x1x96xf32> to vector<1x96xf32>
    %c1_146 = arith.constant 1 : index
    %c2_147 = arith.constant 2 : index
    %c0_148 = arith.constant 0 : index
    %c0_149 = arith.constant 0 : index
    %123 = vector.load %arg6[%c1_146, %c2_147, %c0_148, %c0_149] : memref<3x3x1x96xf32, #tpu.memory_space<vmem>>, vector<1x1x1x96xf32>
    %124 = vector.shape_cast %123 : vector<1x1x1x96xf32> to vector<1x96xf32>
    %c0_i32_150 = arith.constant 0 : i32
    %c2_i32_151 = arith.constant 2 : i32
    %125 = arith.addi %c0_i32_150, %c2_i32_151 : i32
    %c1_i32_152 = arith.constant 1 : i32
    scf.for %arg29 = %c0_i32_150 to %125 step %c1_i32_152  : i32 {
      %c0_i32_291 = arith.constant 0 : i32
      %282 = arith.addi %arg29, %c0_i32_291 : i32
      %c2_i32_292 = arith.constant 2 : i32
      %283 = arith.remsi %282, %c2_i32_292 : i32
      %c0_i32_293 = arith.constant 0 : i32
      %c0_i32_294 = arith.constant 0 : i32
      %284 = tpu.memref_slice %arg3[%c0_i32_293, %c0_i32_294] : memref<128x128xi8, #tpu.memory_space<any>> -> memref<64x128xi8, #tpu.memory_space<any>>
      %c0_i32_295 = arith.constant 0 : i32
      %c0_i32_296 = arith.constant 0 : i32
      %285 = tpu.memref_slice %arg22[%283, %c0_i32_295, %c0_i32_296] : memref<2x64x128xi8, #tpu.memory_space<vmem>> -> memref<1x64x128xi8, #tpu.memory_space<vmem>>
      %286 = tpu.memref_squeeze %285 : memref<1x64x128xi8, #tpu.memory_space<vmem>> -> memref<64x128xi8, #tpu.memory_space<vmem>>
      %287 = tpu.memref_slice %arg23[%283] : memref<2x!tpu.dma_semaphore, #tpu.memory_space<semaphore_mem>> -> memref<1x!tpu.dma_semaphore, #tpu.memory_space<semaphore_mem>>
      %288 = tpu.memref_squeeze %287 : memref<1x!tpu.dma_semaphore, #tpu.memory_space<semaphore_mem>> -> memref<!tpu.dma_semaphore, #tpu.memory_space<semaphore_mem>>
      tpu.wait_dma2 semaphore(%288 : memref<!tpu.dma_semaphore, #tpu.memory_space<semaphore_mem>>) src(%284 : memref<64x128xi8, #tpu.memory_space<any>>) dst(%286 : memref<64x128xi8, #tpu.memory_space<vmem>>)
      %c1_i32_297 = arith.constant 1 : i32
      %289 = arith.addi %arg29, %c1_i32_297 : i32
      %c2_i32_298 = arith.constant 2 : i32
      %290 = arith.cmpi slt, %289, %c2_i32_298 : i32
      %291 = arith.extui %290 : i1 to i32
      %c0_i32_299 = arith.constant 0 : i32
      %292 = arith.cmpi ne, %291, %c0_i32_299 : i32
      scf.if %292 {
        %c1_i32_310 = arith.constant 1 : i32
        %319 = arith.addi %arg29, %c1_i32_310 : i32
        %c64_i32_311 = arith.constant 64 : i32
        %320 = arith.muli %319, %c64_i32_311 : i32
        %321 = tpu.assume_multiple %320, 64 : i32
        %c1_i32_312 = arith.constant 1 : i32
        %322 = arith.subi %c1_i32_312, %283 : i32
        %c0_i32_313 = arith.constant 0 : i32
        %323 = tpu.memref_slice %arg3[%321, %c0_i32_313] : memref<128x128xi8, #tpu.memory_space<any>> -> memref<64x128xi8, #tpu.memory_space<any>>
        %c0_i32_314 = arith.constant 0 : i32
        %c0_i32_315 = arith.constant 0 : i32
        %324 = tpu.memref_slice %arg22[%322, %c0_i32_314, %c0_i32_315] : memref<2x64x128xi8, #tpu.memory_space<vmem>> -> memref<1x64x128xi8, #tpu.memory_space<vmem>>
        %325 = tpu.memref_squeeze %324 : memref<1x64x128xi8, #tpu.memory_space<vmem>> -> memref<64x128xi8, #tpu.memory_space<vmem>>
        %326 = tpu.memref_slice %arg23[%322] : memref<2x!tpu.dma_semaphore, #tpu.memory_space<semaphore_mem>> -> memref<1x!tpu.dma_semaphore, #tpu.memory_space<semaphore_mem>>
        %327 = tpu.memref_squeeze %326 : memref<1x!tpu.dma_semaphore, #tpu.memory_space<semaphore_mem>> -> memref<!tpu.dma_semaphore, #tpu.memory_space<semaphore_mem>>
        tpu.enqueue_dma source(%323 : memref<64x128xi8, #tpu.memory_space<any>>) target(%325 : memref<64x128xi8, #tpu.memory_space<vmem>>) target_semaphore(%327 : memref<!tpu.dma_semaphore, #tpu.memory_space<semaphore_mem>>)
      } else {
      }
      %c64_i32 = arith.constant 64 : i32
      %293 = arith.muli %arg29, %c64_i32 : i32
      %294 = tpu.assume_multiple %293, 64 : i32
      %295 = arith.index_cast %283 : i32 to index
      %c0_300 = arith.constant 0 : index
      %c0_301 = arith.constant 0 : index
      %296 = vector.load %arg22[%295, %c0_300, %c0_301] : memref<2x64x128xi8, #tpu.memory_space<vmem>>, vector<1x64x128xi8>
      %297 = vector.shape_cast %296 : vector<1x64x128xi8> to vector<64x128xi8>
      %298 = arith.sitofp %297 : vector<64x128xi8> to vector<64x128xf32>
      %299 = arith.truncf %298 : vector<64x128xf32> to vector<64x128xbf16>
      %c0_302 = arith.constant 0 : index
      %c0_303 = arith.constant 0 : index
      %300 = vector.load %arg27[%c0_302, %c0_303] : memref<128x96xbf16, #tpu.memory_space<vmem>>, vector<128x96xbf16>
      %cst_304 = arith.constant dense<0.000000e+00> : vector<64x96xf32>
      %301 = tpu.matmul %299, %300, %cst_304 {dimension_numbers = #tpu.dot_dimension_numbers<[1], [0], [0], [1], [0, 0, 1, 1], [], []>} : vector<64x128xbf16>, vector<128x96xbf16>, vector<64x96xf32> -> vector<64x96xf32>
      %c1_305 = arith.constant 1 : index
      %302 = arith.index_cast %294 : i32 to index
      %c0_306 = arith.constant 0 : index
      %303 = vector.load %arg5[%c1_305, %302, %c0_306] : memref<3x128x1xf32, #tpu.memory_space<vmem>>, vector<1x64x1xf32>
      %304 = vector.shape_cast %303 : vector<1x64x1xf32> to vector<64x1xf32>
      %305 = arith.index_cast %294 : i32 to index
      %c0_307 = arith.constant 0 : index
      %306 = vector.load %arg25[%305, %c0_307] : memref<128x96xf32, #tpu.memory_space<vmem>>, vector<64x96xf32>
      %307 = vector.broadcast %304 : vector<64x1xf32> to vector<64x96xf32>
      %308 = arith.mulf %301, %307 : vector<64x96xf32>
      %309 = vector.broadcast %122 : vector<1x96xf32> to vector<64x96xf32>
      %310 = arith.mulf %308, %309 : vector<64x96xf32>
      %311 = arith.subf %306, %310 : vector<64x96xf32>
      %312 = arith.index_cast %294 : i32 to index
      %c0_308 = arith.constant 0 : index
      %313 = vector.load %arg26[%312, %c0_308] : memref<128x96xf32, #tpu.memory_space<vmem>>, vector<64x96xf32>
      %314 = vector.broadcast %124 : vector<1x96xf32> to vector<64x96xf32>
      %315 = arith.mulf %314, %311 : vector<64x96xf32>
      %316 = arith.addf %313, %315 : vector<64x96xf32>
      %317 = arith.index_cast %294 : i32 to index
      %c0_309 = arith.constant 0 : index
      %318 = vector.load %arg26[%317, %c0_309] : memref<128x96xf32, #tpu.memory_space<vmem>>, vector<64x96xf32>
      tpu.vector_store %arg26[%317, %c0_309], %316 {strides = array<i32>} : memref<128x96xf32, #tpu.memory_space<vmem>>, vector<64x96xf32>,
    }
    %c2_i32_153 = arith.constant 2 : i32
    %c0_i32_154 = arith.constant 0 : i32
    %c0_i32_155 = arith.constant 0 : i32
    %c0_i32_156 = arith.constant 0 : i32
    %c0_i32_157 = arith.constant 0 : i32
    %126 = tpu.memref_slice %arg4[%c0_i32_156, %c0_i32_157] : memref<128x128xi8, #tpu.memory_space<any>> -> memref<64x128xi8, #tpu.memory_space<any>>
    %c0_i32_158 = arith.constant 0 : i32
    %c0_i32_159 = arith.constant 0 : i32
    %127 = tpu.memref_slice %arg22[%c0_i32_154, %c0_i32_158, %c0_i32_159] : memref<2x64x128xi8, #tpu.memory_space<vmem>> -> memref<1x64x128xi8, #tpu.memory_space<vmem>>
    %128 = tpu.memref_squeeze %127 : memref<1x64x128xi8, #tpu.memory_space<vmem>> -> memref<64x128xi8, #tpu.memory_space<vmem>>
    %129 = tpu.memref_slice %arg23[%c0_i32_155] : memref<2x!tpu.dma_semaphore, #tpu.memory_space<semaphore_mem>> -> memref<1x!tpu.dma_semaphore, #tpu.memory_space<semaphore_mem>>
    %130 = tpu.memref_squeeze %129 : memref<1x!tpu.dma_semaphore, #tpu.memory_space<semaphore_mem>> -> memref<!tpu.dma_semaphore, #tpu.memory_space<semaphore_mem>>
    tpu.enqueue_dma source(%126 : memref<64x128xi8, #tpu.memory_space<any>>) target(%128 : memref<64x128xi8, #tpu.memory_space<vmem>>) target_semaphore(%130 : memref<!tpu.dma_semaphore, #tpu.memory_space<semaphore_mem>>)
    %c0_160 = arith.constant 0 : index
    %c0_161 = arith.constant 0 : index
    %131 = vector.load %arg26[%c0_160, %c0_161] : memref<128x96xf32, #tpu.memory_space<vmem>>, vector<128x96xf32>
    %c1_162 = arith.constant 1 : index
    %c0_163 = arith.constant 0 : index
    %c0_164 = arith.constant 0 : index
    %132 = vector.load %arg14[%c1_162, %c0_163, %c0_164] : memref<3x96x32xf32, #tpu.memory_space<vmem>>, vector<1x96x32xf32>
    %133 = vector.shape_cast %132 : vector<1x96x32xf32> to vector<96x32xf32>
    %cst_165 = arith.constant dense<0.000000e+00> : vector<128x32xf32>
    %134 = tpu.matmul %131, %133, %cst_165 {dimension_numbers = #tpu.dot_dimension_numbers<[1], [0], [0], [1], [0, 0, 1, 1], [], []>} : vector<128x96xf32>, vector<96x32xf32>, vector<128x32xf32> -> vector<128x32xf32>
    %c1_166 = arith.constant 1 : index
    %c0_167 = arith.constant 0 : index
    %c0_168 = arith.constant 0 : index
    %135 = vector.load %arg15[%c1_166, %c0_167, %c0_168] : memref<3x1x32xf32, #tpu.memory_space<vmem>>, vector<1x1x32xf32>
    %136 = vector.shape_cast %135 : vector<1x1x32xf32> to vector<1x32xf32>
    %137 = vector.broadcast %136 : vector<1x32xf32> to vector<128x32xf32>
    %138 = arith.addf %134, %137 : vector<128x32xf32>
    %cst_169 = arith.constant 0.000000e+00 : f32
    %139 = vector.broadcast %cst_169 : f32 to vector<128x32xf32>
    %140 = arith.maximumf %138, %139 : vector<128x32xf32>
    %c1_170 = arith.constant 1 : index
    %c0_171 = arith.constant 0 : index
    %c0_172 = arith.constant 0 : index
    %141 = vector.load %arg28[%c1_170, %c0_171, %c0_172] : memref<3x128x32xf32, #tpu.memory_space<vmem>>, vector<1x128x32xf32>
    %142 = vector.shape_cast %141 : vector<1x128x32xf32> to vector<128x32xf32>
    %143 = vector.shape_cast %140 : vector<128x32xf32> to vector<1x128x32xf32>
    tpu.vector_store %arg28[%c1_170, %c0_171, %c0_172], %143 {strides = array<i32>} : memref<3x128x32xf32, #tpu.memory_space<vmem>>, vector<1x128x32xf32>,
    %c2_173 = arith.constant 2 : index
    %c0_174 = arith.constant 0 : index
    %c0_175 = arith.constant 0 : index
    %144 = vector.load %arg5[%c2_173, %c0_174, %c0_175] : memref<3x128x1xf32, #tpu.memory_space<vmem>>, vector<1x128x1xf32>
    %145 = vector.shape_cast %144 : vector<1x128x1xf32> to vector<128x1xf32>
    %c2_176 = arith.constant 2 : index
    %c0_177 = arith.constant 0 : index
    %c0_178 = arith.constant 0 : index
    %c0_179 = arith.constant 0 : index
    %146 = vector.load %arg6[%c2_176, %c0_177, %c0_178, %c0_179] : memref<3x3x1x96xf32, #tpu.memory_space<vmem>>, vector<1x1x1x96xf32>
    %147 = vector.shape_cast %146 : vector<1x1x1x96xf32> to vector<1x96xf32>
    %c2_180 = arith.constant 2 : index
    %c0_181 = arith.constant 0 : index
    %c0_182 = arith.constant 0 : index
    %c0_183 = arith.constant 0 : index
    %148 = vector.load %arg7[%c2_180, %c0_181, %c0_182, %c0_183] : memref<3x3x1x96xf32, #tpu.memory_space<vmem>>, vector<1x1x1x96xf32>
    %149 = vector.shape_cast %148 : vector<1x1x1x96xf32> to vector<1x96xf32>
    %150 = arith.mulf %147, %149 : vector<1x96xf32>
    %c0_184 = arith.constant 0 : index
    %c0_185 = arith.constant 0 : index
    %151 = vector.load %arg24[%c0_184, %c0_185] : memref<128x96xf32, #tpu.memory_space<vmem>>, vector<128x96xf32>
    %152 = vector.broadcast %150 : vector<1x96xf32> to vector<128x96xf32>
    %153 = arith.mulf %151, %152 : vector<128x96xf32>
    %c2_186 = arith.constant 2 : index
    %c0_187 = arith.constant 0 : index
    %c0_188 = arith.constant 0 : index
    %154 = vector.load %arg8[%c2_186, %c0_187, %c0_188] : memref<3x96x96xf32, #tpu.memory_space<vmem>>, vector<1x96x96xf32>
    %155 = vector.shape_cast %154 : vector<1x96x96xf32> to vector<96x96xf32>
    %cst_189 = arith.constant dense<0.000000e+00> : vector<128x96xf32>
    %156 = tpu.matmul %153, %155, %cst_189 {dimension_numbers = #tpu.dot_dimension_numbers<[1], [0], [0], [1], [0, 0, 1, 1], [], []>} : vector<128x96xf32>, vector<96x96xf32>, vector<128x96xf32> -> vector<128x96xf32>
    %c2_190 = arith.constant 2 : index
    %c0_191 = arith.constant 0 : index
    %c0_192 = arith.constant 0 : index
    %157 = vector.load %arg9[%c2_190, %c0_191, %c0_192] : memref<3x1x96xf32, #tpu.memory_space<vmem>>, vector<1x1x96xf32>
    %158 = vector.shape_cast %157 : vector<1x1x96xf32> to vector<1x96xf32>
    %159 = vector.broadcast %158 : vector<1x96xf32> to vector<128x96xf32>
    %160 = arith.addf %156, %159 : vector<128x96xf32>
    %c0_193 = arith.constant 0 : index
    %c0_194 = arith.constant 0 : index
    %161 = vector.load %arg26[%c0_193, %c0_194] : memref<128x96xf32, #tpu.memory_space<vmem>>, vector<128x96xf32>
    tpu.vector_store %arg26[%c0_193, %c0_194], %160 {strides = array<i32>} : memref<128x96xf32, #tpu.memory_space<vmem>>, vector<128x96xf32>,
    %c0_195 = arith.constant 0 : index
    %c0_196 = arith.constant 0 : index
    %162 = vector.load %arg24[%c0_195, %c0_196] : memref<128x96xf32, #tpu.memory_space<vmem>>, vector<128x96xf32>
    %163 = vector.broadcast %145 : vector<128x1xf32> to vector<128x96xf32>
    %164 = arith.mulf %162, %163 : vector<128x96xf32>
    %165 = arith.truncf %164 : vector<128x96xf32> to vector<128x96xbf16>
    %c0_197 = arith.constant 0 : index
    %c0_198 = arith.constant 0 : index
    %166 = vector.load %arg27[%c0_197, %c0_198] : memref<128x96xbf16, #tpu.memory_space<vmem>>, vector<128x96xbf16>
    tpu.vector_store %arg27[%c0_197, %c0_198], %165 {strides = array<i32>} : memref<128x96xbf16, #tpu.memory_space<vmem>>, vector<128x96xbf16>,
    %c2_199 = arith.constant 2 : index
    %c1_200 = arith.constant 1 : index
    %c0_201 = arith.constant 0 : index
    %c0_202 = arith.constant 0 : index
    %167 = vector.load %arg7[%c2_199, %c1_200, %c0_201, %c0_202] : memref<3x3x1x96xf32, #tpu.memory_space<vmem>>, vector<1x1x1x96xf32>
    %168 = vector.shape_cast %167 : vector<1x1x1x96xf32> to vector<1x96xf32>
    %c2_203 = arith.constant 2 : index
    %c1_204 = arith.constant 1 : index
    %c0_205 = arith.constant 0 : index
    %c0_206 = arith.constant 0 : index
    %169 = vector.load %arg6[%c2_203, %c1_204, %c0_205, %c0_206] : memref<3x3x1x96xf32, #tpu.memory_space<vmem>>, vector<1x1x1x96xf32>
    %170 = vector.shape_cast %169 : vector<1x1x1x96xf32> to vector<1x96xf32>
    %c0_i32_207 = arith.constant 0 : i32
    %c2_i32_208 = arith.constant 2 : i32
    %171 = arith.addi %c0_i32_207, %c2_i32_208 : i32
    %c1_i32_209 = arith.constant 1 : i32
    scf.for %arg29 = %c0_i32_207 to %171 step %c1_i32_209  : i32 {
      %c0_i32_291 = arith.constant 0 : i32
      %282 = arith.addi %arg29, %c0_i32_291 : i32
      %c2_i32_292 = arith.constant 2 : i32
      %283 = arith.remsi %282, %c2_i32_292 : i32
      %c0_i32_293 = arith.constant 0 : i32
      %c0_i32_294 = arith.constant 0 : i32
      %284 = tpu.memref_slice %arg4[%c0_i32_293, %c0_i32_294] : memref<128x128xi8, #tpu.memory_space<any>> -> memref<64x128xi8, #tpu.memory_space<any>>
      %c0_i32_295 = arith.constant 0 : i32
      %c0_i32_296 = arith.constant 0 : i32
      %285 = tpu.memref_slice %arg22[%283, %c0_i32_295, %c0_i32_296] : memref<2x64x128xi8, #tpu.memory_space<vmem>> -> memref<1x64x128xi8, #tpu.memory_space<vmem>>
      %286 = tpu.memref_squeeze %285 : memref<1x64x128xi8, #tpu.memory_space<vmem>> -> memref<64x128xi8, #tpu.memory_space<vmem>>
      %287 = tpu.memref_slice %arg23[%283] : memref<2x!tpu.dma_semaphore, #tpu.memory_space<semaphore_mem>> -> memref<1x!tpu.dma_semaphore, #tpu.memory_space<semaphore_mem>>
      %288 = tpu.memref_squeeze %287 : memref<1x!tpu.dma_semaphore, #tpu.memory_space<semaphore_mem>> -> memref<!tpu.dma_semaphore, #tpu.memory_space<semaphore_mem>>
      tpu.wait_dma2 semaphore(%288 : memref<!tpu.dma_semaphore, #tpu.memory_space<semaphore_mem>>) src(%284 : memref<64x128xi8, #tpu.memory_space<any>>) dst(%286 : memref<64x128xi8, #tpu.memory_space<vmem>>)
      %c1_i32_297 = arith.constant 1 : i32
      %289 = arith.addi %arg29, %c1_i32_297 : i32
      %c2_i32_298 = arith.constant 2 : i32
      %290 = arith.cmpi slt, %289, %c2_i32_298 : i32
      %291 = arith.extui %290 : i1 to i32
      %c0_i32_299 = arith.constant 0 : i32
      %292 = arith.cmpi ne, %291, %c0_i32_299 : i32
      scf.if %292 {
        %c1_i32_311 = arith.constant 1 : i32
        %321 = arith.addi %arg29, %c1_i32_311 : i32
        %c64_i32_312 = arith.constant 64 : i32
        %322 = arith.muli %321, %c64_i32_312 : i32
        %323 = tpu.assume_multiple %322, 64 : i32
        %c1_i32_313 = arith.constant 1 : i32
        %324 = arith.subi %c1_i32_313, %283 : i32
        %c0_i32_314 = arith.constant 0 : i32
        %325 = tpu.memref_slice %arg4[%323, %c0_i32_314] : memref<128x128xi8, #tpu.memory_space<any>> -> memref<64x128xi8, #tpu.memory_space<any>>
        %c0_i32_315 = arith.constant 0 : i32
        %c0_i32_316 = arith.constant 0 : i32
        %326 = tpu.memref_slice %arg22[%324, %c0_i32_315, %c0_i32_316] : memref<2x64x128xi8, #tpu.memory_space<vmem>> -> memref<1x64x128xi8, #tpu.memory_space<vmem>>
        %327 = tpu.memref_squeeze %326 : memref<1x64x128xi8, #tpu.memory_space<vmem>> -> memref<64x128xi8, #tpu.memory_space<vmem>>
        %328 = tpu.memref_slice %arg23[%324] : memref<2x!tpu.dma_semaphore, #tpu.memory_space<semaphore_mem>> -> memref<1x!tpu.dma_semaphore, #tpu.memory_space<semaphore_mem>>
        %329 = tpu.memref_squeeze %328 : memref<1x!tpu.dma_semaphore, #tpu.memory_space<semaphore_mem>> -> memref<!tpu.dma_semaphore, #tpu.memory_space<semaphore_mem>>
        tpu.enqueue_dma source(%325 : memref<64x128xi8, #tpu.memory_space<any>>) target(%327 : memref<64x128xi8, #tpu.memory_space<vmem>>) target_semaphore(%329 : memref<!tpu.dma_semaphore, #tpu.memory_space<semaphore_mem>>)
      } else {
      }
      %c64_i32 = arith.constant 64 : i32
      %293 = arith.muli %arg29, %c64_i32 : i32
      %294 = tpu.assume_multiple %293, 64 : i32
      %295 = arith.index_cast %283 : i32 to index
      %c0_300 = arith.constant 0 : index
      %c0_301 = arith.constant 0 : index
      %296 = vector.load %arg22[%295, %c0_300, %c0_301] : memref<2x64x128xi8, #tpu.memory_space<vmem>>, vector<1x64x128xi8>
      %297 = vector.shape_cast %296 : vector<1x64x128xi8> to vector<64x128xi8>
      %298 = arith.sitofp %297 : vector<64x128xi8> to vector<64x128xf32>
      %299 = arith.truncf %298 : vector<64x128xf32> to vector<64x128xbf16>
      %c0_302 = arith.constant 0 : index
      %c0_303 = arith.constant 0 : index
      %300 = vector.load %arg27[%c0_302, %c0_303] : memref<128x96xbf16, #tpu.memory_space<vmem>>, vector<128x96xbf16>
      %cst_304 = arith.constant dense<0.000000e+00> : vector<64x96xf32>
      %301 = tpu.matmul %299, %300, %cst_304 {dimension_numbers = #tpu.dot_dimension_numbers<[1], [0], [0], [1], [0, 0, 1, 1], [], []>} : vector<64x128xbf16>, vector<128x96xbf16>, vector<64x96xf32> -> vector<64x96xf32>
      %c2_305 = arith.constant 2 : index
      %302 = arith.index_cast %294 : i32 to index
      %c0_306 = arith.constant 0 : index
      %303 = vector.load %arg5[%c2_305, %302, %c0_306] : memref<3x128x1xf32, #tpu.memory_space<vmem>>, vector<1x64x1xf32>
      %304 = vector.shape_cast %303 : vector<1x64x1xf32> to vector<64x1xf32>
      %305 = arith.index_cast %294 : i32 to index
      %c0_307 = arith.constant 0 : index
      %306 = vector.load %arg24[%305, %c0_307] : memref<128x96xf32, #tpu.memory_space<vmem>>, vector<64x96xf32>
      %307 = vector.broadcast %304 : vector<64x1xf32> to vector<64x96xf32>
      %308 = arith.mulf %301, %307 : vector<64x96xf32>
      %309 = vector.broadcast %168 : vector<1x96xf32> to vector<64x96xf32>
      %310 = arith.mulf %308, %309 : vector<64x96xf32>
      %311 = arith.subf %306, %310 : vector<64x96xf32>
      %312 = arith.index_cast %294 : i32 to index
      %c0_308 = arith.constant 0 : index
      %313 = vector.load %arg26[%312, %c0_308] : memref<128x96xf32, #tpu.memory_space<vmem>>, vector<64x96xf32>
      %314 = vector.broadcast %170 : vector<1x96xf32> to vector<64x96xf32>
      %315 = arith.mulf %314, %311 : vector<64x96xf32>
      %316 = arith.addf %313, %315 : vector<64x96xf32>
      %317 = arith.index_cast %294 : i32 to index
      %c0_309 = arith.constant 0 : index
      %318 = vector.load %arg26[%317, %c0_309] : memref<128x96xf32, #tpu.memory_space<vmem>>, vector<64x96xf32>
      tpu.vector_store %arg26[%317, %c0_309], %316 {strides = array<i32>} : memref<128x96xf32, #tpu.memory_space<vmem>>, vector<64x96xf32>,
      %319 = arith.index_cast %294 : i32 to index
      %c0_310 = arith.constant 0 : index
      %320 = vector.load %arg25[%319, %c0_310] : memref<128x96xf32, #tpu.memory_space<vmem>>, vector<64x96xf32>
      tpu.vector_store %arg25[%319, %c0_310], %311 {strides = array<i32>} : memref<128x96xf32, #tpu.memory_space<vmem>>, vector<64x96xf32>,
    }
    %c2_i32_210 = arith.constant 2 : i32
    %c0_i32_211 = arith.constant 0 : i32
    %c0_i32_212 = arith.constant 0 : i32
    %c0_i32_213 = arith.constant 0 : i32
    %c0_i32_214 = arith.constant 0 : i32
    %172 = tpu.memref_slice %arg4[%c0_i32_213, %c0_i32_214] : memref<128x128xi8, #tpu.memory_space<any>> -> memref<64x128xi8, #tpu.memory_space<any>>
    %c0_i32_215 = arith.constant 0 : i32
    %c0_i32_216 = arith.constant 0 : i32
    %173 = tpu.memref_slice %arg22[%c0_i32_211, %c0_i32_215, %c0_i32_216] : memref<2x64x128xi8, #tpu.memory_space<vmem>> -> memref<1x64x128xi8, #tpu.memory_space<vmem>>
    %174 = tpu.memref_squeeze %173 : memref<1x64x128xi8, #tpu.memory_space<vmem>> -> memref<64x128xi8, #tpu.memory_space<vmem>>
    %175 = tpu.memref_slice %arg23[%c0_i32_212] : memref<2x!tpu.dma_semaphore, #tpu.memory_space<semaphore_mem>> -> memref<1x!tpu.dma_semaphore, #tpu.memory_space<semaphore_mem>>
    %176 = tpu.memref_squeeze %175 : memref<1x!tpu.dma_semaphore, #tpu.memory_space<semaphore_mem>> -> memref<!tpu.dma_semaphore, #tpu.memory_space<semaphore_mem>>
    tpu.enqueue_dma source(%172 : memref<64x128xi8, #tpu.memory_space<any>>) target(%174 : memref<64x128xi8, #tpu.memory_space<vmem>>) target_semaphore(%176 : memref<!tpu.dma_semaphore, #tpu.memory_space<semaphore_mem>>)
    %c0_217 = arith.constant 0 : index
    %c0_218 = arith.constant 0 : index
    %177 = vector.load %arg25[%c0_217, %c0_218] : memref<128x96xf32, #tpu.memory_space<vmem>>, vector<128x96xf32>
    %178 = vector.broadcast %145 : vector<128x1xf32> to vector<128x96xf32>
    %179 = arith.mulf %177, %178 : vector<128x96xf32>
    %180 = arith.truncf %179 : vector<128x96xf32> to vector<128x96xbf16>
    %c0_219 = arith.constant 0 : index
    %c0_220 = arith.constant 0 : index
    %181 = vector.load %arg27[%c0_219, %c0_220] : memref<128x96xbf16, #tpu.memory_space<vmem>>, vector<128x96xbf16>
    tpu.vector_store %arg27[%c0_219, %c0_220], %180 {strides = array<i32>} : memref<128x96xbf16, #tpu.memory_space<vmem>>, vector<128x96xbf16>,
    %c2_221 = arith.constant 2 : index
    %c2_222 = arith.constant 2 : index
    %c0_223 = arith.constant 0 : index
    %c0_224 = arith.constant 0 : index
    %182 = vector.load %arg7[%c2_221, %c2_222, %c0_223, %c0_224] : memref<3x3x1x96xf32, #tpu.memory_space<vmem>>, vector<1x1x1x96xf32>
    %183 = vector.shape_cast %182 : vector<1x1x1x96xf32> to vector<1x96xf32>
    %c2_225 = arith.constant 2 : index
    %c2_226 = arith.constant 2 : index
    %c0_227 = arith.constant 0 : index
    %c0_228 = arith.constant 0 : index
    %184 = vector.load %arg6[%c2_225, %c2_226, %c0_227, %c0_228] : memref<3x3x1x96xf32, #tpu.memory_space<vmem>>, vector<1x1x1x96xf32>
    %185 = vector.shape_cast %184 : vector<1x1x1x96xf32> to vector<1x96xf32>
    %c0_i32_229 = arith.constant 0 : i32
    %c2_i32_230 = arith.constant 2 : i32
    %186 = arith.addi %c0_i32_229, %c2_i32_230 : i32
    %c1_i32_231 = arith.constant 1 : i32
    scf.for %arg29 = %c0_i32_229 to %186 step %c1_i32_231  : i32 {
      %c0_i32_291 = arith.constant 0 : i32
      %282 = arith.addi %arg29, %c0_i32_291 : i32
      %c2_i32_292 = arith.constant 2 : i32
      %283 = arith.remsi %282, %c2_i32_292 : i32
      %c0_i32_293 = arith.constant 0 : i32
      %c0_i32_294 = arith.constant 0 : i32
      %284 = tpu.memref_slice %arg4[%c0_i32_293, %c0_i32_294] : memref<128x128xi8, #tpu.memory_space<any>> -> memref<64x128xi8, #tpu.memory_space<any>>
      %c0_i32_295 = arith.constant 0 : i32
      %c0_i32_296 = arith.constant 0 : i32
      %285 = tpu.memref_slice %arg22[%283, %c0_i32_295, %c0_i32_296] : memref<2x64x128xi8, #tpu.memory_space<vmem>> -> memref<1x64x128xi8, #tpu.memory_space<vmem>>
      %286 = tpu.memref_squeeze %285 : memref<1x64x128xi8, #tpu.memory_space<vmem>> -> memref<64x128xi8, #tpu.memory_space<vmem>>
      %287 = tpu.memref_slice %arg23[%283] : memref<2x!tpu.dma_semaphore, #tpu.memory_space<semaphore_mem>> -> memref<1x!tpu.dma_semaphore, #tpu.memory_space<semaphore_mem>>
      %288 = tpu.memref_squeeze %287 : memref<1x!tpu.dma_semaphore, #tpu.memory_space<semaphore_mem>> -> memref<!tpu.dma_semaphore, #tpu.memory_space<semaphore_mem>>
      tpu.wait_dma2 semaphore(%288 : memref<!tpu.dma_semaphore, #tpu.memory_space<semaphore_mem>>) src(%284 : memref<64x128xi8, #tpu.memory_space<any>>) dst(%286 : memref<64x128xi8, #tpu.memory_space<vmem>>)
      %c1_i32_297 = arith.constant 1 : i32
      %289 = arith.addi %arg29, %c1_i32_297 : i32
      %c2_i32_298 = arith.constant 2 : i32
      %290 = arith.cmpi slt, %289, %c2_i32_298 : i32
      %291 = arith.extui %290 : i1 to i32
      %c0_i32_299 = arith.constant 0 : i32
      %292 = arith.cmpi ne, %291, %c0_i32_299 : i32
      scf.if %292 {
        %c1_i32_310 = arith.constant 1 : i32
        %319 = arith.addi %arg29, %c1_i32_310 : i32
        %c64_i32_311 = arith.constant 64 : i32
        %320 = arith.muli %319, %c64_i32_311 : i32
        %321 = tpu.assume_multiple %320, 64 : i32
        %c1_i32_312 = arith.constant 1 : i32
        %322 = arith.subi %c1_i32_312, %283 : i32
        %c0_i32_313 = arith.constant 0 : i32
        %323 = tpu.memref_slice %arg4[%321, %c0_i32_313] : memref<128x128xi8, #tpu.memory_space<any>> -> memref<64x128xi8, #tpu.memory_space<any>>
        %c0_i32_314 = arith.constant 0 : i32
        %c0_i32_315 = arith.constant 0 : i32
        %324 = tpu.memref_slice %arg22[%322, %c0_i32_314, %c0_i32_315] : memref<2x64x128xi8, #tpu.memory_space<vmem>> -> memref<1x64x128xi8, #tpu.memory_space<vmem>>
        %325 = tpu.memref_squeeze %324 : memref<1x64x128xi8, #tpu.memory_space<vmem>> -> memref<64x128xi8, #tpu.memory_space<vmem>>
        %326 = tpu.memref_slice %arg23[%322] : memref<2x!tpu.dma_semaphore, #tpu.memory_space<semaphore_mem>> -> memref<1x!tpu.dma_semaphore, #tpu.memory_space<semaphore_mem>>
        %327 = tpu.memref_squeeze %326 : memref<1x!tpu.dma_semaphore, #tpu.memory_space<semaphore_mem>> -> memref<!tpu.dma_semaphore, #tpu.memory_space<semaphore_mem>>
        tpu.enqueue_dma source(%323 : memref<64x128xi8, #tpu.memory_space<any>>) target(%325 : memref<64x128xi8, #tpu.memory_space<vmem>>) target_semaphore(%327 : memref<!tpu.dma_semaphore, #tpu.memory_space<semaphore_mem>>)
      } else {
      }
      %c64_i32 = arith.constant 64 : i32
      %293 = arith.muli %arg29, %c64_i32 : i32
      %294 = tpu.assume_multiple %293, 64 : i32
      %295 = arith.index_cast %283 : i32 to index
      %c0_300 = arith.constant 0 : index
      %c0_301 = arith.constant 0 : index
      %296 = vector.load %arg22[%295, %c0_300, %c0_301] : memref<2x64x128xi8, #tpu.memory_space<vmem>>, vector<1x64x128xi8>
      %297 = vector.shape_cast %296 : vector<1x64x128xi8> to vector<64x128xi8>
      %298 = arith.sitofp %297 : vector<64x128xi8> to vector<64x128xf32>
      %299 = arith.truncf %298 : vector<64x128xf32> to vector<64x128xbf16>
      %c0_302 = arith.constant 0 : index
      %c0_303 = arith.constant 0 : index
      %300 = vector.load %arg27[%c0_302, %c0_303] : memref<128x96xbf16, #tpu.memory_space<vmem>>, vector<128x96xbf16>
      %cst_304 = arith.constant dense<0.000000e+00> : vector<64x96xf32>
      %301 = tpu.matmul %299, %300, %cst_304 {dimension_numbers = #tpu.dot_dimension_numbers<[1], [0], [0], [1], [0, 0, 1, 1], [], []>} : vector<64x128xbf16>, vector<128x96xbf16>, vector<64x96xf32> -> vector<64x96xf32>
      %c2_305 = arith.constant 2 : index
      %302 = arith.index_cast %294 : i32 to index
      %c0_306 = arith.constant 0 : index
      %303 = vector.load %arg5[%c2_305, %302, %c0_306] : memref<3x128x1xf32, #tpu.memory_space<vmem>>, vector<1x64x1xf32>
      %304 = vector.shape_cast %303 : vector<1x64x1xf32> to vector<64x1xf32>
      %305 = arith.index_cast %294 : i32 to index
      %c0_307 = arith.constant 0 : index
      %306 = vector.load %arg25[%305, %c0_307] : memref<128x96xf32, #tpu.memory_space<vmem>>, vector<64x96xf32>
      %307 = vector.broadcast %304 : vector<64x1xf32> to vector<64x96xf32>
      %308 = arith.mulf %301, %307 : vector<64x96xf32>
      %309 = vector.broadcast %183 : vector<1x96xf32> to vector<64x96xf32>
      %310 = arith.mulf %308, %309 : vector<64x96xf32>
      %311 = arith.subf %306, %310 : vector<64x96xf32>
      %312 = arith.index_cast %294 : i32 to index
      %c0_308 = arith.constant 0 : index
      %313 = vector.load %arg26[%312, %c0_308] : memref<128x96xf32, #tpu.memory_space<vmem>>, vector<64x96xf32>
      %314 = vector.broadcast %185 : vector<1x96xf32> to vector<64x96xf32>
      %315 = arith.mulf %314, %311 : vector<64x96xf32>
      %316 = arith.addf %313, %315 : vector<64x96xf32>
      %317 = arith.index_cast %294 : i32 to index
      %c0_309 = arith.constant 0 : index
      %318 = vector.load %arg26[%317, %c0_309] : memref<128x96xf32, #tpu.memory_space<vmem>>, vector<64x96xf32>
      tpu.vector_store %arg26[%317, %c0_309], %316 {strides = array<i32>} : memref<128x96xf32, #tpu.memory_space<vmem>>, vector<64x96xf32>,
    }
    %c2_i32_232 = arith.constant 2 : i32
    %c0_233 = arith.constant 0 : index
    %c0_234 = arith.constant 0 : index
    %187 = vector.load %arg26[%c0_233, %c0_234] : memref<128x96xf32, #tpu.memory_space<vmem>>, vector<128x96xf32>
    %c2_235 = arith.constant 2 : index
    %c0_236 = arith.constant 0 : index
    %c0_237 = arith.constant 0 : index
    %188 = vector.load %arg14[%c2_235, %c0_236, %c0_237] : memref<3x96x32xf32, #tpu.memory_space<vmem>>, vector<1x96x32xf32>
    %189 = vector.shape_cast %188 : vector<1x96x32xf32> to vector<96x32xf32>
    %cst_238 = arith.constant dense<0.000000e+00> : vector<128x32xf32>
    %190 = tpu.matmul %187, %189, %cst_238 {dimension_numbers = #tpu.dot_dimension_numbers<[1], [0], [0], [1], [0, 0, 1, 1], [], []>} : vector<128x96xf32>, vector<96x32xf32>, vector<128x32xf32> -> vector<128x32xf32>
    %c2_239 = arith.constant 2 : index
    %c0_240 = arith.constant 0 : index
    %c0_241 = arith.constant 0 : index
    %191 = vector.load %arg15[%c2_239, %c0_240, %c0_241] : memref<3x1x32xf32, #tpu.memory_space<vmem>>, vector<1x1x32xf32>
    %192 = vector.shape_cast %191 : vector<1x1x32xf32> to vector<1x32xf32>
    %193 = vector.broadcast %192 : vector<1x32xf32> to vector<128x32xf32>
    %194 = arith.addf %190, %193 : vector<128x32xf32>
    %cst_242 = arith.constant 0.000000e+00 : f32
    %195 = vector.broadcast %cst_242 : f32 to vector<128x32xf32>
    %196 = arith.maximumf %194, %195 : vector<128x32xf32>
    %c2_243 = arith.constant 2 : index
    %c0_244 = arith.constant 0 : index
    %c0_245 = arith.constant 0 : index
    %197 = vector.load %arg28[%c2_243, %c0_244, %c0_245] : memref<3x128x32xf32, #tpu.memory_space<vmem>>, vector<1x128x32xf32>
    %198 = vector.shape_cast %197 : vector<1x128x32xf32> to vector<128x32xf32>
    %199 = vector.shape_cast %196 : vector<128x32xf32> to vector<1x128x32xf32>
    tpu.vector_store %arg28[%c2_243, %c0_244, %c0_245], %199 {strides = array<i32>} : memref<3x128x32xf32, #tpu.memory_space<vmem>>, vector<1x128x32xf32>,
    %c0_246 = arith.constant 0 : index
    %c0_247 = arith.constant 0 : index
    %200 = vector.load %arg16[%c0_246, %c0_247] : memref<32x32xf32, #tpu.memory_space<vmem>>, vector<32x32xf32>
    %c0_248 = arith.constant 0 : index
    %c0_249 = arith.constant 0 : index
    %201 = vector.load %arg17[%c0_248, %c0_249] : memref<1x32xf32, #tpu.memory_space<vmem>>, vector<1x32xf32>
    %c0_250 = arith.constant 0 : index
    %c0_251 = arith.constant 0 : index
    %202 = vector.load %arg18[%c0_250, %c0_251] : memref<1x32xf32, #tpu.memory_space<vmem>>, vector<1x32xf32>
    %c0_252 = arith.constant 0 : index
    %c0_253 = arith.constant 0 : index
    %c0_254 = arith.constant 0 : index
    %203 = vector.load %arg28[%c0_252, %c0_253, %c0_254] : memref<3x128x32xf32, #tpu.memory_space<vmem>>, vector<1x128x32xf32>
    %204 = vector.shape_cast %203 : vector<1x128x32xf32> to vector<128x32xf32>
    %cst_255 = arith.constant dense<0.000000e+00> : vector<128x32xf32>
    %205 = tpu.matmul %204, %200, %cst_255 {dimension_numbers = #tpu.dot_dimension_numbers<[1], [0], [0], [1], [0, 0, 1, 1], [], []>} : vector<128x32xf32>, vector<32x32xf32>, vector<128x32xf32> -> vector<128x32xf32>
    %206 = vector.broadcast %201 : vector<1x32xf32> to vector<128x32xf32>
    %207 = arith.addf %205, %206 : vector<128x32xf32>
    %208 = math.tanh %207 : vector<128x32xf32>
    %209 = vector.broadcast %202 : vector<1x32xf32> to vector<128x32xf32>
    %210 = arith.mulf %208, %209 : vector<128x32xf32>
    %cst_256 = arith.constant dense<0.000000e+00> : vector<128xf32>
    %211 = vector.multi_reduction <add>, %210, %cst_256 [1] : vector<128x32xf32> to vector<128xf32>
    %212 = vector.shape_cast %211 : vector<128xf32> to vector<128x1xf32>
    %cst_257 = arith.constant dense<0.000000e+00> : vector<1xf32>
    %213 = vector.multi_reduction <add>, %212, %cst_257 [0] : vector<128x1xf32> to vector<1xf32>
    %214 = vector.shape_cast %213 : vector<1xf32> to vector<1x1xf32>
    %cst_258 = arith.constant 1.280000e+02 : f32
    %215 = vector.broadcast %cst_258 : f32 to vector<1x1xf32>
    %216 = arith.divf %214, %215 : vector<1x1xf32>
    %c1_259 = arith.constant 1 : index
    %c0_260 = arith.constant 0 : index
    %c0_261 = arith.constant 0 : index
    %217 = vector.load %arg28[%c1_259, %c0_260, %c0_261] : memref<3x128x32xf32, #tpu.memory_space<vmem>>, vector<1x128x32xf32>
    %218 = vector.shape_cast %217 : vector<1x128x32xf32> to vector<128x32xf32>
    %cst_262 = arith.constant dense<0.000000e+00> : vector<128x32xf32>
    %219 = tpu.matmul %218, %200, %cst_262 {dimension_numbers = #tpu.dot_dimension_numbers<[1], [0], [0], [1], [0, 0, 1, 1], [], []>} : vector<128x32xf32>, vector<32x32xf32>, vector<128x32xf32> -> vector<128x32xf32>
    %220 = vector.broadcast %201 : vector<1x32xf32> to vector<128x32xf32>
    %221 = arith.addf %219, %220 : vector<128x32xf32>
    %222 = math.tanh %221 : vector<128x32xf32>
    %223 = vector.broadcast %202 : vector<1x32xf32> to vector<128x32xf32>
    %224 = arith.mulf %222, %223 : vector<128x32xf32>
    %cst_263 = arith.constant dense<0.000000e+00> : vector<128xf32>
    %225 = vector.multi_reduction <add>, %224, %cst_263 [1] : vector<128x32xf32> to vector<128xf32>
    %226 = vector.shape_cast %225 : vector<128xf32> to vector<128x1xf32>
    %cst_264 = arith.constant dense<0.000000e+00> : vector<1xf32>
    %227 = vector.multi_reduction <add>, %226, %cst_264 [0] : vector<128x1xf32> to vector<1xf32>
    %228 = vector.shape_cast %227 : vector<1xf32> to vector<1x1xf32>
    %cst_265 = arith.constant 1.280000e+02 : f32
    %229 = vector.broadcast %cst_265 : f32 to vector<1x1xf32>
    %230 = arith.divf %228, %229 : vector<1x1xf32>
    %c2_266 = arith.constant 2 : index
    %c0_267 = arith.constant 0 : index
    %c0_268 = arith.constant 0 : index
    %231 = vector.load %arg28[%c2_266, %c0_267, %c0_268] : memref<3x128x32xf32, #tpu.memory_space<vmem>>, vector<1x128x32xf32>
    %232 = vector.shape_cast %231 : vector<1x128x32xf32> to vector<128x32xf32>
    %cst_269 = arith.constant dense<0.000000e+00> : vector<128x32xf32>
    %233 = tpu.matmul %232, %200, %cst_269 {dimension_numbers = #tpu.dot_dimension_numbers<[1], [0], [0], [1], [0, 0, 1, 1], [], []>} : vector<128x32xf32>, vector<32x32xf32>, vector<128x32xf32> -> vector<128x32xf32>
    %234 = vector.broadcast %201 : vector<1x32xf32> to vector<128x32xf32>
    %235 = arith.addf %233, %234 : vector<128x32xf32>
    %236 = math.tanh %235 : vector<128x32xf32>
    %237 = vector.broadcast %202 : vector<1x32xf32> to vector<128x32xf32>
    %238 = arith.mulf %236, %237 : vector<128x32xf32>
    %cst_270 = arith.constant dense<0.000000e+00> : vector<128xf32>
    %239 = vector.multi_reduction <add>, %238, %cst_270 [1] : vector<128x32xf32> to vector<128xf32>
    %240 = vector.shape_cast %239 : vector<128xf32> to vector<128x1xf32>
    %cst_271 = arith.constant dense<0.000000e+00> : vector<1xf32>
    %241 = vector.multi_reduction <add>, %240, %cst_271 [0] : vector<128x1xf32> to vector<1xf32>
    %242 = vector.shape_cast %241 : vector<1xf32> to vector<1x1xf32>
    %cst_272 = arith.constant 1.280000e+02 : f32
    %243 = vector.broadcast %cst_272 : f32 to vector<1x1xf32>
    %244 = arith.divf %242, %243 : vector<1x1xf32>
    %245 = arith.maximumf %216, %230 : vector<1x1xf32>
    %246 = arith.maximumf %245, %244 : vector<1x1xf32>
    %247 = arith.subf %216, %246 : vector<1x1xf32>
    %248 = math.exp %247 : vector<1x1xf32>
    %249 = arith.subf %230, %246 : vector<1x1xf32>
    %250 = math.exp %249 : vector<1x1xf32>
    %251 = arith.subf %244, %246 : vector<1x1xf32>
    %252 = math.exp %251 : vector<1x1xf32>
    %253 = arith.addf %248, %250 : vector<1x1xf32>
    %254 = arith.addf %253, %252 : vector<1x1xf32>
    %cst_273 = arith.constant 1.000000e+00 : f32
    %255 = vector.broadcast %cst_273 : f32 to vector<1x1xf32>
    %256 = arith.divf %255, %254 : vector<1x1xf32>
    %257 = arith.mulf %248, %256 : vector<1x1xf32>
    %c0_274 = arith.constant 0 : index
    %c0_275 = arith.constant 0 : index
    %c0_276 = arith.constant 0 : index
    %258 = vector.load %arg28[%c0_274, %c0_275, %c0_276] : memref<3x128x32xf32, #tpu.memory_space<vmem>>, vector<1x128x32xf32>
    %259 = vector.shape_cast %258 : vector<1x128x32xf32> to vector<128x32xf32>
    %260 = vector.broadcast %257 : vector<1x1xf32> to vector<128x32xf32>
    %261 = arith.mulf %260, %259 : vector<128x32xf32>
    %262 = arith.mulf %250, %256 : vector<1x1xf32>
    %c1_277 = arith.constant 1 : index
    %c0_278 = arith.constant 0 : index
    %c0_279 = arith.constant 0 : index
    %263 = vector.load %arg28[%c1_277, %c0_278, %c0_279] : memref<3x128x32xf32, #tpu.memory_space<vmem>>, vector<1x128x32xf32>
    %264 = vector.shape_cast %263 : vector<1x128x32xf32> to vector<128x32xf32>
    %265 = vector.broadcast %262 : vector<1x1xf32> to vector<128x32xf32>
    %266 = arith.mulf %265, %264 : vector<128x32xf32>
    %267 = arith.addf %261, %266 : vector<128x32xf32>
    %268 = arith.mulf %252, %256 : vector<1x1xf32>
    %c2_280 = arith.constant 2 : index
    %c0_281 = arith.constant 0 : index
    %c0_282 = arith.constant 0 : index
    %269 = vector.load %arg28[%c2_280, %c0_281, %c0_282] : memref<3x128x32xf32, #tpu.memory_space<vmem>>, vector<1x128x32xf32>
    %270 = vector.shape_cast %269 : vector<1x128x32xf32> to vector<128x32xf32>
    %271 = vector.broadcast %268 : vector<1x1xf32> to vector<128x32xf32>
    %272 = arith.mulf %271, %270 : vector<128x32xf32>
    %273 = arith.addf %267, %272 : vector<128x32xf32>
    %c0_283 = arith.constant 0 : index
    %c0_284 = arith.constant 0 : index
    %274 = vector.load %arg19[%c0_283, %c0_284] : memref<32x2xf32, #tpu.memory_space<vmem>>, vector<32x2xf32>
    %cst_285 = arith.constant dense<0.000000e+00> : vector<128x2xf32>
    %275 = tpu.matmul %273, %274, %cst_285 {dimension_numbers = #tpu.dot_dimension_numbers<[1], [0], [0], [1], [0, 0, 1, 1], [], []>} : vector<128x32xf32>, vector<32x2xf32>, vector<128x2xf32> -> vector<128x2xf32>
    %c0_286 = arith.constant 0 : index
    %c0_287 = arith.constant 0 : index
    %276 = vector.load %arg20[%c0_286, %c0_287] : memref<1x2xf32, #tpu.memory_space<vmem>>, vector<1x2xf32>
    %277 = vector.broadcast %276 : vector<1x2xf32> to vector<128x2xf32>
    %278 = arith.addf %275, %277 : vector<128x2xf32>
    %cst_288 = arith.constant 0.000000e+00 : f32
    %279 = vector.broadcast %cst_288 : f32 to vector<128x94xf32>
    %280 = tpu.concatenate %273, %278, %279 in 1 : vector<128x32xf32>, vector<128x2xf32>, vector<128x94xf32> -> vector<128x128xf32>
    %c0_289 = arith.constant 0 : index
    %c0_290 = arith.constant 0 : index
    %281 = vector.load %arg21[%c0_289, %c0_290] : memref<128x128xf32, #tpu.memory_space<vmem>>, vector<128x128xf32>
    tpu.vector_store %arg21[%c0_289, %c0_290], %280 {strides = array<i32>} : memref<128x128xf32, #tpu.memory_space<vmem>>, vector<128x128xf32>,
    return
  }
  func.func @transform_0(%arg0: i32) -> (i32, i32) {
    %c0_i32 = arith.constant 0 : i32
    %c0_i32_0 = arith.constant 0 : i32
    %c0_i32_1 = arith.constant 0 : i32
    return %c0_i32, %c0_i32_0 : i32, i32
  }
  func.func @transform_4(%arg0: i32) -> (i32, i32, i32) {
    %c0_i32 = arith.constant 0 : i32
    %c0_i32_0 = arith.constant 0 : i32
    %c0_i32_1 = arith.constant 0 : i32
    %c0_i32_2 = arith.constant 0 : i32
    return %c0_i32, %c0_i32_0, %c0_i32_1 : i32, i32, i32
  }
  func.func @transform_5(%arg0: i32) -> (i32, i32, i32, i32) {
    %c0_i32 = arith.constant 0 : i32
    %c0_i32_0 = arith.constant 0 : i32
    %c0_i32_1 = arith.constant 0 : i32
    %c0_i32_2 = arith.constant 0 : i32
    %c0_i32_3 = arith.constant 0 : i32
    return %c0_i32, %c0_i32_0, %c0_i32_1, %c0_i32_2 : i32, i32, i32, i32
  }
  func.func @transform_6(%arg0: i32) -> (i32, i32, i32, i32) {
    %c0_i32 = arith.constant 0 : i32
    %c0_i32_0 = arith.constant 0 : i32
    %c0_i32_1 = arith.constant 0 : i32
    %c0_i32_2 = arith.constant 0 : i32
    %c0_i32_3 = arith.constant 0 : i32
    return %c0_i32, %c0_i32_0, %c0_i32_1, %c0_i32_2 : i32, i32, i32, i32
  }
  func.func @transform_7(%arg0: i32) -> (i32, i32, i32) {
    %c0_i32 = arith.constant 0 : i32
    %c0_i32_0 = arith.constant 0 : i32
    %c0_i32_1 = arith.constant 0 : i32
    %c0_i32_2 = arith.constant 0 : i32
    return %c0_i32, %c0_i32_0, %c0_i32_1 : i32, i32, i32
  }
  func.func @transform_8(%arg0: i32) -> (i32, i32, i32) {
    %c0_i32 = arith.constant 0 : i32
    %c0_i32_0 = arith.constant 0 : i32
    %c0_i32_1 = arith.constant 0 : i32
    %c0_i32_2 = arith.constant 0 : i32
    return %c0_i32, %c0_i32_0, %c0_i32_1 : i32, i32, i32
  }
  func.func @transform_9(%arg0: i32) -> (i32, i32) {
    %c0_i32 = arith.constant 0 : i32
    %c0_i32_0 = arith.constant 0 : i32
    %c0_i32_1 = arith.constant 0 : i32
    return %c0_i32, %c0_i32_0 : i32, i32
  }
  func.func @transform_10(%arg0: i32) -> (i32, i32) {
    %c0_i32 = arith.constant 0 : i32
    %c0_i32_0 = arith.constant 0 : i32
    %c0_i32_1 = arith.constant 0 : i32
    return %c0_i32, %c0_i32_0 : i32, i32
  }
  func.func @transform_11(%arg0: i32) -> (i32, i32) {
    %c0_i32 = arith.constant 0 : i32
    %c0_i32_0 = arith.constant 0 : i32
    %c0_i32_1 = arith.constant 0 : i32
    return %c0_i32, %c0_i32_0 : i32, i32
  }
  func.func @transform_12(%arg0: i32) -> (i32, i32) {
    %c0_i32 = arith.constant 0 : i32
    %c0_i32_0 = arith.constant 0 : i32
    %c0_i32_1 = arith.constant 0 : i32
    return %c0_i32, %c0_i32_0 : i32, i32
  }
  func.func @transform_13(%arg0: i32) -> (i32, i32, i32) {
    %c0_i32 = arith.constant 0 : i32
    %c0_i32_0 = arith.constant 0 : i32
    %c0_i32_1 = arith.constant 0 : i32
    %c0_i32_2 = arith.constant 0 : i32
    return %c0_i32, %c0_i32_0, %c0_i32_1 : i32, i32, i32
  }
  func.func @transform_14(%arg0: i32) -> (i32, i32, i32) {
    %c0_i32 = arith.constant 0 : i32
    %c0_i32_0 = arith.constant 0 : i32
    %c0_i32_1 = arith.constant 0 : i32
    %c0_i32_2 = arith.constant 0 : i32
    return %c0_i32, %c0_i32_0, %c0_i32_1 : i32, i32, i32
  }
  func.func @transform_15(%arg0: i32) -> (i32, i32) {
    %c0_i32 = arith.constant 0 : i32
    %c0_i32_0 = arith.constant 0 : i32
    %c0_i32_1 = arith.constant 0 : i32
    return %c0_i32, %c0_i32_0 : i32, i32
  }
  func.func @transform_16(%arg0: i32) -> (i32, i32) {
    %c0_i32 = arith.constant 0 : i32
    %c0_i32_0 = arith.constant 0 : i32
    %c0_i32_1 = arith.constant 0 : i32
    return %c0_i32, %c0_i32_0 : i32, i32
  }
  func.func @transform_17(%arg0: i32) -> (i32, i32) {
    %c0_i32 = arith.constant 0 : i32
    %c0_i32_0 = arith.constant 0 : i32
    %c0_i32_1 = arith.constant 0 : i32
    return %c0_i32, %c0_i32_0 : i32, i32
  }
  func.func @transform_18(%arg0: i32) -> (i32, i32) {
    %c0_i32 = arith.constant 0 : i32
    %c0_i32_0 = arith.constant 0 : i32
    %c0_i32_1 = arith.constant 0 : i32
    return %c0_i32, %c0_i32_0 : i32, i32
  }
  func.func @transform_19(%arg0: i32) -> (i32, i32) {
    %c0_i32 = arith.constant 0 : i32
    %c0_i32_0 = arith.constant 0 : i32
    %c0_i32_1 = arith.constant 0 : i32
    return %c0_i32, %c0_i32_0 : i32, i32
  }
  func.func @transform_20(%arg0: i32) -> (i32, i32) {
    %c0_i32 = arith.constant 0 : i32
    %c0_i32_0 = arith.constant 0 : i32
    %c0_i32_1 = arith.constant 0 : i32
    return %c0_i32, %c0_i32_0 : i32, i32
  }
}

</mosaic_0001>

<bundles_post_ra>
// kernel: tpu_custom_call.1
= control target key start
LH: loop header
LB: loop body
LE: loop exit
PB: predicated region body
PF: predicated region fallthrough
CT: control target
= control target key end

     0   :  { %s9581_s0 = inlined_call_operand.vmem [shape: f32[128,16], index: 0, kind: input, shape index: {}]   ;;  %s9582_s1 = inlined_call_operand.vmem [shape: s8[128,128], index: 1, kind: input, shape index: {}]   ;;  %s9583_s2 = inlined_call_operand.vmem [shape: s8[128,128], index: 2, kind: input, shape index: {}]   ;;  %s9584_s3 = inlined_call_operand.vmem [shape: s8[128,128], index: 3, kind: input, shape index: {}]   ;;  %s9585_s4 = inlined_call_operand.vmem [shape: f32[3,128,1], index: 4, kind: input, shape index: {}]   ;;  %s9586_s5 = inlined_call_operand.vmem [shape: f32[3,3,1,96], index: 5, kind: input, shape index: {}]   ;;  %s9587_s6 = inlined_call_operand.vmem [shape: f32[3,3,1,96], index: 6, kind: input, shape index: {}]   ;;  %s9588_s7 = inlined_call_operand.vmem [shape: f32[3,96,96], index: 7, kind: input, shape index: {}]   ;;  %s9589_s8 = inlined_call_operand.vmem [shape: f32[3,1,96], index: 8, kind: input, shape index: {}]   ;;  %s9590_s9 = inlined_call_operand.vmem [shape: f32[16,32], index: 9, kind: input, shape index: {}]   ;;  %s9591_s10 = inlined_call_operand.vmem [shape: f32[1,32], index: 10, kind: input, shape index: {}]   ;;  %s9592_s11 = inlined_call_operand.vmem [shape: f32[32,32], index: 11, kind: input, shape index: {}]   ;;  %s9593_s12 = inlined_call_operand.vmem [shape: f32[1,32], index: 12, kind: input, shape index: {}]   ;;  %s9594_s13 = inlined_call_operand.vmem [shape: f32[3,96,32], index: 13, kind: input, shape index: {}]   ;;  %s9595_s14 = inlined_call_operand.vmem [shape: f32[3,1,32], index: 14, kind: input, shape index: {}]   ;;  %s9596_s15 = inlined_call_operand.vmem [shape: f32[32,32], index: 15, kind: input, shape index: {}]   ;;  %s9597_s16 = inlined_call_operand.vmem [shape: f32[1,32], index: 16, kind: input, shape index: {}]   ;;  %s9598_s17 = inlined_call_operand.vmem [shape: f32[1,32], index: 17, kind: input, shape index: {}]   ;;  %s9599_s18 = inlined_call_operand.vmem [shape: f32[32,2], index: 18, kind: input, shape index: {}]   ;;  %s9600_s19 = inlined_call_operand.vmem [shape: f32[1,2], index: 19, kind: input, shape index: {}]   ;;  %s9601_s20 = inlined_call_operand.hbm [shape: f32[128,128], index: 20, kind: output, shape index: {}]  }
   0x1   :  { %9612 = sst [smem:[#allocation30_spill]] %s9581_s0 }
   0x2   :  { %9613 = sst [smem:[#allocation31_spill]] %s9582_s1 }
   0x3   :  { %9614 = sst [smem:[#allocation32_spill]] %s9583_s2 }
   0x4   :  { %9615 = sst [smem:[#allocation33_spill]] %s9584_s3 }
   0x5   :  { %9616 = sst [smem:[#allocation34_spill]] %s9585_s4 }
   0x6   :  { %25 = vsyncpa [#allocation10], 0  ;;  %s9617_s23 = sld [smem:[#allocation31_spill]] }
   0xc   :  { %v70_v0 = vld [vmem:[%s9617_s23] sm:$0xff]  ;;  %v72_v1 = vld [vmem:[%s9617_s23 + $0x8] sm:$0xff] }
   0xd   :  { %71 = vst [vmem:[#allocation2] sm:$0xff] %v70_v0 }
   0xe   :  { %73 = vst [vmem:[#allocation2 + $0x8] sm:$0xff] %v72_v1 }
   0xf   :  { %79 = vsyncadd [#allocation3], 256  ;;  %v97_v2 = vld [vmem:[%s9590_s9 + $0x8] sm:$0xff]  ;;  %v96_v3 = vld [vmem:[%s9590_s9] sm:$0xff]  ;;  %s9618_s29 = sld [smem:[#allocation30_spill]]  ;;  %vm102_vm0 = vcmask 130048  }
  0x10   :  { %165 = vmatpush.msra.mxu0 %v97_v2  ;;  %6116 = vmatpush.msra.mxu3 %v97_v2  ;;  %v235_v15 = vld [vmem:[%s9592_s11 + $0x18] sm:$0xff]  ;;  %v234_v20 = vld [vmem:[%s9592_s11 + $0x10] sm:$0xff]  ;;  %v233_v22 = vld [vmem:[%s9592_s11 + $0x8] sm:$0xff]  ;;  %vm240_vm1 = vcmask 261120   ;;  %s6669_s3 = smov 64   ;;  %vm498_vm2 = vcmask 523264  }
  0x11   :  { %301 = vmatpush.msra.mxu1 %v235_v15  ;;  %v232_v23 = vld [vmem:[%s9592_s11] sm:$0xff]  ;;  %vm515_vm3 = vcmask 785408   ;;  %s9619_s2 = sld [smem:[#allocation34_spill]]  ;;  %vm859_vm4 = vcmask 781312  }
  0x12   :  { %166 = vmatpush.msra.mxu0 %v96_v3  ;;  %6117 = vmatpush.msra.mxu3 %v96_v3  ;;  %v6877_v24 = vld [vmem:[%s9591_s10] ss:$0 sm:$0xff]  ;;  %s7377_s10 = smov 0  }
  0x13   :  { %302 = vmatpush.msra.mxu1 %v234_v20 }
  0x14   :  { %6118 = vmatpush.msrb.mxu3 %v235_v15 }
  0x15   :  { %v80_v4 = vld [vmem:[%s9618_s29] sm:$0xff]  ;;  %v81_v5 = vld [vmem:[%s9618_s29 + $0x8] sm:$0xff]  ;;  %v82_v6 = vld [vmem:[%s9618_s29 + $0x10] sm:$0xff]  ;;  %303 = vmatpush.msra.mxu1 %v233_v22 }
  0x16   :  { %5468 = vmatmul.msk.f32.vlgmr.msra.gmra.mxu0 %vm102_vm0, %v80_v4  ;;  %v83_v7 = vld [vmem:[%s9618_s29 + $0x18] sm:$0xff]  ;;  %v84_v8 = vld [vmem:[%s9618_s29 + $0x20] sm:$0xff]  ;;  %v85_v9 = vld [vmem:[%s9618_s29 + $0x28] sm:$0xff]  ;;  %6119 = vmatpush.msrb.mxu3 %v234_v20 }
  0x17   :  { %v86_v10 = vld [vmem:[%s9618_s29 + $0x30] sm:$0xff]  ;;  %v93_v11 = vld [vmem:[%s9618_s29 + $0x68] sm:$0xff]  ;;  %v87_v12 = vld [vmem:[%s9618_s29 + $0x38] sm:$0xff]  ;;  %304 = vmatpush.msra.mxu1 %v232_v23 }
  0x18   :  { %5481 = vmatmul.msk.f32.vlgmr.msra.gmra.mxu3 %vm102_vm0, %v93_v11  ;;  %v88_v13 = vld [vmem:[%s9618_s29 + $0x40] sm:$0xff]  ;;  %v94_v14 = vld [vmem:[%s9618_s29 + $0x70] sm:$0xff]  ;;  %v89_v16 = vld [vmem:[%s9618_s29 + $0x48] sm:$0xff] }
  0x19   :  { %v95_v17 = vld [vmem:[%s9618_s29 + $0x78] sm:$0xff]  ;;  %v90_v18 = vld [vmem:[%s9618_s29 + $0x50] sm:$0xff]  ;;  %v92_v21 = vld [vmem:[%s9618_s29 + $0x60] sm:$0xff]  ;;  %6120 = vmatpush.msrb.mxu3 %v233_v22 }
  0x1a   :  { %v91_v19 = vld [vmem:[%s9618_s29 + $0x58] sm:$0xff]  ;;  %s6668_s29 = smov 32  }
  0x1b   :  { %6121 = vmatpush.msrb.mxu3 %v232_v23 }
  0x1e   :  { %5469 = vmatmul.msk.f32.gmra.mxu0 %vm102_vm0, %v81_v5 }
  0x20   :  { %5482 = vmatmul.msk.f32.gmra.mxu3 %vm102_vm0, %v94_v14 }
  0x26   :  { %5470 = vmatmul.msk.f32.gmra.mxu0 %vm102_vm0, %v82_v6 }
  0x28   :  { %5483 = vmatmul.msk.f32.gmra.mxu3 %vm102_vm0, %v95_v17 }
  0x2e   :  { %5471 = vmatmul.msk.f32.gmra.mxu0 %vm102_vm0, %v83_v7 }
  0x36   :  { %5472 = vmatmul.msk.f32.gmra.mxu0 %vm102_vm0, %v84_v8 }
  0x3e   :  { %5473 = vmatmul.msk.f32.gmra.mxu0 %vm102_vm0, %v85_v9  ;;  %v6914_v9 = vld [vmem:[%s9593_s12] ss:$0 sm:$0xff] }
  0x46   :  { %5474 = vmatmul.msk.f32.gmra.mxu0 %vm102_vm0, %v86_v10 }
  0x4e   :  { %5475 = vmatmul.msk.f32.gmra.mxu0 %vm102_vm0, %v87_v12 }
  0x56   :  { %5476 = vmatmul.msk.f32.gmra.mxu0 %vm102_vm0, %v88_v13 }
  0x5e   :  { %5477 = vmatmul.msk.f32.gmra.mxu0 %vm102_vm0, %v89_v16 }
  0x66   :  { %5478 = vmatmul.msk.f32.gmra.mxu0 %vm102_vm0, %v90_v18 }
  0x6e   :  { %5479 = vmatmul.msk.f32.gmra.mxu0 %vm102_vm0, %v91_v19 }
  0x76   :  { %5480 = vmatmul.msk.f32.gmra.mxu0 %vm102_vm0, %v92_v21 }
  0x93   :  { %v168_v25 = vpop.f32.mrf.mxu0 }
  0x94   :  { %v169_v26 = vadd.f32 %v6877_v24, %v168_v25 }
  0x96   :  { %v216_v27 = vmax.f32 %v169_v26, 0.0 }
  0x98   :  { %5484 = vmatmul.msk.f32.vlgmr.msra.gmra.mxu1 %vm240_vm1, %v216_v27 }
  0x9b   :  { %v171_v28 = vpop.f32.mrf.mxu0  ;;  %v207_v48 = vpop.f32.mrf.mxu3 }
  0x9c   :  { %v172_v29 = vadd.f32 %v6877_v24, %v171_v28  ;;  %v208_v50 = vadd.f32 %v6877_v24, %v207_v48 }
  0x9e   :  { %v217_v30 = vmax.f32 %v172_v29, 0.0  ;;  %v229_v51 = vmax.f32 %v208_v50, 0.0 }
  0xa0   :  { %5485 = vmatmul.msk.f32.gmra.mxu1 %vm240_vm1, %v217_v30  ;;  %5497 = vmatmul.msk.f32.vlgmr.msrb.gmra.mxu3 %vm240_vm1, %v229_v51  ;;  %v591_v51 = vld [vmem:[%s9588_s7 + $0x28] sm:$0xff] }
  0xa3   :  { %v174_v31 = vpop.f32.mrf.mxu0  ;;  %v210_v55 = vpop.f32.mrf.mxu3 }
  0xa4   :  { %v175_v32 = vadd.f32 %v6877_v24, %v174_v31  ;;  %v211_v57 = vadd.f32 %v6877_v24, %v210_v55 }
  0xa6   :  { %v218_v33 = vmax.f32 %v175_v32, 0.0  ;;  %v230_v59 = vmax.f32 %v211_v57, 0.0  ;;  %v589_v57 = vld [vmem:[%s9588_s7 + $0x18] sm:$0xff] }
  0xa8   :  { %5486 = vmatmul.msk.f32.gmra.mxu1 %vm240_vm1, %v218_v33  ;;  %5498 = vmatmul.msk.f32.gmra.mxu3 %vm240_vm1, %v230_v59 }
  0xab   :  { %v177_v34 = vpop.f32.mrf.mxu0  ;;  %v213_v61 = vpop.f32.mrf.mxu3 }
  0xac   :  { %v178_v35 = vadd.f32 %v6877_v24, %v177_v34  ;;  %v214_v63 = vadd.f32 %v6877_v24, %v213_v61  ;;  %v587_v61 = vld [vmem:[%s9588_s7 + $0x8] sm:$0xff] }
  0xae   :  { %v219_v36 = vmax.f32 %v178_v35, 0.0  ;;  %v231_v1 = vmax.f32 %v214_v63, 0.0 }
  0xb0   :  { %5487 = vmatmul.msk.f32.gmra.mxu1 %vm240_vm1, %v219_v36  ;;  %5499 = vmatmul.msk.f32.gmra.mxu3 %vm240_vm1, %v231_v1 }
  0xb3   :  { %v180_v37 = vpop.f32.mrf.mxu0 }
  0xb4   :  { %v181_v38 = vadd.f32 %v6877_v24, %v180_v37 }
  0xb6   :  { %v220_v39 = vmax.f32 %v181_v38, 0.0 }
  0xb8   :  { %5488 = vmatmul.msk.f32.gmra.mxu1 %vm240_vm1, %v220_v39  ;;  %v597_v39 = vld [vmem:[%s9588_s7 + $0x58] sm:$0xff] }
  0xb9   :  { %654 = vmatpush.msra.mxu2 %v597_v39  ;;  %6122 = vmatpush.msra.mxu3 %v597_v39 }
  0xbb   :  { %v183_v40 = vpop.f32.mrf.mxu0 }
  0xbc   :  { %v184_v41 = vadd.f32 %v6877_v24, %v183_v40  ;;  %v596_v40 = vld [vmem:[%s9588_s7 + $0x50] sm:$0xff] }
  0xbd   :  { %655 = vmatpush.msra.mxu2 %v596_v40  ;;  %6123 = vmatpush.msra.mxu3 %v596_v40 }
  0xbe   :  { %v221_v42 = vmax.f32 %v184_v41, 0.0 }
  0xc0   :  { %5489 = vmatmul.msk.f32.gmra.mxu1 %vm240_vm1, %v221_v42  ;;  %v595_v42 = vld [vmem:[%s9588_s7 + $0x48] sm:$0xff] }
  0xc1   :  { %656 = vmatpush.msra.mxu2 %v595_v42  ;;  %6124 = vmatpush.msra.mxu3 %v595_v42  ;;  %v537_v42 = vld [vmem:[%s9619_s2 + $0x28] sm:$0xff] }
  0xc3   :  { %v186_v43 = vpop.f32.mrf.mxu0 }
  0xc4   :  { %v187_v44 = vadd.f32 %v6877_v24, %v186_v43 }
  0xc6   :  { %v222_v45 = vmax.f32 %v187_v44, 0.0  ;;  %v594_v44 = vld [vmem:[%s9588_s7 + $0x40] sm:$0xff] }
  0xc7   :  { %657 = vmatpush.msra.mxu2 %v594_v44  ;;  %6125 = vmatpush.msra.mxu3 %v594_v44  ;;  %v541_v44 = vld [vmem:[%s9619_s2 + $0x48] sm:$0xff] }
  0xc8   :  { %5490 = vmatmul.msk.f32.gmra.mxu1 %vm240_vm1, %v222_v45 }
  0xcb   :  { %v189_v46 = vpop.f32.mrf.mxu0 }
  0xcc   :  { %v190_v47 = vadd.f32 %v6877_v24, %v189_v46 }
  0xce   :  { %v223_v49 = vmax.f32 %v190_v47, 0.0  ;;  %v593_v47 = vld [vmem:[%s9588_s7 + $0x38] sm:$0xff] }
  0xcf   :  { %658 = vmatpush.msra.mxu2 %v593_v47  ;;  %6126 = vmatpush.msra.mxu3 %v593_v47 }
  0xd0   :  { %5491 = vmatmul.msk.f32.gmra.mxu1 %vm240_vm1, %v223_v49  ;;  %v592_v49 = vld [vmem:[%s9588_s7 + $0x30] sm:$0xff] }
  0xd1   :  { %659 = vmatpush.msra.mxu2 %v592_v49  ;;  %6127 = vmatpush.msra.mxu3 %v592_v49 }
  0xd3   :  { %v192_v52 = vpop.f32.mrf.mxu0  ;;  %660 = vmatpush.msra.mxu2 %v591_v51  ;;  %6128 = vmatpush.msra.mxu3 %v591_v51  ;;  %v540_v51 = vld [vmem:[%s9619_s2 + $0x40] sm:$0xff] }
  0xd4   :  { %v193_v53 = vadd.f32 %v6877_v24, %v192_v52 }
  0xd6   :  { %v224_v54 = vmax.f32 %v193_v53, 0.0 }
  0xd8   :  { %5492 = vmatmul.msk.f32.gmra.mxu1 %vm240_vm1, %v224_v54  ;;  %v590_v54 = vld [vmem:[%s9588_s7 + $0x20] sm:$0xff] }
  0xd9   :  { %661 = vmatpush.msra.mxu2 %v590_v54  ;;  %6129 = vmatpush.msra.mxu3 %v590_v54 }
  0xdb   :  { %v195_v56 = vpop.f32.mrf.mxu0  ;;  %662 = vmatpush.msra.mxu2 %v589_v57  ;;  %6130 = vmatpush.msra.mxu3 %v589_v57 }
  0xdc   :  { %v196_v58 = vadd.f32 %v6877_v24, %v195_v56  ;;  %v6670_v56 = vmov 0  }
  0xdd   :  { %6400 = vset.pattern.permute.xlu0 %v6670_v56  ;;  %6399 = vset.pattern.permute.xlu2 %v6670_v56 }
  0xde   :  { %v225_v60 = vmax.f32 %v196_v58, 0.0  ;;  %6401 = vset.pattern.permute.xlu1 %v6670_v56  ;;  %v588_v58 = vld [vmem:[%s9588_s7 + $0x10] sm:$0xff] }
  0xdf   :  { %663 = vmatpush.msra.mxu2 %v588_v58  ;;  %6131 = vmatpush.msra.mxu3 %v588_v58 }
  0xe0   :  { %5493 = vmatmul.msk.f32.gmra.mxu1 %vm240_vm1, %v225_v60 }
  0xe1   :  { %664 = vmatpush.msra.mxu2 %v587_v61  ;;  %6132 = vmatpush.msra.mxu3 %v587_v61 }
  0xe3   :  { %v198_v62 = vpop.f32.mrf.mxu0 }
  0xe4   :  { %v199_v0 = vadd.f32 %v6877_v24, %v198_v62  ;;  %v586_v62 = vld [vmem:[%s9588_s7] sm:$0xff] }
  0xe5   :  { %665 = vmatpush.msra.mxu2 %v586_v62  ;;  %6133 = vmatpush.msra.mxu3 %v586_v62  ;;  %v543_v62 = vld [vmem:[%s9619_s2 + $0x58] sm:$0xff] }
  0xe6   :  { %v226_v2 = vmax.f32 %v199_v0, 0.0 }
  0xe8   :  { %5494 = vmatmul.msk.f32.gmra.mxu1 %vm240_vm1, %v226_v2 }
  0xeb   :  { %v201_v3 = vpop.f32.mrf.mxu0 }
  0xec   :  { %v202_v4 = vadd.f32 %v6877_v24, %v201_v3 }
  0xee   :  { %v227_v5 = vmax.f32 %v202_v4, 0.0 }
  0xf0   :  { %5495 = vmatmul.msk.f32.gmra.mxu1 %vm240_vm1, %v227_v5 }
  0xf3   :  { %v204_v6 = vpop.f32.mrf.mxu0 }
  0xf4   :  { %v205_v7 = vadd.f32 %v6877_v24, %v204_v6 }
  0xf6   :  { %v228_v8 = vmax.f32 %v205_v7, 0.0 }
  0xf8   :  { %5496 = vmatmul.msk.f32.gmra.mxu1 %vm240_vm1, %v228_v8 }
 0x115   :  { %v306_v10 = vpop.f32.mrf.mxu1 }
 0x116   :  { %v307_v11 = vadd.f32 %v6914_v9, %v306_v10 }
 0x118   :  { %v6917_v12 = vmax.f32 %v307_v11, 0.0 }
 0x11a   :  { %386 = vrot.lane.b32.xlu0 %v6917_v12, %s6668_s29 }
 0x11d   :  { %v309_v13 = vpop.f32.mrf.mxu1 }
 0x11e   :  { %v310_v14 = vadd.f32 %v6914_v9, %v309_v13 }
 0x120   :  { %v6922_v15 = vmax.f32 %v310_v14, 0.0 }
 0x122   :  { %388 = vrot.lane.b32.xlu1 %v6922_v15, %s6668_s29  ;;  %434 = vrot.lane.b32.xlu0 %v6917_v12, %s6669_s3 }
 0x123   :  { %v345_v46 = vpop.f32.mrf.mxu3 }
 0x124   :  { %v346_v48 = vadd.f32 %v6914_v9, %v345_v46 }
 0x125   :  { %v312_v16 = vpop.f32.mrf.mxu1 }
 0x126   :  { %v313_v17 = vadd.f32 %v6914_v9, %v312_v16  ;;  %v7009_v53 = vmax.f32 %v346_v48, 0.0 }
 0x128   :  { %v6929_v18 = vmax.f32 %v313_v17, 0.0 }
 0x12a   :  { %390 = vrot.lane.b32.xlu2 %v6929_v18, %s6668_s29  ;;  %436 = vrot.lane.b32.xlu1 %v6922_v15, %s6669_s3 }
 0x12b   :  { %v348_v60 = vpop.f32.mrf.mxu3 }
 0x12c   :  { %v349_v0 = vadd.f32 %v6914_v9, %v348_v60 }
 0x12d   :  { %v315_v19 = vpop.f32.mrf.mxu1 }
 0x12e   :  { %v316_v20 = vadd.f32 %v6914_v9, %v315_v19  ;;  %v7047_v2 = vmax.f32 %v349_v0, 0.0  ;;  %v549_v19 = vld [vmem:[%s9587_s6] sm:$0x1]  ;;  %v542_v0 = vld [vmem:[%s9619_s2 + $0x50] sm:$0xff] }
 0x130   :  { %v6936_v21 = vmax.f32 %v316_v20, 0.0  ;;  %v532_v20 = vld [vmem:[%s9619_s2] sm:$0xff] }
 0x132   :  { %438 = vrot.lane.b32.xlu2 %v6929_v18, %s6669_s3  ;;  %440 = vrot.lane.b32.xlu1 %v6936_v21, %s6669_s3 }
 0x133   :  { %392 = vrot.lane.b32.xlu0 %v6936_v21, %s6668_s29  ;;  %v351_v3 = vpop.f32.mrf.mxu3 }
 0x134   :  { %v352_v4 = vadd.f32 %v6914_v9, %v351_v3 }
 0x135   :  { %v318_v22 = vpop.f32.mrf.mxu1 }
 0x136   :  { %v319_v23 = vadd.f32 %v6914_v9, %v318_v22  ;;  %v7062_v11 = vmax.f32 %v352_v4, 0.0 }
 0x138   :  { %v6945_v24 = vmax.f32 %v319_v23, 0.0 }
 0x13a   :  { %394 = vrot.lane.b32.xlu2 %v6945_v24, %s6668_s29 }
 0x13b   :  { %442 = vrot.lane.b32.xlu0 %v6945_v24, %s6669_s3 }
 0x13d   :  { %v321_v25 = vpop.f32.mrf.mxu1 }
 0x13e   :  { %v322_v26 = vadd.f32 %v6914_v9, %v321_v25 }
 0x140   :  { %v6952_v27 = vmax.f32 %v322_v26, 0.0 }
 0x142   :  { %444 = vrot.lane.b32.xlu2 %v6952_v27, %s6669_s3  ;;  %396 = vrot.lane.b32.xlu1 %v6952_v27, %s6668_s29 }
 0x145   :  { %v324_v28 = vpop.f32.mrf.mxu1 }
 0x146   :  { %v325_v29 = vadd.f32 %v6914_v9, %v324_v28 }
 0x148   :  { %v6959_v30 = vmax.f32 %v325_v29, 0.0 }
 0x14a   :  { %446 = vrot.lane.b32.xlu2 %v6959_v30, %s6669_s3  ;;  %398 = vrot.lane.b32.xlu0 %v6959_v30, %s6668_s29 }
 0x14d   :  { %v327_v31 = vpop.f32.mrf.mxu1 }
 0x14e   :  { %v328_v32 = vadd.f32 %v6914_v9, %v327_v31 }
 0x150   :  { %v6966_v33 = vmax.f32 %v328_v32, 0.0  ;;  %v535_v32 = vld [vmem:[%s9619_s2 + $0x18] sm:$0xff] }
 0x152   :  { %400 = vrot.lane.b32.xlu1 %v6966_v33, %s6668_s29  ;;  %448 = vrot.lane.b32.xlu0 %v6966_v33, %s6669_s3 }
 0x155   :  { %v330_v34 = vpop.f32.mrf.mxu1 }
 0x156   :  { %v331_v35 = vadd.f32 %v6914_v9, %v330_v34  ;;  %v538_v34 = vld [vmem:[%s9619_s2 + $0x30] sm:$0xff] }
 0x158   :  { %v6973_v36 = vmax.f32 %v331_v35, 0.0 }
 0x15a   :  { %402 = vrot.lane.b32.xlu2 %v6973_v36, %s6668_s29 }
 0x15d   :  { %v333_v37 = vpop.f32.mrf.mxu1 }
 0x15e   :  { %v334_v59 = vadd.f32 %v6914_v9, %v333_v37 }
 0x160   :  { %v7038_v63 = vmax.f32 %v334_v59, 0.0 }
 0x165   :  { %v6977_v38 = vpop.f32.mrf.mxu1 }
 0x166   :  { %v337_v5 = vadd.f32 %v6914_v9, %v6977_v38 }
 0x168   :  { %v7064_v13 = vmax.f32 %v337_v5, 0.0 }
 0x16d   :  { %v339_v41 = vpop.f32.mrf.mxu1 }
 0x16e   :  { %v340_v43 = vadd.f32 %v6914_v9, %v339_v41 }
 0x170   :  { %v6992_v45 = vmax.f32 %v340_v43, 0.0  ;;  %v536_v43 = vld [vmem:[%s9619_s2 + $0x20] sm:$0xff] }
 0x172   :  { %408 = vrot.lane.b32.xlu1 %v6992_v45, %s6668_s29  ;;  %456 = vrot.lane.b32.xlu0 %v6992_v45, %s6669_s3 }
 0x175   :  { %v342_v50 = vpop.f32.mrf.mxu1 }
 0x176   :  { %v343_v52 = vadd.f32 %v6914_v9, %v342_v50 }
 0x178   :  { %v7014_v55 = vmax.f32 %v343_v52, 0.0  ;;  %v539_v52 = vld [vmem:[%s9619_s2 + $0x38] sm:$0xff] }
 0x17a   :  { %410 = vrot.lane.b32.xlu2 %v7014_v55, %s6668_s29  ;;  %450 = vrot.lane.b32.xlu1 %v6973_v36, %s6669_s3 }
 0x17b   :  { %412 = vrot.lane.b32.xlu0 %v7009_v53, %s6668_s29 }
 0x182   :  { %460 = vrot.lane.b32.xlu2 %v7009_v53, %s6669_s3  ;;  %458 = vrot.lane.b32.xlu1 %v7014_v55, %s6669_s3 }
 0x183   :  { %404 = vrot.lane.b32.xlu0 %v7038_v63, %s6668_s29 }
 0x184   :  { %v391_v1 = vpop.permute.xlu2 %390 }
 0x185   :  { %v484_v6 = vsel %vm240_vm1, %v6929_v18, %v391_v1  ;;  %v548_v18 = vld [vmem:[%s9586_s5] sm:$0x1]  ;;  %v547_v1 = vld [vmem:[%s9619_s2 + $0x78] sm:$0xff] }
 0x186   :  { %v550_v22 = vmul.f32 %v549_v19, %v548_v18 }
 0x188   :  { %v7093_v28 = vperm.slane %v550_v22, 0 }
 0x18a   :  { %452 = vrot.lane.b32.xlu2 %v7038_v63, %s6669_s3  ;;  %414 = vrot.lane.b32.xlu1 %v7047_v2, %s6668_s29 }
 0x18b   :  { %462 = vrot.lane.b32.xlu0 %v7047_v2, %s6669_s3 }
 0x18c   :  { %v439_v7 = vpop.permute.xlu2 %438  ;;  %v387_v8 = vpop.permute.xlu0 %386 }
 0x18d   :  { %v501_v10 = vsel %vm498_vm2, %v484_v6, %v439_v7  ;;  %v482_v14 = vsel %vm240_vm1, %v6917_v12, %v387_v8  ;;  %v533_v12 = vld [vmem:[%s9619_s2 + $0x8] sm:$0xff]  ;;  %v546_v8 = vld [vmem:[%s9619_s2 + $0x70] sm:$0xff] }
 0x18e   :  { %518 = vst.msk [vmem:[#allocation4 + $0x10] sm:$0xff] %vm515_vm3, %v501_v10  ;;  %v545_v10 = vld [vmem:[%s9619_s2 + $0x68] sm:$0xff] }
 0x192   :  { %416 = vrot.lane.b32.xlu2 %v7062_v11, %s6668_s29  ;;  %406 = vrot.lane.b32.xlu1 %v7064_v13, %s6668_s29 }
 0x193   :  { %454 = vrot.lane.b32.xlu0 %v7064_v13, %s6669_s3 }
 0x194   :  { %v389_v9 = vpop.permute.xlu1 %388  ;;  %v435_v16 = vpop.permute.xlu0 %434 }
 0x195   :  { %v499_v17 = vsel %vm498_vm2, %v482_v14, %v435_v16  ;;  %v483_v23 = vsel %vm240_vm1, %v6922_v15, %v389_v9  ;;  %v534_v15 = vld [vmem:[%s9619_s2 + $0x10] sm:$0xff] }
 0x196   :  { %516 = vst.msk [vmem:[#allocation4] sm:$0xff] %vm515_vm3, %v499_v17  ;;  %v7128_v46 = vld [vmem:[#allocation4 + $0x10] sm:$0xff] }
 0x197   :  { %v572_v50 = vmul.f32 %v7093_v28, %v7128_v46 }
 0x19a   :  { %749 = vperm.xlu2 %6399, %v532_v20   ;;  %464 = vrot.lane.b32.xlu1 %v7062_v11, %s6669_s3 }
 0x19b   :  { %754 = vperm.xlu0 %6400, %v533_v12  }
 0x19c   :  { %v437_v25 = vpop.permute.xlu1 %436 }
 0x19d   :  { %v500_v26 = vsel %vm498_vm2, %v483_v23, %v437_v25  ;;  %v7096_v29 = vld [vmem:[#allocation4] sm:$0xff] }
 0x19e   :  { %517 = vst.msk [vmem:[#allocation4 + $0x8] sm:$0xff] %vm515_vm3, %v500_v26  ;;  %v570_v31 = vmul.f32 %v7093_v28, %v7096_v29 }
 0x1a0   :  { %5500 = vmatmul.msk.f32.vlgmr.msra.gmra.mxu2 %vm515_vm3, %v570_v31 }
 0x1a2   :  { %764 = vperm.xlu2 %6399, %v535_v32   ;;  %759 = vperm.xlu1 %6401, %v534_v15  }
 0x1a3   :  { %779 = vperm.xlu0 %6400, %v538_v34  }
 0x1a4   :  { %v441_v35 = vpop.permute.xlu1 %440 }
 0x1a5   :  { %v393_v37 = vpop.permute.xlu0 %392  ;;  %v7110_v38 = vld [vmem:[#allocation4 + $0x8] sm:$0xff] }
 0x1a6   :  { %v485_v39 = vsel %vm240_vm1, %v6936_v21, %v393_v37  ;;  %v571_v40 = vmul.f32 %v7093_v28, %v7110_v38  ;;  %v395_v21 = vpop.permute.xlu2 %394 }
 0x1a7   :  { %v502_v41 = vsel %vm498_vm2, %v485_v39, %v441_v35  ;;  %v486_v47 = vsel %vm240_vm1, %v6945_v24, %v395_v21  ;;  %v544_v24 = vld [vmem:[%s9619_s2 + $0x60] sm:$0xff] }
 0x1a8   :  { %519 = vst.msk [vmem:[#allocation4 + $0x18] sm:$0xff] %vm515_vm3, %v502_v41  ;;  %5501 = vmatmul.msk.f32.gmra.mxu2 %vm515_vm3, %v571_v40 }
 0x1aa   :  { %774 = vperm.xlu2 %6399, %v537_v42   ;;  %769 = vperm.xlu1 %6401, %v536_v43  }
 0x1ab   :  { %794 = vperm.xlu0 %6400, %v541_v44  }
 0x1ad   :  { %v443_v48 = vpop.permute.xlu0 %442 }
 0x1ae   :  { %v503_v49 = vsel %vm498_vm2, %v486_v47, %v443_v48  ;;  %v445_v54 = vpop.permute.xlu2 %444 }
 0x1af   :  { %520 = vst.msk [vmem:[#allocation4 + $0x20] sm:$0xff] %vm515_vm3, %v503_v49  ;;  %v7146_v58 = vld [vmem:[#allocation4 + $0x18] sm:$0xff] }
 0x1b0   :  { %5502 = vmatmul.msk.f32.gmra.mxu2 %vm515_vm3, %v572_v50  ;;  %v573_v61 = vmul.f32 %v7093_v28, %v7146_v58 }
 0x1b2   :  { %789 = vperm.xlu2 %6399, %v540_v51   ;;  %784 = vperm.xlu1 %6401, %v539_v52  }
 0x1b3   :  { %809 = vperm.xlu0 %6400, %v544_v24  }
 0x1b4   :  { %v397_v57 = vpop.permute.xlu1 %396 }
 0x1b5   :  { %v487_v59 = vsel %vm240_vm1, %v6952_v27, %v397_v57 }
 0x1b6   :  { %v504_v60 = vsel %vm498_vm2, %v487_v59, %v445_v54  ;;  %v7164_v3 = vld [vmem:[#allocation4 + $0x20] sm:$0xff]  ;;  %v447_v4 = vpop.permute.xlu2 %446 }
 0x1b7   :  { %521 = vst.msk [vmem:[#allocation4 + $0x28] sm:$0xff] %vm515_vm3, %v504_v60  ;;  %v574_v7 = vmul.f32 %v7093_v28, %v7164_v3 }
 0x1b8   :  { %5503 = vmatmul.msk.f32.gmra.mxu2 %vm515_vm3, %v573_v61 }
 0x1ba   :  { %804 = vperm.xlu2 %6399, %v543_v62   ;;  %799 = vperm.xlu1 %6401, %v542_v0  }
 0x1bb   :  { %824 = vperm.xlu0 %6400, %v547_v1  }
 0x1bc   :  { %v399_v27 = vpop.permute.xlu0 %398 }
 0x1bd   :  { %v488_v5 = vsel %vm240_vm1, %v6959_v30, %v399_v27 }
 0x1be   :  { %v505_v6 = vsel %vm498_vm2, %v488_v5, %v447_v4  ;;  %v7179_v14 = vld [vmem:[#allocation4 + $0x28] sm:$0xff]  ;;  %v403_v19 = vpop.permute.xlu2 %402 }
 0x1bf   :  { %522 = vst.msk [vmem:[#allocation4 + $0x30] sm:$0xff] %vm515_vm3, %v505_v6  ;;  %v575_v18 = vmul.f32 %v7093_v28, %v7179_v14  ;;  %v490_v35 = vsel %vm240_vm1, %v6973_v36, %v403_v19 }
 0x1c0   :  { %5504 = vmatmul.msk.f32.gmra.mxu2 %vm515_vm3, %v574_v7 }
 0x1c2   :  { %819 = vperm.xlu2 %6399, %v546_v8   ;;  %814 = vperm.xlu1 %6401, %v545_v10  }
 0x1c4   :  { %v401_v30 = vpop.permute.xlu1 %400  ;;  %v449_v9 = vpop.permute.xlu0 %448 }
 0x1c5   :  { %v489_v16 = vsel %vm240_vm1, %v6966_v33, %v401_v30 }
 0x1c6   :  { %v506_v17 = vsel %vm498_vm2, %v489_v16, %v449_v9  ;;  %v7188_v20 = vld [vmem:[#allocation4 + $0x30] sm:$0xff] }
 0x1c7   :  { %523 = vst.msk [vmem:[#allocation4 + $0x38] sm:$0xff] %vm515_vm3, %v506_v17  ;;  %v576_v12 = vmul.f32 %v7093_v28, %v7188_v20 }
 0x1c8   :  { %5505 = vmatmul.msk.f32.gmra.mxu2 %vm515_vm3, %v575_v18 }
 0x1ce   :  { %v7193_v23 = vld [vmem:[#allocation4 + $0x38] sm:$0xff] }
 0x1cf   :  { %v577_v33 = vmul.f32 %v7093_v28, %v7193_v23 }
 0x1d0   :  { %5506 = vmatmul.msk.f32.gmra.mxu2 %vm515_vm3, %v576_v12 }
 0x1d4   :  { %v411_v22 = vpop.permute.xlu2 %410 }
 0x1d5   :  { %v494_v36 = vsel %vm240_vm1, %v7014_v55, %v411_v22 }
 0x1d8   :  { %5507 = vmatmul.msk.f32.gmra.mxu2 %vm515_vm3, %v577_v33 }
 0x1dc   :  { %v461_v25 = vpop.permute.xlu2 %460 }
 0x1e4   :  { %v453_v26 = vpop.permute.xlu2 %452  ;;  %v409_v31 = vpop.permute.xlu1 %408 }
 0x1e5   :  { %v493_v32 = vsel %vm240_vm1, %v6992_v45, %v409_v31  ;;  %v457_v15 = vpop.permute.xlu0 %456 }
 0x1e6   :  { %v510_v34 = vsel %vm498_vm2, %v493_v32, %v457_v15 }
 0x1e7   :  { %527 = vst.msk [vmem:[#allocation4 + $0x58] sm:$0xff] %vm515_vm3, %v510_v34 }
 0x1ec   :  { %v417_v37 = vpop.permute.xlu2 %416  ;;  %v451_v39 = vpop.permute.xlu1 %450 }
 0x1ed   :  { %v507_v40 = vsel %vm498_vm2, %v490_v35, %v451_v39  ;;  %v413_v41 = vpop.permute.xlu0 %412 }
 0x1ee   :  { %524 = vst.msk [vmem:[#allocation4 + $0x40] sm:$0xff] %vm515_vm3, %v507_v40  ;;  %v495_v42 = vsel %vm240_vm1, %v7009_v53, %v413_v41  ;;  %v7208_v43 = vld [vmem:[#allocation4 + $0x58] sm:$0xff] }
 0x1ef   :  { %v512_v45 = vsel %vm498_vm2, %v495_v42, %v461_v25  ;;  %v581_v44 = vmul.f32 %v7093_v28, %v7208_v43 }
 0x1f0   :  { %529 = vst.msk [vmem:[#allocation4 + $0x68] sm:$0xff] %vm515_vm3, %v512_v45 }
 0x1f1   :  { %5511 = vmatmul.msk.f32.vlgmr.msra.gmra.mxu3 %vm515_vm3, %v581_v44 }
 0x1f4   :  { %v7217_v21 = vpop.permute.xlu2 %749  ;;  %v459_v47 = vpop.permute.xlu1 %458 }
 0x1f5   :  { %v827_v53 = vmul.f32 %v7217_v21, %v7096_v29  ;;  %v511_v48 = vsel %vm498_vm2, %v494_v36, %v459_v47  ;;  %v405_v49 = vpop.permute.xlu0 %404  ;;  %v559_v50 = vld [vmem:[#allocation4 + $0x40] sm:$0xff] }
 0x1f6   :  { %528 = vst.msk [vmem:[#allocation4 + $0x60] sm:$0xff] %vm515_vm3, %v511_v48  ;;  %v491_v51 = vsel %vm240_vm1, %v7038_v63, %v405_v49  ;;  %v578_v52 = vmul.f32 %v7093_v28, %v559_v50  ;;  %v7308_v48 = vld [vmem:[%s9589_s8] ss:$0 sm:$0xff] }
 0x1f7   :  { %v843_v24 = vpack.c.bf16 %v827_v53, %v827_v53  ;;  %v508_v55 = vsel %vm498_vm2, %v491_v51, %v453_v26 }
 0x1f8   :  { %525 = vst.msk [vmem:[#allocation4 + $0x48] sm:$0xff] %vm515_vm3, %v508_v55  ;;  %5508 = vmatmul.msk.f32.gmra.mxu2 %vm515_vm3, %v578_v52 }
 0x1f9   :  { %860 = vst.msk [vmem:[#allocation7] sm:$0xf] %vm859_vm4, %v843_v24 }
 0x1fc   :  { %v7230_v29 = vpop.permute.xlu2 %764  ;;  %v415_v54 = vpop.permute.xlu1 %414 }
 0x1fd   :  { %v830_v57 = vmul.f32 %v7230_v29, %v7146_v58  ;;  %v496_v63 = vsel %vm240_vm1, %v7047_v2, %v415_v54  ;;  %v463_v59 = vpop.permute.xlu0 %462  ;;  %v7236_v60 = vld [vmem:[#allocation4 + $0x60] sm:$0xff]  ;;  %v7246_v2 = vld [vmem:[#allocation4 + $0x68] sm:$0xff] }
 0x1fe   :  { %v513_v61 = vsel %vm498_vm2, %v496_v63, %v463_v59  ;;  %v582_v62 = vmul.f32 %v7093_v28, %v7236_v60  ;;  %v583_v10 = vmul.f32 %v7093_v28, %v7246_v2 }
 0x1ff   :  { %v846_v0 = vpack.c.bf16 %v830_v57, %v830_v57  ;;  %530 = vst.msk [vmem:[#allocation4 + $0x70] sm:$0xff] %vm515_vm3, %v513_v61  ;;  %v560_v1 = vld [vmem:[#allocation4 + $0x48] sm:$0xff] }
 0x200   :  { %5512 = vmatmul.msk.f32.gmra.mxu3 %vm515_vm3, %v582_v62  ;;  %v579_v27 = vmul.f32 %v7093_v28, %v560_v1 }
 0x201   :  { %863 = vst.msk [vmem:[#allocation7 + $0xc] sm:$0xf] %vm859_vm4, %v846_v0 }
 0x202   :  { %5509 = vmatmul.msk.f32.gmra.mxu2 %vm515_vm3, %v579_v27 }
 0x204   :  { %v7248_v58 = vpop.permute.xlu2 %774  ;;  %v407_v4 = vpop.permute.xlu1 %406 }
 0x205   :  { %v832_v5 = vmul.f32 %v7248_v58, %v7179_v14  ;;  %v492_v6 = vsel %vm240_vm1, %v7064_v13, %v407_v4  ;;  %v455_v7 = vpop.permute.xlu0 %454  ;;  %v497_v14 = vsel %vm240_vm1, %v7062_v11, %v417_v37 }
 0x206   :  { %v509_v8 = vsel %vm498_vm2, %v492_v6, %v455_v7  ;;  %v565_v9 = vld [vmem:[#allocation4 + $0x70] sm:$0xff] }
 0x207   :  { %v848_v30 = vpack.c.bf16 %v832_v5, %v832_v5  ;;  %526 = vst.msk [vmem:[#allocation4 + $0x50] sm:$0xff] %vm515_vm3, %v509_v8  ;;  %v584_v22 = vmul.f32 %v7093_v28, %v565_v9 }
 0x208   :  { %5513 = vmatmul.msk.f32.gmra.mxu3 %vm515_vm3, %v583_v10 }
 0x209   :  { %865 = vst.msk [vmem:[#allocation7 + $0x14] sm:$0xf] %vm859_vm4, %v848_v30 }
 0x20c   :  { %v7262_v16 = vpop.permute.xlu2 %789  ;;  %v465_v13 = vpop.permute.xlu1 %464 }
 0x20d   :  { %v835_v17 = vmul.f32 %v7262_v16, %v559_v50  ;;  %v514_v18 = vsel %vm498_vm2, %v497_v14, %v465_v13  ;;  %v7266_v19 = vpop.permute.xlu0 %754 }
 0x20e   :  { %531 = vst.msk [vmem:[#allocation4 + $0x78] sm:$0xff] %vm515_vm3, %v514_v18  ;;  %v828_v12 = vmul.f32 %v7266_v19, %v7110_v38  ;;  %v561_v33 = vld [vmem:[#allocation4 + $0x50] sm:$0xff] }
 0x20f   :  { %v851_v25 = vpack.c.bf16 %v835_v17, %v835_v17  ;;  %v580_v11 = vmul.f32 %v7093_v28, %v561_v33 }
 0x210   :  { %v844_v26 = vpack.c.bf16 %v828_v12, %v828_v12  ;;  %5514 = vmatmul.msk.f32.gmra.mxu3 %vm515_vm3, %v584_v22 }
 0x211   :  { %868 = vst.msk [vmem:[#allocation7 + $0x20] sm:$0xf] %vm859_vm4, %v851_v25  ;;  %5510 = vmatmul.msk.f32.gmra.mxu2 %vm515_vm3, %v580_v11  ;;  %v7358_v11 = vld [vmem:[%s9587_s6 + $0x1] sm:$0x1] }
 0x212   :  { %861 = vst.msk [vmem:[#allocation7 + $0x4] sm:$0xf] %vm859_vm4, %v844_v26  ;;  %v7363_v26 = vld [vmem:[%s9586_s5 + $0x1] sm:$0x1] }
 0x214   :  { %v7277_v31 = vpop.permute.xlu2 %804  ;;  %v7279_v32 = vpop.permute.xlu1 %759 }
 0x215   :  { %v838_v38 = vmul.f32 %v7277_v31, %v7208_v43  ;;  %v829_v15 = vmul.f32 %v7279_v32, %v7128_v46  ;;  %v7285_v34 = vpop.permute.xlu0 %779  ;;  %v566_v35 = vld [vmem:[#allocation4 + $0x78] sm:$0xff] }
 0x216   :  { %v833_v37 = vmul.f32 %v7285_v34, %v7188_v20  ;;  %v585_v39 = vmul.f32 %v7093_v28, %v566_v35 }
 0x217   :  { %v854_v40 = vpack.c.bf16 %v838_v38, %v838_v38  ;;  %v845_v41 = vpack.c.bf16 %v829_v15, %v829_v15 }
 0x218   :  { %v849_v42 = vpack.c.bf16 %v833_v37, %v833_v37  ;;  %5515 = vmatmul.msk.f32.gmra.mxu3 %vm515_vm3, %v585_v39 }
 0x219   :  { %871 = vst.msk [vmem:[#allocation7 + $0x2c] sm:$0xf] %vm859_vm4, %v854_v40 }
 0x21a   :  { %862 = vst.msk [vmem:[#allocation7 + $0x8] sm:$0xf] %vm859_vm4, %v845_v41 }
 0x21b   :  { %866 = vst.msk [vmem:[#allocation7 + $0x18] sm:$0xf] %vm859_vm4, %v849_v42 }
 0x21c   :  { %v7294_v46 = vpop.permute.xlu2 %819  ;;  %v7296_v43 = vpop.permute.xlu1 %769 }
 0x21d   :  { %v841_v45 = vmul.f32 %v7294_v46, %v565_v9  ;;  %v831_v28 = vmul.f32 %v7296_v43, %v7164_v3  ;;  %v7301_v20 = vpop.permute.xlu0 %794 }
 0x21e   :  { %v836_v44 = vmul.f32 %v7301_v20, %v560_v1 }
 0x21f   :  { %v857_v36 = vpack.c.bf16 %v841_v45, %v841_v45  ;;  %v847_v47 = vpack.c.bf16 %v831_v28, %v831_v28 }
 0x220   :  { %v852_v53 = vpack.c.bf16 %v836_v44, %v836_v44 }
 0x221   :  { %874 = vst.msk [vmem:[#allocation7 + $0x38] sm:$0xf] %vm859_vm4, %v857_v36 }
 0x222   :  { %864 = vst.msk [vmem:[#allocation7 + $0x10] sm:$0xf] %vm859_vm4, %v847_v47 }
 0x223   :  { %869 = vst.msk [vmem:[#allocation7 + $0x24] sm:$0xf] %vm859_vm4, %v852_v53  ;;  %v667_v49 = vpop.f32.mrf.mxu2 }
 0x224   :  { %v7312_v3 = vpop.permute.xlu1 %784  ;;  %v668_v50 = vadd.f32 %v7308_v48, %v667_v49 }
 0x225   :  { %v834_v51 = vmul.f32 %v7312_v3, %v7193_v23  ;;  %v7317_v52 = vpop.permute.xlu0 %809 }
 0x226   :  { %v839_v24 = vmul.f32 %v7317_v52, %v7236_v60  ;;  %715 = vst.msk [vmem:[#allocation6] sm:$0xff] %vm515_vm3, %v668_v50 }
 0x227   :  { %v850_v55 = vpack.c.bf16 %v834_v51, %v834_v51 }
 0x228   :  { %v855_v54 = vpack.c.bf16 %v839_v24, %v839_v24 }
 0x229   :  { %867 = vst.msk [vmem:[#allocation7 + $0x1c] sm:$0xf] %vm859_vm4, %v850_v55 }
 0x22a   :  { %872 = vst.msk [vmem:[#allocation7 + $0x30] sm:$0xf] %vm859_vm4, %v855_v54 }
 0x22b   :  { %v670_v57 = vpop.f32.mrf.mxu2 }
 0x22c   :  { %v7324_v63 = vpop.permute.xlu1 %799  ;;  %v671_v59 = vadd.f32 %v7308_v48, %v670_v57 }
 0x22d   :  { %v837_v23 = vmul.f32 %v7324_v63, %v561_v33  ;;  %v7328_v61 = vpop.permute.xlu0 %824 }
 0x22e   :  { %v842_v62 = vmul.f32 %v7328_v61, %v566_v35  ;;  %716 = vst.msk [vmem:[#allocation6 + $0x8] sm:$0xff] %vm515_vm3, %v671_v59 }
 0x22f   :  { %v853_v60 = vpack.c.bf16 %v837_v23, %v837_v23 }
 0x230   :  { %v858_v0 = vpack.c.bf16 %v842_v62, %v842_v62 }
 0x231   :  { %870 = vst.msk [vmem:[#allocation7 + $0x28] sm:$0xf] %vm859_vm4, %v853_v60 }
 0x232   :  { %875 = vst.msk [vmem:[#allocation7 + $0x3c] sm:$0xf] %vm859_vm4, %v858_v0 }
 0x233   :  { %v673_v1 = vpop.f32.mrf.mxu2 }
 0x234   :  { %v7334_v27 = vpop.permute.xlu1 %814  ;;  %v674_v4 = vadd.f32 %v7308_v48, %v673_v1 }
 0x235   :  { %v840_v5 = vmul.f32 %v7334_v27, %v7246_v2 }
 0x236   :  { %717 = vst.msk [vmem:[#allocation6 + $0x10] sm:$0xff] %vm515_vm3, %v674_v4 }
 0x237   :  { %v856_v6 = vpack.c.bf16 %v840_v5, %v840_v5 }
 0x239   :  { %873 = vst.msk [vmem:[#allocation7 + $0x34] sm:$0xf] %vm859_vm4, %v856_v6 }
 0x23b   :  { %v676_v7 = vpop.f32.mrf.mxu2 }
 0x23c   :  { %v677_v8 = vadd.f32 %v7308_v48, %v676_v7 }
 0x23e   :  { %718 = vst.msk [vmem:[#allocation6 + $0x18] sm:$0xff] %vm515_vm3, %v677_v8 }
 0x243   :  { %v679_v10 = vpop.f32.mrf.mxu2 }
 0x244   :  { %v680_v30 = vadd.f32 %v7308_v48, %v679_v10 }
 0x246   :  { %719 = vst.msk [vmem:[#allocation6 + $0x20] sm:$0xff] %vm515_vm3, %v680_v30 }
 0x24b   :  { %v682_v9 = vpop.f32.mrf.mxu2 }
 0x24c   :  { %v683_v14 = vadd.f32 %v7308_v48, %v682_v9 }
 0x24e   :  { %720 = vst.msk [vmem:[#allocation6 + $0x28] sm:$0xff] %vm515_vm3, %v683_v14 }
 0x253   :  { %v685_v2 = vpop.f32.mrf.mxu2 }
 0x254   :  { %v686_v13 = vadd.f32 %v7308_v48, %v685_v2 }
 0x256   :  { %721 = vst.msk [vmem:[#allocation6 + $0x30] sm:$0xff] %vm515_vm3, %v686_v13 }
 0x25b   :  { %v688_v17 = vpop.f32.mrf.mxu2 }
 0x25c   :  { %v689_v18 = vadd.f32 %v7308_v48, %v688_v17 }
 0x25e   :  { %722 = vst.msk [vmem:[#allocation6 + $0x38] sm:$0xff] %vm515_vm3, %v689_v18 }
 0x274   :  { %v700_v12 = vpop.f32.mrf.mxu3 }
 0x275   :  { %v701_v22 = vadd.f32 %v7308_v48, %v700_v12 }
 0x277   :  { %726 = vst.msk [vmem:[#allocation6 + $0x58] sm:$0xff] %vm515_vm3, %v701_v22 }
 0x27b   :  { %v691_v33 = vpop.f32.mrf.mxu2 }
 0x27c   :  { %v692_v25 = vadd.f32 %v7308_v48, %v691_v33 }
 0x27e   :  { %723 = vst.msk [vmem:[#allocation6 + $0x40] sm:$0xff] %vm515_vm3, %v692_v25 }
 0x283   :  { %v703_v38 = vpop.f32.mrf.mxu3 }
 0x284   :  { %v704_v15 = vadd.f32 %v7308_v48, %v703_v38 }
 0x285   :  { %v694_v35 = vpop.f32.mrf.mxu2 }
 0x286   :  { %727 = vst.msk [vmem:[#allocation6 + $0x60] sm:$0xff] %vm515_vm3, %v704_v15  ;;  %v695_v37 = vadd.f32 %v7308_v48, %v694_v35 }
 0x288   :  { %724 = vst.msk [vmem:[#allocation6 + $0x48] sm:$0xff] %vm515_vm3, %v695_v37 }
 0x28b   :  { %v706_v39 = vpop.f32.mrf.mxu3 }
 0x28c   :  { %v707_v40 = vadd.f32 %v7308_v48, %v706_v39 }
 0x28e   :  { %728 = vst.msk [vmem:[#allocation6 + $0x68] sm:$0xff] %vm515_vm3, %v707_v40 }
 0x293   :  { %v709_v41 = vpop.f32.mrf.mxu3 }
 0x294   :  { %v710_v42 = vadd.f32 %v7308_v48, %v709_v41  ;;  %v697_v45 = vpop.f32.mrf.mxu2 }
 0x295   :  { %v698_v28 = vadd.f32 %v7308_v48, %v697_v45 }
 0x296   :  { %729 = vst.msk [vmem:[#allocation6 + $0x70] sm:$0xff] %vm515_vm3, %v710_v42 }
 0x297   :  { %725 = vst.msk [vmem:[#allocation6 + $0x50] sm:$0xff] %vm515_vm3, %v698_v28 }
 0x29b   :  { %v712_v44 = vpop.f32.mrf.mxu3 }
 0x29c   :  { %v713_v36 = vadd.f32 %v7308_v48, %v712_v44 }
 0x29e   :  { %730 = vst.msk [vmem:[#allocation6 + $0x78] sm:$0xff] %vm515_vm3, %v713_v36 }
 0x29f LB: > { %p886_p0 = scmp.lt.s32.totalorder %s6646_s10, 0  ;;  %s887_s11 = ssub.s32 0, %s6646_s10  ;;  %s6646_s10 = sphi %s7377_s10, %s9623_s10  }
 0x2a0   : > { %s5518_s12 = smin.u32 %s6646_s10, %s887_s11 }
 0x2a1   : > { %s889_s3 = sand.u32 1, %s5518_s12  }
 0x2a2   : > { %s890_s26 = ssub.s32 0, %s889_s3 }
 0x2a3   : > { %s9652_s26 = smov (!%p886_p0, %s890_s26), %s889_s3 }
 0x2a4   : > { %s6044_s27 = sshll.u32 %s9652_s26, 4  ;;  %s895_s4 = scalar_lea.sflag [#allocation3], %s9652_s26 }
 0x2a5   : > { %s7385_s28 = scalar_lea.vmem [#allocation2], %s6044_s27 }
 0x2a6   : > { %6630 = dma.done.wait %s895_s4, 256 }
 0x2a7   : > { %6631 = vsyncadd %s895_s4, 4294967040  ;;  %s900_s30 = sadd.s32 1, %s6646_s10  }
 0x2a8   : > { %p7390_p1 = scmp.ge.s32.totalorder %s900_s30, 2 }
 0x2a9   : > { %s6045_s21 = sshll.u32 (!%p7390_p1), %s6646_s10, 6  ;;  %s906_s1 = ssub.s32 (!%p7390_p1), 1, %s9652_s26 }
 0x2aa   : > { %904 = sbr.rel (%p7390_p1) target bundleno = 695 (0x2b7), region = 99  ;;  %s6046_s2 = sadd.s32 (!%p7390_p1), 64, %s6045_s21 }
 0x2ab   : > { %s6047_s9 = sshll.u32 (!%p7390_p1), %s906_s1, 4  ;;  %s907_s22 = sshra.s32 (!%p7390_p1), %s6046_s2, 5 }
 0x2ac   : > { %s5523_s23 = sshll.u32 (!%p7390_p1), %s907_s22, 3  ;;  %s9621_s11 = sld [smem:[#allocation31_spill]] (!%p7390_p1) }
 0x2ad   : > { %s913_s3 = scalar_lea.vmem (!%p7390_p1), [#allocation2], %s6047_s9  ;;  %s914_s27 = scalar_lea.sflag (!%p7390_p1), [#allocation3], %s906_s1 }
 0x2b2   : > { %s910_s12 = scalar_lea.vmem %s9621_s11, %s5523_s23 }
 0x2b3   : > { %v925_v47 = vld [vmem:[%s910_s12] sm:$0xff]  ;;  %v927_v53 = vld [vmem:[%s910_s12 + $0x8] sm:$0xff] }
 0x2b4   : > { %926 = vst [vmem:[%s913_s3] sm:$0xff] %v925_v47 }
 0x2b5   : > { %928 = vst [vmem:[%s913_s3 + $0x8] sm:$0xff] %v927_v53 }
 0x2b6   : > { %934 = vsyncadd %s914_s27, 256 }
 0x2b7 PF: > { %v6055_v48 = vld [vmem:[#allocation7 + $0x38] sm:$0xff]  ;;  %s7401_s4 = sshll.u32 %s6646_s10, 6  ;;  %v6671_v49 = vmov 0   ;;  %s9622_s2 = sld [smem:[#allocation34_spill]]  ;;  %v6054_v50 = vld [vmem:[#allocation7 + $0x30] sm:$0xff]  ;;  %v6053_v54 = vld [vmem:[#allocation7 + $0x28] sm:$0xff] }
 0x2b8   : > { %6406 = vset.pattern.permute.xlu1 %v6671_v49  ;;  %6405 = vset.pattern.permute.xlu0 %v6671_v49  ;;  %v6052_v23 = vld [vmem:[#allocation7 + $0x20] sm:$0xff]  ;;  %v6051_v60 = vld [vmem:[#allocation7 + $0x18] sm:$0xff]  ;;  %v6050_v4 = vld [vmem:[#allocation7 + $0x10] sm:$0xff]  ;;  %v7420_v36 = vperm.slane %v7358_v11, 0  ;;  %s7433_s1 = scalar_lea.vmem [#allocation6], %s7401_s4  ;;  %s7439_s9 = scalar_lea.vmem [#allocation5], %s7401_s4 }
 0x2b9   : > { %1022 = vmatpush.bf16.msra.mxu0 %v6055_v48  ;;  %6134 = vmatpush.bf16.msra.mxu1 %v6055_v48  ;;  %v6049_v9 = vld [vmem:[#allocation7 + $0x8] sm:$0xff]  ;;  %v6048_v25 = vld [vmem:[#allocation7] sm:$0xff]  ;;  %s9623_s10 = smov %s900_s30  ;;  %s9624_s25 = sld [smem:[#allocation31_spill]] (%p7390_p1) }
 0x2ba   : > { %6135 = vmatpush.bf16.msra.mxu2 %v6055_v48  ;;  %6136 = vmatpush.bf16.msra.mxu3 %v6055_v48 }
 0x2bb   : > { %6407 = vset.pattern.permute.xlu2 %v6671_v49 }
 0x2bc   : > { %v936_v5 = vld [vmem:[%s7385_s28] sm:$0xff]  ;;  %v937_v6 = vld [vmem:[%s7385_s28 + $0x8] sm:$0xff]  ;;  %s7423_s28 = scalar_lea.vmem [#allocation4], %s7401_s4 }
 0x2bd   : > { %s7407_s22 = scalar_lea.vmem %s9622_s2, %s7401_s4  ;;  %1023 = vmatpush.bf16.msra.mxu0 %v6054_v50  ;;  %6137 = vmatpush.bf16.msra.mxu1 %v6054_v50  ;;  %v938_v7 = vunpack.c.0.s8 %v936_v5  ;;  %v939_v8 = vunpack.c.1.s8 %v936_v5  ;;  %v940_v10 = vunpack.c.2.s8 %v936_v5  ;;  %v941_v30 = vunpack.c.3.s8 %v936_v5 }
 0x2be   : > { %v1054_v51 = vld [vmem:[%s7407_s22 + $0x10] sm:$0xff]  ;;  %v1052_v24 = vld [vmem:[%s7407_s22] sm:$0xff]  ;;  %6138 = vmatpush.bf16.msra.mxu2 %v6054_v50  ;;  %6139 = vmatpush.bf16.msra.mxu3 %v6054_v50  ;;  %v1055_v57 = vld [vmem:[%s7407_s22 + $0x18] sm:$0xff]  ;;  %v942_v14 = vunpack.c.0.s8 %v937_v6  ;;  %v943_v2 = vunpack.c.1.s8 %v937_v6  ;;  %v944_v13 = vunpack.c.2.s8 %v937_v6  ;;  %v945_v17 = vunpack.c.3.s8 %v937_v6 }
 0x2bf   : > { %1081 = vperm.xlu1 %6406, %v1054_v51   ;;  %1071 = vperm.xlu0 %6405, %v1052_v24   ;;  %v1056_v55 = vld [vmem:[%s7407_s22 + $0x20] sm:$0xff]  ;;  %v1053_v59 = vld [vmem:[%s7407_s22 + $0x8] sm:$0xff]  ;;  %v1059_v0 = vld [vmem:[%s7407_s22 + $0x38] sm:$0xff]  ;;  %v946_v18 = vcvt.s32.f32 %v938_v7  ;;  %v947_v12 = vcvt.s32.f32 %v939_v8  ;;  %v948_v22 = vcvt.s32.f32 %v940_v10  ;;  %v949_v33 = vcvt.s32.f32 %v941_v30 }
 0x2c0   : > { %1091 = vperm.xlu2 %6407, %v1056_v55   ;;  %v1057_v62 = vld [vmem:[%s7407_s22 + $0x28] sm:$0xff]  ;;  %v1058_v1 = vld [vmem:[%s7407_s22 + $0x30] sm:$0xff]  ;;  %v950_v38 = vcvt.s32.f32 %v942_v14  ;;  %v951_v15 = vcvt.s32.f32 %v943_v2  ;;  %v952_v35 = vcvt.s32.f32 %v944_v13  ;;  %v953_v37 = vcvt.s32.f32 %v945_v17  ;;  %v1061_v50 = vld [vmem:[%s7423_s28] sm:$0xff] }
 0x2c1   : > { %1024 = vmatpush.bf16.msra.mxu0 %v6053_v54  ;;  %6140 = vmatpush.bf16.msra.mxu1 %v6053_v54  ;;  %v954_v39 = vpack.c.bf16 %v947_v12, %v946_v18  ;;  %v955_v40 = vpack.c.bf16 %v949_v33, %v948_v22  ;;  %v1063_v51 = vld [vmem:[%s7423_s28 + $0x10] sm:$0xff]  ;;  %v7429_v55 = vperm.slane %v7363_v26, 0  ;;  %v1065_v13 = vld [vmem:[%s7423_s28 + $0x20] sm:$0xff] }
 0x2c2   : > { %6141 = vmatpush.bf16.msra.mxu2 %v6053_v54  ;;  %6142 = vmatpush.bf16.msra.mxu3 %v6053_v54  ;;  %v956_v41 = vpack.c.bf16 %v951_v15, %v950_v38  ;;  %v957_v42 = vpack.c.bf16 %v953_v37, %v952_v35  ;;  %v1067_v17 = vld [vmem:[%s7423_s28 + $0x30] sm:$0xff]  ;;  %v1064_v38 = vld [vmem:[%s7423_s28 + $0x18] sm:$0xff] }
 0x2c5   : > { %1025 = vmatpush.bf16.msra.mxu0 %v6052_v23  ;;  %6143 = vmatpush.bf16.msra.mxu1 %v6052_v23 }
 0x2c6   : > { %6144 = vmatpush.bf16.msra.mxu2 %v6052_v23  ;;  %6145 = vmatpush.bf16.msra.mxu3 %v6052_v23 }
 0x2c7   : > { %1086 = vperm.xlu1 %6406, %v1055_v57   ;;  %1076 = vperm.xlu0 %6405, %v1053_v59  }
 0x2c8   : > { %1096 = vperm.xlu2 %6407, %v1057_v62  }
 0x2c9   : > { %1026 = vmatpush.bf16.msra.mxu0 %v6051_v60  ;;  %6146 = vmatpush.bf16.msra.mxu1 %v6051_v60 }
 0x2ca   : > { %6147 = vmatpush.bf16.msra.mxu2 %v6051_v60  ;;  %6148 = vmatpush.bf16.msra.mxu3 %v6051_v60 }
 0x2cd   : > { %1027 = vmatpush.bf16.msra.mxu0 %v6050_v4  ;;  %6149 = vmatpush.bf16.msra.mxu1 %v6050_v4 }
 0x2ce   : > { %6150 = vmatpush.bf16.msra.mxu2 %v6050_v4  ;;  %6151 = vmatpush.bf16.msra.mxu3 %v6050_v4 }
 0x2cf   : > { %1106 = vperm.xlu1 %6406, %v1059_v0   ;;  %1101 = vperm.xlu0 %6405, %v1058_v1   ;;  %v1137_v0 = vld [vmem:[%s7433_s1] sm:$0xff]  ;;  %v1139_v1 = vld [vmem:[%s7433_s1 + $0x10] sm:$0xff] }
 0x2d1   : > { %1028 = vmatpush.bf16.msra.mxu0 %v6049_v9  ;;  %6152 = vmatpush.bf16.msra.mxu1 %v6049_v9 }
 0x2d2   : > { %6153 = vmatpush.bf16.msra.mxu2 %v6049_v9  ;;  %6154 = vmatpush.bf16.msra.mxu3 %v6049_v9 }
 0x2d5   : > { %1029 = vmatpush.bf16.msra.mxu0 %v6048_v25  ;;  %6155 = vmatpush.bf16.msra.mxu1 %v6048_v25 }
 0x2d6   : > { %6156 = vmatpush.bf16.msra.mxu2 %v6048_v25  ;;  %6157 = vmatpush.bf16.msra.mxu3 %v6048_v25  ;;  %v1062_v25 = vld [vmem:[%s7423_s28 + $0x8] sm:$0xff] }
 0x2d8   : > { %1030 = vmatmul.bf16.vlgmr.msra.gmra.mxu0 %v954_v39  ;;  %1035 = vmatmul.bf16.vlgmr.msra.gmra.mxu1 %v955_v40  ;;  %v1141_v40 = vld [vmem:[%s7433_s1 + $0x20] sm:$0xff] }
 0x2d9   : > { %1040 = vmatmul.bf16.vlgmr.msra.gmra.mxu2 %v956_v41  ;;  %1045 = vmatmul.bf16.vlgmr.msra.gmra.mxu3 %v957_v42  ;;  %v1143_v41 = vld [vmem:[%s7433_s1 + $0x30] sm:$0xff] }
 0x31a   : > { %v1092_v59 = vpop.permute.xlu2 %1091 }
 0x331   : > { %v1072_v45 = vpop.permute.xlu0 %1071  ;;  %v1082_v28 = vpop.permute.xlu1 %1081 }
 0x339   : > { %v1077_v44 = vpop.permute.xlu0 %1076  ;;  %v1087_v57 = vpop.permute.xlu1 %1086 }
 0x341   : > { %v1102_v60 = vpop.permute.xlu0 %1101 }
 0x355   : > { %v1031_v47 = vpop.f32.mrf.mxu0  ;;  %v1036_v53 = vpop.f32.mrf.mxu1 }
 0x356   : > { %v1109_v48 = vmul.f32 %v1072_v45, %v1031_v47  ;;  %v1111_v49 = vmul.f32 %v1082_v28, %v1036_v53  ;;  %v1107_v28 = vpop.permute.xlu1 %1106  ;;  %v1097_v53 = vpop.permute.xlu2 %1096 }
 0x358   : > { %v1120_v24 = vmul.f32 %v7420_v36, %v1109_v48  ;;  %v1122_v54 = vmul.f32 %v7420_v36, %v1111_v49  ;;  %v1138_v48 = vld [vmem:[%s7433_s1 + $0x8] sm:$0xff]  ;;  %v1140_v49 = vld [vmem:[%s7433_s1 + $0x18] sm:$0xff] }
 0x35a   : > { %v1128_v23 = vsub.f32 %v1061_v50, %v1120_v24  ;;  %v1130_v62 = vsub.f32 %v1063_v51, %v1122_v54 }
 0x35c   : > { %v1148_v4 = vmul.f32 %v7429_v55, %v1128_v23  ;;  %1173 = vst.msk [vmem:[%s7439_s9] sm:$0xff] %vm515_vm3, %v1128_v23  ;;  %v1150_v5 = vmul.f32 %v7429_v55, %v1130_v62  ;;  %v1041_v6 = vpop.f32.mrf.mxu2  ;;  %v1046_v7 = vpop.f32.mrf.mxu3 }
 0x35d   : > { %1175 = vst.msk [vmem:[%s7439_s9 + $0x10] sm:$0xff] %vm515_vm3, %v1130_v62  ;;  %v1113_v8 = vmul.f32 %v1092_v59, %v1041_v6  ;;  %v1115_v10 = vmul.f32 %v1102_v60, %v1046_v7  ;;  %v1033_v30 = vpop.f32.mrf.mxu0  ;;  %v1038_v9 = vpop.f32.mrf.mxu1 }
 0x35e   : > { %v1156_v14 = vadd.f32 %v1148_v4, %v1137_v0  ;;  %v1158_v2 = vadd.f32 %v1150_v5, %v1139_v1  ;;  %v1110_v18 = vmul.f32 %v1077_v44, %v1033_v30  ;;  %v1112_v12 = vmul.f32 %v1087_v57, %v1038_v9  ;;  %v1066_v1 = vld [vmem:[%s7423_s28 + $0x28] sm:$0xff]  ;;  %v1068_v4 = vld [vmem:[%s7423_s28 + $0x38] sm:$0xff] }
 0x35f   : > { %v1124_v22 = vmul.f32 %v7420_v36, %v1113_v8  ;;  %v1126_v33 = vmul.f32 %v7420_v36, %v1115_v10  ;;  %v1142_v10 = vld [vmem:[%s7433_s1 + $0x28] sm:$0xff]  ;;  %v1144_v30 = vld [vmem:[%s7433_s1 + $0x38] sm:$0xff] }
 0x360   : > { %1164 = vst.msk [vmem:[%s7433_s1] sm:$0xff] %vm515_vm3, %v1156_v14  ;;  %v1121_v15 = vmul.f32 %v7420_v36, %v1110_v18  ;;  %v1123_v35 = vmul.f32 %v7420_v36, %v1112_v12 }
 0x361   : > { %1166 = vst.msk [vmem:[%s7433_s1 + $0x10] sm:$0xff] %vm515_vm3, %v1158_v2  ;;  %v1132_v37 = vsub.f32 %v1065_v13, %v1124_v22  ;;  %v1134_v39 = vsub.f32 %v1067_v17, %v1126_v33  ;;  %v1191_v13 = vld [vmem:[%s9624_s25] sm:$0xff] (%p7390_p1) }
 0x362   : > { %v1129_v42 = vsub.f32 %v1062_v25, %v1121_v15  ;;  %v1131_v45 = vsub.f32 %v1064_v38, %v1123_v35  ;;  %1192 = vst [vmem:[#allocation2] sm:$0xff] (%p7390_p1), %v1191_v13 }
 0x363   : > { %v1152_v44 = vmul.f32 %v7429_v55, %v1132_v37  ;;  %1177 = vst.msk [vmem:[%s7439_s9 + $0x20] sm:$0xff] %vm515_vm3, %v1132_v37  ;;  %v1154_v47 = vmul.f32 %v7429_v55, %v1134_v39 }
 0x364   : > { %1179 = vst.msk [vmem:[%s7439_s9 + $0x30] sm:$0xff] %vm515_vm3, %v1134_v39  ;;  %v1149_v50 = vmul.f32 %v7429_v55, %v1129_v42  ;;  %v1151_v51 = vmul.f32 %v7429_v55, %v1131_v45  ;;  %v1043_v24 = vpop.f32.mrf.mxu2  ;;  %v1048_v54 = vpop.f32.mrf.mxu3 }
 0x365   : > { %v1160_v57 = vadd.f32 %v1152_v44, %v1141_v40  ;;  %v1162_v59 = vadd.f32 %v1154_v47, %v1143_v41  ;;  %1174 = vst.msk [vmem:[%s7439_s9 + $0x8] sm:$0xff] %vm515_vm3, %v1129_v42  ;;  %v1114_v23 = vmul.f32 %v1097_v53, %v1043_v24  ;;  %v1116_v62 = vmul.f32 %v1107_v28, %v1048_v54 }
 0x366   : > { %v1157_v60 = vadd.f32 %v1149_v50, %v1138_v48  ;;  %v1159_v0 = vadd.f32 %v1151_v51, %v1140_v49  ;;  %1176 = vst.msk [vmem:[%s7439_s9 + $0x18] sm:$0xff] %vm515_vm3, %v1131_v45 }
 0x367   : > { %1168 = vst.msk [vmem:[%s7433_s1 + $0x20] sm:$0xff] %vm515_vm3, %v1160_v57  ;;  %v1125_v5 = vmul.f32 %v7420_v36, %v1114_v23  ;;  %v1127_v6 = vmul.f32 %v7420_v36, %v1116_v62 }
 0x368   : > { %1170 = vst.msk [vmem:[%s7433_s1 + $0x30] sm:$0xff] %vm515_vm3, %v1162_v59 }
 0x369   : > { %1165 = vst.msk [vmem:[%s7433_s1 + $0x8] sm:$0xff] %vm515_vm3, %v1157_v60  ;;  %v1133_v7 = vsub.f32 %v1066_v1, %v1125_v5  ;;  %v1135_v8 = vsub.f32 %v1068_v4, %v1127_v6 }
 0x36a   : > { %1167 = vst.msk [vmem:[%s7433_s1 + $0x18] sm:$0xff] %vm515_vm3, %v1159_v0 }
 0x36b   : > { %v1153_v9 = vmul.f32 %v7429_v55, %v1133_v7  ;;  %1178 = vst.msk [vmem:[%s7439_s9 + $0x28] sm:$0xff] %vm515_vm3, %v1133_v7  ;;  %v1155_v14 = vmul.f32 %v7429_v55, %v1135_v8  ;;  %v1193_v55 = vld [vmem:[%s9624_s25 + $0x8] sm:$0xff] (%p7390_p1) }
 0x36c   : > { %1180 = vst.msk [vmem:[%s7439_s9 + $0x38] sm:$0xff] %vm515_vm3, %v1135_v8  ;;  %884 = sbr.rel (!%p7390_p1) target bundleno = 671 (0x29f), region = 510 }
 0x36d   : > { %v1161_v2 = vadd.f32 %v1153_v9, %v1142_v10  ;;  %v1163_v36 = vadd.f32 %v1155_v14, %v1144_v30  ;;  %1194 = vst [vmem:[#allocation2 + $0x8] sm:$0xff] (%p7390_p1), %v1193_v55 }
 0x36f   : > { %1169 = vst.msk [vmem:[%s7433_s1 + $0x28] sm:$0xff] %vm515_vm3, %v1161_v2 }
 0x370   : > { %1171 = vst.msk [vmem:[%s7433_s1 + $0x38] sm:$0xff] %vm515_vm3, %v1163_v36 }
 0x371   :  { %1200 = vsyncadd [#allocation3], 256  ;;  %v7523_v48 = vld [vmem:[%s9587_s6 + $0x2] sm:$0x1]  ;;  %s7552_s27 = smov 0  }
 0x373   :  { %v1201_v17 = vld [vmem:[#allocation5] sm:$0xff]  ;;  %v1202_v18 = vld [vmem:[#allocation5 + $0x8] sm:$0xff]  ;;  %v1203_v33 = vld [vmem:[#allocation5 + $0x10] sm:$0xff] }
 0x374   :  { %v1217_v12 = vmul.f32 %v1201_v17, %v7217_v21  ;;  %v1218_v22 = vmul.f32 %v1202_v18, %v7266_v19  ;;  %v1204_v25 = vld [vmem:[#allocation5 + $0x18] sm:$0xff]  ;;  %v1205_v38 = vld [vmem:[#allocation5 + $0x20] sm:$0xff]  ;;  %v1219_v11 = vmul.f32 %v1203_v33, %v7279_v32  ;;  %v1206_v35 = vld [vmem:[#allocation5 + $0x28] sm:$0xff] }
 0x375   :  { %v1220_v26 = vmul.f32 %v1204_v25, %v7230_v29  ;;  %v1221_v15 = vmul.f32 %v1205_v38, %v7296_v43  ;;  %v1207_v37 = vld [vmem:[#allocation5 + $0x30] sm:$0xff]  ;;  %v1208_v39 = vld [vmem:[#allocation5 + $0x38] sm:$0xff]  ;;  %v1222_v42 = vmul.f32 %v1206_v35, %v7248_v58  ;;  %v1209_v45 = vld [vmem:[#allocation5 + $0x40] sm:$0xff] }
 0x376   :  { %v1233_v40 = vpack.c.bf16 %v1217_v12, %v1217_v12  ;;  %v1234_v41 = vpack.c.bf16 %v1218_v22, %v1218_v22  ;;  %v1223_v21 = vmul.f32 %v1207_v37, %v7285_v34  ;;  %v1210_v19 = vld [vmem:[#allocation5 + $0x48] sm:$0xff]  ;;  %v1235_v28 = vpack.c.bf16 %v1219_v11, %v1219_v11  ;;  %v1211_v32 = vld [vmem:[#allocation5 + $0x50] sm:$0xff]  ;;  %v1212_v53 = vld [vmem:[#allocation5 + $0x58] sm:$0xff] }
 0x377   :  { %v1236_v44 = vpack.c.bf16 %v1220_v26, %v1220_v26  ;;  %v1224_v47 = vmul.f32 %v1208_v39, %v7312_v3  ;;  %v1237_v29 = vpack.c.bf16 %v1221_v15, %v1221_v15  ;;  %v1225_v43 = vmul.f32 %v1209_v45, %v7262_v16  ;;  %v1213_v49 = vld [vmem:[#allocation5 + $0x60] sm:$0xff]  ;;  %v1214_v51 = vld [vmem:[#allocation5 + $0x68] sm:$0xff]  ;;  %v1215_v57 = vld [vmem:[#allocation5 + $0x70] sm:$0xff] }
 0x378   :  { %1249 = vst.msk [vmem:[#allocation7] sm:$0xf] %vm859_vm4, %v1233_v40  ;;  %v1238_v58 = vpack.c.bf16 %v1222_v42, %v1222_v42  ;;  %v1226_v34 = vmul.f32 %v1210_v19, %v7301_v20  ;;  %v7530_v3 = vld [vmem:[%s9586_s5 + $0x2] sm:$0x1]  ;;  %v1239_v16 = vpack.c.bf16 %v1223_v21, %v1223_v21  ;;  %v1227_v50 = vmul.f32 %v1211_v32, %v7324_v63  ;;  %v1216_v23 = vld [vmem:[#allocation5 + $0x78] sm:$0xff] }
 0x379   :  { %1250 = vst.msk [vmem:[#allocation7 + $0x4] sm:$0xf] %vm859_vm4, %v1234_v41  ;;  %v1240_v24 = vpack.c.bf16 %v1224_v47, %v1224_v47  ;;  %v1228_v54 = vmul.f32 %v1212_v53, %v7277_v31  ;;  %v1241_v20 = vpack.c.bf16 %v1225_v43, %v1225_v43  ;;  %v1229_v59 = vmul.f32 %v1213_v49, %v7317_v52 }
 0x37a   :  { %1251 = vst.msk [vmem:[#allocation7 + $0x8] sm:$0xf] %vm859_vm4, %v1235_v28  ;;  %v1242_v62 = vpack.c.bf16 %v1226_v34, %v1226_v34  ;;  %v1230_v60 = vmul.f32 %v1214_v51, %v7334_v27  ;;  %v1243_v63 = vpack.c.bf16 %v1227_v50, %v1227_v50  ;;  %v1231_v0 = vmul.f32 %v1215_v57, %v7294_v46 }
 0x37b   :  { %1252 = vst.msk [vmem:[#allocation7 + $0xc] sm:$0xf] %vm859_vm4, %v1236_v44  ;;  %v1244_v31 = vpack.c.bf16 %v1228_v54, %v1228_v54  ;;  %v1232_v1 = vmul.f32 %v1216_v23, %v7328_v61  ;;  %v1245_v4 = vpack.c.bf16 %v1229_v59, %v1229_v59 }
 0x37c   :  { %1253 = vst.msk [vmem:[#allocation7 + $0x10] sm:$0xf] %vm859_vm4, %v1237_v29  ;;  %v1246_v52 = vpack.c.bf16 %v1230_v60, %v1230_v60  ;;  %v1247_v5 = vpack.c.bf16 %v1231_v0, %v1231_v0 }
 0x37d   :  { %1254 = vst.msk [vmem:[#allocation7 + $0x14] sm:$0xf] %vm859_vm4, %v1238_v58  ;;  %v1248_v27 = vpack.c.bf16 %v1232_v1, %v1232_v1 }
 0x37e   :  { %1255 = vst.msk [vmem:[#allocation7 + $0x18] sm:$0xf] %vm859_vm4, %v1239_v16 }
 0x37f   :  { %1256 = vst.msk [vmem:[#allocation7 + $0x1c] sm:$0xf] %vm859_vm4, %v1240_v24 }
 0x380   :  { %1257 = vst.msk [vmem:[#allocation7 + $0x20] sm:$0xf] %vm859_vm4, %v1241_v20 }
 0x381   :  { %1258 = vst.msk [vmem:[#allocation7 + $0x24] sm:$0xf] %vm859_vm4, %v1242_v62 }
 0x382   :  { %1259 = vst.msk [vmem:[#allocation7 + $0x28] sm:$0xf] %vm859_vm4, %v1243_v63 }
 0x383   :  { %1260 = vst.msk [vmem:[#allocation7 + $0x2c] sm:$0xf] %vm859_vm4, %v1244_v31 }
 0x384   :  { %1261 = vst.msk [vmem:[#allocation7 + $0x30] sm:$0xf] %vm859_vm4, %v1245_v4 }
 0x385   :  { %1262 = vst.msk [vmem:[#allocation7 + $0x34] sm:$0xf] %vm859_vm4, %v1246_v52 }
 0x386   :  { %1263 = vst.msk [vmem:[#allocation7 + $0x38] sm:$0xf] %vm859_vm4, %v1247_v5 }
 0x387   :  { %1264 = vst.msk [vmem:[#allocation7 + $0x3c] sm:$0xf] %vm859_vm4, %v1248_v27 }
 0x388 LB: > { %p1275_p2 = scmp.lt.s32.totalorder %s6650_s27, 0  ;;  %s1276_s4 = ssub.s32 0, %s6650_s27  ;;  %s6650_s27 = sphi %s7552_s27, %s9628_s27  }
 0x389   : > { %s5561_s26 = smin.u32 %s6650_s27, %s1276_s4 }
 0x38a   : > { %s1278_s21 = sand.u32 1, %s5561_s26  }
 0x38b   : > { %s1279_s2 = ssub.s32 0, %s1278_s21 }
 0x38c   : > { %s9654_s2 = smov (!%p1275_p2, %s1279_s2), %s1278_s21 }
 0x38d   : > { %s6056_s22 = sshll.u32 %s9654_s2, 4  ;;  %s1284_s1 = scalar_lea.sflag [#allocation3], %s9654_s2 }
 0x38e   : > { %s7560_s28 = scalar_lea.vmem [#allocation2], %s6056_s22 }
 0x38f   : > { %6632 = dma.done.wait %s1284_s1, 256 }
 0x390   : > { %6633 = vsyncadd %s1284_s1, 4294967040  ;;  %s1289_s9 = sadd.s32 1, %s6650_s27  }
 0x391   : > { %p7565_p3 = scmp.ge.s32.totalorder %s1289_s9, 2 }
 0x392   : > { %s6057_s24 = sshll.u32 (!%p7565_p3), %s6650_s27, 6  ;;  %s1295_s25 = ssub.s32 (!%p7565_p3), 1, %s9654_s2 }
 0x393   : > { %1293 = sbr.rel (%p7565_p3) target bundleno = 928 (0x3a0), region = 148  ;;  %s6058_s11 = sadd.s32 (!%p7565_p3), 64, %s6057_s24 }
 0x394   : > { %s6059_s12 = sshll.u32 (!%p7565_p3), %s1295_s25, 4  ;;  %s1296_s10 = sshra.s32 (!%p7565_p3), %s6058_s11, 5 }
 0x395   : > { %s5566_s30 = sshll.u32 (!%p7565_p3), %s1296_s10, 3  ;;  %s9626_s4 = sld [smem:[#allocation31_spill]] (!%p7565_p3) }
 0x396   : > { %s1302_s21 = scalar_lea.vmem (!%p7565_p3), [#allocation2], %s6059_s12  ;;  %s1303_s22 = scalar_lea.sflag (!%p7565_p3), [#allocation3], %s1295_s25 }
 0x39b   : > { %s1299_s26 = scalar_lea.vmem %s9626_s4, %s5566_s30 }
 0x39c   : > { %v1314_v46 = vld [vmem:[%s1299_s26] sm:$0xff]  ;;  %v1316_v61 = vld [vmem:[%s1299_s26 + $0x8] sm:$0xff] }
 0x39d   : > { %1315 = vst [vmem:[%s1302_s21] sm:$0xff] %v1314_v46 }
 0x39e   : > { %1317 = vst [vmem:[%s1302_s21 + $0x8] sm:$0xff] %v1316_v61 }
 0x39f   : > { %1323 = vsyncadd %s1303_s22, 256 }
 0x3a0 PF: > { %v6067_v6 = vld [vmem:[#allocation7 + $0x38] sm:$0xff]  ;;  %s7576_s1 = sshll.u32 %s6650_s27, 6  ;;  %v6672_v7 = vmov 0   ;;  %s9627_s11 = sld [smem:[#allocation34_spill]]  ;;  %v6066_v8 = vld [vmem:[#allocation7 + $0x30] sm:$0xff]  ;;  %v6065_v14 = vld [vmem:[#allocation7 + $0x28] sm:$0xff] }
 0x3a1   : > { %6409 = vset.pattern.permute.xlu1 %v6672_v7  ;;  %6408 = vset.pattern.permute.xlu0 %v6672_v7  ;;  %v6064_v13 = vld [vmem:[#allocation7 + $0x20] sm:$0xff]  ;;  %v6063_v17 = vld [vmem:[#allocation7 + $0x18] sm:$0xff]  ;;  %v6062_v22 = vld [vmem:[#allocation7 + $0x10] sm:$0xff]  ;;  %v7595_v51 = vperm.slane %v7523_v48, 0  ;;  %v7604_v60 = vperm.slane %v7530_v3, 0  ;;  %s7608_s25 = scalar_lea.vmem [#allocation6], %s7576_s1  ;;  %s9628_s27 = smov %s1289_s9 }
 0x3a2   : > { %1411 = vmatpush.bf16.msra.mxu0 %v6067_v6  ;;  %6158 = vmatpush.bf16.msra.mxu1 %v6067_v6  ;;  %v6061_v35 = vld [vmem:[#allocation7 + $0x8] sm:$0xff]  ;;  %v6060_v28 = vld [vmem:[#allocation7] sm:$0xff]  ;;  %v1528_v27 = vld [vmem:[%s7608_s25 + $0x10] sm:$0xff]  ;;  %s9629_s0 = sld [smem:[#allocation32_spill]] (%p7565_p3) }
 0x3a3   : > { %6159 = vmatpush.bf16.msra.mxu2 %v6067_v6  ;;  %6160 = vmatpush.bf16.msra.mxu3 %v6067_v6  ;;  %v1526_v5 = vld [vmem:[%s7608_s25] sm:$0xff]  ;;  %v5647_v48 = vld [vmem:[%s9588_s7 + $0xb8] sm:$0xff] (%p7565_p3)  ;;  %v5646_v3 = vld [vmem:[%s9588_s7 + $0xb0] sm:$0xff] (%p7565_p3) }
 0x3a4   : > { %6410 = vset.pattern.permute.xlu2 %v6672_v7 }
 0x3a5   : > { %v1325_v33 = vld [vmem:[%s7560_s28] sm:$0xff]  ;;  %v1326_v25 = vld [vmem:[%s7560_s28 + $0x8] sm:$0xff]  ;;  %s7598_s28 = scalar_lea.vmem [#allocation5], %s7576_s1 }
 0x3a6   : > { %s7582_s10 = scalar_lea.vmem %s9627_s11, %s7576_s1  ;;  %1412 = vmatpush.bf16.msra.mxu0 %v6066_v8  ;;  %6161 = vmatpush.bf16.msra.mxu1 %v6066_v8  ;;  %v1327_v38 = vunpack.c.0.s8 %v1325_v33  ;;  %v1328_v11 = vunpack.c.1.s8 %v1325_v33  ;;  %v1329_v26 = vunpack.c.2.s8 %v1325_v33  ;;  %v1330_v15 = vunpack.c.3.s8 %v1325_v33  ;;  %v1450_v59 = vld [vmem:[%s7598_s28] sm:$0xff]  ;;  %v1452_v23 = vld [vmem:[%s7598_s28 + $0x10] sm:$0xff]  ;;  %v1453_v33 = vld [vmem:[%s7598_s28 + $0x18] sm:$0xff] }
 0x3a7   : > { %v1443_v10 = vld [vmem:[%s7582_s10 + $0x10] sm:$0xff]  ;;  %v1441_v30 = vld [vmem:[%s7582_s10] sm:$0xff]  ;;  %6162 = vmatpush.bf16.msra.mxu2 %v6066_v8  ;;  %6163 = vmatpush.bf16.msra.mxu3 %v6066_v8  ;;  %v1444_v2 = vld [vmem:[%s7582_s10 + $0x18] sm:$0xff]  ;;  %v1331_v37 = vunpack.c.0.s8 %v1326_v25  ;;  %v1332_v39 = vunpack.c.1.s8 %v1326_v25  ;;  %v1333_v40 = vunpack.c.2.s8 %v1326_v25  ;;  %v1334_v41 = vunpack.c.3.s8 %v1326_v25 }
 0x3a8   : > { %1470 = vperm.xlu1 %6409, %v1443_v10   ;;  %1460 = vperm.xlu0 %6408, %v1441_v30   ;;  %v1445_v9 = vld [vmem:[%s7582_s10 + $0x20] sm:$0xff]  ;;  %v1442_v36 = vld [vmem:[%s7582_s10 + $0x8] sm:$0xff]  ;;  %v1448_v18 = vld [vmem:[%s7582_s10 + $0x38] sm:$0xff]  ;;  %v1335_v42 = vcvt.s32.f32 %v1327_v38  ;;  %v1336_v21 = vcvt.s32.f32 %v1328_v11  ;;  %v1337_v45 = vcvt.s32.f32 %v1329_v26  ;;  %v1338_v19 = vcvt.s32.f32 %v1330_v15 }
 0x3a9   : > { %1480 = vperm.xlu2 %6410, %v1445_v9   ;;  %v1446_v55 = vld [vmem:[%s7582_s10 + $0x28] sm:$0xff]  ;;  %v1447_v12 = vld [vmem:[%s7582_s10 + $0x30] sm:$0xff]  ;;  %v1339_v44 = vcvt.s32.f32 %v1331_v37  ;;  %v1340_v47 = vcvt.s32.f32 %v1332_v39  ;;  %v1341_v32 = vcvt.s32.f32 %v1333_v40  ;;  %v1342_v29 = vcvt.s32.f32 %v1334_v41  ;;  %v1530_v15 = vld [vmem:[%s7608_s25 + $0x20] sm:$0xff] }
 0x3aa   : > { %1413 = vmatpush.bf16.msra.mxu0 %v6065_v14  ;;  %6164 = vmatpush.bf16.msra.mxu1 %v6065_v14  ;;  %v1343_v43 = vpack.c.bf16 %v1336_v21, %v1335_v42  ;;  %v1344_v53 = vpack.c.bf16 %v1338_v19, %v1337_v45  ;;  %v1527_v45 = vld [vmem:[%s7608_s25 + $0x8] sm:$0xff]  ;;  %v1529_v19 = vld [vmem:[%s7608_s25 + $0x18] sm:$0xff] }
 0x3ab   : > { %6165 = vmatpush.bf16.msra.mxu2 %v6065_v14  ;;  %6166 = vmatpush.bf16.msra.mxu3 %v6065_v14  ;;  %v1345_v58 = vpack.c.bf16 %v1340_v47, %v1339_v44  ;;  %v1346_v34 = vpack.c.bf16 %v1342_v29, %v1341_v32 }
 0x3ae   : > { %1414 = vmatpush.bf16.msra.mxu0 %v6064_v13  ;;  %6167 = vmatpush.bf16.msra.mxu1 %v6064_v13 }
 0x3af   : > { %6168 = vmatpush.bf16.msra.mxu2 %v6064_v13  ;;  %6169 = vmatpush.bf16.msra.mxu3 %v6064_v13  ;;  %v1456_v13 = vld [vmem:[%s7598_s28 + $0x30] sm:$0xff] }
 0x3b0   : > { %1475 = vperm.xlu1 %6409, %v1444_v2   ;;  %1465 = vperm.xlu0 %6408, %v1442_v36   ;;  %v1454_v36 = vld [vmem:[%s7598_s28 + $0x20] sm:$0xff] }
 0x3b1   : > { %1485 = vperm.xlu2 %6410, %v1446_v55  }
 0x3b2   : > { %1415 = vmatpush.bf16.msra.mxu0 %v6063_v17  ;;  %6170 = vmatpush.bf16.msra.mxu1 %v6063_v17 }
 0x3b3   : > { %6171 = vmatpush.bf16.msra.mxu2 %v6063_v17  ;;  %6172 = vmatpush.bf16.msra.mxu3 %v6063_v17 }
 0x3b6   : > { %1416 = vmatpush.bf16.msra.mxu0 %v6062_v22  ;;  %6173 = vmatpush.bf16.msra.mxu1 %v6062_v22 }
 0x3b7   : > { %6174 = vmatpush.bf16.msra.mxu2 %v6062_v22  ;;  %6175 = vmatpush.bf16.msra.mxu3 %v6062_v22  ;;  %v1451_v22 = vld [vmem:[%s7598_s28 + $0x8] sm:$0xff] }
 0x3b8   : > { %1495 = vperm.xlu1 %6409, %v1448_v18   ;;  %1490 = vperm.xlu0 %6408, %v1447_v12  }
 0x3ba   : > { %1417 = vmatpush.bf16.msra.mxu0 %v6061_v35  ;;  %6176 = vmatpush.bf16.msra.mxu1 %v6061_v35 }
 0x3bb   : > { %6177 = vmatpush.bf16.msra.mxu2 %v6061_v35  ;;  %6178 = vmatpush.bf16.msra.mxu3 %v6061_v35  ;;  %v1532_v35 = vld [vmem:[%s7608_s25 + $0x30] sm:$0xff] }
 0x3be   : > { %1418 = vmatpush.bf16.msra.mxu0 %v6060_v28  ;;  %6179 = vmatpush.bf16.msra.mxu1 %v6060_v28 }
 0x3bf   : > { %6180 = vmatpush.bf16.msra.mxu2 %v6060_v28  ;;  %6181 = vmatpush.bf16.msra.mxu3 %v6060_v28 }
 0x3c0   :  { %6411 = vset.pattern.permute.xlu0 (%p7565_p3), %v6670_v56  ;;  %6412 = vset.pattern.permute.xlu1 (%p7565_p3), %v6670_v56 }
 0x3c1   : > { %1419 = vmatmul.bf16.vlgmr.msra.gmra.mxu0 %v1343_v43  ;;  %1424 = vmatmul.bf16.vlgmr.msra.gmra.mxu1 %v1344_v53 }
 0x3c2   : > { %1429 = vmatmul.bf16.vlgmr.msra.gmra.mxu2 %v1345_v58  ;;  %1434 = vmatmul.bf16.vlgmr.msra.gmra.mxu3 %v1346_v34 }
 0x3c3   :  { %6194 = vmatpush.msra.mxu3 (%p7565_p3), %v5647_v48 }
 0x403   : > { %v1481_v31 = vpop.permute.xlu2 %1480 }
 0x40b   : > { %v1486_v21 = vpop.permute.xlu2 %1485 }
 0x41a   : > { %v1461_v49 = vpop.permute.xlu0 %1460  ;;  %v1471_v16 = vpop.permute.xlu1 %1470 }
 0x422   : > { %v1466_v50 = vpop.permute.xlu0 %1465  ;;  %v1476_v0 = vpop.permute.xlu1 %1475 }
 0x42a   : > { %v1491_v52 = vpop.permute.xlu0 %1490  ;;  %v1496_v40 = vpop.permute.xlu1 %1495 }
 0x43e   : > { %v1420_v24 = vpop.f32.mrf.mxu0  ;;  %v1425_v54 = vpop.f32.mrf.mxu1 }
 0x43f   : > { %v1498_v57 = vmul.f32 %v1461_v49, %v1420_v24  ;;  %v1500_v20 = vmul.f32 %v1471_v16, %v1425_v54  ;;  %v1455_v16 = vld [vmem:[%s7598_s28 + $0x28] sm:$0xff] }
 0x441   : > { %v1509_v62 = vmul.f32 %v7595_v51, %v1498_v57  ;;  %v1511_v63 = vmul.f32 %v7595_v51, %v1500_v20 }
 0x443   : > { %v1517_v1 = vsub.f32 %v1450_v59, %v1509_v62  ;;  %v1519_v4 = vsub.f32 %v1452_v23, %v1511_v63  ;;  %v1531_v59 = vld [vmem:[%s7608_s25 + $0x28] sm:$0xff]  ;;  %v1533_v23 = vld [vmem:[%s7608_s25 + $0x38] sm:$0xff] }
 0x445   : > { %v1537_v46 = vmul.f32 %v7604_v60, %v1517_v1  ;;  %v1539_v61 = vmul.f32 %v7604_v60, %v1519_v4  ;;  %v1430_v6 = vpop.f32.mrf.mxu2  ;;  %v1435_v7 = vpop.f32.mrf.mxu3  ;;  %v1608_v1 = vld [vmem:[%s9594_s13 + $0x58] sm:$0xff] (%p7565_p3)  ;;  %v1607_v4 = vld [vmem:[%s9594_s13 + $0x50] sm:$0xff] (%p7565_p3) }
 0x446   : > { %v1502_v8 = vmul.f32 %v1481_v31, %v1430_v6  ;;  %v1504_v10 = vmul.f32 %v1491_v52, %v1435_v7  ;;  %v1422_v30 = vpop.f32.mrf.mxu0  ;;  %v1427_v9 = vpop.f32.mrf.mxu1  ;;  %6182 = vmatpush.msra.mxu2 (%p7565_p3), %v1608_v1 }
 0x447   : > { %v1545_v14 = vadd.f32 %v1537_v46, %v1526_v5  ;;  %v1547_v2 = vadd.f32 %v1539_v61, %v1528_v27  ;;  %v1499_v55 = vmul.f32 %v1466_v50, %v1422_v30  ;;  %v1501_v17 = vmul.f32 %v1476_v0, %v1427_v9  ;;  %v1457_v50 = vld [vmem:[%s7598_s28 + $0x38] sm:$0xff] }
 0x448   : > { %v1513_v18 = vmul.f32 %v7595_v51, %v1502_v8  ;;  %v1515_v12 = vmul.f32 %v7595_v51, %v1504_v10 }
 0x449   : > { %1553 = vst.msk [vmem:[%s7608_s25] sm:$0xff] %vm515_vm3, %v1545_v14  ;;  %v1510_v25 = vmul.f32 %v7595_v51, %v1499_v55  ;;  %v1512_v38 = vmul.f32 %v7595_v51, %v1501_v17 }
 0x44a   : > { %1555 = vst.msk [vmem:[%s7608_s25 + $0x10] sm:$0xff] %vm515_vm3, %v1547_v2  ;;  %v1521_v11 = vsub.f32 %v1454_v36, %v1513_v18  ;;  %v1523_v26 = vsub.f32 %v1456_v13, %v1515_v12 }
 0x44b   : > { %v1518_v37 = vsub.f32 %v1451_v22, %v1510_v25  ;;  %v1520_v39 = vsub.f32 %v1453_v33, %v1512_v38 }
 0x44c   : > { %v1541_v41 = vmul.f32 %v7604_v60, %v1521_v11  ;;  %v1543_v42 = vmul.f32 %v7604_v60, %v1523_v26 }
 0x44d   : > { %v1538_v28 = vmul.f32 %v7604_v60, %v1518_v37  ;;  %v1540_v44 = vmul.f32 %v7604_v60, %v1520_v39  ;;  %v1432_v47 = vpop.f32.mrf.mxu2  ;;  %v1437_v32 = vpop.f32.mrf.mxu3 }
 0x44e   : > { %v1549_v29 = vadd.f32 %v1541_v41, %v1530_v15  ;;  %v1551_v43 = vadd.f32 %v1543_v42, %v1532_v35  ;;  %v1503_v53 = vmul.f32 %v1486_v21, %v1432_v47  ;;  %v1505_v58 = vmul.f32 %v1496_v40, %v1437_v32 }
 0x44f   : > { %v1546_v34 = vadd.f32 %v1538_v28, %v1527_v45  ;;  %v1548_v49 = vadd.f32 %v1540_v44, %v1529_v19 }
 0x450   : > { %1557 = vst.msk [vmem:[%s7608_s25 + $0x20] sm:$0xff] %vm515_vm3, %v1549_v29  ;;  %v1514_v24 = vmul.f32 %v7595_v51, %v1503_v53  ;;  %v1516_v54 = vmul.f32 %v7595_v51, %v1505_v58  ;;  %v1571_v51 = vld [vmem:[%s9629_s0] sm:$0xff] (%p7565_p3) }
 0x451   : > { %1559 = vst.msk [vmem:[%s7608_s25 + $0x30] sm:$0xff] %vm515_vm3, %v1551_v43 }
 0x452   : > { %1554 = vst.msk [vmem:[%s7608_s25 + $0x8] sm:$0xff] %vm515_vm3, %v1546_v34  ;;  %v1522_v57 = vsub.f32 %v1455_v16, %v1514_v24  ;;  %v1524_v20 = vsub.f32 %v1457_v50, %v1516_v54 }
 0x453   : > { %1556 = vst.msk [vmem:[%s7608_s25 + $0x18] sm:$0xff] %vm515_vm3, %v1548_v49 }
 0x454   : > { %v1542_v62 = vmul.f32 %v7604_v60, %v1522_v57  ;;  %v1544_v63 = vmul.f32 %v7604_v60, %v1524_v20  ;;  %v1573_v60 = vld [vmem:[%s9629_s0 + $0x8] sm:$0xff] (%p7565_p3)  ;;  %1572 = vst [vmem:[#allocation2] sm:$0xff] (%p7565_p3), %v1571_v51 }
 0x455   :  { %1273 = sbr.rel (!%p7565_p3) target bundleno = 904 (0x388), region = 521  ;;  %1574 = vst [vmem:[#allocation2 + $0x8] sm:$0xff] (%p7565_p3), %v1573_v60 }
 0x456   : > { %v1550_v0 = vadd.f32 %v1542_v62, %v1531_v59  ;;  %v1552_v31 = vadd.f32 %v1544_v63, %v1533_v23 }
 0x458   : > { %1558 = vst.msk [vmem:[%s7608_s25 + $0x28] sm:$0xff] %vm515_vm3, %v1550_v0 }
 0x459   : > { %1560 = vst.msk [vmem:[%s7608_s25 + $0x38] sm:$0xff] %vm515_vm3, %v1552_v31 }
 0x45a   :  { %1580 = vsyncadd [#allocation3], 256  ;;  %v1606_v52 = vld [vmem:[%s9594_s13 + $0x48] sm:$0xff]  ;;  %1665 = vmatpush.msra.mxu0 %v1608_v1  ;;  %1885 = vmatpush.msra.mxu1 %v5647_v48  ;;  %v1605_v27 = vld [vmem:[%s9594_s13 + $0x40] sm:$0xff]  ;;  %s9630_s24 = sld [smem:[#allocation34_spill]]  ;;  %s8041_s23 = smov 0  }
 0x45b   :  { %v5645_v5 = vld [vmem:[%s9588_s7 + $0xa8] sm:$0xff]  ;;  %6183 = vmatpush.msra.mxu2 %v1607_v4  ;;  %6195 = vmatpush.msra.mxu3 %v5646_v3  ;;  %v5644_v46 = vld [vmem:[%s9588_s7 + $0xa0] sm:$0xff]  ;;  %v1604_v61 = vld [vmem:[%s9594_s13 + $0x38] sm:$0xff] }
 0x45c   :  { %1666 = vmatpush.msra.mxu0 %v1607_v4  ;;  %1886 = vmatpush.msra.mxu1 %v5646_v3  ;;  %v5643_v6 = vld [vmem:[%s9588_s7 + $0x98] sm:$0xff]  ;;  %v1603_v7 = vld [vmem:[%s9594_s13 + $0x30] sm:$0xff]  ;;  %v5634_v30 = vld [vmem:[%s9586_s5 + $0x3] sm:$0x1] }
 0x45d   :  { %6184 = vmatpush.msra.mxu2 %v1606_v52  ;;  %6196 = vmatpush.msra.mxu3 %v5645_v5  ;;  %v5642_v8 = vld [vmem:[%s9588_s7 + $0x90] sm:$0xff]  ;;  %v5635_v9 = vld [vmem:[%s9587_s6 + $0x3] sm:$0x1]  ;;  %v1602_v14 = vld [vmem:[%s9594_s13 + $0x28] sm:$0xff] }
 0x45e   :  { %1667 = vmatpush.msra.mxu0 %v1606_v52  ;;  %1887 = vmatpush.msra.mxu1 %v5645_v5  ;;  %v5641_v2 = vld [vmem:[%s9588_s7 + $0x88] sm:$0xff]  ;;  %v1601_v36 = vld [vmem:[%s9594_s13 + $0x20] sm:$0xff]  ;;  %v1779_v55 = vmul.f32 %v5635_v9, %v5634_v30  ;;  %v1600_v17 = vld [vmem:[%s9594_s13 + $0x18] sm:$0xff] }
 0x45f   :  { %6185 = vmatpush.msra.mxu2 %v1605_v27  ;;  %6197 = vmatpush.msra.mxu3 %v5644_v46  ;;  %v5640_v13 = vld [vmem:[%s9588_s7 + $0x80] sm:$0xff]  ;;  %v5639_v18 = vld [vmem:[%s9588_s7 + $0x78] sm:$0xff]  ;;  %v1599_v12 = vld [vmem:[%s9594_s13 + $0x10] sm:$0xff] }
 0x460   :  { %1668 = vmatpush.msra.mxu0 %v1605_v27  ;;  %1888 = vmatpush.msra.mxu1 %v5644_v46  ;;  %v5618_v10 = vld [vmem:[%s9630_s24 + $0x80] sm:$0xff]  ;;  %v5638_v22 = vld [vmem:[%s9588_s7 + $0x70] sm:$0xff]  ;;  %v7737_v33 = vperm.slane %v1779_v55, 0  ;;  %v5619_v25 = vld [vmem:[%s9630_s24 + $0x88] sm:$0xff] }
 0x461   :  { %6186 = vmatpush.msra.mxu2 %v1604_v61  ;;  %6198 = vmatpush.msra.mxu3 %v5643_v6  ;;  %v7742_v38 = vld [vmem:[#allocation4 + $0x40] sm:$0xff]  ;;  %v1598_v11 = vld [vmem:[%s9594_s13 + $0x8] sm:$0xff]  ;;  %v5620_v41 = vld [vmem:[%s9630_s24 + $0x90] sm:$0xff] }
 0x462   :  { %1669 = vmatpush.msra.mxu0 %v1604_v61  ;;  %1889 = vmatpush.msra.mxu1 %v5643_v6  ;;  %v5637_v26 = vld [vmem:[%s9588_s7 + $0x68] sm:$0xff]  ;;  %v1597_v15 = vld [vmem:[%s9594_s13] sm:$0xff]  ;;  %v1807_v37 = vmul.f32 %v7737_v33, %v7742_v38  ;;  %v5624_v19 = vld [vmem:[%s9630_s24 + $0xb0] sm:$0xff] }
 0x463   :  { %6187 = vmatpush.msra.mxu2 %v1603_v7  ;;  %6199 = vmatpush.msra.mxu3 %v5642_v8  ;;  %v5636_v35 = vld [vmem:[%s9588_s7 + $0x60] sm:$0xff]  ;;  %v7767_v45 = vld [vmem:[#allocation4 + $0x48] sm:$0xff]  ;;  %v5621_v29 = vld [vmem:[%s9630_s24 + $0x98] sm:$0xff] }
 0x464   :  { %1980 = vperm.xlu0 %6411, %v5618_v10   ;;  %1670 = vmatpush.msra.mxu0 %v1603_v7  ;;  %v1589_v39 = vld [vmem:[#allocation6 + $0x40] sm:$0xff]  ;;  %v1808_v44 = vmul.f32 %v7737_v33, %v7767_v45  ;;  %v1590_v47 = vld [vmem:[#allocation6 + $0x48] sm:$0xff]  ;;  %v7789_v58 = vld [vmem:[#allocation4 + $0x50] sm:$0xff] }
 0x465   :  { %6188 = vmatpush.msra.mxu2 %v1602_v14  ;;  %6200 = vmatpush.msra.mxu3 %v5641_v2  ;;  %v7758_v40 = vld [vmem:[#allocation4] sm:$0xff]  ;;  %v7780_v32 = vld [vmem:[#allocation4 + $0x8] sm:$0xff]  ;;  %v1809_v16 = vmul.f32 %v7737_v33, %v7789_v58  ;;  %v1591_v50 = vld [vmem:[#allocation6 + $0x50] sm:$0xff] }
 0x466   :  { %1671 = vmatpush.msra.mxu0 %v1602_v14  ;;  %1890 = vmatpush.msra.mxu1 %v5642_v8  ;;  %v1799_v42 = vmul.f32 %v7737_v33, %v7758_v40  ;;  %v1581_v21 = vld [vmem:[#allocation6] sm:$0xff]  ;;  %v1800_v43 = vmul.f32 %v7737_v33, %v7780_v32  ;;  %v1582_v53 = vld [vmem:[#allocation6 + $0x8] sm:$0xff]  ;;  %v7801_v24 = vld [vmem:[#allocation4 + $0x10] sm:$0xff] }
 0x467   :  { %6189 = vmatpush.msra.mxu2 %v1601_v36  ;;  %6201 = vmatpush.msra.mxu3 %v5640_v13  ;;  %v5622_v28 = vld [vmem:[%s9630_s24 + $0xa0] sm:$0xff]  ;;  %v5627_v34 = vld [vmem:[%s9630_s24 + $0xc8] sm:$0xff]  ;;  %v5625_v54 = vld [vmem:[%s9630_s24 + $0xb8] sm:$0xff]  ;;  %v1801_v57 = vmul.f32 %v7737_v33, %v7801_v24 }
 0x468   :  { %1672 = vmatpush.msra.mxu0 %v1601_v36  ;;  %1891 = vmatpush.msra.mxu1 %v5641_v2  ;;  %v5623_v49 = vld [vmem:[%s9630_s24 + $0xa8] sm:$0xff]  ;;  %v1583_v20 = vld [vmem:[#allocation6 + $0x10] sm:$0xff]  ;;  %v7810_v59 = vld [vmem:[#allocation4 + $0x58] sm:$0xff] }
 0x469   :  { %6190 = vmatpush.msra.mxu2 %v1600_v17  ;;  %6202 = vmatpush.msra.mxu3 %v5639_v18  ;;  %v5630_v23 = vld [vmem:[%s9630_s24 + $0xe0] sm:$0xff]  ;;  %v1810_v63 = vmul.f32 %v7737_v33, %v7810_v59  ;;  %v1592_v0 = vld [vmem:[#allocation6 + $0x58] sm:$0xff]  ;;  %v5628_v51 = vld [vmem:[%s9630_s24 + $0xd0] sm:$0xff] }
 0x46a   :  { %1673 = vmatpush.msra.mxu0 %v1600_v17  ;;  %1892 = vmatpush.msra.mxu1 %v5640_v13  ;;  %v5626_v62 = vld [vmem:[%s9630_s24 + $0xc0] sm:$0xff]  ;;  %v7822_v31 = vld [vmem:[#allocation4 + $0x18] sm:$0xff]  ;;  %v5631_v46 = vld [vmem:[%s9630_s24 + $0xe8] sm:$0xff] }
 0x46b   :  { %6191 = vmatpush.msra.mxu2 %v1599_v12  ;;  %6203 = vmatpush.msra.mxu3 %v5638_v22  ;;  %v1802_v60 = vmul.f32 %v7737_v33, %v7822_v31  ;;  %v1584_v1 = vld [vmem:[#allocation6 + $0x18] sm:$0xff]  ;;  %v7831_v4 = vld [vmem:[#allocation4 + $0x60] sm:$0xff]  ;;  %v7849_v7 = vld [vmem:[#allocation4 + $0x68] sm:$0xff] }
 0x46c   :  { %1893 = vmatpush.msra.mxu1 %v5639_v18  ;;  %1985 = vperm.xlu0 %6411, %v5619_v25   ;;  %v5633_v48 = vld [vmem:[%s9630_s24 + $0xf8] sm:$0xff]  ;;  %v1811_v52 = vmul.f32 %v7737_v33, %v7831_v4  ;;  %v1593_v5 = vld [vmem:[#allocation6 + $0x60] sm:$0xff]  ;;  %v5632_v8 = vld [vmem:[%s9630_s24 + $0xf0] sm:$0xff]  ;;  %v1812_v10 = vmul.f32 %v7737_v33, %v7849_v7 }
 0x46d   :  { %6192 = vmatpush.msra.mxu2 %v1598_v11  ;;  %6204 = vmatpush.msra.mxu3 %v5637_v26  ;;  %v5629_v3 = vld [vmem:[%s9630_s24 + $0xd8] sm:$0xff]  ;;  %v1784_v27 = vld [vmem:[#allocation4 + $0x20] sm:$0xff]  ;;  %v1594_v30 = vld [vmem:[#allocation6 + $0x68] sm:$0xff] }
 0x46e   :  { %1674 = vmatpush.msra.mxu0 %v1599_v12  ;;  %1894 = vmatpush.msra.mxu1 %v5638_v22  ;;  %v1803_v61 = vmul.f32 %v7737_v33, %v1784_v27  ;;  %v1585_v6 = vld [vmem:[#allocation6 + $0x20] sm:$0xff]  ;;  %v1785_v9 = vld [vmem:[#allocation4 + $0x28] sm:$0xff]  ;;  %v7861_v36 = vld [vmem:[#allocation4 + $0x70] sm:$0xff] }
 0x46f   :  { %6193 = vmatpush.msra.mxu2 %v1597_v15  ;;  %6205 = vmatpush.msra.mxu3 %v5636_v35  ;;  %v1804_v14 = vmul.f32 %v7737_v33, %v1785_v9  ;;  %v1586_v2 = vld [vmem:[#allocation6 + $0x28] sm:$0xff]  ;;  %v1813_v13 = vmul.f32 %v7737_v33, %v7861_v36  ;;  %v1595_v55 = vld [vmem:[#allocation6 + $0x70] sm:$0xff]  ;;  %v7870_v22 = vld [vmem:[#allocation4 + $0x78] sm:$0xff] }
 0x470   :  { %5610 = vmatmul.msk.f32.vlgmr.msra.gmra.mxu2 %vm515_vm3, %v1589_v39  ;;  %5657 = vmatmul.msk.f32.vlgmr.msra.gmra.mxu3 %vm515_vm3, %v1807_v37  ;;  %v1786_v17 = vld [vmem:[#allocation4 + $0x30] sm:$0xff]  ;;  %v1814_v25 = vmul.f32 %v7737_v33, %v7870_v22 }
 0x471   :  { %1675 = vmatpush.msra.mxu0 %v1598_v11  ;;  %1895 = vmatpush.msra.mxu1 %v5637_v26  ;;  %v1805_v18 = vmul.f32 %v7737_v33, %v1786_v17  ;;  %v1587_v12 = vld [vmem:[#allocation6 + $0x30] sm:$0xff]  ;;  %v1596_v11 = vld [vmem:[#allocation6 + $0x78] sm:$0xff] }
 0x472   :  { %1990 = vperm.xlu1 %6412, %v5620_v41   ;;  %6413 = vset.pattern.permute.xlu2 %v6670_v56  ;;  %v1787_v26 = vld [vmem:[#allocation4 + $0x38] sm:$0xff] }
 0x473   :  { %1676 = vmatpush.msra.mxu0 %v1597_v15  ;;  %1896 = vmatpush.msra.mxu1 %v5636_v35  ;;  %v1806_v15 = vmul.f32 %v7737_v33, %v1787_v26  ;;  %v1588_v35 = vld [vmem:[#allocation6 + $0x38] sm:$0xff] }
 0x474   :  { %5602 = vmatmul.msk.f32.vlgmr.msra.gmra.mxu0 %vm515_vm3, %v1581_v21  ;;  %5649 = vmatmul.msk.f32.vlgmr.msra.gmra.mxu1 %vm515_vm3, %v1799_v42 }
 0x475   :  { %2010 = vperm.xlu0 %6411, %v5624_v19   ;;  %2000 = vperm.xlu2 %6413, %v5622_v28  }
 0x478   :  { %5611 = vmatmul.msk.f32.gmra.mxu2 %vm515_vm3, %v1590_v47  ;;  %5658 = vmatmul.msk.f32.gmra.mxu3 %vm515_vm3, %v1808_v44 }
 0x47a   :  { %1995 = vperm.xlu1 %6412, %v5621_v29  }
 0x47c   :  { %5603 = vmatmul.msk.f32.gmra.mxu0 %vm515_vm3, %v1582_v53  ;;  %5650 = vmatmul.msk.f32.gmra.mxu1 %vm515_vm3, %v1800_v43 }
 0x47d   :  { %2025 = vperm.xlu0 %6411, %v5627_v34   ;;  %2005 = vperm.xlu2 %6413, %v5623_v49  }
 0x480   :  { %5612 = vmatmul.msk.f32.gmra.mxu2 %vm515_vm3, %v1591_v50  ;;  %5659 = vmatmul.msk.f32.gmra.mxu3 %vm515_vm3, %v1809_v16 }
 0x482   :  { %2015 = vperm.xlu1 %6412, %v5625_v54  }
 0x484   :  { %5604 = vmatmul.msk.f32.gmra.mxu0 %vm515_vm3, %v1583_v20  ;;  %5651 = vmatmul.msk.f32.gmra.mxu1 %vm515_vm3, %v1801_v57 }
 0x485   :  { %2040 = vperm.xlu0 %6411, %v5630_v23   ;;  %2020 = vperm.xlu2 %6413, %v5626_v62  }
 0x488   :  { %5613 = vmatmul.msk.f32.gmra.mxu2 %vm515_vm3, %v1592_v0  ;;  %5660 = vmatmul.msk.f32.gmra.mxu3 %vm515_vm3, %v1810_v63  ;;  %v7925_v63 = vld [vmem:[%s9595_s14] ss:$0 sm:$0xff] }
 0x48a   :  { %2030 = vperm.xlu1 %6412, %v5628_v51  }
 0x48c   :  { %5605 = vmatmul.msk.f32.gmra.mxu0 %vm515_vm3, %v1584_v1  ;;  %5652 = vmatmul.msk.f32.gmra.mxu1 %vm515_vm3, %v1802_v60 }
 0x48d   :  { %2055 = vperm.xlu0 %6411, %v5633_v48   ;;  %2035 = vperm.xlu2 %6413, %v5629_v3  }
 0x490   :  { %5614 = vmatmul.msk.f32.gmra.mxu2 %vm515_vm3, %v1593_v5  ;;  %5661 = vmatmul.msk.f32.gmra.mxu3 %vm515_vm3, %v1811_v52 }
 0x492   :  { %2045 = vperm.xlu1 %6412, %v5631_v46  }
 0x494   :  { %5606 = vmatmul.msk.f32.gmra.mxu0 %vm515_vm3, %v1585_v6  ;;  %5653 = vmatmul.msk.f32.gmra.mxu1 %vm515_vm3, %v1803_v61 }
 0x495   :  { %2050 = vperm.xlu2 %6413, %v5632_v8  }
 0x498   :  { %5615 = vmatmul.msk.f32.gmra.mxu2 %vm515_vm3, %v1594_v30  ;;  %5662 = vmatmul.msk.f32.gmra.mxu3 %vm515_vm3, %v1812_v10 }
 0x49c   :  { %5607 = vmatmul.msk.f32.gmra.mxu0 %vm515_vm3, %v1586_v2  ;;  %5654 = vmatmul.msk.f32.gmra.mxu1 %vm515_vm3, %v1804_v14 }
 0x4a0   :  { %5616 = vmatmul.msk.f32.gmra.mxu2 %vm515_vm3, %v1595_v55  ;;  %5663 = vmatmul.msk.f32.gmra.mxu3 %vm515_vm3, %v1813_v13 }
 0x4a4   :  { %5608 = vmatmul.msk.f32.gmra.mxu0 %vm515_vm3, %v1587_v12  ;;  %5655 = vmatmul.msk.f32.gmra.mxu1 %vm515_vm3, %v1805_v18 }
 0x4a8   :  { %5617 = vmatmul.msk.f32.gmra.mxu2 %vm515_vm3, %v1596_v11  ;;  %5664 = vmatmul.msk.f32.gmra.mxu3 %vm515_vm3, %v1814_v25 }
 0x4ac   :  { %5609 = vmatmul.msk.f32.gmra.mxu0 %vm515_vm3, %v1588_v35  ;;  %5656 = vmatmul.msk.f32.gmra.mxu1 %vm515_vm3, %v1806_v15 }
 0x4cf   :  { %v7881_v37 = vpop.permute.xlu2 %2000 }
 0x4d0   :  { %v2062_v39 = vmul.f32 %v7881_v37, %v1784_v27 }
 0x4d2   :  { %v2078_v41 = vpack.c.bf16 %v2062_v39, %v2062_v39 }
 0x4d4   :  { %2094 = vst.msk [vmem:[#allocation7 + $0x10] sm:$0xf] %vm859_vm4, %v2078_v41 }
 0x4d6   :  { %v7885_v42 = vpop.permute.xlu0 %1980 }
 0x4d7   :  { %v2058_v21 = vmul.f32 %v7885_v42, %v7758_v40  ;;  %v7889_v19 = vpop.permute.xlu2 %2005 }
 0x4d8   :  { %v2063_v33 = vmul.f32 %v7889_v19, %v1785_v9 }
 0x4d9   :  { %v2074_v28 = vpack.c.bf16 %v2058_v21, %v2058_v21 }
 0x4da   :  { %v2079_v44 = vpack.c.bf16 %v2063_v33, %v2063_v33 }
 0x4db   :  { %2090 = vst.msk [vmem:[#allocation7] sm:$0xf] %vm859_vm4, %v2074_v28 }
 0x4dc   :  { %2095 = vst.msk [vmem:[#allocation7 + $0x14] sm:$0xf] %vm859_vm4, %v2079_v44 }
 0x4de   :  { %v7894_v47 = vpop.permute.xlu0 %1985 }
 0x4df   :  { %v2059_v29 = vmul.f32 %v7894_v47, %v7780_v32  ;;  %v7898_v43 = vpop.permute.xlu2 %2020 }
 0x4e0   :  { %v2066_v40 = vmul.f32 %v7898_v43, %v7742_v38 }
 0x4e1   :  { %v2075_v53 = vpack.c.bf16 %v2059_v29, %v2059_v29 }
 0x4e2   :  { %v2082_v34 = vpack.c.bf16 %v2066_v40, %v2066_v40 }
 0x4e3   :  { %2091 = vst.msk [vmem:[#allocation7 + $0x4] sm:$0xf] %vm859_vm4, %v2075_v53 }
 0x4e4   :  { %v7903_v49 = vpop.permute.xlu1 %1990  ;;  %2098 = vst.msk [vmem:[#allocation7 + $0x20] sm:$0xf] %vm859_vm4, %v2082_v34 }
 0x4e5   :  { %v2060_v16 = vmul.f32 %v7903_v49, %v7801_v24 }
 0x4e7   :  { %v2076_v50 = vpack.c.bf16 %v2060_v16, %v2060_v16  ;;  %v7908_v54 = vpop.permute.xlu0 %2010  ;;  %v7910_v32 = vpop.permute.xlu2 %2035 }
 0x4e8   :  { %v2064_v57 = vmul.f32 %v7908_v54, %v1786_v17  ;;  %v2069_v38 = vmul.f32 %v7910_v32, %v7810_v59  ;;  %v7930_v59 = vld [vmem:[%s9589_s8 + $0x1] ss:$0 sm:$0xff] }
 0x4e9   :  { %2092 = vst.msk [vmem:[#allocation7 + $0x8] sm:$0xf] %vm859_vm4, %v2076_v50 }
 0x4ea   :  { %v2080_v20 = vpack.c.bf16 %v2064_v57, %v2064_v57  ;;  %v2085_v23 = vpack.c.bf16 %v2069_v38, %v2069_v38 }
 0x4ec   :  { %2096 = vst.msk [vmem:[#allocation7 + $0x18] sm:$0xf] %vm859_vm4, %v2080_v20  ;;  %v7917_v62 = vpop.permute.xlu1 %1995 }
 0x4ed   :  { %v2061_v24 = vmul.f32 %v7917_v62, %v7822_v31  ;;  %2101 = vst.msk [vmem:[#allocation7 + $0x2c] sm:$0xf] %vm859_vm4, %v2085_v23 }
 0x4ef   :  { %v2077_v0 = vpack.c.bf16 %v2061_v24, %v2061_v24  ;;  %v7932_v51 = vpop.permute.xlu0 %2025  ;;  %v7934_v60 = vpop.permute.xlu2 %2050 }
 0x4f0   :  { %v2067_v31 = vmul.f32 %v7932_v51, %v7767_v45  ;;  %v2072_v27 = vmul.f32 %v7934_v60, %v7861_v36 }
 0x4f1   :  { %2093 = vst.msk [vmem:[#allocation7 + $0xc] sm:$0xf] %vm859_vm4, %v2077_v0  ;;  %v1678_v1 = vpop.f32.mrf.mxu0  ;;  %v1898_v48 = vpop.f32.mrf.mxu1 }
 0x4f2   :  { %v2083_v3 = vpack.c.bf16 %v2067_v31, %v2067_v31  ;;  %v1679_v52 = vadd.f32 %v7925_v63, %v1678_v1  ;;  %v1899_v5 = vadd.f32 %v7930_v59, %v1898_v48  ;;  %v2088_v14 = vpack.c.bf16 %v2072_v27, %v2072_v27 }
 0x4f3   :  { %v1702_v46 = vpop.f32.mrf.mxu2  ;;  %v1922_v61 = vpop.f32.mrf.mxu3 }
 0x4f4   :  { %2099 = vst.msk [vmem:[#allocation7 + $0x24] sm:$0xf] %vm859_vm4, %v2083_v3  ;;  %v1726_v6 = vmax.f32 %v1679_v52, 0.0  ;;  %v1703_v8 = vadd.f32 %v7925_v63, %v1702_v46  ;;  %v1923_v45 = vadd.f32 %v7930_v59, %v1922_v61  ;;  %v7946_v10 = vpop.permute.xlu1 %2015 }
 0x4f5   :  { %1946 = vst.msk [vmem:[#allocation6] sm:$0xff] %vm515_vm3, %v1899_v5  ;;  %v2065_v30 = vmul.f32 %v7946_v10, %v1787_v26 }
 0x4f6   :  { %1742 = vst.msk [vmem:[#allocation8] sm:$0xff] %vm240_vm1, %v1726_v6  ;;  %v1734_v9 = vmax.f32 %v1703_v8, 0.0  ;;  %v8002_v6 = vld [vmem:[%s9587_s6 + $0x4] sm:$0x1] }
 0x4f7   :  { %1954 = vst.msk [vmem:[#allocation6 + $0x40] sm:$0xff] %vm515_vm3, %v1923_v45  ;;  %v2081_v2 = vpack.c.bf16 %v2065_v30, %v2065_v30  ;;  %v7952_v36 = vpop.permute.xlu0 %2040  ;;  %v8007_v8 = vld [vmem:[%s9586_s5 + $0x4] sm:$0x1] }
 0x4f8   :  { %1750 = vst.msk [vmem:[#allocation8 + $0x40] sm:$0xff] %vm240_vm1, %v1734_v9  ;;  %v2070_v13 = vmul.f32 %v7952_v36, %v7831_v4 }
 0x4f9   :  { %2097 = vst.msk [vmem:[#allocation7 + $0x1c] sm:$0xf] %vm859_vm4, %v2081_v2  ;;  %v1681_v55 = vpop.f32.mrf.mxu0  ;;  %v1901_v17 = vpop.f32.mrf.mxu1 }
 0x4fa   :  { %v2086_v18 = vpack.c.bf16 %v2070_v13, %v2070_v13  ;;  %v1682_v12 = vadd.f32 %v7925_v63, %v1681_v55  ;;  %v1902_v25 = vadd.f32 %v7930_v59, %v1901_v17  ;;  %2104 = vst.msk [vmem:[#allocation7 + $0x38] sm:$0xf] %vm859_vm4, %v2088_v14 }
 0x4fb   :  { %v1705_v11 = vpop.f32.mrf.mxu2  ;;  %v1925_v26 = vpop.f32.mrf.mxu3 }
 0x4fc   :  { %2102 = vst.msk [vmem:[#allocation7 + $0x30] sm:$0xf] %vm859_vm4, %v2086_v18  ;;  %v1727_v15 = vmax.f32 %v1682_v12, 0.0  ;;  %v1706_v35 = vadd.f32 %v7925_v63, %v1705_v11  ;;  %v1926_v4 = vadd.f32 %v7930_v59, %v1925_v26  ;;  %v7964_v39 = vpop.permute.xlu1 %2030 }
 0x4fd   :  { %1947 = vst.msk [vmem:[#allocation6 + $0x8] sm:$0xff] %vm515_vm3, %v1902_v25  ;;  %v2068_v41 = vmul.f32 %v7964_v39, %v7789_v58 }
 0x4fe   :  { %1743 = vst.msk [vmem:[#allocation8 + $0x8] sm:$0xff] %vm240_vm1, %v1727_v15  ;;  %v1735_v21 = vmax.f32 %v1706_v35, 0.0 }
 0x4ff   :  { %1955 = vst.msk [vmem:[#allocation6 + $0x48] sm:$0xff] %vm515_vm3, %v1926_v4  ;;  %v2084_v33 = vpack.c.bf16 %v2068_v41, %v2068_v41  ;;  %v7971_v28 = vpop.permute.xlu0 %2055 }
 0x500   :  { %1751 = vst.msk [vmem:[#allocation8 + $0x48] sm:$0xff] %vm240_vm1, %v1735_v21  ;;  %v2073_v44 = vmul.f32 %v7971_v28, %v7870_v22 }
 0x501   :  { %2100 = vst.msk [vmem:[#allocation7 + $0x28] sm:$0xf] %vm859_vm4, %v2084_v33  ;;  %v1684_v29 = vpop.f32.mrf.mxu0  ;;  %v1904_v40 = vpop.f32.mrf.mxu1 }
 0x502   :  { %v2089_v53 = vpack.c.bf16 %v2073_v44, %v2073_v44  ;;  %v1685_v58 = vadd.f32 %v7925_v63, %v1684_v29  ;;  %v1905_v34 = vadd.f32 %v7930_v59, %v1904_v40 }
 0x503   :  { %v1708_v16 = vpop.f32.mrf.mxu2  ;;  %v1928_v50 = vpop.f32.mrf.mxu3 }
 0x504   :  { %2105 = vst.msk [vmem:[#allocation7 + $0x3c] sm:$0xf] %vm859_vm4, %v2089_v53  ;;  %v1728_v57 = vmax.f32 %v1685_v58, 0.0  ;;  %v1709_v38 = vadd.f32 %v7925_v63, %v1708_v16  ;;  %v1929_v20 = vadd.f32 %v7930_v59, %v1928_v50  ;;  %v7982_v23 = vpop.permute.xlu1 %2045 }
 0x505   :  { %1948 = vst.msk [vmem:[#allocation6 + $0x10] sm:$0xff] %vm515_vm3, %v1905_v34  ;;  %v2071_v22 = vmul.f32 %v7982_v23, %v7849_v7 }
 0x506   :  { %1744 = vst.msk [vmem:[#allocation8 + $0x10] sm:$0xff] %vm240_vm1, %v1728_v57  ;;  %v1736_v24 = vmax.f32 %v1709_v38, 0.0 }
 0x507   :  { %1956 = vst.msk [vmem:[#allocation6 + $0x50] sm:$0xff] %vm515_vm3, %v1929_v20  ;;  %v2087_v0 = vpack.c.bf16 %v2071_v22, %v2071_v22 }
 0x508   :  { %1752 = vst.msk [vmem:[#allocation8 + $0x50] sm:$0xff] %vm240_vm1, %v1736_v24 }
 0x509   :  { %2103 = vst.msk [vmem:[#allocation7 + $0x34] sm:$0xf] %vm859_vm4, %v2087_v0  ;;  %v1687_v31 = vpop.f32.mrf.mxu0  ;;  %v1907_v1 = vpop.f32.mrf.mxu1 }
 0x50a   :  { %v1688_v48 = vadd.f32 %v7925_v63, %v1687_v31  ;;  %v1908_v3 = vadd.f32 %v7930_v59, %v1907_v1 }
 0x50b   :  { %v1711_v52 = vpop.f32.mrf.mxu2  ;;  %v1931_v5 = vpop.f32.mrf.mxu3 }
 0x50c   :  { %v1729_v27 = vmax.f32 %v1688_v48, 0.0  ;;  %v1712_v7 = vadd.f32 %v7925_v63, %v1711_v52  ;;  %1949 = vst.msk [vmem:[#allocation6 + $0x18] sm:$0xff] %vm515_vm3, %v1908_v3  ;;  %v1932_v46 = vadd.f32 %v7930_v59, %v1931_v5 }
 0x50e   :  { %1745 = vst.msk [vmem:[#allocation8 + $0x18] sm:$0xff] %vm240_vm1, %v1729_v27  ;;  %v1737_v61 = vmax.f32 %v1712_v7, 0.0 }
 0x50f   :  { %1957 = vst.msk [vmem:[#allocation6 + $0x58] sm:$0xff] %vm515_vm3, %v1932_v46 }
 0x510   :  { %1753 = vst.msk [vmem:[#allocation8 + $0x58] sm:$0xff] %vm240_vm1, %v1737_v61 }
 0x511   :  { %v1690_v45 = vpop.f32.mrf.mxu0  ;;  %v1910_v30 = vpop.f32.mrf.mxu1 }
 0x512   :  { %v1691_v9 = vadd.f32 %v7925_v63, %v1690_v45  ;;  %v1911_v14 = vadd.f32 %v7930_v59, %v1910_v30 }
 0x513   :  { %v1714_v2 = vpop.f32.mrf.mxu2  ;;  %v1934_v13 = vpop.f32.mrf.mxu3 }
 0x514   :  { %v1730_v55 = vmax.f32 %v1691_v9, 0.0  ;;  %v1715_v17 = vadd.f32 %v7925_v63, %v1714_v2  ;;  %1950 = vst.msk [vmem:[#allocation6 + $0x20] sm:$0xff] %vm515_vm3, %v1911_v14  ;;  %v1935_v18 = vadd.f32 %v7930_v59, %v1934_v13 }
 0x516   :  { %1746 = vst.msk [vmem:[#allocation8 + $0x20] sm:$0xff] %vm240_vm1, %v1730_v55  ;;  %v1738_v12 = vmax.f32 %v1715_v17, 0.0 }
 0x517   :  { %1958 = vst.msk [vmem:[#allocation6 + $0x60] sm:$0xff] %vm515_vm3, %v1935_v18 }
 0x518   :  { %1754 = vst.msk [vmem:[#allocation8 + $0x60] sm:$0xff] %vm240_vm1, %v1738_v12 }
 0x519   :  { %v1693_v25 = vpop.f32.mrf.mxu0  ;;  %v1913_v11 = vpop.f32.mrf.mxu1 }
 0x51a   :  { %v1694_v26 = vadd.f32 %v7925_v63, %v1693_v25  ;;  %v1914_v15 = vadd.f32 %v7930_v59, %v1913_v11 }
 0x51b   :  { %v1717_v35 = vpop.f32.mrf.mxu2  ;;  %v1937_v4 = vpop.f32.mrf.mxu3 }
 0x51c   :  { %v1731_v41 = vmax.f32 %v1694_v26, 0.0  ;;  %v1718_v21 = vadd.f32 %v7925_v63, %v1717_v35  ;;  %1951 = vst.msk [vmem:[#allocation6 + $0x28] sm:$0xff] %vm515_vm3, %v1914_v15  ;;  %v1938_v33 = vadd.f32 %v7930_v59, %v1937_v4 }
 0x51e   :  { %1747 = vst.msk [vmem:[#allocation8 + $0x28] sm:$0xff] %vm240_vm1, %v1731_v41  ;;  %v1739_v44 = vmax.f32 %v1718_v21, 0.0 }
 0x51f   :  { %1959 = vst.msk [vmem:[#allocation6 + $0x68] sm:$0xff] %vm515_vm3, %v1938_v33 }
 0x520   :  { %1755 = vst.msk [vmem:[#allocation8 + $0x68] sm:$0xff] %vm240_vm1, %v1739_v44 }
 0x521   :  { %v1696_v29 = vpop.f32.mrf.mxu0  ;;  %v1916_v40 = vpop.f32.mrf.mxu1 }
 0x522   :  { %v1697_v53 = vadd.f32 %v7925_v63, %v1696_v29  ;;  %v1917_v58 = vadd.f32 %v7930_v59, %v1916_v40 }
 0x523   :  { %v1720_v34 = vpop.f32.mrf.mxu2  ;;  %v1940_v16 = vpop.f32.mrf.mxu3 }
 0x524   :  { %v1732_v50 = vmax.f32 %v1697_v53, 0.0  ;;  %v1721_v57 = vadd.f32 %v7925_v63, %v1720_v34  ;;  %1952 = vst.msk [vmem:[#allocation6 + $0x30] sm:$0xff] %vm515_vm3, %v1917_v58  ;;  %v1941_v38 = vadd.f32 %v7930_v59, %v1940_v16 }
 0x526   :  { %1748 = vst.msk [vmem:[#allocation8 + $0x30] sm:$0xff] %vm240_vm1, %v1732_v50  ;;  %v1740_v20 = vmax.f32 %v1721_v57, 0.0 }
 0x527   :  { %1960 = vst.msk [vmem:[#allocation6 + $0x70] sm:$0xff] %vm515_vm3, %v1941_v38 }
 0x528   :  { %1756 = vst.msk [vmem:[#allocation8 + $0x70] sm:$0xff] %vm240_vm1, %v1740_v20 }
 0x529   :  { %v1699_v22 = vpop.f32.mrf.mxu0  ;;  %v1919_v24 = vpop.f32.mrf.mxu1 }
 0x52a   :  { %v1700_v0 = vadd.f32 %v7925_v63, %v1699_v22  ;;  %v1920_v31 = vadd.f32 %v7930_v59, %v1919_v24 }
 0x52b   :  { %v1723_v1 = vpop.f32.mrf.mxu2  ;;  %v1943_v48 = vpop.f32.mrf.mxu3 }
 0x52c   :  { %v1733_v3 = vmax.f32 %v1700_v0, 0.0  ;;  %v1724_v52 = vadd.f32 %v7925_v63, %v1723_v1  ;;  %1953 = vst.msk [vmem:[#allocation6 + $0x38] sm:$0xff] %vm515_vm3, %v1920_v31  ;;  %v1944_v5 = vadd.f32 %v7930_v59, %v1943_v48 }
 0x52e   :  { %1749 = vst.msk [vmem:[#allocation8 + $0x38] sm:$0xff] %vm240_vm1, %v1733_v3  ;;  %v1741_v27 = vmax.f32 %v1724_v52, 0.0 }
 0x52f   :  { %1961 = vst.msk [vmem:[#allocation6 + $0x78] sm:$0xff] %vm515_vm3, %v1944_v5 }
 0x530   :  { %1757 = vst.msk [vmem:[#allocation8 + $0x78] sm:$0xff] %vm240_vm1, %v1741_v27 }
 0x531 LB: > { %p2116_p4 = scmp.lt.s32.totalorder %s6654_s23, 0  ;;  %s2117_s1 = ssub.s32 0, %s6654_s23  ;;  %s6654_s23 = sphi %s8041_s23, %s9634_s23  }
 0x532   : > { %s5667_s2 = smin.u32 %s6654_s23, %s2117_s1 }
 0x533   : > { %s2119_s11 = sand.u32 1, %s5667_s2  }
 0x534   : > { %s2120_s10 = ssub.s32 0, %s2119_s11 }
 0x535   : > { %s9656_s10 = smov (!%p2116_p4, %s2120_s10), %s2119_s11 }
 0x536   : > { %s6068_s28 = sshll.u32 %s9656_s10, 4  ;;  %s2125_s12 = scalar_lea.sflag [#allocation3], %s9656_s10 }
 0x537   : > { %s8049_s25 = scalar_lea.vmem [#allocation2], %s6068_s28 }
 0x538   : > { %6634 = dma.done.wait %s2125_s12, 256 }
 0x539   : > { %6635 = vsyncadd %s2125_s12, 4294967040  ;;  %s2130_s30 = sadd.s32 1, %s6654_s23  }
 0x53a   : > { %p8054_p5 = scmp.ge.s32.totalorder %s2130_s30, 2 }
 0x53b   : > { %s6069_s24 = sshll.u32 (!%p8054_p5), %s6654_s23, 6  ;;  %s2136_s3 = ssub.s32 (!%p8054_p5), 1, %s9656_s10 }
 0x53c   : > { %2134 = sbr.rel (%p8054_p5) target bundleno = 1353 (0x549), region = 197  ;;  %s6070_s4 = sadd.s32 (!%p8054_p5), 64, %s6069_s24 }
 0x53d   : > { %s6071_s26 = sshll.u32 (!%p8054_p5), %s2136_s3, 4  ;;  %s2137_s21 = sshra.s32 (!%p8054_p5), %s6070_s4, 5 }
 0x53e   : > { %s5672_s27 = sshll.u32 (!%p8054_p5), %s2137_s21, 3  ;;  %s9632_s1 = sld [smem:[#allocation32_spill]] (!%p8054_p5) }
 0x53f   : > { %s2143_s11 = scalar_lea.vmem (!%p8054_p5), [#allocation2], %s6071_s26  ;;  %s2144_s28 = scalar_lea.sflag (!%p8054_p5), [#allocation3], %s2136_s3 }
 0x544   : > { %s2140_s2 = scalar_lea.vmem %s9632_s1, %s5672_s27 }
 0x545   : > { %v2155_v63 = vld [vmem:[%s2140_s2] sm:$0xff]  ;;  %v2157_v59 = vld [vmem:[%s2140_s2 + $0x8] sm:$0xff] }
 0x546   : > { %2156 = vst [vmem:[%s2143_s11] sm:$0xff] %v2155_v63 }
 0x547   : > { %2158 = vst [vmem:[%s2143_s11 + $0x8] sm:$0xff] %v2157_v59 }
 0x548   : > { %2164 = vsyncadd %s2144_s28, 256 }
 0x549 PF: > { %v6079_v7 = vld [vmem:[#allocation7 + $0x38] sm:$0xff]  ;;  %s8065_s12 = sshll.u32 %s6654_s23, 6  ;;  %v6673_v46 = vmov 0   ;;  %s9633_s4 = sld [smem:[#allocation34_spill]]  ;;  %v6078_v61 = vld [vmem:[#allocation7 + $0x30] sm:$0xff]  ;;  %v6077_v14 = vld [vmem:[#allocation7 + $0x28] sm:$0xff] }
 0x54a   : > { %6417 = vset.pattern.permute.xlu1 %v6673_v46  ;;  %6416 = vset.pattern.permute.xlu0 %v6673_v46  ;;  %v6076_v55 = vld [vmem:[#allocation7 + $0x20] sm:$0xff]  ;;  %v6075_v18 = vld [vmem:[#allocation7 + $0x18] sm:$0xff]  ;;  %v6074_v11 = vld [vmem:[#allocation7 + $0x10] sm:$0xff]  ;;  %v8084_v27 = vperm.slane %v8002_v6, 0  ;;  %s8097_s3 = scalar_lea.vmem [#allocation6], %s8065_s12  ;;  %s8103_s26 = scalar_lea.vmem [#allocation5], %s8065_s12 }
 0x54b   : > { %2252 = vmatpush.bf16.msra.mxu0 %v6079_v7  ;;  %6206 = vmatpush.bf16.msra.mxu1 %v6079_v7  ;;  %v6073_v33 = vld [vmem:[#allocation7 + $0x8] sm:$0xff]  ;;  %v6072_v57 = vld [vmem:[#allocation7] sm:$0xff]  ;;  %s9634_s23 = smov %s2130_s30  ;;  %s9635_s9 = sld [smem:[#allocation32_spill]] (%p8054_p5) }
 0x54c   : > { %6207 = vmatpush.bf16.msra.mxu2 %v6079_v7  ;;  %6208 = vmatpush.bf16.msra.mxu3 %v6079_v7 }
 0x54d   : > { %6418 = vset.pattern.permute.xlu2 %v6673_v46 }
 0x54e   : > { %v2166_v26 = vld [vmem:[%s8049_s25] sm:$0xff]  ;;  %v2167_v15 = vld [vmem:[%s8049_s25 + $0x8] sm:$0xff]  ;;  %s8087_s25 = scalar_lea.vmem [#allocation4], %s8065_s12 }
 0x54f   : > { %s8071_s21 = scalar_lea.vmem %s9633_s4, %s8065_s12  ;;  %2253 = vmatpush.bf16.msra.mxu0 %v6078_v61  ;;  %6209 = vmatpush.bf16.msra.mxu1 %v6078_v61  ;;  %v2168_v35 = vunpack.c.0.s8 %v2166_v26  ;;  %v2169_v4 = vunpack.c.1.s8 %v2166_v26  ;;  %v2170_v41 = vunpack.c.2.s8 %v2166_v26  ;;  %v2171_v21 = vunpack.c.3.s8 %v2166_v26 }
 0x550   : > { %v5711_v45 = vld [vmem:[%s8071_s21 + $0x90] sm:$0xff]  ;;  %v5709_v30 = vld [vmem:[%s8071_s21 + $0x80] sm:$0xff]  ;;  %6210 = vmatpush.bf16.msra.mxu2 %v6078_v61  ;;  %6211 = vmatpush.bf16.msra.mxu3 %v6078_v61  ;;  %v5712_v2 = vld [vmem:[%s8071_s21 + $0x98] sm:$0xff]  ;;  %v2172_v44 = vunpack.c.0.s8 %v2167_v15  ;;  %v2173_v29 = vunpack.c.1.s8 %v2167_v15  ;;  %v2174_v40 = vunpack.c.2.s8 %v2167_v15  ;;  %v2175_v53 = vunpack.c.3.s8 %v2167_v15 }
 0x551   : > { %2312 = vperm.xlu1 %6417, %v5711_v45   ;;  %2302 = vperm.xlu0 %6416, %v5709_v30   ;;  %v5713_v9 = vld [vmem:[%s8071_s21 + $0xa0] sm:$0xff]  ;;  %v5710_v13 = vld [vmem:[%s8071_s21 + $0x88] sm:$0xff]  ;;  %v5716_v12 = vld [vmem:[%s8071_s21 + $0xb8] sm:$0xff]  ;;  %v2176_v58 = vcvt.s32.f32 %v2168_v35  ;;  %v2177_v34 = vcvt.s32.f32 %v2169_v4  ;;  %v2178_v16 = vcvt.s32.f32 %v2170_v41  ;;  %v2179_v50 = vcvt.s32.f32 %v2171_v21 }
 0x552   : > { %2322 = vperm.xlu2 %6418, %v5713_v9   ;;  %v5714_v17 = vld [vmem:[%s8071_s21 + $0xa8] sm:$0xff]  ;;  %v5715_v25 = vld [vmem:[%s8071_s21 + $0xb0] sm:$0xff]  ;;  %v2180_v38 = vcvt.s32.f32 %v2172_v44  ;;  %v2181_v20 = vcvt.s32.f32 %v2173_v29  ;;  %v2182_v22 = vcvt.s32.f32 %v2174_v40  ;;  %v2183_v24 = vcvt.s32.f32 %v2175_v53  ;;  %v2292_v61 = vld [vmem:[%s8087_s25] sm:$0xff] }
 0x553   : > { %2254 = vmatpush.bf16.msra.mxu0 %v6077_v14  ;;  %6212 = vmatpush.bf16.msra.mxu1 %v6077_v14  ;;  %v2184_v0 = vpack.c.bf16 %v2177_v34, %v2176_v58  ;;  %v2185_v31 = vpack.c.bf16 %v2179_v50, %v2178_v16  ;;  %v2294_v45 = vld [vmem:[%s8087_s25 + $0x10] sm:$0xff]  ;;  %v8093_v9 = vperm.slane %v8007_v8, 0  ;;  %v2296_v40 = vld [vmem:[%s8087_s25 + $0x20] sm:$0xff] }
 0x554   : > { %6213 = vmatpush.bf16.msra.mxu2 %v6077_v14  ;;  %6214 = vmatpush.bf16.msra.mxu3 %v6077_v14  ;;  %v2186_v1 = vpack.c.bf16 %v2181_v20, %v2180_v38  ;;  %v2187_v48 = vpack.c.bf16 %v2183_v24, %v2182_v22  ;;  %v2298_v53 = vld [vmem:[%s8087_s25 + $0x30] sm:$0xff]  ;;  %v2295_v38 = vld [vmem:[%s8087_s25 + $0x18] sm:$0xff] }
 0x557   : > { %2255 = vmatpush.bf16.msra.mxu0 %v6076_v55  ;;  %6215 = vmatpush.bf16.msra.mxu1 %v6076_v55 }
 0x558   : > { %6216 = vmatpush.bf16.msra.mxu2 %v6076_v55  ;;  %6217 = vmatpush.bf16.msra.mxu3 %v6076_v55 }
 0x559   : > { %2317 = vperm.xlu1 %6417, %v5712_v2   ;;  %2307 = vperm.xlu0 %6416, %v5710_v13  }
 0x55a   : > { %2327 = vperm.xlu2 %6418, %v5714_v17  }
 0x55b   : > { %2256 = vmatpush.bf16.msra.mxu0 %v6075_v18  ;;  %6218 = vmatpush.bf16.msra.mxu1 %v6075_v18 }
 0x55c   : > { %6219 = vmatpush.bf16.msra.mxu2 %v6075_v18  ;;  %6220 = vmatpush.bf16.msra.mxu3 %v6075_v18 }
 0x55f   : > { %2257 = vmatpush.bf16.msra.mxu0 %v6074_v11  ;;  %6221 = vmatpush.bf16.msra.mxu1 %v6074_v11 }
 0x560   : > { %6222 = vmatpush.bf16.msra.mxu2 %v6074_v11  ;;  %6223 = vmatpush.bf16.msra.mxu3 %v6074_v11 }
 0x561   : > { %2337 = vperm.xlu1 %6417, %v5716_v12   ;;  %2332 = vperm.xlu0 %6416, %v5715_v25   ;;  %v2368_v12 = vld [vmem:[%s8097_s3] sm:$0xff]  ;;  %v2370_v25 = vld [vmem:[%s8097_s3 + $0x10] sm:$0xff] }
 0x563   : > { %2258 = vmatpush.bf16.msra.mxu0 %v6073_v33  ;;  %6224 = vmatpush.bf16.msra.mxu1 %v6073_v33 }
 0x564   : > { %6225 = vmatpush.bf16.msra.mxu2 %v6073_v33  ;;  %6226 = vmatpush.bf16.msra.mxu3 %v6073_v33 }
 0x567   : > { %2259 = vmatpush.bf16.msra.mxu0 %v6072_v57  ;;  %6227 = vmatpush.bf16.msra.mxu1 %v6072_v57 }
 0x568   : > { %6228 = vmatpush.bf16.msra.mxu2 %v6072_v57  ;;  %6229 = vmatpush.bf16.msra.mxu3 %v6072_v57  ;;  %v2293_v57 = vld [vmem:[%s8087_s25 + $0x8] sm:$0xff] }
 0x56a   : > { %2260 = vmatmul.bf16.vlgmr.msra.gmra.mxu0 %v2184_v0  ;;  %2265 = vmatmul.bf16.vlgmr.msra.gmra.mxu1 %v2185_v31  ;;  %v2372_v31 = vld [vmem:[%s8097_s3 + $0x20] sm:$0xff] }
 0x56b   : > { %2270 = vmatmul.bf16.vlgmr.msra.gmra.mxu2 %v2186_v1  ;;  %2275 = vmatmul.bf16.vlgmr.msra.gmra.mxu3 %v2187_v48  ;;  %v2374_v1 = vld [vmem:[%s8097_s3 + $0x30] sm:$0xff] }
 0x5ac   : > { %v2323_v13 = vpop.permute.xlu2 %2322 }
 0x5c3   : > { %v2303_v3 = vpop.permute.xlu0 %2302  ;;  %v2313_v52 = vpop.permute.xlu1 %2312 }
 0x5cb   : > { %v2308_v5 = vpop.permute.xlu0 %2307  ;;  %v2318_v2 = vpop.permute.xlu1 %2317 }
 0x5d3   : > { %v2333_v18 = vpop.permute.xlu0 %2332 }
 0x5e7   : > { %v2261_v63 = vpop.f32.mrf.mxu0  ;;  %v2266_v59 = vpop.f32.mrf.mxu1 }
 0x5e8   : > { %v2340_v7 = vmul.f32 %v2303_v3, %v2261_v63  ;;  %v2342_v46 = vmul.f32 %v2313_v52, %v2266_v59  ;;  %v2338_v52 = vpop.permute.xlu1 %2337  ;;  %v2328_v59 = vpop.permute.xlu2 %2327 }
 0x5ea   : > { %v2351_v30 = vmul.f32 %v8084_v27, %v2340_v7  ;;  %v2353_v14 = vmul.f32 %v8084_v27, %v2342_v46  ;;  %v2369_v7 = vld [vmem:[%s8097_s3 + $0x8] sm:$0xff]  ;;  %v2371_v46 = vld [vmem:[%s8097_s3 + $0x18] sm:$0xff] }
 0x5ec   : > { %v2359_v55 = vsub.f32 %v2292_v61, %v2351_v30  ;;  %v2361_v17 = vsub.f32 %v2294_v45, %v2353_v14 }
 0x5ee   : > { %v2379_v11 = vmul.f32 %v8093_v9, %v2359_v55  ;;  %2404 = vst.msk [vmem:[%s8103_s26] sm:$0xff] %vm515_vm3, %v2359_v55  ;;  %v2381_v26 = vmul.f32 %v8093_v9, %v2361_v17  ;;  %v2271_v15 = vpop.f32.mrf.mxu2  ;;  %v2276_v35 = vpop.f32.mrf.mxu3 }
 0x5ef   : > { %2406 = vst.msk [vmem:[%s8103_s26 + $0x10] sm:$0xff] %vm515_vm3, %v2361_v17  ;;  %v2344_v4 = vmul.f32 %v2323_v13, %v2271_v15  ;;  %v2346_v41 = vmul.f32 %v2333_v18, %v2276_v35  ;;  %v2263_v21 = vpop.f32.mrf.mxu0  ;;  %v2268_v33 = vpop.f32.mrf.mxu1 }
 0x5f0   : > { %v2387_v44 = vadd.f32 %v2379_v11, %v2368_v12  ;;  %v2389_v29 = vadd.f32 %v2381_v26, %v2370_v25  ;;  %v2341_v58 = vmul.f32 %v2308_v5, %v2263_v21  ;;  %v2343_v34 = vmul.f32 %v2318_v2, %v2268_v33  ;;  %v2297_v25 = vld [vmem:[%s8087_s25 + $0x28] sm:$0xff]  ;;  %v2299_v11 = vld [vmem:[%s8087_s25 + $0x38] sm:$0xff] }
 0x5f1   : > { %v2355_v16 = vmul.f32 %v8084_v27, %v2344_v4  ;;  %v2357_v50 = vmul.f32 %v8084_v27, %v2346_v41  ;;  %v2373_v41 = vld [vmem:[%s8097_s3 + $0x28] sm:$0xff]  ;;  %v2375_v21 = vld [vmem:[%s8097_s3 + $0x38] sm:$0xff] }
 0x5f2   : > { %2395 = vst.msk [vmem:[%s8097_s3] sm:$0xff] %vm515_vm3, %v2387_v44  ;;  %v2352_v20 = vmul.f32 %v8084_v27, %v2341_v58  ;;  %v2354_v22 = vmul.f32 %v8084_v27, %v2343_v34 }
 0x5f3   : > { %2397 = vst.msk [vmem:[%s8097_s3 + $0x10] sm:$0xff] %vm515_vm3, %v2389_v29  ;;  %v2363_v24 = vsub.f32 %v2296_v40, %v2355_v16  ;;  %v2365_v0 = vsub.f32 %v2298_v53, %v2357_v50  ;;  %v2422_v40 = vld [vmem:[%s9635_s9] sm:$0xff] (%p8054_p5) }
 0x5f4   : > { %v2360_v48 = vsub.f32 %v2293_v57, %v2352_v20  ;;  %v2362_v3 = vsub.f32 %v2295_v38, %v2354_v22  ;;  %2423 = vst [vmem:[#allocation2] sm:$0xff] (%p8054_p5), %v2422_v40 }
 0x5f5   : > { %v2383_v5 = vmul.f32 %v8093_v9, %v2363_v24  ;;  %2408 = vst.msk [vmem:[%s8103_s26 + $0x20] sm:$0xff] %vm515_vm3, %v2363_v24  ;;  %v2385_v63 = vmul.f32 %v8093_v9, %v2365_v0 }
 0x5f6   : > { %2410 = vst.msk [vmem:[%s8103_s26 + $0x30] sm:$0xff] %vm515_vm3, %v2365_v0  ;;  %v2380_v61 = vmul.f32 %v8093_v9, %v2360_v48  ;;  %v2382_v45 = vmul.f32 %v8093_v9, %v2362_v3  ;;  %v2273_v30 = vpop.f32.mrf.mxu2  ;;  %v2278_v14 = vpop.f32.mrf.mxu3 }
 0x5f7   : > { %v2391_v2 = vadd.f32 %v2383_v5, %v2372_v31  ;;  %v2393_v13 = vadd.f32 %v2385_v63, %v2374_v1  ;;  %2405 = vst.msk [vmem:[%s8103_s26 + $0x8] sm:$0xff] %vm515_vm3, %v2360_v48  ;;  %v2345_v55 = vmul.f32 %v2328_v59, %v2273_v30  ;;  %v2347_v17 = vmul.f32 %v2338_v52, %v2278_v14 }
 0x5f8   : > { %v2388_v18 = vadd.f32 %v2380_v61, %v2369_v7  ;;  %v2390_v12 = vadd.f32 %v2382_v45, %v2371_v46  ;;  %2407 = vst.msk [vmem:[%s8103_s26 + $0x18] sm:$0xff] %vm515_vm3, %v2362_v3 }
 0x5f9   : > { %2399 = vst.msk [vmem:[%s8097_s3 + $0x20] sm:$0xff] %vm515_vm3, %v2391_v2  ;;  %v2356_v26 = vmul.f32 %v8084_v27, %v2345_v55  ;;  %v2358_v15 = vmul.f32 %v8084_v27, %v2347_v17 }
 0x5fa   : > { %2401 = vst.msk [vmem:[%s8097_s3 + $0x30] sm:$0xff] %vm515_vm3, %v2393_v13 }
 0x5fb   : > { %2396 = vst.msk [vmem:[%s8097_s3 + $0x8] sm:$0xff] %vm515_vm3, %v2388_v18  ;;  %v2364_v35 = vsub.f32 %v2297_v25, %v2356_v26  ;;  %v2366_v4 = vsub.f32 %v2299_v11, %v2358_v15 }
 0x5fc   : > { %2398 = vst.msk [vmem:[%s8097_s3 + $0x18] sm:$0xff] %vm515_vm3, %v2390_v12 }
 0x5fd   : > { %v2384_v33 = vmul.f32 %v8093_v9, %v2364_v35  ;;  %2409 = vst.msk [vmem:[%s8103_s26 + $0x28] sm:$0xff] %vm515_vm3, %v2364_v35  ;;  %v2386_v44 = vmul.f32 %v8093_v9, %v2366_v4  ;;  %v2424_v9 = vld [vmem:[%s9635_s9 + $0x8] sm:$0xff] (%p8054_p5) }
 0x5fe   : > { %2411 = vst.msk [vmem:[%s8103_s26 + $0x38] sm:$0xff] %vm515_vm3, %v2366_v4  ;;  %2114 = sbr.rel (!%p8054_p5) target bundleno = 1329 (0x531), region = 532 }
 0x5ff   : > { %v2392_v29 = vadd.f32 %v2384_v33, %v2373_v41  ;;  %v2394_v27 = vadd.f32 %v2386_v44, %v2375_v21  ;;  %2425 = vst [vmem:[#allocation2 + $0x8] sm:$0xff] (%p8054_p5), %v2424_v9 }
 0x601   : > { %2400 = vst.msk [vmem:[%s8097_s3 + $0x28] sm:$0xff] %vm515_vm3, %v2392_v29 }
 0x602   : > { %2402 = vst.msk [vmem:[%s8097_s3 + $0x38] sm:$0xff] %vm515_vm3, %v2394_v27 }
 0x603   :  { %2431 = vsyncadd [#allocation3], 256  ;;  %v8187_v7 = vld [vmem:[%s9587_s6 + $0x5] sm:$0x1]  ;;  %s8216_s28 = smov 0  }
 0x605   :  { %v2432_v53 = vld [vmem:[#allocation5] sm:$0xff]  ;;  %v2433_v58 = vld [vmem:[#allocation5 + $0x8] sm:$0xff]  ;;  %v2434_v50 = vld [vmem:[#allocation5 + $0x10] sm:$0xff] }
 0x606   :  { %v2448_v34 = vmul.f32 %v2432_v53, %v7885_v42  ;;  %v2449_v16 = vmul.f32 %v2433_v58, %v7894_v47  ;;  %v2435_v57 = vld [vmem:[#allocation5 + $0x18] sm:$0xff]  ;;  %v2436_v38 = vld [vmem:[#allocation5 + $0x20] sm:$0xff]  ;;  %v2450_v6 = vmul.f32 %v2434_v50, %v7903_v49  ;;  %v2437_v22 = vld [vmem:[#allocation5 + $0x28] sm:$0xff] }
 0x607   :  { %v2451_v8 = vmul.f32 %v2435_v57, %v7917_v62  ;;  %v2452_v20 = vmul.f32 %v2436_v38, %v7881_v37  ;;  %v2438_v24 = vld [vmem:[#allocation5 + $0x30] sm:$0xff]  ;;  %v2439_v0 = vld [vmem:[#allocation5 + $0x38] sm:$0xff]  ;;  %v2453_v48 = vmul.f32 %v2437_v22, %v7889_v19  ;;  %v2440_v3 = vld [vmem:[#allocation5 + $0x40] sm:$0xff] }
 0x608   :  { %v2464_v31 = vpack.c.bf16 %v2448_v34, %v2448_v34  ;;  %v2465_v1 = vpack.c.bf16 %v2449_v16, %v2449_v16  ;;  %v2454_v42 = vmul.f32 %v2438_v24, %v7908_v54  ;;  %v2441_v47 = vld [vmem:[#allocation5 + $0x48] sm:$0xff]  ;;  %v2466_v52 = vpack.c.bf16 %v2450_v6, %v2450_v6  ;;  %v2442_v49 = vld [vmem:[#allocation5 + $0x50] sm:$0xff]  ;;  %v2443_v59 = vld [vmem:[#allocation5 + $0x58] sm:$0xff] }
 0x609   :  { %v2467_v5 = vpack.c.bf16 %v2451_v8, %v2451_v8  ;;  %v2455_v63 = vmul.f32 %v2439_v0, %v7946_v10  ;;  %v2468_v62 = vpack.c.bf16 %v2452_v20, %v2452_v20  ;;  %v2456_v37 = vmul.f32 %v2440_v3, %v7898_v43  ;;  %v2444_v46 = vld [vmem:[#allocation5 + $0x60] sm:$0xff]  ;;  %v2445_v45 = vld [vmem:[#allocation5 + $0x68] sm:$0xff]  ;;  %v2446_v2 = vld [vmem:[#allocation5 + $0x70] sm:$0xff] }
 0x60a   :  { %2480 = vst.msk [vmem:[#allocation7] sm:$0xf] %vm859_vm4, %v2464_v31  ;;  %v2469_v19 = vpack.c.bf16 %v2453_v48, %v2453_v48  ;;  %v2457_v54 = vmul.f32 %v2441_v47, %v7932_v51  ;;  %v8194_v10 = vld [vmem:[%s9586_s5 + $0x5] sm:$0x1]  ;;  %v2470_v43 = vpack.c.bf16 %v2454_v42, %v2454_v42  ;;  %v2458_v61 = vmul.f32 %v2442_v49, %v7964_v39  ;;  %v2447_v55 = vld [vmem:[#allocation5 + $0x78] sm:$0xff] }
 0x60b   :  { %2481 = vst.msk [vmem:[#allocation7 + $0x4] sm:$0xf] %vm859_vm4, %v2465_v1  ;;  %v2471_v30 = vpack.c.bf16 %v2455_v63, %v2455_v63  ;;  %v2459_v14 = vmul.f32 %v2443_v59, %v7910_v32  ;;  %v2472_v51 = vpack.c.bf16 %v2456_v37, %v2456_v37  ;;  %v2460_v13 = vmul.f32 %v2444_v46, %v7952_v36 }
 0x60c   :  { %2482 = vst.msk [vmem:[#allocation7 + $0x8] sm:$0xf] %vm859_vm4, %v2466_v52  ;;  %v2473_v17 = vpack.c.bf16 %v2457_v54, %v2457_v54  ;;  %v2461_v18 = vmul.f32 %v2445_v45, %v7982_v23  ;;  %v2474_v39 = vpack.c.bf16 %v2458_v61, %v2458_v61  ;;  %v2462_v12 = vmul.f32 %v2446_v2, %v7934_v60 }
 0x60d   :  { %2483 = vst.msk [vmem:[#allocation7 + $0xc] sm:$0xf] %vm859_vm4, %v2467_v5  ;;  %v2475_v32 = vpack.c.bf16 %v2459_v14, %v2459_v14  ;;  %v2463_v25 = vmul.f32 %v2447_v55, %v7971_v28  ;;  %v2476_v11 = vpack.c.bf16 %v2460_v13, %v2460_v13 }
 0x60e   :  { %2484 = vst.msk [vmem:[#allocation7 + $0x10] sm:$0xf] %vm859_vm4, %v2468_v62  ;;  %v2477_v36 = vpack.c.bf16 %v2461_v18, %v2461_v18  ;;  %v2478_v26 = vpack.c.bf16 %v2462_v12, %v2462_v12 }
 0x60f   :  { %2485 = vst.msk [vmem:[#allocation7 + $0x14] sm:$0xf] %vm859_vm4, %v2469_v19  ;;  %v2479_v23 = vpack.c.bf16 %v2463_v25, %v2463_v25 }
 0x610   :  { %2486 = vst.msk [vmem:[#allocation7 + $0x18] sm:$0xf] %vm859_vm4, %v2470_v43 }
 0x611   :  { %2487 = vst.msk [vmem:[#allocation7 + $0x1c] sm:$0xf] %vm859_vm4, %v2471_v30 }
 0x612   :  { %2488 = vst.msk [vmem:[#allocation7 + $0x20] sm:$0xf] %vm859_vm4, %v2472_v51 }
 0x613   :  { %2489 = vst.msk [vmem:[#allocation7 + $0x24] sm:$0xf] %vm859_vm4, %v2473_v17 }
 0x614   :  { %2490 = vst.msk [vmem:[#allocation7 + $0x28] sm:$0xf] %vm859_vm4, %v2474_v39 }
 0x615   :  { %2491 = vst.msk [vmem:[#allocation7 + $0x2c] sm:$0xf] %vm859_vm4, %v2475_v32 }
 0x616   :  { %2492 = vst.msk [vmem:[#allocation7 + $0x30] sm:$0xf] %vm859_vm4, %v2476_v11 }
 0x617   :  { %2493 = vst.msk [vmem:[#allocation7 + $0x34] sm:$0xf] %vm859_vm4, %v2477_v36 }
 0x618   :  { %2494 = vst.msk [vmem:[#allocation7 + $0x38] sm:$0xf] %vm859_vm4, %v2478_v26 }
 0x619   :  { %2495 = vst.msk [vmem:[#allocation7 + $0x3c] sm:$0xf] %vm859_vm4, %v2479_v23 }
 0x61a LB: > { %p2506_p6 = scmp.lt.s32.totalorder %s6658_s28, 0  ;;  %s2507_s12 = ssub.s32 0, %s6658_s28  ;;  %s6658_s28 = sphi %s8216_s28, %s9639_s28  }
 0x61b   : > { %s5719_s10 = smin.u32 %s6658_s28, %s2507_s12 }
 0x61c   : > { %s2509_s24 = sand.u32 1, %s5719_s10  }
 0x61d   : > { %s2510_s4 = ssub.s32 0, %s2509_s24 }
 0x61e   : > { %s9658_s4 = smov (!%p2506_p6, %s2510_s4), %s2509_s24 }
 0x61f   : > { %s6080_s21 = sshll.u32 %s9658_s4, 4  ;;  %s2515_s3 = scalar_lea.sflag [#allocation3], %s9658_s4 }
 0x620   : > { %s8224_s25 = scalar_lea.vmem [#allocation2], %s6080_s21 }
 0x621   : > { %6636 = dma.done.wait %s2515_s3, 256 }
 0x622   : > { %6637 = vsyncadd %s2515_s3, 4294967040  ;;  %s2520_s26 = sadd.s32 1, %s6658_s28  }
 0x623   : > { %p8229_p7 = scmp.ge.s32.totalorder %s2520_s26, 2 }
 0x624   : > { %s6081_s22 = sshll.u32 (!%p8229_p7), %s6658_s28, 6  ;;  %s2526_s9 = ssub.s32 (!%p8229_p7), 1, %s9658_s4 }
 0x625   : > { %2524 = sbr.rel (%p8229_p7) target bundleno = 1586 (0x632), region = 246  ;;  %s6082_s1 = sadd.s32 (!%p8229_p7), 64, %s6081_s22 }
 0x626   : > { %s6083_s2 = sshll.u32 (!%p8229_p7), %s2526_s9, 4  ;;  %s2527_s23 = sshra.s32 (!%p8229_p7), %s6082_s1, 5 }
 0x627   : > { %s5724_s30 = sshll.u32 (!%p8229_p7), %s2527_s23, 3  ;;  %s9637_s12 = sld [smem:[#allocation32_spill]] (!%p8229_p7) }
 0x628   : > { %s2533_s24 = scalar_lea.vmem (!%p8229_p7), [#allocation2], %s6083_s2  ;;  %s2534_s21 = scalar_lea.sflag (!%p8229_p7), [#allocation3], %s2526_s9 }
 0x62d   : > { %s2530_s10 = scalar_lea.vmem %s9637_s12, %s5724_s30 }
 0x62e   : > { %v2545_v60 = vld [vmem:[%s2530_s10] sm:$0xff]  ;;  %v2547_v28 = vld [vmem:[%s2530_s10 + $0x8] sm:$0xff] }
 0x62f   : > { %2546 = vst [vmem:[%s2533_s24] sm:$0xff] %v2545_v60 }
 0x630   : > { %2548 = vst [vmem:[%s2533_s24 + $0x8] sm:$0xff] %v2547_v28 }
 0x631   : > { %2554 = vsyncadd %s2534_s21, 256 }
 0x632 PF: > { %v6091_v15 = vld [vmem:[#allocation7 + $0x38] sm:$0xff]  ;;  %s8240_s3 = sshll.u32 %s6658_s28, 6  ;;  %v6674_v35 = vmov 0   ;;  %s9638_s1 = sld [smem:[#allocation34_spill]]  ;;  %v6090_v4 = vld [vmem:[#allocation7 + $0x30] sm:$0xff]  ;;  %v6089_v44 = vld [vmem:[#allocation7 + $0x28] sm:$0xff] }
 0x633   : > { %6420 = vset.pattern.permute.xlu1 %v6674_v35  ;;  %6419 = vset.pattern.permute.xlu0 %v6674_v35  ;;  %v6088_v40 = vld [vmem:[#allocation7 + $0x20] sm:$0xff]  ;;  %v6087_v53 = vld [vmem:[#allocation7 + $0x18] sm:$0xff]  ;;  %v6086_v16 = vld [vmem:[#allocation7 + $0x10] sm:$0xff]  ;;  %v8259_v45 = vperm.slane %v8187_v7, 0  ;;  %v8268_v18 = vperm.slane %v8194_v10, 0  ;;  %s8272_s9 = scalar_lea.vmem [#allocation6], %s8240_s3  ;;  %s9639_s28 = smov %s2520_s26 }
 0x634   : > { %2642 = vmatpush.bf16.msra.mxu0 %v6091_v15  ;;  %6230 = vmatpush.bf16.msra.mxu1 %v6091_v15  ;;  %v6085_v22 = vld [vmem:[#allocation7 + $0x8] sm:$0xff]  ;;  %v6084_v52 = vld [vmem:[#allocation7] sm:$0xff]  ;;  %v2760_v23 = vld [vmem:[%s8272_s9 + $0x10] sm:$0xff]  ;;  %s9640_s0 = sld [smem:[#allocation33_spill]] (%p8229_p7) }
 0x635   : > { %6231 = vmatpush.bf16.msra.mxu2 %v6091_v15  ;;  %6232 = vmatpush.bf16.msra.mxu3 %v6091_v15  ;;  %v2758_v26 = vld [vmem:[%s8272_s9] sm:$0xff]  ;;  %v5827_v7 = vld [vmem:[%s9588_s7 + $0x118] sm:$0xff] (%p8229_p7)  ;;  %v5826_v10 = vld [vmem:[%s9588_s7 + $0x110] sm:$0xff] (%p8229_p7) }
 0x636   : > { %6421 = vset.pattern.permute.xlu2 %v6674_v35 }
 0x637   : > { %v2556_v50 = vld [vmem:[%s8224_s25] sm:$0xff]  ;;  %v2557_v57 = vld [vmem:[%s8224_s25 + $0x8] sm:$0xff]  ;;  %s8262_s25 = scalar_lea.vmem [#allocation5], %s8240_s3 }
 0x638   : > { %s8246_s23 = scalar_lea.vmem %s9638_s1, %s8240_s3  ;;  %2643 = vmatpush.bf16.msra.mxu0 %v6090_v4  ;;  %6233 = vmatpush.bf16.msra.mxu1 %v6090_v4  ;;  %v2558_v38 = vunpack.c.0.s8 %v2556_v50  ;;  %v2559_v6 = vunpack.c.1.s8 %v2556_v50  ;;  %v2560_v8 = vunpack.c.2.s8 %v2556_v50  ;;  %v2561_v20 = vunpack.c.3.s8 %v2556_v50  ;;  %v2682_v13 = vld [vmem:[%s8262_s25] sm:$0xff]  ;;  %v2684_v55 = vld [vmem:[%s8262_s25 + $0x10] sm:$0xff]  ;;  %v2685_v50 = vld [vmem:[%s8262_s25 + $0x18] sm:$0xff] }
 0x639   : > { %v5763_v41 = vld [vmem:[%s8246_s23 + $0x90] sm:$0xff]  ;;  %v5761_v21 = vld [vmem:[%s8246_s23 + $0x80] sm:$0xff]  ;;  %6234 = vmatpush.bf16.msra.mxu2 %v6090_v4  ;;  %6235 = vmatpush.bf16.msra.mxu3 %v6090_v4  ;;  %v5764_v29 = vld [vmem:[%s8246_s23 + $0x98] sm:$0xff]  ;;  %v2562_v24 = vunpack.c.0.s8 %v2557_v57  ;;  %v2563_v0 = vunpack.c.1.s8 %v2557_v57  ;;  %v2564_v31 = vunpack.c.2.s8 %v2557_v57  ;;  %v2565_v1 = vunpack.c.3.s8 %v2557_v57 }
 0x63a   : > { %2702 = vperm.xlu1 %6420, %v5763_v41   ;;  %2692 = vperm.xlu0 %6419, %v5761_v21   ;;  %v5765_v33 = vld [vmem:[%s8246_s23 + $0xa0] sm:$0xff]  ;;  %v5762_v27 = vld [vmem:[%s8246_s23 + $0x88] sm:$0xff]  ;;  %v5768_v58 = vld [vmem:[%s8246_s23 + $0xb8] sm:$0xff]  ;;  %v2566_v48 = vcvt.s32.f32 %v2558_v38  ;;  %v2567_v42 = vcvt.s32.f32 %v2559_v6  ;;  %v2568_v3 = vcvt.s32.f32 %v2560_v8  ;;  %v2569_v47 = vcvt.s32.f32 %v2561_v20 }
 0x63b   : > { %2712 = vperm.xlu2 %6421, %v5765_v33   ;;  %v5766_v9 = vld [vmem:[%s8246_s23 + $0xa8] sm:$0xff]  ;;  %v5767_v34 = vld [vmem:[%s8246_s23 + $0xb0] sm:$0xff]  ;;  %v2570_v5 = vcvt.s32.f32 %v2562_v24  ;;  %v2571_v63 = vcvt.s32.f32 %v2563_v0  ;;  %v2572_v49 = vcvt.s32.f32 %v2564_v31  ;;  %v2573_v62 = vcvt.s32.f32 %v2565_v1  ;;  %v2762_v20 = vld [vmem:[%s8272_s9 + $0x20] sm:$0xff] }
 0x63c   : > { %2644 = vmatpush.bf16.msra.mxu0 %v6089_v44  ;;  %6236 = vmatpush.bf16.msra.mxu1 %v6089_v44  ;;  %v2574_v37 = vpack.c.bf16 %v2567_v42, %v2566_v48  ;;  %v2575_v59 = vpack.c.bf16 %v2569_v47, %v2568_v3  ;;  %v2759_v3 = vld [vmem:[%s8272_s9 + $0x8] sm:$0xff]  ;;  %v2761_v47 = vld [vmem:[%s8272_s9 + $0x18] sm:$0xff] }
 0x63d   : > { %6237 = vmatpush.bf16.msra.mxu2 %v6089_v44  ;;  %6238 = vmatpush.bf16.msra.mxu3 %v6089_v44  ;;  %v2576_v19 = vpack.c.bf16 %v2571_v63, %v2570_v5  ;;  %v2577_v54 = vpack.c.bf16 %v2573_v62, %v2572_v49 }
 0x640   : > { %2645 = vmatpush.bf16.msra.mxu0 %v6088_v40  ;;  %6239 = vmatpush.bf16.msra.mxu1 %v6088_v40 }
 0x641   : > { %6240 = vmatpush.bf16.msra.mxu2 %v6088_v40  ;;  %6241 = vmatpush.bf16.msra.mxu3 %v6088_v40  ;;  %v2688_v40 = vld [vmem:[%s8262_s25 + $0x30] sm:$0xff] }
 0x642   : > { %2707 = vperm.xlu1 %6420, %v5764_v29   ;;  %2697 = vperm.xlu0 %6419, %v5762_v27   ;;  %v2686_v27 = vld [vmem:[%s8262_s25 + $0x20] sm:$0xff] }
 0x643   : > { %2717 = vperm.xlu2 %6421, %v5766_v9  }
 0x644   : > { %2646 = vmatpush.bf16.msra.mxu0 %v6087_v53  ;;  %6242 = vmatpush.bf16.msra.mxu1 %v6087_v53 }
 0x645   : > { %6243 = vmatpush.bf16.msra.mxu2 %v6087_v53  ;;  %6244 = vmatpush.bf16.msra.mxu3 %v6087_v53 }
 0x648   : > { %2647 = vmatpush.bf16.msra.mxu0 %v6086_v16  ;;  %6245 = vmatpush.bf16.msra.mxu1 %v6086_v16 }
 0x649   : > { %6246 = vmatpush.bf16.msra.mxu2 %v6086_v16  ;;  %6247 = vmatpush.bf16.msra.mxu3 %v6086_v16  ;;  %v2683_v16 = vld [vmem:[%s8262_s25 + $0x8] sm:$0xff] }
 0x64a   : > { %2727 = vperm.xlu1 %6420, %v5768_v58   ;;  %2722 = vperm.xlu0 %6419, %v5767_v34  }
 0x64c   : > { %2648 = vmatpush.bf16.msra.mxu0 %v6085_v22  ;;  %6248 = vmatpush.bf16.msra.mxu1 %v6085_v22 }
 0x64d   : > { %6249 = vmatpush.bf16.msra.mxu2 %v6085_v22  ;;  %6250 = vmatpush.bf16.msra.mxu3 %v6085_v22  ;;  %v2764_v22 = vld [vmem:[%s8272_s9 + $0x30] sm:$0xff] }
 0x650   : > { %2649 = vmatpush.bf16.msra.mxu0 %v6084_v52  ;;  %6251 = vmatpush.bf16.msra.mxu1 %v6084_v52 }
 0x651   : > { %6252 = vmatpush.bf16.msra.mxu2 %v6084_v52  ;;  %6253 = vmatpush.bf16.msra.mxu3 %v6084_v52 }
 0x652   :  { %6422 = vset.pattern.permute.xlu0 (%p8229_p7), %v6670_v56  ;;  %6423 = vset.pattern.permute.xlu1 (%p8229_p7), %v6670_v56 }
 0x653   : > { %2650 = vmatmul.bf16.vlgmr.msra.gmra.mxu0 %v2574_v37  ;;  %2655 = vmatmul.bf16.vlgmr.msra.gmra.mxu1 %v2575_v59 }
 0x654   : > { %2660 = vmatmul.bf16.vlgmr.msra.gmra.mxu2 %v2576_v19  ;;  %2665 = vmatmul.bf16.vlgmr.msra.gmra.mxu3 %v2577_v54 }
 0x655   :  { %6266 = vmatpush.msra.mxu3 (%p8229_p7), %v5827_v7 }
 0x695   : > { %v2713_v32 = vpop.permute.xlu2 %2712 }
 0x69d   : > { %v2718_v42 = vpop.permute.xlu2 %2717 }
 0x6ac   : > { %v2693_v46 = vpop.permute.xlu0 %2692  ;;  %v2703_v43 = vpop.permute.xlu1 %2702 }
 0x6b4   : > { %v2698_v61 = vpop.permute.xlu0 %2697  ;;  %v2708_v12 = vpop.permute.xlu1 %2707 }
 0x6bc   : > { %v2723_v36 = vpop.permute.xlu0 %2722  ;;  %v2728_v31 = vpop.permute.xlu1 %2727 }
 0x6d0   : > { %v2651_v30 = vpop.f32.mrf.mxu0  ;;  %v2656_v14 = vpop.f32.mrf.mxu1 }
 0x6d1   : > { %v2730_v2 = vmul.f32 %v2693_v46, %v2651_v30  ;;  %v2732_v51 = vmul.f32 %v2703_v43, %v2656_v14  ;;  %v2687_v43 = vld [vmem:[%s8262_s25 + $0x28] sm:$0xff] }
 0x6d3   : > { %v2741_v17 = vmul.f32 %v8259_v45, %v2730_v2  ;;  %v2743_v39 = vmul.f32 %v8259_v45, %v2732_v51 }
 0x6d5   : > { %v2749_v25 = vsub.f32 %v2682_v13, %v2741_v17  ;;  %v2751_v11 = vsub.f32 %v2684_v55, %v2743_v39  ;;  %v2763_v13 = vld [vmem:[%s8272_s9 + $0x28] sm:$0xff]  ;;  %v2765_v55 = vld [vmem:[%s8272_s9 + $0x38] sm:$0xff] }
 0x6d7   : > { %v2769_v60 = vmul.f32 %v8268_v18, %v2749_v25  ;;  %v2771_v28 = vmul.f32 %v8268_v18, %v2751_v11  ;;  %v2661_v15 = vpop.f32.mrf.mxu2  ;;  %v2666_v35 = vpop.f32.mrf.mxu3  ;;  %v5780_v25 = vld [vmem:[%s9594_s13 + $0xb8] sm:$0xff] (%p8229_p7)  ;;  %v5779_v11 = vld [vmem:[%s9594_s13 + $0xb0] sm:$0xff] (%p8229_p7) }
 0x6d8   : > { %v2734_v4 = vmul.f32 %v2713_v32, %v2661_v15  ;;  %v2736_v41 = vmul.f32 %v2723_v36, %v2666_v35  ;;  %v2653_v21 = vpop.f32.mrf.mxu0  ;;  %v2658_v33 = vpop.f32.mrf.mxu1  ;;  %6254 = vmatpush.msra.mxu2 (%p8229_p7), %v5780_v25 }
 0x6d9   : > { %v2777_v44 = vadd.f32 %v2769_v60, %v2758_v26  ;;  %v2779_v29 = vadd.f32 %v2771_v28, %v2760_v23  ;;  %v2731_v9 = vmul.f32 %v2698_v61, %v2653_v21  ;;  %v2733_v53 = vmul.f32 %v2708_v12, %v2658_v33  ;;  %v2689_v61 = vld [vmem:[%s8262_s25 + $0x38] sm:$0xff] }
 0x6da   : > { %v2745_v58 = vmul.f32 %v8259_v45, %v2734_v4  ;;  %v2747_v34 = vmul.f32 %v8259_v45, %v2736_v41 }
 0x6db   : > { %2785 = vst.msk [vmem:[%s8272_s9] sm:$0xff] %vm515_vm3, %v2777_v44  ;;  %v2742_v57 = vmul.f32 %v8259_v45, %v2731_v9  ;;  %v2744_v38 = vmul.f32 %v8259_v45, %v2733_v53 }
 0x6dc   : > { %2787 = vst.msk [vmem:[%s8272_s9 + $0x10] sm:$0xff] %vm515_vm3, %v2779_v29  ;;  %v2753_v6 = vsub.f32 %v2686_v27, %v2745_v58  ;;  %v2755_v8 = vsub.f32 %v2688_v40, %v2747_v34 }
 0x6dd   : > { %v2750_v24 = vsub.f32 %v2683_v16, %v2742_v57  ;;  %v2752_v0 = vsub.f32 %v2685_v50, %v2744_v38 }
 0x6de   : > { %v2773_v1 = vmul.f32 %v8268_v18, %v2753_v6  ;;  %v2775_v48 = vmul.f32 %v8268_v18, %v2755_v8 }
 0x6df   : > { %v2770_v52 = vmul.f32 %v8268_v18, %v2750_v24  ;;  %v2772_v5 = vmul.f32 %v8268_v18, %v2752_v0  ;;  %v2663_v63 = vpop.f32.mrf.mxu2  ;;  %v2668_v49 = vpop.f32.mrf.mxu3 }
 0x6e0   : > { %v2781_v62 = vadd.f32 %v2773_v1, %v2762_v20  ;;  %v2783_v37 = vadd.f32 %v2775_v48, %v2764_v22  ;;  %v2735_v59 = vmul.f32 %v2718_v42, %v2663_v63  ;;  %v2737_v19 = vmul.f32 %v2728_v31, %v2668_v49 }
 0x6e1   : > { %v2778_v54 = vadd.f32 %v2770_v52, %v2759_v3  ;;  %v2780_v46 = vadd.f32 %v2772_v5, %v2761_v47 }
 0x6e2   : > { %2789 = vst.msk [vmem:[%s8272_s9 + $0x20] sm:$0xff] %vm515_vm3, %v2781_v62  ;;  %v2746_v30 = vmul.f32 %v8259_v45, %v2735_v59  ;;  %v2748_v14 = vmul.f32 %v8259_v45, %v2737_v19  ;;  %v2803_v45 = vld [vmem:[%s9640_s0] sm:$0xff] (%p8229_p7) }
 0x6e3   : > { %2791 = vst.msk [vmem:[%s8272_s9 + $0x30] sm:$0xff] %vm515_vm3, %v2783_v37 }
 0x6e4   : > { %2786 = vst.msk [vmem:[%s8272_s9 + $0x8] sm:$0xff] %vm515_vm3, %v2778_v54  ;;  %v2754_v2 = vsub.f32 %v2687_v43, %v2746_v30  ;;  %v2756_v51 = vsub.f32 %v2689_v61, %v2748_v14 }
 0x6e5   : > { %2788 = vst.msk [vmem:[%s8272_s9 + $0x18] sm:$0xff] %vm515_vm3, %v2780_v46 }
 0x6e6   : > { %v2774_v17 = vmul.f32 %v8268_v18, %v2754_v2  ;;  %v2776_v39 = vmul.f32 %v8268_v18, %v2756_v51  ;;  %v2805_v18 = vld [vmem:[%s9640_s0 + $0x8] sm:$0xff] (%p8229_p7)  ;;  %2804 = vst [vmem:[#allocation2] sm:$0xff] (%p8229_p7), %v2803_v45 }
 0x6e7   :  { %2504 = sbr.rel (!%p8229_p7) target bundleno = 1562 (0x61a), region = 543  ;;  %2806 = vst [vmem:[#allocation2 + $0x8] sm:$0xff] (%p8229_p7), %v2805_v18 }
 0x6e8   : > { %v2782_v12 = vadd.f32 %v2774_v17, %v2763_v13  ;;  %v2784_v32 = vadd.f32 %v2776_v39, %v2765_v55 }
 0x6ea   : > { %2790 = vst.msk [vmem:[%s8272_s9 + $0x28] sm:$0xff] %vm515_vm3, %v2782_v12 }
 0x6eb   : > { %2792 = vst.msk [vmem:[%s8272_s9 + $0x38] sm:$0xff] %vm515_vm3, %v2784_v32 }
 0x6ec   :  { %2812 = vsyncadd [#allocation3], 256  ;;  %v5778_v36 = vld [vmem:[%s9594_s13 + $0xa8] sm:$0xff]  ;;  %2899 = vmatpush.msra.mxu0 %v5780_v25  ;;  %3120 = vmatpush.msra.mxu1 %v5827_v7  ;;  %v5777_v23 = vld [vmem:[%s9594_s13 + $0xa0] sm:$0xff]  ;;  %s9641_s22 = sld [smem:[#allocation34_spill]]  ;;  %s8705_s28 = smov 0  }
 0x6ed   :  { %v5825_v26 = vld [vmem:[%s9588_s7 + $0x108] sm:$0xff]  ;;  %6255 = vmatpush.msra.mxu2 %v5779_v11  ;;  %6267 = vmatpush.msra.mxu3 %v5826_v10  ;;  %v5824_v60 = vld [vmem:[%s9588_s7 + $0x100] sm:$0xff]  ;;  %v5776_v28 = vld [vmem:[%s9594_s13 + $0x98] sm:$0xff] }
 0x6ee   :  { %2900 = vmatpush.msra.mxu0 %v5779_v11  ;;  %3121 = vmatpush.msra.mxu1 %v5826_v10  ;;  %v5823_v15 = vld [vmem:[%s9588_s7 + $0xf8] sm:$0xff]  ;;  %v5775_v35 = vld [vmem:[%s9594_s13 + $0x90] sm:$0xff]  ;;  %v5814_v21 = vld [vmem:[%s9586_s5 + $0x6] sm:$0x1] }
 0x6ef   :  { %6256 = vmatpush.msra.mxu2 %v5778_v36  ;;  %6268 = vmatpush.msra.mxu3 %v5825_v26  ;;  %v5822_v4 = vld [vmem:[%s9588_s7 + $0xf0] sm:$0xff]  ;;  %v5815_v33 = vld [vmem:[%s9587_s6 + $0x6] sm:$0x1]  ;;  %v5774_v44 = vld [vmem:[%s9594_s13 + $0x88] sm:$0xff] }
 0x6f0   :  { %2901 = vmatpush.msra.mxu0 %v5778_v36  ;;  %3122 = vmatpush.msra.mxu1 %v5825_v26  ;;  %v5821_v29 = vld [vmem:[%s9588_s7 + $0xe8] sm:$0xff]  ;;  %v5773_v27 = vld [vmem:[%s9594_s13 + $0x80] sm:$0xff]  ;;  %v3014_v9 = vmul.f32 %v5815_v33, %v5814_v21  ;;  %v5772_v53 = vld [vmem:[%s9594_s13 + $0x78] sm:$0xff] }
 0x6f1   :  { %6257 = vmatpush.msra.mxu2 %v5777_v23  ;;  %6269 = vmatpush.msra.mxu3 %v5824_v60  ;;  %v5820_v40 = vld [vmem:[%s9588_s7 + $0xe0] sm:$0xff]  ;;  %v5819_v58 = vld [vmem:[%s9588_s7 + $0xd8] sm:$0xff]  ;;  %v5771_v34 = vld [vmem:[%s9594_s13 + $0x70] sm:$0xff] }
 0x6f2   :  { %2902 = vmatpush.msra.mxu0 %v5777_v23  ;;  %3123 = vmatpush.msra.mxu1 %v5824_v60  ;;  %v5798_v41 = vld [vmem:[%s9641_s22 + $0x100] sm:$0xff]  ;;  %v5818_v16 = vld [vmem:[%s9588_s7 + $0xd0] sm:$0xff]  ;;  %v8401_v50 = vperm.slane %v3014_v9, 0  ;;  %v5799_v57 = vld [vmem:[%s9641_s22 + $0x108] sm:$0xff] }
 0x6f3   :  { %6258 = vmatpush.msra.mxu2 %v5776_v28  ;;  %6270 = vmatpush.msra.mxu3 %v5823_v15  ;;  %v8406_v38 = vld [vmem:[#allocation4 + $0x40] sm:$0xff]  ;;  %v5770_v6 = vld [vmem:[%s9594_s13 + $0x68] sm:$0xff]  ;;  %v5800_v1 = vld [vmem:[%s9641_s22 + $0x110] sm:$0xff] }
 0x6f4   :  { %2903 = vmatpush.msra.mxu0 %v5776_v28  ;;  %3124 = vmatpush.msra.mxu1 %v5823_v15  ;;  %v5817_v8 = vld [vmem:[%s9588_s7 + $0xc8] sm:$0xff]  ;;  %v5769_v20 = vld [vmem:[%s9594_s13 + $0x60] sm:$0xff]  ;;  %v3042_v24 = vmul.f32 %v8401_v50, %v8406_v38  ;;  %v5804_v47 = vld [vmem:[%s9641_s22 + $0x130] sm:$0xff] }
 0x6f5   :  { %6259 = vmatpush.msra.mxu2 %v5775_v35  ;;  %6271 = vmatpush.msra.mxu3 %v5822_v4  ;;  %v5816_v22 = vld [vmem:[%s9588_s7 + $0xc0] sm:$0xff]  ;;  %v8431_v3 = vld [vmem:[#allocation4 + $0x48] sm:$0xff]  ;;  %v8453_v59 = vld [vmem:[#allocation4 + $0x50] sm:$0xff] }
 0x6f6   :  { %3215 = vperm.xlu0 %6422, %v5798_v41   ;;  %2904 = vmatpush.msra.mxu0 %v5775_v35  ;;  %v2821_v0 = vld [vmem:[#allocation6 + $0x40] sm:$0xff]  ;;  %v3043_v5 = vmul.f32 %v8401_v50, %v8431_v3  ;;  %v2822_v63 = vld [vmem:[#allocation6 + $0x48] sm:$0xff]  ;;  %v3044_v46 = vmul.f32 %v8401_v50, %v8453_v59  ;;  %v2823_v43 = vld [vmem:[#allocation6 + $0x50] sm:$0xff] }
 0x6f7   :  { %6260 = vmatpush.msra.mxu2 %v5774_v44  ;;  %6272 = vmatpush.msra.mxu3 %v5821_v29  ;;  %v8422_v31 = vld [vmem:[#allocation4] sm:$0xff]  ;;  %v8444_v49 = vld [vmem:[#allocation4 + $0x8] sm:$0xff]  ;;  %v8465_v61 = vld [vmem:[#allocation4 + $0x10] sm:$0xff] }
 0x6f8   :  { %2905 = vmatpush.msra.mxu0 %v5774_v44  ;;  %3125 = vmatpush.msra.mxu1 %v5822_v4  ;;  %v3034_v48 = vmul.f32 %v8401_v50, %v8422_v31  ;;  %v2813_v42 = vld [vmem:[#allocation6] sm:$0xff]  ;;  %v3035_v62 = vmul.f32 %v8401_v50, %v8444_v49  ;;  %v2814_v37 = vld [vmem:[#allocation6 + $0x8] sm:$0xff]  ;;  %v5805_v30 = vld [vmem:[%s9641_s22 + $0x138] sm:$0xff]  ;;  %v3036_v14 = vmul.f32 %v8401_v50, %v8465_v61 }
 0x6f9   :  { %6261 = vmatpush.msra.mxu2 %v5773_v27  ;;  %6273 = vmatpush.msra.mxu3 %v5820_v40  ;;  %v5802_v52 = vld [vmem:[%s9641_s22 + $0x120] sm:$0xff]  ;;  %v5807_v19 = vld [vmem:[%s9641_s22 + $0x148] sm:$0xff]  ;;  %v2815_v2 = vld [vmem:[#allocation6 + $0x10] sm:$0xff] }
 0x6fa   :  { %2906 = vmatpush.msra.mxu0 %v5773_v27  ;;  %3126 = vmatpush.msra.mxu1 %v5821_v29  ;;  %v5803_v54 = vld [vmem:[%s9641_s22 + $0x128] sm:$0xff]  ;;  %v8474_v51 = vld [vmem:[#allocation4 + $0x58] sm:$0xff]  ;;  %v5810_v13 = vld [vmem:[%s9641_s22 + $0x160] sm:$0xff] }
 0x6fb   :  { %6262 = vmatpush.msra.mxu2 %v5772_v53  ;;  %6274 = vmatpush.msra.mxu3 %v5819_v58  ;;  %v5806_v55 = vld [vmem:[%s9641_s22 + $0x140] sm:$0xff]  ;;  %v3045_v17 = vmul.f32 %v8401_v50, %v8474_v51  ;;  %v2824_v39 = vld [vmem:[#allocation6 + $0x58] sm:$0xff]  ;;  %v5808_v32 = vld [vmem:[%s9641_s22 + $0x150] sm:$0xff] }
 0x6fc   :  { %2907 = vmatpush.msra.mxu0 %v5772_v53  ;;  %3127 = vmatpush.msra.mxu1 %v5820_v40  ;;  %v8486_v12 = vld [vmem:[#allocation4 + $0x18] sm:$0xff]  ;;  %v8495_v25 = vld [vmem:[#allocation4 + $0x60] sm:$0xff]  ;;  %v5811_v23 = vld [vmem:[%s9641_s22 + $0x168] sm:$0xff] }
 0x6fd   :  { %6263 = vmatpush.msra.mxu2 %v5771_v34  ;;  %6275 = vmatpush.msra.mxu3 %v5818_v16  ;;  %v3037_v45 = vmul.f32 %v8401_v50, %v8486_v12  ;;  %v2816_v18 = vld [vmem:[#allocation6 + $0x18] sm:$0xff]  ;;  %v3046_v10 = vmul.f32 %v8401_v50, %v8495_v25  ;;  %v2825_v36 = vld [vmem:[#allocation6 + $0x60] sm:$0xff]  ;;  %v8513_v15 = vld [vmem:[#allocation4 + $0x68] sm:$0xff] }
 0x6fe   :  { %3128 = vmatpush.msra.mxu1 %v5819_v58  ;;  %3220 = vperm.xlu0 %6422, %v5799_v57   ;;  %v5813_v11 = vld [vmem:[%s9641_s22 + $0x178] sm:$0xff]  ;;  %v3019_v26 = vld [vmem:[#allocation4 + $0x20] sm:$0xff]  ;;  %v5812_v35 = vld [vmem:[%s9641_s22 + $0x170] sm:$0xff]  ;;  %v3047_v4 = vmul.f32 %v8401_v50, %v8513_v15 }
 0x6ff   :  { %6264 = vmatpush.msra.mxu2 %v5770_v6  ;;  %6276 = vmatpush.msra.mxu3 %v5817_v8  ;;  %v5809_v7 = vld [vmem:[%s9641_s22 + $0x158] sm:$0xff]  ;;  %v3038_v60 = vmul.f32 %v8401_v50, %v3019_v26  ;;  %v2817_v28 = vld [vmem:[#allocation6 + $0x20] sm:$0xff]  ;;  %v2826_v41 = vld [vmem:[#allocation6 + $0x68] sm:$0xff] }
 0x700   :  { %2908 = vmatpush.msra.mxu0 %v5771_v34  ;;  %3129 = vmatpush.msra.mxu1 %v5818_v16  ;;  %v3020_v21 = vld [vmem:[#allocation4 + $0x28] sm:$0xff]  ;;  %v8525_v29 = vld [vmem:[#allocation4 + $0x70] sm:$0xff]  ;;  %v8534_v34 = vld [vmem:[#allocation4 + $0x78] sm:$0xff] }
 0x701   :  { %6265 = vmatpush.msra.mxu2 %v5769_v20  ;;  %6277 = vmatpush.msra.mxu3 %v5816_v22  ;;  %v3039_v33 = vmul.f32 %v8401_v50, %v3020_v21  ;;  %v2818_v44 = vld [vmem:[#allocation6 + $0x28] sm:$0xff]  ;;  %v3048_v27 = vmul.f32 %v8401_v50, %v8525_v29  ;;  %v2827_v40 = vld [vmem:[#allocation6 + $0x70] sm:$0xff]  ;;  %v3049_v16 = vmul.f32 %v8401_v50, %v8534_v34  ;;  %v2828_v57 = vld [vmem:[#allocation6 + $0x78] sm:$0xff] }
 0x702   :  { %5790 = vmatmul.msk.f32.vlgmr.msra.gmra.mxu2 %vm515_vm3, %v2821_v0  ;;  %5837 = vmatmul.msk.f32.vlgmr.msra.gmra.mxu3 %vm515_vm3, %v3042_v24  ;;  %v3021_v9 = vld [vmem:[#allocation4 + $0x30] sm:$0xff] }
 0x703   :  { %2909 = vmatpush.msra.mxu0 %v5770_v6  ;;  %3130 = vmatpush.msra.mxu1 %v5817_v8  ;;  %v3040_v53 = vmul.f32 %v8401_v50, %v3021_v9  ;;  %v2819_v58 = vld [vmem:[#allocation6 + $0x30] sm:$0xff]  ;;  %v3022_v6 = vld [vmem:[#allocation4 + $0x38] sm:$0xff] }
 0x704   :  { %3225 = vperm.xlu1 %6423, %v5800_v1   ;;  %6424 = vset.pattern.permute.xlu2 %v6670_v56  ;;  %v5801_v56 = vld [vmem:[%s9641_s22 + $0x118] sm:$0xff]  ;;  %v3041_v8 = vmul.f32 %v8401_v50, %v3022_v6 }
 0x705   :  { %2910 = vmatpush.msra.mxu0 %v5769_v20  ;;  %3131 = vmatpush.msra.mxu1 %v5816_v22  ;;  %v2820_v20 = vld [vmem:[#allocation6 + $0x38] sm:$0xff] }
 0x706   :  { %5782 = vmatmul.msk.f32.vlgmr.msra.gmra.mxu0 %vm515_vm3, %v2813_v42  ;;  %5829 = vmatmul.msk.f32.vlgmr.msra.gmra.mxu1 %vm515_vm3, %v3034_v48 }
 0x707   :  { %3245 = vperm.xlu0 %6422, %v5804_v47   ;;  %3235 = vperm.xlu2 %6424, %v5802_v52  }
 0x70a   :  { %5791 = vmatmul.msk.f32.gmra.mxu2 %vm515_vm3, %v2822_v63  ;;  %5838 = vmatmul.msk.f32.gmra.mxu3 %vm515_vm3, %v3043_v5 }
 0x70c   :  { %3230 = vperm.xlu1 %6423, %v5801_v56  }
 0x70e   :  { %5783 = vmatmul.msk.f32.gmra.mxu0 %vm515_vm3, %v2814_v37  ;;  %5830 = vmatmul.msk.f32.gmra.mxu1 %vm515_vm3, %v3035_v62 }
 0x70f   :  { %3260 = vperm.xlu0 %6422, %v5807_v19   ;;  %3240 = vperm.xlu2 %6424, %v5803_v54  }
 0x712   :  { %5792 = vmatmul.msk.f32.gmra.mxu2 %vm515_vm3, %v2823_v43  ;;  %5839 = vmatmul.msk.f32.gmra.mxu3 %vm515_vm3, %v3044_v46 }
 0x714   :  { %3250 = vperm.xlu1 %6423, %v5805_v30  }
 0x716   :  { %5784 = vmatmul.msk.f32.gmra.mxu0 %vm515_vm3, %v2815_v2  ;;  %5831 = vmatmul.msk.f32.gmra.mxu1 %vm515_vm3, %v3036_v14 }
 0x717   :  { %3275 = vperm.xlu0 %6422, %v5810_v13   ;;  %3255 = vperm.xlu2 %6424, %v5806_v55   ;;  %v8589_v55 = vld [vmem:[%s9595_s14 + $0x1] ss:$0 sm:$0xff] }
 0x71a   :  { %5793 = vmatmul.msk.f32.gmra.mxu2 %vm515_vm3, %v2824_v39  ;;  %5840 = vmatmul.msk.f32.gmra.mxu3 %vm515_vm3, %v3045_v17 }
 0x71c   :  { %3265 = vperm.xlu1 %6423, %v5808_v32  }
 0x71e   :  { %5785 = vmatmul.msk.f32.gmra.mxu0 %vm515_vm3, %v2816_v18  ;;  %5832 = vmatmul.msk.f32.gmra.mxu1 %vm515_vm3, %v3037_v45 }
 0x71f   :  { %3290 = vperm.xlu0 %6422, %v5813_v11   ;;  %3270 = vperm.xlu2 %6424, %v5809_v7  }
 0x722   :  { %5794 = vmatmul.msk.f32.gmra.mxu2 %vm515_vm3, %v2825_v36  ;;  %5841 = vmatmul.msk.f32.gmra.mxu3 %vm515_vm3, %v3046_v10 }
 0x724   :  { %3280 = vperm.xlu1 %6423, %v5811_v23  }
 0x726   :  { %5786 = vmatmul.msk.f32.gmra.mxu0 %vm515_vm3, %v2817_v28  ;;  %5833 = vmatmul.msk.f32.gmra.mxu1 %vm515_vm3, %v3038_v60 }
 0x727   :  { %3285 = vperm.xlu2 %6424, %v5812_v35  }
 0x72a   :  { %5795 = vmatmul.msk.f32.gmra.mxu2 %vm515_vm3, %v2826_v41  ;;  %5842 = vmatmul.msk.f32.gmra.mxu3 %vm515_vm3, %v3047_v4 }
 0x72e   :  { %5787 = vmatmul.msk.f32.gmra.mxu0 %vm515_vm3, %v2818_v44  ;;  %5834 = vmatmul.msk.f32.gmra.mxu1 %vm515_vm3, %v3039_v33 }
 0x732   :  { %5796 = vmatmul.msk.f32.gmra.mxu2 %vm515_vm3, %v2827_v40  ;;  %5843 = vmatmul.msk.f32.gmra.mxu3 %vm515_vm3, %v3048_v27 }
 0x736   :  { %5788 = vmatmul.msk.f32.gmra.mxu0 %vm515_vm3, %v2819_v58  ;;  %5835 = vmatmul.msk.f32.gmra.mxu1 %vm515_vm3, %v3040_v53 }
 0x73a   :  { %5797 = vmatmul.msk.f32.gmra.mxu2 %vm515_vm3, %v2828_v57  ;;  %5844 = vmatmul.msk.f32.gmra.mxu3 %vm515_vm3, %v3049_v16 }
 0x73e   :  { %5789 = vmatmul.msk.f32.gmra.mxu0 %vm515_vm3, %v2820_v20  ;;  %5836 = vmatmul.msk.f32.gmra.mxu1 %vm515_vm3, %v3041_v8 }
 0x761   :  { %v8545_v22 = vpop.permute.xlu2 %3235 }
 0x762   :  { %v3297_v24 = vmul.f32 %v8545_v22, %v3019_v26 }
 0x764   :  { %v3313_v0 = vpack.c.bf16 %v3297_v24, %v3297_v24 }
 0x766   :  { %3329 = vst.msk [vmem:[#allocation7 + $0x10] sm:$0xf] %vm859_vm4, %v3313_v0 }
 0x768   :  { %v8549_v1 = vpop.permute.xlu0 %3215 }
 0x769   :  { %v3293_v48 = vmul.f32 %v8549_v1, %v8422_v31  ;;  %v8553_v42 = vpop.permute.xlu2 %3240 }
 0x76a   :  { %v3298_v50 = vmul.f32 %v8553_v42, %v3020_v21 }
 0x76b   :  { %v3309_v47 = vpack.c.bf16 %v3293_v48, %v3293_v48 }
 0x76c   :  { %v3314_v52 = vpack.c.bf16 %v3298_v50, %v3298_v50 }
 0x76d   :  { %3325 = vst.msk [vmem:[#allocation7] sm:$0xf] %vm859_vm4, %v3309_v47 }
 0x76e   :  { %3330 = vst.msk [vmem:[#allocation7 + $0x14] sm:$0xf] %vm859_vm4, %v3314_v52 }
 0x770   :  { %v8558_v5 = vpop.permute.xlu0 %3220 }
 0x771   :  { %v3294_v63 = vmul.f32 %v8558_v5, %v8444_v49  ;;  %v8562_v56 = vpop.permute.xlu2 %3255 }
 0x772   :  { %v3301_v31 = vmul.f32 %v8562_v56, %v8406_v38 }
 0x773   :  { %v3310_v62 = vpack.c.bf16 %v3294_v63, %v3294_v63 }
 0x774   :  { %v3317_v37 = vpack.c.bf16 %v3301_v31, %v3301_v31 }
 0x775   :  { %3326 = vst.msk [vmem:[#allocation7 + $0x4] sm:$0xf] %vm859_vm4, %v3310_v62 }
 0x776   :  { %v8567_v19 = vpop.permute.xlu1 %3225  ;;  %3333 = vst.msk [vmem:[#allocation7 + $0x20] sm:$0xf] %vm859_vm4, %v3317_v37 }
 0x777   :  { %v3295_v54 = vmul.f32 %v8567_v19, %v8465_v61 }
 0x779   :  { %v3311_v46 = vpack.c.bf16 %v3295_v54, %v3295_v54  ;;  %v8572_v43 = vpop.permute.xlu0 %3245  ;;  %v8574_v49 = vpop.permute.xlu2 %3270 }
 0x77a   :  { %v3299_v30 = vmul.f32 %v8572_v43, %v3021_v9  ;;  %v3304_v38 = vmul.f32 %v8574_v49, %v8474_v51  ;;  %v8594_v51 = vld [vmem:[%s9589_s8 + $0x2] ss:$0 sm:$0xff] }
 0x77b   :  { %3327 = vst.msk [vmem:[#allocation7 + $0x8] sm:$0xf] %vm859_vm4, %v3311_v46 }
 0x77c   :  { %v3315_v14 = vpack.c.bf16 %v3299_v30, %v3299_v30  ;;  %v3320_v2 = vpack.c.bf16 %v3304_v38, %v3304_v38 }
 0x77e   :  { %3331 = vst.msk [vmem:[#allocation7 + $0x18] sm:$0xf] %vm859_vm4, %v3315_v14  ;;  %v8581_v13 = vpop.permute.xlu1 %3230 }
 0x77f   :  { %v3296_v61 = vmul.f32 %v8581_v13, %v8486_v12  ;;  %3336 = vst.msk [vmem:[#allocation7 + $0x2c] sm:$0xf] %vm859_vm4, %v3320_v2 }
 0x781   :  { %v3312_v17 = vpack.c.bf16 %v3296_v61, %v3296_v61  ;;  %v8596_v39 = vpop.permute.xlu0 %3260  ;;  %v8598_v32 = vpop.permute.xlu2 %3285 }
 0x782   :  { %v3302_v12 = vmul.f32 %v8596_v39, %v8431_v3  ;;  %v3307_v36 = vmul.f32 %v8598_v32, %v8525_v29 }
 0x783   :  { %3328 = vst.msk [vmem:[#allocation7 + $0xc] sm:$0xf] %vm859_vm4, %v3312_v17  ;;  %v2912_v45 = vpop.f32.mrf.mxu0  ;;  %v3133_v18 = vpop.f32.mrf.mxu1 }
 0x784   :  { %v3318_v11 = vpack.c.bf16 %v3302_v12, %v3302_v12  ;;  %v2913_v7 = vadd.f32 %v8589_v55, %v2912_v45  ;;  %v3134_v10 = vadd.f32 %v8594_v51, %v3133_v18  ;;  %v3323_v21 = vpack.c.bf16 %v3307_v36, %v3307_v36 }
 0x785   :  { %v2936_v26 = vpop.f32.mrf.mxu2  ;;  %v3157_v23 = vpop.f32.mrf.mxu3 }
 0x786   :  { %3334 = vst.msk [vmem:[#allocation7 + $0x24] sm:$0xf] %vm859_vm4, %v3318_v11  ;;  %v2960_v60 = vmax.f32 %v2913_v7, 0.0  ;;  %v2937_v28 = vadd.f32 %v8589_v55, %v2936_v26  ;;  %v3158_v3 = vadd.f32 %v8594_v51, %v3157_v23  ;;  %v8610_v35 = vpop.permute.xlu1 %3250  ;;  %v8666_v23 = vld [vmem:[%s9587_s6 + $0x7] sm:$0x1] }
 0x787   :  { %3181 = vst.msk [vmem:[#allocation6] sm:$0xff] %vm515_vm3, %v3134_v10  ;;  %v3300_v4 = vmul.f32 %v8610_v35, %v3022_v6 }
 0x788   :  { %2977 = vst.msk [vmem:[#allocation8 + $0x80] sm:$0xff] %vm240_vm1, %v2960_v60  ;;  %v2968_v41 = vmax.f32 %v2937_v28, 0.0  ;;  %v8671_v60 = vld [vmem:[%s9586_s5 + $0x7] sm:$0x1] }
 0x789   :  { %3189 = vst.msk [vmem:[#allocation6 + $0x40] sm:$0xff] %vm515_vm3, %v3158_v3  ;;  %v3316_v33 = vpack.c.bf16 %v3300_v4, %v3300_v4  ;;  %v8616_v44 = vpop.permute.xlu0 %3275 }
 0x78a   :  { %2985 = vst.msk [vmem:[#allocation8 + $0xc0] sm:$0xff] %vm240_vm1, %v2968_v41  ;;  %v3305_v29 = vmul.f32 %v8616_v44, %v8495_v25 }
 0x78b   :  { %3332 = vst.msk [vmem:[#allocation7 + $0x1c] sm:$0xf] %vm859_vm4, %v3316_v33  ;;  %v2915_v27 = vpop.f32.mrf.mxu0  ;;  %v3136_v40 = vpop.f32.mrf.mxu1 }
 0x78c   :  { %v3321_v9 = vpack.c.bf16 %v3305_v29, %v3305_v29  ;;  %v2916_v53 = vadd.f32 %v8589_v55, %v2915_v27  ;;  %v3137_v58 = vadd.f32 %v8594_v51, %v3136_v40  ;;  %3339 = vst.msk [vmem:[#allocation7 + $0x38] sm:$0xf] %vm859_vm4, %v3323_v21 }
 0x78d   :  { %v2939_v16 = vpop.f32.mrf.mxu2  ;;  %v3160_v57 = vpop.f32.mrf.mxu3 }
 0x78e   :  { %3337 = vst.msk [vmem:[#allocation7 + $0x30] sm:$0xf] %vm859_vm4, %v3321_v9  ;;  %v2961_v6 = vmax.f32 %v2916_v53, 0.0  ;;  %v2940_v8 = vadd.f32 %v8589_v55, %v2939_v16  ;;  %v3161_v25 = vadd.f32 %v8594_v51, %v3160_v57  ;;  %v8628_v20 = vpop.permute.xlu1 %3265 }
 0x78f   :  { %3182 = vst.msk [vmem:[#allocation6 + $0x8] sm:$0xff] %vm515_vm3, %v3137_v58  ;;  %v3303_v24 = vmul.f32 %v8628_v20, %v8453_v59 }
 0x790   :  { %2978 = vst.msk [vmem:[#allocation8 + $0x88] sm:$0xff] %vm240_vm1, %v2961_v6  ;;  %v2969_v0 = vmax.f32 %v2940_v8, 0.0 }
 0x791   :  { %3190 = vst.msk [vmem:[#allocation6 + $0x48] sm:$0xff] %vm515_vm3, %v3161_v25  ;;  %v3319_v48 = vpack.c.bf16 %v3303_v24, %v3303_v24  ;;  %v8635_v50 = vpop.permute.xlu0 %3290 }
 0x792   :  { %2986 = vst.msk [vmem:[#allocation8 + $0xc8] sm:$0xff] %vm240_vm1, %v2969_v0  ;;  %v3308_v47 = vmul.f32 %v8635_v50, %v8534_v34 }
 0x793   :  { %3335 = vst.msk [vmem:[#allocation7 + $0x28] sm:$0xf] %vm859_vm4, %v3319_v48  ;;  %v2918_v52 = vpop.f32.mrf.mxu0  ;;  %v3139_v63 = vpop.f32.mrf.mxu1 }
 0x794   :  { %v3324_v31 = vpack.c.bf16 %v3308_v47, %v3308_v47  ;;  %v2919_v59 = vadd.f32 %v8589_v55, %v2918_v52  ;;  %v3140_v62 = vadd.f32 %v8594_v51, %v3139_v63 }
 0x795   :  { %v2942_v37 = vpop.f32.mrf.mxu2  ;;  %v3163_v54 = vpop.f32.mrf.mxu3 }
 0x796   :  { %3340 = vst.msk [vmem:[#allocation7 + $0x3c] sm:$0xf] %vm859_vm4, %v3324_v31  ;;  %v2962_v46 = vmax.f32 %v2919_v59, 0.0  ;;  %v2943_v30 = vadd.f32 %v8589_v55, %v2942_v37  ;;  %v3164_v38 = vadd.f32 %v8594_v51, %v3163_v54  ;;  %v8646_v14 = vpop.permute.xlu1 %3280 }
 0x797   :  { %3183 = vst.msk [vmem:[#allocation6 + $0x10] sm:$0xff] %vm515_vm3, %v3140_v62  ;;  %v3306_v34 = vmul.f32 %v8646_v14, %v8513_v15 }
 0x798   :  { %2979 = vst.msk [vmem:[#allocation8 + $0x90] sm:$0xff] %vm240_vm1, %v2962_v46  ;;  %v2970_v2 = vmax.f32 %v2943_v30, 0.0 }
 0x799   :  { %3191 = vst.msk [vmem:[#allocation6 + $0x50] sm:$0xff] %vm515_vm3, %v3164_v38  ;;  %v3322_v61 = vpack.c.bf16 %v3306_v34, %v3306_v34 }
 0x79a   :  { %2987 = vst.msk [vmem:[#allocation8 + $0xd0] sm:$0xff] %vm240_vm1, %v2970_v2 }
 0x79b   :  { %3338 = vst.msk [vmem:[#allocation7 + $0x34] sm:$0xf] %vm859_vm4, %v3322_v61  ;;  %v2921_v17 = vpop.f32.mrf.mxu0  ;;  %v3142_v12 = vpop.f32.mrf.mxu1 }
 0x79c   :  { %v2922_v45 = vadd.f32 %v8589_v55, %v2921_v17  ;;  %v3143_v18 = vadd.f32 %v8594_v51, %v3142_v12 }
 0x79d   :  { %v2945_v11 = vpop.f32.mrf.mxu2  ;;  %v3166_v7 = vpop.f32.mrf.mxu3 }
 0x79e   :  { %v2963_v10 = vmax.f32 %v2922_v45, 0.0  ;;  %v2946_v15 = vadd.f32 %v8589_v55, %v2945_v11  ;;  %3184 = vst.msk [vmem:[#allocation6 + $0x18] sm:$0xff] %vm515_vm3, %v3143_v18  ;;  %v3167_v36 = vadd.f32 %v8594_v51, %v3166_v7 }
 0x7a0   :  { %2980 = vst.msk [vmem:[#allocation8 + $0x98] sm:$0xff] %vm240_vm1, %v2963_v10  ;;  %v2971_v26 = vmax.f32 %v2946_v15, 0.0 }
 0x7a1   :  { %3192 = vst.msk [vmem:[#allocation6 + $0x58] sm:$0xff] %vm515_vm3, %v3167_v36 }
 0x7a2   :  { %2988 = vst.msk [vmem:[#allocation8 + $0xd8] sm:$0xff] %vm240_vm1, %v2971_v26 }
 0x7a3   :  { %v2924_v28 = vpop.f32.mrf.mxu0  ;;  %v3145_v3 = vpop.f32.mrf.mxu1 }
 0x7a4   :  { %v2925_v4 = vadd.f32 %v8589_v55, %v2924_v28  ;;  %v3146_v41 = vadd.f32 %v8594_v51, %v3145_v3 }
 0x7a5   :  { %v2948_v21 = vpop.f32.mrf.mxu2  ;;  %v3169_v33 = vpop.f32.mrf.mxu3 }
 0x7a6   :  { %v2964_v29 = vmax.f32 %v2925_v4, 0.0  ;;  %v2949_v27 = vadd.f32 %v8589_v55, %v2948_v21  ;;  %3185 = vst.msk [vmem:[#allocation6 + $0x20] sm:$0xff] %vm515_vm3, %v3146_v41  ;;  %v3170_v40 = vadd.f32 %v8594_v51, %v3169_v33 }
 0x7a8   :  { %2981 = vst.msk [vmem:[#allocation8 + $0xa0] sm:$0xff] %vm240_vm1, %v2964_v29  ;;  %v2972_v9 = vmax.f32 %v2949_v27, 0.0 }
 0x7a9   :  { %3193 = vst.msk [vmem:[#allocation6 + $0x60] sm:$0xff] %vm515_vm3, %v3170_v40 }
 0x7aa   :  { %2989 = vst.msk [vmem:[#allocation8 + $0xe0] sm:$0xff] %vm240_vm1, %v2972_v9 }
 0x7ab   :  { %v2927_v53 = vpop.f32.mrf.mxu0  ;;  %v3148_v58 = vpop.f32.mrf.mxu1 }
 0x7ac   :  { %v2928_v16 = vadd.f32 %v8589_v55, %v2927_v53  ;;  %v3149_v57 = vadd.f32 %v8594_v51, %v3148_v58 }
 0x7ad   :  { %v2951_v6 = vpop.f32.mrf.mxu2  ;;  %v3172_v8 = vpop.f32.mrf.mxu3 }
 0x7ae   :  { %v2965_v25 = vmax.f32 %v2928_v16, 0.0  ;;  %v2952_v24 = vadd.f32 %v8589_v55, %v2951_v6  ;;  %3186 = vst.msk [vmem:[#allocation6 + $0x28] sm:$0xff] %vm515_vm3, %v3149_v57  ;;  %v3173_v0 = vadd.f32 %v8594_v51, %v3172_v8 }
 0x7b0   :  { %2982 = vst.msk [vmem:[#allocation8 + $0xa8] sm:$0xff] %vm240_vm1, %v2965_v25  ;;  %v2973_v48 = vmax.f32 %v2952_v24, 0.0 }
 0x7b1   :  { %3194 = vst.msk [vmem:[#allocation6 + $0x68] sm:$0xff] %vm515_vm3, %v3173_v0 }
 0x7b2   :  { %2990 = vst.msk [vmem:[#allocation8 + $0xe8] sm:$0xff] %vm240_vm1, %v2973_v48 }
 0x7b3   :  { %v2930_v47 = vpop.f32.mrf.mxu0  ;;  %v3151_v52 = vpop.f32.mrf.mxu1 }
 0x7b4   :  { %v2931_v63 = vadd.f32 %v8589_v55, %v2930_v47  ;;  %v3152_v31 = vadd.f32 %v8594_v51, %v3151_v52 }
 0x7b5   :  { %v2954_v59 = vpop.f32.mrf.mxu2  ;;  %v3175_v62 = vpop.f32.mrf.mxu3 }
 0x7b6   :  { %v2966_v37 = vmax.f32 %v2931_v63, 0.0  ;;  %v2955_v54 = vadd.f32 %v8589_v55, %v2954_v59  ;;  %3187 = vst.msk [vmem:[#allocation6 + $0x30] sm:$0xff] %vm515_vm3, %v3152_v31  ;;  %v3176_v46 = vadd.f32 %v8594_v51, %v3175_v62 }
 0x7b8   :  { %2983 = vst.msk [vmem:[#allocation8 + $0xb0] sm:$0xff] %vm240_vm1, %v2966_v37  ;;  %v2974_v30 = vmax.f32 %v2955_v54, 0.0 }
 0x7b9   :  { %3195 = vst.msk [vmem:[#allocation6 + $0x70] sm:$0xff] %vm515_vm3, %v3176_v46 }
 0x7ba   :  { %2991 = vst.msk [vmem:[#allocation8 + $0xf0] sm:$0xff] %vm240_vm1, %v2974_v30 }
 0x7bb   :  { %v2933_v38 = vpop.f32.mrf.mxu0  ;;  %v3154_v34 = vpop.f32.mrf.mxu1 }
 0x7bc   :  { %v2934_v2 = vadd.f32 %v8589_v55, %v2933_v38  ;;  %v3155_v61 = vadd.f32 %v8594_v51, %v3154_v34 }
 0x7bd   :  { %v2957_v17 = vpop.f32.mrf.mxu2  ;;  %v3178_v12 = vpop.f32.mrf.mxu3 }
 0x7be   :  { %v2967_v45 = vmax.f32 %v2934_v2, 0.0  ;;  %v2958_v18 = vadd.f32 %v8589_v55, %v2957_v17  ;;  %3188 = vst.msk [vmem:[#allocation6 + $0x38] sm:$0xff] %vm515_vm3, %v3155_v61  ;;  %v3179_v11 = vadd.f32 %v8594_v51, %v3178_v12 }
 0x7c0   :  { %2984 = vst.msk [vmem:[#allocation8 + $0xb8] sm:$0xff] %vm240_vm1, %v2967_v45  ;;  %v2975_v7 = vmax.f32 %v2958_v18, 0.0 }
 0x7c1   :  { %3196 = vst.msk [vmem:[#allocation6 + $0x78] sm:$0xff] %vm515_vm3, %v3179_v11 }
 0x7c2   :  { %2992 = vst.msk [vmem:[#allocation8 + $0xf8] sm:$0xff] %vm240_vm1, %v2975_v7 }
 0x7c3 LB: > { %p3351_p8 = scmp.lt.s32.totalorder %s6662_s28, 0  ;;  %s3352_s21 = ssub.s32 0, %s6662_s28  ;;  %s6662_s28 = sphi %s8705_s28, %s9645_s28  }
 0x7c4   : > { %s5847_s26 = smin.u32 %s6662_s28, %s3352_s21 }
 0x7c5   : > { %s3354_s27 = sand.u32 1, %s5847_s26  }
 0x7c6   : > { %s3355_s7 = ssub.s32 0, %s3354_s27 }
 0x7c7   : > { %s9660_s7 = smov (!%p3351_p8, %s3355_s7), %s3354_s27 }
 0x7c8   : > { %s6092_s3 = sshll.u32 %s9660_s7, 4  ;;  %s3360_s1 = scalar_lea.sflag [#allocation3], %s9660_s7 }
 0x7c9   : > { %s8713_s4 = scalar_lea.vmem [#allocation2], %s6092_s3 }
 0x7ca   : > { %6638 = dma.done.wait %s3360_s1, 256 }
 0x7cb   : > { %6639 = vsyncadd %s3360_s1, 4294967040  ;;  %s3365_s23 = sadd.s32 1, %s6662_s28  }
 0x7cc   : > { %p8718_p9 = scmp.ge.s32.totalorder %s3365_s23, 2 }
 0x7cd   : > { %s6093_s9 = sshll.u32 (!%p8718_p9), %s6662_s28, 6  ;;  %s3371_s2 = ssub.s32 (!%p8718_p9), 1, %s9660_s7 }
 0x7ce   : > { %3369 = sbr.rel (%p8718_p9) target bundleno = 2011 (0x7db), region = 295  ;;  %s6094_s22 = sadd.s32 (!%p8718_p9), 64, %s6093_s9 }
 0x7cf   : > { %s6095_s30 = sshll.u32 (!%p8718_p9), %s3371_s2, 4  ;;  %s3372_s0 = sshra.s32 (!%p8718_p9), %s6094_s22, 5 }
 0x7d0   : > { %s5852_s11 = sshll.u32 (!%p8718_p9), %s3372_s0, 3  ;;  %s9643_s10 = sld [smem:[#allocation33_spill]] (!%p8718_p9) }
 0x7d1   : > { %s3378_s21 = scalar_lea.vmem (!%p8718_p9), [#allocation2], %s6095_s30  ;;  %s3379_s26 = scalar_lea.sflag (!%p8718_p9), [#allocation3], %s3371_s2 }
 0x7d6   : > { %s3375_s24 = scalar_lea.vmem %s9643_s10, %s5852_s11 }
 0x7d7   : > { %v3390_v55 = vld [vmem:[%s3375_s24] sm:$0xff]  ;;  %v3392_v51 = vld [vmem:[%s3375_s24 + $0x8] sm:$0xff] }
 0x7d8   : > { %3391 = vst [vmem:[%s3378_s21] sm:$0xff] %v3390_v55 }
 0x7d9   : > { %3393 = vst [vmem:[%s3378_s21 + $0x8] sm:$0xff] %v3392_v51 }
 0x7da   : > { %3399 = vsyncadd %s3379_s26, 256 }
 0x7db PF: > { %v6103_v10 = vld [vmem:[#allocation7 + $0x38] sm:$0xff]  ;;  %s8729_s27 = sshll.u32 %s6662_s28, 6  ;;  %v6675_v15 = vmov 0   ;;  %s9644_s1 = sld [smem:[#allocation34_spill]]  ;;  %v6102_v36 = vld [vmem:[#allocation7 + $0x30] sm:$0xff]  ;;  %v6101_v4 = vld [vmem:[#allocation7 + $0x28] sm:$0xff] }
 0x7dc   : > { %6428 = vset.pattern.permute.xlu1 %v6675_v15  ;;  %6427 = vset.pattern.permute.xlu0 %v6675_v15  ;;  %v6100_v33 = vld [vmem:[#allocation7 + $0x20] sm:$0xff]  ;;  %v6099_v27 = vld [vmem:[#allocation7 + $0x18] sm:$0xff]  ;;  %v6098_v53 = vld [vmem:[#allocation7 + $0x10] sm:$0xff]  ;;  %v8748_v11 = vperm.slane %v8666_v23, 0  ;;  %s8761_s2 = scalar_lea.vmem [#allocation6], %s8729_s27  ;;  %s8767_s22 = scalar_lea.vmem [#allocation5], %s8729_s27 }
 0x7dd   : > { %3487 = vmatpush.bf16.msra.mxu0 %v6103_v10  ;;  %6278 = vmatpush.bf16.msra.mxu1 %v6103_v10  ;;  %v6097_v24 = vld [vmem:[#allocation7 + $0x8] sm:$0xff]  ;;  %v6096_v37 = vld [vmem:[#allocation7] sm:$0xff]  ;;  %s9645_s28 = smov %s3365_s23  ;;  %s9646_s11 = sld [smem:[#allocation33_spill]] (%p8718_p9) }
 0x7de   : > { %6279 = vmatpush.bf16.msra.mxu2 %v6103_v10  ;;  %6280 = vmatpush.bf16.msra.mxu3 %v6103_v10 }
 0x7df   : > { %6429 = vset.pattern.permute.xlu2 %v6675_v15 }
 0x7e0   : > { %v3401_v58 = vld [vmem:[%s8713_s4] sm:$0xff]  ;;  %v3402_v16 = vld [vmem:[%s8713_s4 + $0x8] sm:$0xff]  ;;  %s8751_s4 = scalar_lea.vmem [#allocation4], %s8729_s27 }
 0x7e1   : > { %s8735_s9 = scalar_lea.vmem %s9644_s1, %s8729_s27  ;;  %3488 = vmatpush.bf16.msra.mxu0 %v6102_v36  ;;  %6281 = vmatpush.bf16.msra.mxu1 %v6102_v36  ;;  %v3403_v57 = vunpack.c.0.s8 %v3401_v58  ;;  %v3404_v6 = vunpack.c.1.s8 %v3401_v58  ;;  %v3405_v8 = vunpack.c.2.s8 %v3401_v58  ;;  %v3406_v25 = vunpack.c.3.s8 %v3401_v58  ;;  %v3527_v15 = vld [vmem:[%s8751_s4] sm:$0xff] }
 0x7e2   : > { %v5891_v26 = vld [vmem:[%s8735_s9 + $0x110] sm:$0xff]  ;;  %v5889_v28 = vld [vmem:[%s8735_s9 + $0x100] sm:$0xff]  ;;  %6282 = vmatpush.bf16.msra.mxu2 %v6102_v36  ;;  %6283 = vmatpush.bf16.msra.mxu3 %v6102_v36  ;;  %v5892_v41 = vld [vmem:[%s8735_s9 + $0x118] sm:$0xff]  ;;  %v3407_v0 = vunpack.c.0.s8 %v3402_v16  ;;  %v3408_v48 = vunpack.c.1.s8 %v3402_v16  ;;  %v3409_v47 = vunpack.c.2.s8 %v3402_v16  ;;  %v3410_v52 = vunpack.c.3.s8 %v3402_v16 }
 0x7e3   : > { %3547 = vperm.xlu1 %6428, %v5891_v26   ;;  %3537 = vperm.xlu0 %6427, %v5889_v28   ;;  %v5893_v3 = vld [vmem:[%s8735_s9 + $0x120] sm:$0xff]  ;;  %v5890_v21 = vld [vmem:[%s8735_s9 + $0x108] sm:$0xff]  ;;  %v5896_v40 = vld [vmem:[%s8735_s9 + $0x138] sm:$0xff]  ;;  %v3411_v63 = vcvt.s32.f32 %v3403_v57  ;;  %v3412_v31 = vcvt.s32.f32 %v3404_v6  ;;  %v3413_v59 = vcvt.s32.f32 %v3405_v8  ;;  %v3414_v62 = vcvt.s32.f32 %v3406_v25 }
 0x7e4   : > { %3557 = vperm.xlu2 %6429, %v5893_v3   ;;  %v5894_v29 = vld [vmem:[%s8735_s9 + $0x128] sm:$0xff]  ;;  %v5895_v9 = vld [vmem:[%s8735_s9 + $0x130] sm:$0xff]  ;;  %v3415_v54 = vcvt.s32.f32 %v3407_v0  ;;  %v3416_v46 = vcvt.s32.f32 %v3408_v48  ;;  %v3417_v30 = vcvt.s32.f32 %v3409_v47  ;;  %v3418_v38 = vcvt.s32.f32 %v3410_v52  ;;  %v3531_v48 = vld [vmem:[%s8751_s4 + $0x20] sm:$0xff] }
 0x7e5   : > { %3489 = vmatpush.bf16.msra.mxu0 %v6101_v4  ;;  %6284 = vmatpush.bf16.msra.mxu1 %v6101_v4  ;;  %v3419_v34 = vpack.c.bf16 %v3412_v31, %v3411_v63  ;;  %v3420_v2 = vpack.c.bf16 %v3414_v62, %v3413_v59  ;;  %v3529_v36 = vld [vmem:[%s8751_s4 + $0x10] sm:$0xff]  ;;  %v8757_v28 = vperm.slane %v8671_v60, 0  ;;  %v3528_v62 = vld [vmem:[%s8751_s4 + $0x8] sm:$0xff] }
 0x7e6   : > { %6285 = vmatpush.bf16.msra.mxu2 %v6101_v4  ;;  %6286 = vmatpush.bf16.msra.mxu3 %v6101_v4  ;;  %v3421_v61 = vpack.c.bf16 %v3416_v46, %v3415_v54  ;;  %v3422_v17 = vpack.c.bf16 %v3418_v38, %v3417_v30  ;;  %v3533_v47 = vld [vmem:[%s8751_s4 + $0x30] sm:$0xff] }
 0x7e9   : > { %3490 = vmatpush.bf16.msra.mxu0 %v6100_v33  ;;  %6287 = vmatpush.bf16.msra.mxu1 %v6100_v33 }
 0x7ea   : > { %6288 = vmatpush.bf16.msra.mxu2 %v6100_v33  ;;  %6289 = vmatpush.bf16.msra.mxu3 %v6100_v33 }
 0x7eb   : > { %3552 = vperm.xlu1 %6428, %v5892_v41   ;;  %3542 = vperm.xlu0 %6427, %v5890_v21  }
 0x7ec   : > { %3562 = vperm.xlu2 %6429, %v5894_v29  }
 0x7ed   : > { %3491 = vmatpush.bf16.msra.mxu0 %v6099_v27  ;;  %6290 = vmatpush.bf16.msra.mxu1 %v6099_v27 }
 0x7ee   : > { %6291 = vmatpush.bf16.msra.mxu2 %v6099_v27  ;;  %6292 = vmatpush.bf16.msra.mxu3 %v6099_v27  ;;  %v3603_v27 = vld [vmem:[%s8761_s2] sm:$0xff] }
 0x7f1   : > { %3492 = vmatpush.bf16.msra.mxu0 %v6098_v53  ;;  %6293 = vmatpush.bf16.msra.mxu1 %v6098_v53 }
 0x7f2   : > { %6294 = vmatpush.bf16.msra.mxu2 %v6098_v53  ;;  %6295 = vmatpush.bf16.msra.mxu3 %v6098_v53 }
 0x7f3   : > { %3572 = vperm.xlu1 %6428, %v5896_v40   ;;  %3567 = vperm.xlu0 %6427, %v5895_v9   ;;  %v3605_v40 = vld [vmem:[%s8761_s2 + $0x10] sm:$0xff] }
 0x7f5   : > { %3493 = vmatpush.bf16.msra.mxu0 %v6097_v24  ;;  %6296 = vmatpush.bf16.msra.mxu1 %v6097_v24 }
 0x7f6   : > { %6297 = vmatpush.bf16.msra.mxu2 %v6097_v24  ;;  %6298 = vmatpush.bf16.msra.mxu3 %v6097_v24 }
 0x7f9   : > { %3494 = vmatpush.bf16.msra.mxu0 %v6096_v37  ;;  %6299 = vmatpush.bf16.msra.mxu1 %v6096_v37 }
 0x7fa   : > { %6300 = vmatpush.bf16.msra.mxu2 %v6096_v37  ;;  %6301 = vmatpush.bf16.msra.mxu3 %v6096_v37  ;;  %v3530_v37 = vld [vmem:[%s8751_s4 + $0x18] sm:$0xff] }
 0x7fc   : > { %3495 = vmatmul.bf16.vlgmr.msra.gmra.mxu0 %v3419_v34  ;;  %3500 = vmatmul.bf16.vlgmr.msra.gmra.mxu1 %v3420_v2  ;;  %v3607_v34 = vld [vmem:[%s8761_s2 + $0x20] sm:$0xff]  ;;  %v3609_v2 = vld [vmem:[%s8761_s2 + $0x30] sm:$0xff] }
 0x7fd   : > { %3505 = vmatmul.bf16.vlgmr.msra.gmra.mxu2 %v3421_v61  ;;  %3510 = vmatmul.bf16.vlgmr.msra.gmra.mxu3 %v3422_v17 }
 0x83e   : > { %v3558_v41 = vpop.permute.xlu2 %3557 }
 0x855   : > { %v3538_v12 = vpop.permute.xlu0 %3537  ;;  %v3548_v45 = vpop.permute.xlu1 %3547 }
 0x85d   : > { %v3543_v18 = vpop.permute.xlu0 %3542  ;;  %v3553_v4 = vpop.permute.xlu1 %3552 }
 0x865   : > { %v3568_v29 = vpop.permute.xlu0 %3567 }
 0x879   : > { %v3496_v7 = vpop.f32.mrf.mxu0  ;;  %v3501_v55 = vpop.f32.mrf.mxu1 }
 0x87a   : > { %v3575_v51 = vmul.f32 %v3538_v12, %v3496_v7  ;;  %v3577_v10 = vmul.f32 %v3548_v45, %v3501_v55  ;;  %v3573_v12 = vpop.permute.xlu1 %3572  ;;  %v3563_v7 = vpop.permute.xlu2 %3562  ;;  %v3604_v55 = vld [vmem:[%s8761_s2 + $0x8] sm:$0xff] }
 0x87c   : > { %v3586_v26 = vmul.f32 %v8748_v11, %v3575_v51  ;;  %v3588_v3 = vmul.f32 %v8748_v11, %v3577_v10  ;;  %v3606_v51 = vld [vmem:[%s8761_s2 + $0x18] sm:$0xff] }
 0x87e   : > { %v3594_v21 = vsub.f32 %v3527_v15, %v3586_v26  ;;  %v3596_v33 = vsub.f32 %v3529_v36, %v3588_v3 }
 0x880   : > { %v3614_v9 = vmul.f32 %v8757_v28, %v3594_v21  ;;  %3639 = vst.msk [vmem:[%s8767_s22] sm:$0xff] %vm515_vm3, %v3594_v21  ;;  %v3616_v53 = vmul.f32 %v8757_v28, %v3596_v33  ;;  %v3506_v58 = vpop.f32.mrf.mxu2  ;;  %v3511_v16 = vpop.f32.mrf.mxu3 }
 0x881   : > { %3641 = vst.msk [vmem:[%s8767_s22 + $0x10] sm:$0xff] %vm515_vm3, %v3596_v33  ;;  %v3579_v57 = vmul.f32 %v3558_v41, %v3506_v58  ;;  %v3581_v6 = vmul.f32 %v3568_v29, %v3511_v16  ;;  %v3498_v8 = vpop.f32.mrf.mxu0  ;;  %v3503_v25 = vpop.f32.mrf.mxu1 }
 0x882   : > { %v3622_v24 = vadd.f32 %v3614_v9, %v3603_v27  ;;  %v3624_v0 = vadd.f32 %v3616_v53, %v3605_v40  ;;  %v3576_v52 = vmul.f32 %v3543_v18, %v3498_v8  ;;  %v3578_v63 = vmul.f32 %v3553_v4, %v3503_v25  ;;  %v3532_v27 = vld [vmem:[%s8751_s4 + $0x28] sm:$0xff]  ;;  %v3534_v40 = vld [vmem:[%s8751_s4 + $0x38] sm:$0xff] }
 0x883   : > { %v3590_v31 = vmul.f32 %v8748_v11, %v3579_v57  ;;  %v3592_v59 = vmul.f32 %v8748_v11, %v3581_v6  ;;  %v3608_v57 = vld [vmem:[%s8761_s2 + $0x28] sm:$0xff]  ;;  %v3610_v6 = vld [vmem:[%s8761_s2 + $0x38] sm:$0xff] }
 0x884   : > { %3630 = vst.msk [vmem:[%s8761_s2] sm:$0xff] %vm515_vm3, %v3622_v24  ;;  %v3587_v54 = vmul.f32 %v8748_v11, %v3576_v52  ;;  %v3589_v46 = vmul.f32 %v8748_v11, %v3578_v63 }
 0x885   : > { %3632 = vst.msk [vmem:[%s8761_s2 + $0x10] sm:$0xff] %vm515_vm3, %v3624_v0  ;;  %v3598_v30 = vsub.f32 %v3531_v48, %v3590_v31  ;;  %v3600_v38 = vsub.f32 %v3533_v47, %v3592_v59  ;;  %v3657_v0 = vld [vmem:[%s9646_s11] sm:$0xff] (%p8718_p9) }
 0x886   : > { %v3595_v61 = vsub.f32 %v3528_v62, %v3587_v54  ;;  %v3597_v17 = vsub.f32 %v3530_v37, %v3589_v46  ;;  %3658 = vst [vmem:[#allocation2] sm:$0xff] (%p8718_p9), %v3657_v0 }
 0x887   : > { %v3618_v45 = vmul.f32 %v8757_v28, %v3598_v30  ;;  %3643 = vst.msk [vmem:[%s8767_s22 + $0x20] sm:$0xff] %vm515_vm3, %v3598_v30  ;;  %v3620_v18 = vmul.f32 %v8757_v28, %v3600_v38 }
 0x888   : > { %3645 = vst.msk [vmem:[%s8767_s22 + $0x30] sm:$0xff] %vm515_vm3, %v3600_v38  ;;  %v3615_v10 = vmul.f32 %v8757_v28, %v3595_v61  ;;  %v3617_v15 = vmul.f32 %v8757_v28, %v3597_v17  ;;  %v3508_v36 = vpop.f32.mrf.mxu2  ;;  %v3513_v26 = vpop.f32.mrf.mxu3 }
 0x889   : > { %v3626_v3 = vadd.f32 %v3618_v45, %v3607_v34  ;;  %v3628_v4 = vadd.f32 %v3620_v18, %v3609_v2  ;;  %3640 = vst.msk [vmem:[%s8767_s22 + $0x8] sm:$0xff] %vm515_vm3, %v3595_v61  ;;  %v3580_v41 = vmul.f32 %v3563_v7, %v3508_v36  ;;  %v3582_v21 = vmul.f32 %v3573_v12, %v3513_v26 }
 0x88a   : > { %v3623_v33 = vadd.f32 %v3615_v10, %v3604_v55  ;;  %v3625_v29 = vadd.f32 %v3617_v15, %v3606_v51  ;;  %3642 = vst.msk [vmem:[%s8767_s22 + $0x18] sm:$0xff] %vm515_vm3, %v3597_v17 }
 0x88b   : > { %3634 = vst.msk [vmem:[%s8761_s2 + $0x20] sm:$0xff] %vm515_vm3, %v3626_v3  ;;  %v3591_v9 = vmul.f32 %v8748_v11, %v3580_v41  ;;  %v3593_v53 = vmul.f32 %v8748_v11, %v3582_v21 }
 0x88c   : > { %3636 = vst.msk [vmem:[%s8761_s2 + $0x30] sm:$0xff] %vm515_vm3, %v3628_v4 }
 0x88d   : > { %3631 = vst.msk [vmem:[%s8761_s2 + $0x8] sm:$0xff] %vm515_vm3, %v3623_v33  ;;  %v3599_v58 = vsub.f32 %v3532_v27, %v3591_v9  ;;  %v3601_v16 = vsub.f32 %v3534_v40, %v3593_v53 }
 0x88e   : > { %3633 = vst.msk [vmem:[%s8761_s2 + $0x18] sm:$0xff] %vm515_vm3, %v3625_v29 }
 0x88f   : > { %v3619_v8 = vmul.f32 %v8757_v28, %v3599_v58  ;;  %3644 = vst.msk [vmem:[%s8767_s22 + $0x28] sm:$0xff] %vm515_vm3, %v3599_v58  ;;  %v3621_v25 = vmul.f32 %v8757_v28, %v3601_v16  ;;  %v3659_v28 = vld [vmem:[%s9646_s11 + $0x8] sm:$0xff] (%p8718_p9) }
 0x890   : > { %3646 = vst.msk [vmem:[%s8767_s22 + $0x38] sm:$0xff] %vm515_vm3, %v3601_v16  ;;  %3349 = sbr.rel (!%p8718_p9) target bundleno = 1987 (0x7c3), region = 554 }
 0x891   : > { %v3627_v24 = vadd.f32 %v3619_v8, %v3608_v57  ;;  %v3629_v11 = vadd.f32 %v3621_v25, %v3610_v6  ;;  %3660 = vst [vmem:[#allocation2 + $0x8] sm:$0xff] (%p8718_p9), %v3659_v28 }
 0x893   : > { %3635 = vst.msk [vmem:[%s8761_s2 + $0x28] sm:$0xff] %vm515_vm3, %v3627_v24 }
 0x894   : > { %3637 = vst.msk [vmem:[%s8761_s2 + $0x38] sm:$0xff] %vm515_vm3, %v3629_v11 }
 0x895   :  { %3666 = vsyncadd [#allocation3], 256  ;;  %v8851_v7 = vld [vmem:[%s9587_s6 + $0x8] sm:$0x1] }
 0x897   :  { %v3667_v48 = vld [vmem:[#allocation5] sm:$0xff]  ;;  %v3668_v47 = vld [vmem:[#allocation5 + $0x8] sm:$0xff]  ;;  %v3669_v31 = vld [vmem:[#allocation5 + $0x10] sm:$0xff] }
 0x898   :  { %v3683_v52 = vmul.f32 %v3667_v48, %v8549_v1  ;;  %v3684_v63 = vmul.f32 %v3668_v47, %v8558_v5  ;;  %v3670_v59 = vld [vmem:[#allocation5 + $0x18] sm:$0xff]  ;;  %v3671_v62 = vld [vmem:[#allocation5 + $0x20] sm:$0xff]  ;;  %v3685_v23 = vmul.f32 %v3669_v31, %v8567_v19  ;;  %v3672_v54 = vld [vmem:[#allocation5 + $0x28] sm:$0xff] }
 0x899   :  { %v3686_v60 = vmul.f32 %v3670_v59, %v8581_v13  ;;  %v3687_v37 = vmul.f32 %v3671_v62, %v8545_v22  ;;  %v3673_v46 = vld [vmem:[#allocation5 + $0x30] sm:$0xff]  ;;  %v3674_v30 = vld [vmem:[#allocation5 + $0x38] sm:$0xff]  ;;  %v3688_v2 = vmul.f32 %v3672_v54, %v8553_v42  ;;  %v3675_v61 = vld [vmem:[#allocation5 + $0x40] sm:$0xff] }
 0x89a   :  { %v3699_v38 = vpack.c.bf16 %v3683_v52, %v3683_v52  ;;  %v3700_v34 = vpack.c.bf16 %v3684_v63, %v3684_v63  ;;  %v3689_v1 = vmul.f32 %v3673_v46, %v8572_v43  ;;  %v3676_v5 = vld [vmem:[#allocation5 + $0x48] sm:$0xff]  ;;  %v3701_v17 = vpack.c.bf16 %v3685_v23, %v3685_v23  ;;  %v3677_v19 = vld [vmem:[#allocation5 + $0x50] sm:$0xff]  ;;  %v3678_v18 = vld [vmem:[#allocation5 + $0x58] sm:$0xff] }
 0x89b   :  { %v3702_v12 = vpack.c.bf16 %v3686_v60, %v3686_v60  ;;  %v3690_v45 = vmul.f32 %v3674_v30, %v8610_v35  ;;  %v3703_v13 = vpack.c.bf16 %v3687_v37, %v3687_v37  ;;  %v3691_v22 = vmul.f32 %v3675_v61, %v8562_v56  ;;  %v3679_v55 = vld [vmem:[#allocation5 + $0x60] sm:$0xff]  ;;  %v8858_v35 = vld [vmem:[%s9586_s5 + $0x8] sm:$0x1]  ;;  %v3681_v26 = vld [vmem:[#allocation5 + $0x70] sm:$0xff]  ;;  %s8880_s5 = smov 0  }
 0x89c   :  { %3715 = vst.msk [vmem:[#allocation7] sm:$0xf] %vm859_vm4, %v3699_v38  ;;  %v3704_v42 = vpack.c.bf16 %v3688_v2, %v3688_v2  ;;  %v3692_v43 = vmul.f32 %v3676_v5, %v8596_v39  ;;  %v3705_v56 = vpack.c.bf16 %v3689_v1, %v3689_v1  ;;  %v3693_v51 = vmul.f32 %v3677_v19, %v8628_v20  ;;  %v3680_v10 = vld [vmem:[#allocation5 + $0x68] sm:$0xff]  ;;  %v3682_v4 = vld [vmem:[#allocation5 + $0x78] sm:$0xff] }
 0x89d   :  { %3716 = vst.msk [vmem:[#allocation7 + $0x4] sm:$0xf] %vm859_vm4, %v3700_v34  ;;  %v3706_v15 = vpack.c.bf16 %v3690_v45, %v3690_v45  ;;  %v3694_v36 = vmul.f32 %v3678_v18, %v8574_v49  ;;  %v3707_v39 = vpack.c.bf16 %v3691_v22, %v3691_v22  ;;  %v3695_v3 = vmul.f32 %v3679_v55, %v8616_v44 }
 0x89e   :  { %3717 = vst.msk [vmem:[#allocation7 + $0x8] sm:$0xf] %vm859_vm4, %v3701_v17  ;;  %v3708_v41 = vpack.c.bf16 %v3692_v43, %v3692_v43  ;;  %v3696_v21 = vmul.f32 %v3680_v10, %v8646_v14  ;;  %v3709_v20 = vpack.c.bf16 %v3693_v51, %v3693_v51  ;;  %v3697_v33 = vmul.f32 %v3681_v26, %v8598_v32 }
 0x89f   :  { %3718 = vst.msk [vmem:[#allocation7 + $0xc] sm:$0xf] %vm859_vm4, %v3702_v12  ;;  %v3710_v49 = vpack.c.bf16 %v3694_v36, %v3694_v36  ;;  %v3698_v29 = vmul.f32 %v3682_v4, %v8635_v50  ;;  %v3711_v27 = vpack.c.bf16 %v3695_v3, %v3695_v3 }
 0x8a0   :  { %3719 = vst.msk [vmem:[#allocation7 + $0x10] sm:$0xf] %vm859_vm4, %v3703_v13  ;;  %v3712_v44 = vpack.c.bf16 %v3696_v21, %v3696_v21  ;;  %v3713_v40 = vpack.c.bf16 %v3697_v33, %v3697_v33 }
 0x8a1   :  { %3720 = vst.msk [vmem:[#allocation7 + $0x14] sm:$0xf] %vm859_vm4, %v3704_v42  ;;  %v3714_v14 = vpack.c.bf16 %v3698_v29, %v3698_v29 }
 0x8a2   :  { %3721 = vst.msk [vmem:[#allocation7 + $0x18] sm:$0xf] %vm859_vm4, %v3705_v56 }
 0x8a3   :  { %3722 = vst.msk [vmem:[#allocation7 + $0x1c] sm:$0xf] %vm859_vm4, %v3706_v15 }
 0x8a4   :  { %3723 = vst.msk [vmem:[#allocation7 + $0x20] sm:$0xf] %vm859_vm4, %v3707_v39 }
 0x8a5   :  { %3724 = vst.msk [vmem:[#allocation7 + $0x24] sm:$0xf] %vm859_vm4, %v3708_v41 }
 0x8a6   :  { %3725 = vst.msk [vmem:[#allocation7 + $0x28] sm:$0xf] %vm859_vm4, %v3709_v20 }
 0x8a7   :  { %3726 = vst.msk [vmem:[#allocation7 + $0x2c] sm:$0xf] %vm859_vm4, %v3710_v49 }
 0x8a8   :  { %3727 = vst.msk [vmem:[#allocation7 + $0x30] sm:$0xf] %vm859_vm4, %v3711_v27 }
 0x8a9   :  { %3728 = vst.msk [vmem:[#allocation7 + $0x34] sm:$0xf] %vm859_vm4, %v3712_v44 }
 0x8aa   :  { %3729 = vst.msk [vmem:[#allocation7 + $0x38] sm:$0xf] %vm859_vm4, %v3713_v40 }
 0x8ab   :  { %3730 = vst.msk [vmem:[#allocation7 + $0x3c] sm:$0xf] %vm859_vm4, %v3714_v14 }
 0x8ac LB: > { %p3741_p10 = scmp.lt.s32.totalorder %s6666_s5, 0  ;;  %s3742_s6 = ssub.s32 0, %s6666_s5  ;;  %s6666_s5 = sphi %s8880_s5, %s9650_s5  }
 0x8ad   : > { %s5899_s24 = smin.u32 %s6666_s5, %s3742_s6 }
 0x8ae   : > { %s3744_s21 = sand.u32 1, %s5899_s24  }
 0x8af   : > { %s3745_s26 = ssub.s32 0, %s3744_s21 }
 0x8b0   : > { %s9662_s26 = smov (!%p3741_p10, %s3745_s26), %s3744_s21 }
 0x8b1   : > { %s6104_s27 = sshll.u32 %s9662_s26, 4  ;;  %s3750_s3 = scalar_lea.sflag [#allocation3], %s9662_s26 }
 0x8b2   : > { %s8888_s7 = scalar_lea.vmem [#allocation2], %s6104_s27 }
 0x8b3   : > { %6640 = dma.done.wait %s3750_s3, 256 }
 0x8b4   : > { %6641 = vsyncadd %s3750_s3, 4294967040  ;;  %s3755_s1 = sadd.s32 1, %s6666_s5  }
 0x8b5   : > { %p8893_p11 = scmp.ge.s32.totalorder %s3755_s1, 2 }
 0x8b6   : > { %s6105_s4 = sshll.u32 (!%p8893_p11), %s6666_s5, 6  ;;  %s3761_s2 = ssub.s32 (!%p8893_p11), 1, %s9662_s26 }
 0x8b7   : > { %3759 = sbr.rel (%p8893_p11) target bundleno = 2244 (0x8c4), region = 344  ;;  %s6106_s22 = sadd.s32 (!%p8893_p11), 64, %s6105_s4 }
 0x8b8   : > { %s6107_s30 = sshll.u32 (!%p8893_p11), %s3761_s2, 4  ;;  %s3762_s0 = sshra.s32 (!%p8893_p11), %s6106_s22, 5 }
 0x8b9   : > { %s5904_s11 = sshll.u32 (!%p8893_p11), %s3762_s0, 3  ;;  %s9648_s28 = sld [smem:[#allocation33_spill]] (!%p8893_p11) }
 0x8ba   : > { %s3768_s25 = scalar_lea.vmem (!%p8893_p11), [#allocation2], %s6107_s30  ;;  %s3769_s10 = scalar_lea.sflag (!%p8893_p11), [#allocation3], %s3761_s2 }
 0x8bf   : > { %s3765_s23 = scalar_lea.vmem %s9648_s28, %s5904_s11 }
 0x8c0   : > { %v3780_v32 = vld [vmem:[%s3765_s23] sm:$0xff]  ;;  %v3782_v50 = vld [vmem:[%s3765_s23 + $0x8] sm:$0xff] }
 0x8c1   : > { %3781 = vst [vmem:[%s3768_s25] sm:$0xff] %v3780_v32 }
 0x8c2   : > { %3783 = vst [vmem:[%s3768_s25 + $0x8] sm:$0xff] %v3782_v50 }
 0x8c3   : > { %3789 = vsyncadd %s3769_s10, 256 }
 0x8c4 PF: > { %v6115_v9 = vld [vmem:[#allocation7 + $0x38] sm:$0xff]  ;;  %s8904_s6 = sshll.u32 %s6666_s5, 6  ;;  %v6676_v53 = vmov 0   ;;  %s9649_s26 = sld [smem:[#allocation34_spill]]  ;;  %v6114_v58 = vld [vmem:[#allocation7 + $0x30] sm:$0xff]  ;;  %v6113_v8 = vld [vmem:[#allocation7 + $0x28] sm:$0xff] }
 0x8c5   : > { %6431 = vset.pattern.permute.xlu1 %v6676_v53  ;;  %6430 = vset.pattern.permute.xlu0 %v6676_v53  ;;  %v6112_v11 = vld [vmem:[#allocation7 + $0x20] sm:$0xff]  ;;  %v6111_v28 = vld [vmem:[#allocation7 + $0x18] sm:$0xff]  ;;  %v6110_v52 = vld [vmem:[#allocation7 + $0x10] sm:$0xff]  ;;  %v8923_v51 = vperm.slane %v8851_v7, 0  ;;  %v8932_v41 = vperm.slane %v8858_v35, 0  ;;  %s8936_s3 = scalar_lea.vmem [#allocation6], %s8904_s6  ;;  %s9650_s5 = smov %s3755_s1 }
 0x8c6   : > { %3877 = vmatpush.bf16.msra.mxu0 %v6115_v9  ;;  %6302 = vmatpush.bf16.msra.mxu1 %v6115_v9  ;;  %v6109_v37 = vld [vmem:[#allocation7 + $0x8] sm:$0xff]  ;;  %v6108_v5 = vld [vmem:[#allocation7] sm:$0xff]  ;;  %v3995_v40 = vld [vmem:[%s8936_s3 + $0x10] sm:$0xff]  ;;  %vm5232_vm10 = vcmask (%p8893_p11), 277504   ;;  %s6679_s4 = smov (%p8893_p11), 128   ;;  %s6680_s2 = smov (%p8893_p11), 8  }
 0x8c7   : > { %6303 = vmatpush.bf16.msra.mxu2 %v6115_v9  ;;  %6304 = vmatpush.bf16.msra.mxu3 %v6115_v9  ;;  %v3993_v44 = vld [vmem:[%s8936_s3] sm:$0xff]  ;;  %v5958_v7 = vld [vmem:[%s9594_s13 + $0x108] sm:$0xff] (%p8893_p11) }
 0x8c8   : > { %6432 = vset.pattern.permute.xlu2 %v6676_v53  ;;  %v4209_v35 = vld [vmem:[%s9596_s15 + $0x8] sm:$0xff] (%p8893_p11) }
 0x8c9   : > { %v3791_v63 = vld [vmem:[%s8888_s7] sm:$0xff]  ;;  %v3792_v31 = vld [vmem:[%s8888_s7 + $0x8] sm:$0xff]  ;;  %s8926_s7 = scalar_lea.vmem [#allocation5], %s8904_s6 }
 0x8ca   : > { %s8910_s27 = scalar_lea.vmem %s9649_s26, %s8904_s6  ;;  %3878 = vmatpush.bf16.msra.mxu0 %v6114_v58  ;;  %6305 = vmatpush.bf16.msra.mxu1 %v6114_v58  ;;  %v3793_v59 = vunpack.c.0.s8 %v3791_v63  ;;  %v3794_v62 = vunpack.c.1.s8 %v3791_v63  ;;  %v3795_v23 = vunpack.c.2.s8 %v3791_v63  ;;  %v3796_v60 = vunpack.c.3.s8 %v3791_v63  ;;  %v3917_v39 = vld [vmem:[%s8926_s7] sm:$0xff]  ;;  %v3919_v3 = vld [vmem:[%s8926_s7 + $0x10] sm:$0xff] }
 0x8cb   : > { %v5943_v16 = vld [vmem:[%s8910_s27 + $0x110] sm:$0xff]  ;;  %v5941_v57 = vld [vmem:[%s8910_s27 + $0x100] sm:$0xff]  ;;  %6306 = vmatpush.bf16.msra.mxu2 %v6114_v58  ;;  %6307 = vmatpush.bf16.msra.mxu3 %v6114_v58  ;;  %v5944_v25 = vld [vmem:[%s8910_s27 + $0x118] sm:$0xff]  ;;  %v3797_v54 = vunpack.c.0.s8 %v3792_v31  ;;  %v3798_v46 = vunpack.c.1.s8 %v3792_v31  ;;  %v3799_v30 = vunpack.c.2.s8 %v3792_v31  ;;  %v3800_v38 = vunpack.c.3.s8 %v3792_v31 }
 0x8cc   : > { %3937 = vperm.xlu1 %6431, %v5943_v16   ;;  %3927 = vperm.xlu0 %6430, %v5941_v57   ;;  %v5945_v6 = vld [vmem:[%s8910_s27 + $0x120] sm:$0xff]  ;;  %v5942_v24 = vld [vmem:[%s8910_s27 + $0x108] sm:$0xff]  ;;  %v5948_v48 = vld [vmem:[%s8910_s27 + $0x138] sm:$0xff]  ;;  %v3801_v34 = vcvt.s32.f32 %v3793_v59  ;;  %v3802_v2 = vcvt.s32.f32 %v3794_v62  ;;  %v3803_v1 = vcvt.s32.f32 %v3795_v23  ;;  %v3804_v61 = vcvt.s32.f32 %v3796_v60 }
 0x8cd   : > { %3947 = vperm.xlu2 %6432, %v5945_v6   ;;  %v5946_v0 = vld [vmem:[%s8910_s27 + $0x128] sm:$0xff]  ;;  %v5947_v47 = vld [vmem:[%s8910_s27 + $0x130] sm:$0xff]  ;;  %v3805_v17 = vcvt.s32.f32 %v3797_v54  ;;  %v3806_v12 = vcvt.s32.f32 %v3798_v46  ;;  %v3807_v45 = vcvt.s32.f32 %v3799_v30  ;;  %v3808_v19 = vcvt.s32.f32 %v3800_v38  ;;  %v3997_v23 = vld [vmem:[%s8936_s3 + $0x20] sm:$0xff] }
 0x8ce   : > { %3879 = vmatpush.bf16.msra.mxu0 %v6113_v8  ;;  %6308 = vmatpush.bf16.msra.mxu1 %v6113_v8  ;;  %v3809_v13 = vpack.c.bf16 %v3802_v2, %v3801_v34  ;;  %v3810_v22 = vpack.c.bf16 %v3804_v61, %v3803_v1  ;;  %v3999_v60 = vld [vmem:[%s8936_s3 + $0x30] sm:$0xff]  ;;  %v3994_v2 = vld [vmem:[%s8936_s3 + $0x8] sm:$0xff]  ;;  %v3996_v1 = vld [vmem:[%s8936_s3 + $0x18] sm:$0xff] }
 0x8cf   : > { %6309 = vmatpush.bf16.msra.mxu2 %v6113_v8  ;;  %6310 = vmatpush.bf16.msra.mxu3 %v6113_v8  ;;  %v3811_v18 = vpack.c.bf16 %v3806_v12, %v3805_v17  ;;  %v3812_v42 = vpack.c.bf16 %v3808_v19, %v3807_v45 }
 0x8d2   : > { %3880 = vmatpush.bf16.msra.mxu0 %v6112_v11  ;;  %6311 = vmatpush.bf16.msra.mxu1 %v6112_v11 }
 0x8d3   : > { %6312 = vmatpush.bf16.msra.mxu2 %v6112_v11  ;;  %6313 = vmatpush.bf16.msra.mxu3 %v6112_v11 }
 0x8d4   : > { %3942 = vperm.xlu1 %6431, %v5944_v25   ;;  %3932 = vperm.xlu0 %6430, %v5942_v24   ;;  %v3921_v25 = vld [vmem:[%s8926_s7 + $0x20] sm:$0xff]  ;;  %v3923_v24 = vld [vmem:[%s8926_s7 + $0x30] sm:$0xff] }
 0x8d5   : > { %3952 = vperm.xlu2 %6432, %v5946_v0  }
 0x8d6   : > { %3881 = vmatpush.bf16.msra.mxu0 %v6111_v28  ;;  %6314 = vmatpush.bf16.msra.mxu1 %v6111_v28 }
 0x8d7   : > { %6315 = vmatpush.bf16.msra.mxu2 %v6111_v28  ;;  %6316 = vmatpush.bf16.msra.mxu3 %v6111_v28 }
 0x8da   : > { %3882 = vmatpush.bf16.msra.mxu0 %v6110_v52  ;;  %6317 = vmatpush.bf16.msra.mxu1 %v6110_v52 }
 0x8db   : > { %6318 = vmatpush.bf16.msra.mxu2 %v6110_v52  ;;  %6319 = vmatpush.bf16.msra.mxu3 %v6110_v52  ;;  %v3920_v52 = vld [vmem:[%s8926_s7 + $0x18] sm:$0xff] }
 0x8dc   : > { %3962 = vperm.xlu1 %6431, %v5948_v48   ;;  %3957 = vperm.xlu0 %6430, %v5947_v47   ;;  %v3918_v47 = vld [vmem:[%s8926_s7 + $0x8] sm:$0xff] }
 0x8de   : > { %3883 = vmatpush.bf16.msra.mxu0 %v6109_v37  ;;  %6320 = vmatpush.bf16.msra.mxu1 %v6109_v37 }
 0x8df   : > { %6321 = vmatpush.bf16.msra.mxu2 %v6109_v37  ;;  %6322 = vmatpush.bf16.msra.mxu3 %v6109_v37 }
 0x8e2   : > { %3884 = vmatpush.bf16.msra.mxu0 %v6108_v5  ;;  %6323 = vmatpush.bf16.msra.mxu1 %v6108_v5 }
 0x8e3   : > { %6324 = vmatpush.bf16.msra.mxu2 %v6108_v5  ;;  %6325 = vmatpush.bf16.msra.mxu3 %v6108_v5 }
 0x8e5   : > { %3885 = vmatmul.bf16.vlgmr.msra.gmra.mxu0 %v3809_v13  ;;  %3890 = vmatmul.bf16.vlgmr.msra.gmra.mxu1 %v3810_v22 }
 0x8e6   : > { %3895 = vmatmul.bf16.vlgmr.msra.gmra.mxu2 %v3811_v18  ;;  %3900 = vmatmul.bf16.vlgmr.msra.gmra.mxu3 %v3812_v42 }
 0x927   : > { %v3948_v33 = vpop.permute.xlu2 %3947 }
 0x92f   : > { %v3953_v34 = vpop.permute.xlu2 %3952 }
 0x93e   : > { %v3928_v43 = vpop.permute.xlu0 %3927  ;;  %v3938_v55 = vpop.permute.xlu1 %3937 }
 0x946   : > { %v3933_v56 = vpop.permute.xlu0 %3932  ;;  %v3943_v20 = vpop.permute.xlu1 %3942 }
 0x94e   : > { %v3958_v27 = vpop.permute.xlu0 %3957  ;;  %v3963_v46 = vpop.permute.xlu1 %3962 }
 0x962   : > { %v3886_v10 = vpop.f32.mrf.mxu0  ;;  %v3891_v15 = vpop.f32.mrf.mxu1 }
 0x963   : > { %v3965_v36 = vmul.f32 %v3928_v43, %v3886_v10  ;;  %v3967_v26 = vmul.f32 %v3938_v55, %v3891_v15  ;;  %v3922_v43 = vld [vmem:[%s8926_s7 + $0x28] sm:$0xff]  ;;  %v3924_v55 = vld [vmem:[%s8926_s7 + $0x38] sm:$0xff] }
 0x965   : > { %v3976_v4 = vmul.f32 %v8923_v51, %v3965_v36  ;;  %v3978_v21 = vmul.f32 %v8923_v51, %v3967_v26  ;;  %v3998_v26 = vld [vmem:[%s8936_s3 + $0x28] sm:$0xff] }
 0x967   : > { %v3984_v49 = vsub.f32 %v3917_v39, %v3976_v4  ;;  %v3986_v29 = vsub.f32 %v3919_v3, %v3978_v21  ;;  %v4000_v39 = vld [vmem:[%s8936_s3 + $0x38] sm:$0xff] }
 0x969   : > { %v4004_v14 = vmul.f32 %v8932_v41, %v3984_v49  ;;  %v4006_v32 = vmul.f32 %v8932_v41, %v3986_v29  ;;  %v3896_v50 = vpop.f32.mrf.mxu2  ;;  %v3901_v9 = vpop.f32.mrf.mxu3  ;;  %v4210_v49 = vld [vmem:[%s9596_s15 + $0x10] sm:$0xff] (%p8893_p11)  ;;  %v5957_v29 = vld [vmem:[%s9594_s13 + $0x100] sm:$0xff] (%p8893_p11) }
 0x96a   : > { %v3969_v53 = vmul.f32 %v3948_v33, %v3896_v50  ;;  %v3971_v58 = vmul.f32 %v3958_v27, %v3901_v9  ;;  %v3888_v16 = vpop.f32.mrf.mxu0  ;;  %v3893_v57 = vpop.f32.mrf.mxu1  ;;  %v4211_v33 = vld [vmem:[%s9596_s15 + $0x18] sm:$0xff] (%p8893_p11)  ;;  %v4208_v27 = vld [vmem:[%s9596_s15] sm:$0xff] (%p8893_p11) }
 0x96b   : > { %v4012_v6 = vadd.f32 %v4004_v14, %v3993_v44  ;;  %v4014_v8 = vadd.f32 %v4006_v32, %v3995_v40  ;;  %v3966_v11 = vmul.f32 %v3933_v56, %v3888_v16  ;;  %v3968_v0 = vmul.f32 %v3943_v20, %v3893_v57  ;;  %6327 = vmatpush.msra.mxu2 (%p8893_p11), %v4211_v33  ;;  %v4220_v44 = vld [vmem:[#allocation8 + $0x30] sm:$0xff] (%p8893_p11)  ;;  %v5956_v40 = vld [vmem:[%s9594_s13 + $0xf8] sm:$0xff] (%p8893_p11)  ;;  %v5954_v32 = vld [vmem:[%s9594_s13 + $0xe8] sm:$0xff] (%p8893_p11) }
 0x96c   : > { %v3980_v28 = vmul.f32 %v8923_v51, %v3969_v53  ;;  %v3982_v48 = vmul.f32 %v8923_v51, %v3971_v58  ;;  %6328 = vmatpush.msra.mxu3 (%p8893_p11), %v4211_v33  ;;  %6326 = vmatpush.msra.mxu1 (%p8893_p11), %v4211_v33  ;;  %v5955_v14 = vld [vmem:[%s9594_s13 + $0xf0] sm:$0xff] (%p8893_p11)  ;;  %v5953_v50 = vld [vmem:[%s9594_s13 + $0xe0] sm:$0xff] (%p8893_p11)  ;;  %v4221_v9 = vld [vmem:[#allocation8 + $0x38] sm:$0xff] (%p8893_p11) }
 0x96d   : > { %4020 = vst.msk [vmem:[%s8936_s3] sm:$0xff] %vm515_vm3, %v4012_v6  ;;  %v3977_v63 = vmul.f32 %v8923_v51, %v3966_v11  ;;  %v3979_v31 = vmul.f32 %v8923_v51, %v3968_v0  ;;  %6330 = vmatpush.msra.mxu2 (%p8893_p11), %v4210_v49  ;;  %v5952_v53 = vld [vmem:[%s9594_s13 + $0xd8] sm:$0xff] (%p8893_p11)  ;;  %v5951_v58 = vld [vmem:[%s9594_s13 + $0xd0] sm:$0xff] (%p8893_p11)  ;;  %v5950_v57 = vld [vmem:[%s9594_s13 + $0xc8] sm:$0xff] (%p8893_p11) }
 0x96e   : > { %4022 = vst.msk [vmem:[%s8936_s3 + $0x10] sm:$0xff] %vm515_vm3, %v4014_v8  ;;  %v3988_v59 = vsub.f32 %v3921_v25, %v3980_v28  ;;  %v3990_v62 = vsub.f32 %v3923_v24, %v3982_v48  ;;  %6331 = vmatpush.msra.mxu3 (%p8893_p11), %v4210_v49  ;;  %6329 = vmatpush.msra.mxu1 (%p8893_p11), %v4210_v49  ;;  %v4225_v16 = vld [vmem:[#allocation8 + $0x58] sm:$0xff] (%p8893_p11)  ;;  %v5949_v6 = vld [vmem:[%s9594_s13 + $0xc0] sm:$0xff] (%p8893_p11)  ;;  %v4215_v24 = vld [vmem:[#allocation8 + $0x8] sm:$0xff] (%p8893_p11) }
 0x96f   : > { %v3985_v37 = vsub.f32 %v3918_v47, %v3977_v63  ;;  %v3987_v54 = vsub.f32 %v3920_v52, %v3979_v31  ;;  %6333 = vmatpush.msra.mxu2 (%p8893_p11), %v4209_v35  ;;  %v4222_v25 = vld [vmem:[#allocation8 + $0x40] sm:$0xff] (%p8893_p11)  ;;  %v4223_v0 = vld [vmem:[#allocation8 + $0x48] sm:$0xff] (%p8893_p11)  ;;  %v4216_v28 = vld [vmem:[#allocation8 + $0x10] sm:$0xff] (%p8893_p11) }
 0x970   : > { %v4008_v30 = vmul.f32 %v8932_v41, %v3988_v59  ;;  %v4010_v38 = vmul.f32 %v8932_v41, %v3990_v62  ;;  %6334 = vmatpush.msra.mxu3 (%p8893_p11), %v4209_v35  ;;  %6332 = vmatpush.msra.mxu1 (%p8893_p11), %v4209_v35  ;;  %v4224_v47 = vld [vmem:[#allocation8 + $0x50] sm:$0xff] (%p8893_p11)  ;;  %v4226_v52 = vld [vmem:[#allocation8 + $0x60] sm:$0xff] (%p8893_p11)  ;;  %v4459_v62 = vld [vmem:[#allocation8 + $0x88] sm:$0xff] (%p8893_p11) }
 0x971   : > { %v4005_v61 = vmul.f32 %v8932_v41, %v3985_v37  ;;  %v4007_v5 = vmul.f32 %v8932_v41, %v3987_v54  ;;  %v3898_v17 = vpop.f32.mrf.mxu2  ;;  %v3903_v12 = vpop.f32.mrf.mxu3  ;;  %6336 = vmatpush.msra.mxu2 (%p8893_p11), %v4208_v27  ;;  %v4458_v31 = vld [vmem:[#allocation8 + $0x80] sm:$0xff] (%p8893_p11)  ;;  %v4460_v37 = vld [vmem:[#allocation8 + $0x90] sm:$0xff] (%p8893_p11) }
 0x972   : > { %v4016_v45 = vadd.f32 %v4008_v30, %v3997_v23  ;;  %v4018_v19 = vadd.f32 %v4010_v38, %v3999_v60  ;;  %v3970_v13 = vmul.f32 %v3953_v34, %v3898_v17  ;;  %v3972_v22 = vmul.f32 %v3963_v46, %v3903_v12  ;;  %5984 = vmatmul.msk.f32.vlgmr.msra.gmra.mxu2 (%p8893_p11), %vm240_vm1, %v4220_v44  ;;  %v4217_v23 = vld [vmem:[#allocation8 + $0x18] sm:$0xff] (%p8893_p11)  ;;  %v4218_v30 = vld [vmem:[#allocation8 + $0x20] sm:$0xff] (%p8893_p11)  ;;  %v4464_v17 = vld [vmem:[#allocation8 + $0xb0] sm:$0xff] (%p8893_p11) }
 0x973   : > { %v4013_v18 = vadd.f32 %v4005_v61, %v3994_v2  ;;  %v4015_v42 = vadd.f32 %v4007_v5, %v3996_v1  ;;  %6337 = vmatpush.msra.mxu3 (%p8893_p11), %v4208_v27  ;;  %4534 = vmatpush.msrb.mxu2 (%p8893_p11), %v4211_v33  ;;  %v4461_v46 = vld [vmem:[#allocation8 + $0x98] sm:$0xff] (%p8893_p11)  ;;  %v4462_v34 = vld [vmem:[#allocation8 + $0xa0] sm:$0xff] (%p8893_p11)  ;;  %v4463_v1 = vld [vmem:[#allocation8 + $0xa8] sm:$0xff] (%p8893_p11) }
 0x974   : > { %4024 = vst.msk [vmem:[%s8936_s3 + $0x20] sm:$0xff] %vm515_vm3, %v4016_v45  ;;  %v3981_v56 = vmul.f32 %v8923_v51, %v3970_v13  ;;  %v3983_v10 = vmul.f32 %v8923_v51, %v3972_v22  ;;  %v5960_v51 = vld [vmem:[%s9594_s13 + $0x118] sm:$0xff] (%p8893_p11)  ;;  %6335 = vmatpush.msra.mxu1 (%p8893_p11), %v4208_v27  ;;  %5989 = vmatmul.msk.f32.vlgmr.msra.gmra.mxu3 (%p8893_p11), %vm240_vm1, %v4225_v16  ;;  %v4219_v61 = vld [vmem:[#allocation8 + $0x28] sm:$0xff] (%p8893_p11)  ;;  %v4466_v22 = vld [vmem:[#allocation8 + $0xc0] sm:$0xff] (%p8893_p11) }
 0x975   : > { %4026 = vst.msk [vmem:[%s8936_s3 + $0x30] sm:$0xff] %vm515_vm3, %v4018_v19  ;;  %4114 = vmatpush.msra.mxu0 (%p8893_p11), %v5960_v51  ;;  %4765 = vmatpush.msrb.mxu3 (%p8893_p11), %v4211_v33  ;;  %v4465_v45 = vld [vmem:[#allocation8 + $0xb8] sm:$0xff] (%p8893_p11)  ;;  %v4227_v19 = vld [vmem:[#allocation8 + $0x68] sm:$0xff] (%p8893_p11) }
 0x976   : > { %4021 = vst.msk [vmem:[%s8936_s3 + $0x8] sm:$0xff] %vm515_vm3, %v4013_v18  ;;  %v3989_v15 = vsub.f32 %v3922_v43, %v3981_v56  ;;  %v3991_v36 = vsub.f32 %v3924_v55, %v3983_v10  ;;  %4535 = vmatpush.msrb.mxu2 (%p8893_p11), %v4210_v49  ;;  %5979 = vmatmul.msk.f32.vlgmr.msra.gmra.mxu1 (%p8893_p11), %vm240_vm1, %v4215_v24  ;;  %v4228_v18 = vld [vmem:[#allocation8 + $0x70] sm:$0xff] (%p8893_p11)  ;;  %v4467_v43 = vld [vmem:[#allocation8 + $0xc8] sm:$0xff] (%p8893_p11)  ;;  %v4229_v55 = vld [vmem:[#allocation8 + $0x78] sm:$0xff] (%p8893_p11) }
 0x977   : > { %4023 = vst.msk [vmem:[%s8936_s3 + $0x18] sm:$0xff] %vm515_vm3, %v4015_v42  ;;  %4766 = vmatpush.msrb.mxu3 (%p8893_p11), %v4210_v49  ;;  %v4468_v10 = vld [vmem:[#allocation8 + $0xd0] sm:$0xff] (%p8893_p11) }
 0x978   : > { %v4009_v3 = vmul.f32 %v8932_v41, %v3989_v15  ;;  %v4011_v4 = vmul.f32 %v8932_v41, %v3991_v36  ;;  %v5959_v41 = vld [vmem:[%s9594_s13 + $0x110] sm:$0xff] (%p8893_p11)  ;;  %4536 = vmatpush.msrb.mxu2 (%p8893_p11), %v4209_v35  ;;  %v4469_v36 = vld [vmem:[#allocation8 + $0xd8] sm:$0xff] (%p8893_p11) }
 0x979   :  { %3739 = sbr.rel (!%p8893_p11) target bundleno = 2220 (0x8ac), region = 565  ;;  %4115 = vmatpush.msra.mxu0 (%p8893_p11), %v5959_v41  ;;  %4767 = vmatpush.msrb.mxu3 (%p8893_p11), %v4209_v35 }
 0x97a   : > { %v4017_v21 = vadd.f32 %v4009_v3, %v3998_v26  ;;  %v4019_v20 = vadd.f32 %v4011_v4, %v4000_v39  ;;  %4537 = vmatpush.msrb.mxu2 (%p8893_p11), %v4208_v27  ;;  %v9081_v26 = vld [vmem:[%s9597_s16] ss:$0 sm:$0xff] (%p8893_p11) }
 0x97b   :  { %4116 = vmatpush.msra.mxu0 (%p8893_p11), %v5958_v7  ;;  %5985 = vmatmul.msk.f32.gmra.mxu2 (%p8893_p11), %vm240_vm1, %v4221_v9  ;;  %v4471_v7 = vld [vmem:[#allocation8 + $0xe8] sm:$0xff] (%p8893_p11) }
 0x97c   : > { %4025 = vst.msk [vmem:[%s8936_s3 + $0x28] sm:$0xff] %vm515_vm3, %v4017_v21  ;;  %4768 = vmatpush.msrb.mxu3 (%p8893_p11), %v4208_v27  ;;  %v4470_v21 = vld [vmem:[#allocation8 + $0xe0] sm:$0xff] (%p8893_p11) }
 0x97d   : > { %4027 = vst.msk [vmem:[%s8936_s3 + $0x38] sm:$0xff] %vm515_vm3, %v4019_v20  ;;  %4117 = vmatpush.msra.mxu0 (%p8893_p11), %v5957_v29  ;;  %5990 = vmatmul.msk.f32.gmra.mxu3 (%p8893_p11), %vm240_vm1, %v4226_v52  ;;  %v9089_v20 = vld [vmem:[%s9595_s14 + $0x2] ss:$0 sm:$0xff] (%p8893_p11)  ;;  %v9094_v29 = vld [vmem:[%s9598_s17] ss:$0 sm:$0xff] (%p8893_p11)  ;;  %s5271_s3 = sshll.u32 (%p8893_p11), %s9601_s20, 4  ;;  %s5272_s3 = int_to_ptr.hbm [resolvable:$true] %s5271_s3 }
 0x97e   :  { %5980 = vmatmul.msk.f32.gmra.mxu1 %vm240_vm1, %v4216_v28 }
 0x97f   :  { %4118 = vmatpush.msra.mxu0 %v5956_v40 }
 0x981   :  { %4119 = vmatpush.msra.mxu0 %v5955_v14 }
 0x983   :  { %4120 = vmatpush.msra.mxu0 %v5954_v32  ;;  %5986 = vmatmul.msk.f32.gmra.mxu2 %vm240_vm1, %v4222_v25 }
 0x984   :  { %v4028_v8 = vld [vmem:[#allocation6] sm:$0xff]  ;;  %v4029_v11 = vld [vmem:[#allocation6 + $0x8] sm:$0xff]  ;;  %v4030_v48 = vld [vmem:[#allocation6 + $0x10] sm:$0xff] }
 0x985   :  { %4121 = vmatpush.msra.mxu0 %v5953_v50  ;;  %v4031_v63 = vld [vmem:[#allocation6 + $0x18] sm:$0xff]  ;;  %v4032_v59 = vld [vmem:[#allocation6 + $0x20] sm:$0xff]  ;;  %v4033_v60 = vld [vmem:[#allocation6 + $0x28] sm:$0xff]  ;;  %5991 = vmatmul.msk.f32.gmra.mxu3 %vm240_vm1, %v4227_v19 }
 0x986   :  { %5981 = vmatmul.msk.f32.gmra.mxu1 %vm240_vm1, %v4217_v23  ;;  %v4034_v54 = vld [vmem:[#allocation6 + $0x30] sm:$0xff]  ;;  %v4035_v38 = vld [vmem:[#allocation6 + $0x38] sm:$0xff]  ;;  %v4036_v2 = vld [vmem:[#allocation6 + $0x40] sm:$0xff] }
 0x987   :  { %4122 = vmatpush.msra.mxu0 %v5952_v53  ;;  %v4037_v5 = vld [vmem:[#allocation6 + $0x48] sm:$0xff]  ;;  %v4038_v12 = vld [vmem:[#allocation6 + $0x50] sm:$0xff]  ;;  %v4039_v13 = vld [vmem:[#allocation6 + $0x58] sm:$0xff] }
 0x988   :  { %v4040_v42 = vld [vmem:[#allocation6 + $0x60] sm:$0xff]  ;;  %v4041_v56 = vld [vmem:[#allocation6 + $0x68] sm:$0xff]  ;;  %v4042_v15 = vld [vmem:[#allocation6 + $0x70] sm:$0xff] }
 0x989   :  { %4123 = vmatpush.msra.mxu0 %v5951_v58  ;;  %v4043_v4 = vld [vmem:[#allocation6 + $0x78] sm:$0xff]  ;;  %v4472_v58 = vld [vmem:[#allocation8 + $0xf0] sm:$0xff] }
 0x98b   :  { %4124 = vmatpush.msra.mxu0 %v5950_v57  ;;  %5987 = vmatmul.msk.f32.gmra.mxu2 %vm240_vm1, %v4223_v0 }
 0x98d   :  { %4125 = vmatpush.msra.mxu0 %v5949_v6  ;;  %5992 = vmatmul.msk.f32.gmra.mxu3 %vm240_vm1, %v4228_v18 }
 0x98e   :  { %5962 = vmatmul.msk.f32.vlgmr.msra.gmra.mxu0 %vm515_vm3, %v4028_v8  ;;  %5982 = vmatmul.msk.f32.gmra.mxu1 %vm240_vm1, %v4218_v30 }
 0x98f   :  { %4293 = vmatpush.msrb.mxu0 %v4211_v33 }
 0x991   :  { %4294 = vmatpush.msrb.mxu0 %v4210_v49  ;;  %v4214_v49 = vld [vmem:[#allocation8] sm:$0xff] }
 0x993   :  { %4295 = vmatpush.msrb.mxu0 %v4209_v35  ;;  %5988 = vmatmul.msk.f32.gmra.mxu2 %vm240_vm1, %v4224_v47 }
 0x995   :  { %4296 = vmatpush.msrb.mxu0 %v4208_v27  ;;  %5993 = vmatmul.msk.f32.gmra.mxu3 %vm240_vm1, %v4229_v55 }
 0x996   :  { %5963 = vmatmul.msk.f32.gmra.mxu0 %vm515_vm3, %v4029_v11  ;;  %5983 = vmatmul.msk.f32.gmra.mxu1 %vm240_vm1, %v4219_v61 }
 0x99b   :  { %5994 = vmatmul.msk.f32.vlgmr.msrb.gmra.mxu2 %vm240_vm1, %v4458_v31 }
 0x99e   :  { %5964 = vmatmul.msk.f32.gmra.mxu0 %vm515_vm3, %v4030_v48 }
 0x9a3   :  { %5995 = vmatmul.msk.f32.gmra.mxu2 %vm240_vm1, %v4459_v62 }
 0x9a6   :  { %5965 = vmatmul.msk.f32.gmra.mxu0 %vm515_vm3, %v4031_v63  ;;  %v4473_v63 = vld [vmem:[#allocation8 + $0xf8] sm:$0xff] }
 0x9ab   :  { %5996 = vmatmul.msk.f32.gmra.mxu2 %vm240_vm1, %v4460_v37 }
 0x9ae   :  { %5966 = vmatmul.msk.f32.gmra.mxu0 %vm515_vm3, %v4032_v59 }
 0x9b3   :  { %5997 = vmatmul.msk.f32.gmra.mxu2 %vm240_vm1, %v4461_v46 }
 0x9b6   :  { %5967 = vmatmul.msk.f32.gmra.mxu0 %vm515_vm3, %v4033_v60 }
 0x9bb   :  { %5998 = vmatmul.msk.f32.gmra.mxu2 %vm240_vm1, %v4462_v34 }
 0x9be   :  { %5968 = vmatmul.msk.f32.gmra.mxu0 %vm515_vm3, %v4034_v54 }
 0x9c3   :  { %5999 = vmatmul.msk.f32.gmra.mxu2 %vm240_vm1, %v4463_v1 }
 0x9c6   :  { %5969 = vmatmul.msk.f32.gmra.mxu0 %vm515_vm3, %v4035_v38 }
 0x9cb   :  { %6000 = vmatmul.msk.f32.gmra.mxu2 %vm240_vm1, %v4464_v17 }
 0x9ce   :  { %5970 = vmatmul.msk.f32.gmra.mxu0 %vm515_vm3, %v4036_v2 }
 0x9d3   :  { %6001 = vmatmul.msk.f32.gmra.mxu2 %vm240_vm1, %v4465_v45 }
 0x9d6   :  { %5971 = vmatmul.msk.f32.gmra.mxu0 %vm515_vm3, %v4037_v5 }
 0x9db   :  { %6002 = vmatmul.msk.f32.gmra.mxu2 %vm240_vm1, %v4466_v22 }
 0x9de   :  { %5972 = vmatmul.msk.f32.gmra.mxu0 %vm515_vm3, %v4038_v12 }
 0x9e3   :  { %6003 = vmatmul.msk.f32.gmra.mxu2 %vm240_vm1, %v4467_v43 }
 0x9e6   :  { %5973 = vmatmul.msk.f32.gmra.mxu0 %vm515_vm3, %v4039_v13 }
 0x9eb   :  { %6004 = vmatmul.msk.f32.gmra.mxu2 %vm240_vm1, %v4468_v10 }
 0x9ee   :  { %5974 = vmatmul.msk.f32.gmra.mxu0 %vm515_vm3, %v4040_v42 }
 0x9f3   :  { %6005 = vmatmul.msk.f32.gmra.mxu2 %vm240_vm1, %v4469_v36  ;;  %v4301_v44 = vpop.f32.mrf.mxu1 }
 0x9f4   :  { %v4302_v48 = vadd.f32 %v9081_v26, %v4301_v44 }
 0x9f5   :  { %v4316_v39 = vpop.f32.mrf.mxu2 }
 0x9f6   :  { %5975 = vmatmul.msk.f32.gmra.mxu0 %vm515_vm3, %v4041_v56  ;;  %v4317_v3 = vadd.f32 %v9081_v26, %v4316_v39 }
 0x9f7   :  { %v4331_v35 = vpop.f32.mrf.mxu3 }
 0x9f8   :  { %6437 = vtanh.f32 %v4317_v3  ;;  %v4332_v40 = vadd.f32 %v9081_v26, %v4331_v35 }
 0x9fa   :  { %6439 = vtanh.f32 %v4332_v40 }
 0x9fb   :  { %6006 = vmatmul.msk.f32.gmra.mxu2 %vm240_vm1, %v4470_v21  ;;  %v4304_v6 = vpop.f32.mrf.mxu1 }
 0x9fc   :  { %v4305_v8 = vadd.f32 %v9081_v26, %v4304_v6 }
 0x9fe   :  { %5976 = vmatmul.msk.f32.gmra.mxu0 %vm515_vm3, %v4042_v15  ;;  %v4319_v51 = vpop.f32.mrf.mxu2  ;;  %v6438_v41 = vpop.eup %6437  ;;  %6441 = vtanh.f32 %v4305_v8 }
 0x9ff   :  { %v4371_v14 = vmul.f32 %v6438_v41, %v9094_v29  ;;  %v4320_v11 = vadd.f32 %v9081_v26, %v4319_v51 }
 0xa00   :  { %v6440_v16 = vpop.eup %6439  ;;  %v4334_v34 = vpop.f32.mrf.mxu3 }
 0xa01   :  { %v4399_v50 = vsel %vm240_vm1, %v4371_v14, 0.0  ;;  %v4376_v25 = vmul.f32 %v6440_v16, %v9094_v29  ;;  %6443 = vtanh.f32 %v4320_v11  ;;  %v4335_v1 = vadd.f32 %v9081_v26, %v4334_v34 }
 0xa02   :  { %4400 = vadd.xlane.f32.xlu2 %v4399_v50  ;;  %6445 = vtanh.f32 %v4302_v48 }
 0xa03   :  { %6007 = vmatmul.msk.f32.gmra.mxu2 %vm240_vm1, %v4471_v7  ;;  %v4414_v28 = vsel %vm240_vm1, %v4376_v25, 0.0  ;;  %6447 = vtanh.f32 %v4335_v1  ;;  %v4307_v43 = vpop.f32.mrf.mxu1 }
 0xa04   :  { %v6442_v59 = vpop.eup %6441  ;;  %v4308_v55 = vadd.f32 %v9081_v26, %v4307_v43 }
 0xa05   :  { %v4367_v23 = vmul.f32 %v6442_v59, %v9094_v29 }
 0xa06   :  { %5977 = vmatmul.msk.f32.gmra.mxu0 %vm515_vm3, %v4043_v4  ;;  %v4322_v9 = vpop.f32.mrf.mxu2  ;;  %6449 = vtanh.f32 %v4308_v55 }
 0xa07   :  { %v4387_v37 = vsel %vm240_vm1, %v4367_v23, 0.0  ;;  %v6444_v54 = vpop.eup %6443  ;;  %v4323_v39 = vadd.f32 %v9081_v26, %v4322_v9 }
 0xa08   :  { %v6446_v30 = vpop.eup %6445  ;;  %v4372_v61 = vmul.f32 %v6444_v54, %v9094_v29 }
 0xa09   :  { %v4366_v5 = vmul.f32 %v6446_v30, %v9094_v29  ;;  %v6448_v18 = vpop.eup %6447  ;;  %6451 = vtanh.f32 %v4323_v39 }
 0xa0a   :  { %4415 = vadd.xlane.f32.xlu2 %v4414_v28  ;;  %v4402_v45 = vsel %vm240_vm1, %v4372_v61, 0.0  ;;  %v4377_v56 = vmul.f32 %v6448_v18, %v9094_v29 }
 0xa0b   :  { %v4127_v33 = vpop.f32.mrf.mxu0  ;;  %6008 = vmatmul.msk.f32.gmra.mxu2 %vm240_vm1, %v4472_v58  ;;  %v4384_v19 = vsel %vm240_vm1, %v4366_v5, 0.0  ;;  %v4310_v14 = vpop.f32.mrf.mxu1 }
 0xa0c   :  { %v4128_v27 = vadd.f32 %v9089_v20, %v4127_v33  ;;  %4385 = vadd.xlane.f32.xlu0 %v4384_v19  ;;  %v4417_v36 = vsel %vm240_vm1, %v4377_v56, 0.0  ;;  %v6450_v51 = vpop.eup %6449 }
 0xa0d   :  { %v4368_v33 = vmul.f32 %v6450_v51, %v9094_v29 }
 0xa0e   :  { %v4175_v32 = vmax.f32 %v4128_v27, 0.0  ;;  %5978 = vmatmul.msk.f32.vlgmr.msrb.gmra.mxu0 %vm240_vm1, %v4214_v49  ;;  %v9112_v47 = vpop.f32.mrf.mxu2 }
 0xa0f   :  { %v4390_v7 = vsel %vm240_vm1, %v4368_v33, 0.0  ;;  %v6452_v27 = vpop.eup %6451 }
 0xa10   :  { %4192 = vst.msk [vmem:[#allocation8 + $0x100] sm:$0xff] %vm240_vm1, %v4175_v32  ;;  %v4311_v32 = vadd.f32 %v9081_v26, %v4310_v14  ;;  %v4373_v50 = vmul.f32 %v6452_v27, %v9094_v29 }
 0xa12   :  { %4388 = vadd.xlane.f32.xlu2 %v4387_v37  ;;  %6453 = vtanh.f32 %v4311_v32  ;;  %v4405_v16 = vsel %vm240_vm1, %v4373_v50, 0.0 }
 0xa13   :  { %v4130_v53 = vpop.f32.mrf.mxu0  ;;  %6009 = vmatmul.msk.f32.gmra.mxu2 %vm240_vm1, %v4473_v63 }
 0xa14   :  { %v4131_v57 = vadd.f32 %v9089_v20, %v4130_v53  ;;  %v4326_v53 = vadd.f32 %v9081_v26, %v9112_v47 }
 0xa16   :  { %v4176_v24 = vmax.f32 %v4131_v57, 0.0  ;;  %v9120_v46 = vpop.f32.mrf.mxu2  ;;  %6455 = vtanh.f32 %v4326_v53  ;;  %v4337_v53 = vpop.f32.mrf.mxu3 }
 0xa17   :  { %v4689_v0 = vld [vmem:[#allocation8 + $0x100] sm:$0xff]  ;;  %v4329_v34 = vadd.f32 %v9081_v26, %v9120_v46 }
 0xa18   :  { %4193 = vst.msk [vmem:[#allocation8 + $0x108] sm:$0xff] %vm240_vm1, %v4176_v24  ;;  %6010 = vmatmul.msk.f32.vlgmr.msrb.gmra.mxu3 %vm240_vm1, %v4689_v0  ;;  %v6454_v24 = vpop.eup %6453 }
 0xa19   :  { %v4369_v0 = vmul.f32 %v6454_v24, %v9094_v29 }
 0xa1a   :  { %4403 = vadd.xlane.f32.xlu2 %v4402_v45 }
 0xa1b   :  { %v4133_v52 = vpop.f32.mrf.mxu0  ;;  %v4393_v48 = vsel %vm240_vm1, %v4369_v0, 0.0 }
 0xa1c   :  { %v4134_v31 = vadd.f32 %v9089_v20, %v4133_v52  ;;  %v6456_v47 = vpop.eup %6455 }
 0xa1d   :  { %v4374_v30 = vmul.f32 %v6456_v47, %v9094_v29 }
 0xa1e   :  { %v4177_v62 = vmax.f32 %v4134_v31, 0.0  ;;  %v9130_v13 = vpop.f32.mrf.mxu2 }
 0xa1f   :  { %v4690_v60 = vld [vmem:[#allocation8 + $0x108] sm:$0xff]  ;;  %v4408_v1 = vsel %vm240_vm1, %v4374_v30, 0.0 }
 0xa20   :  { %4194 = vst.msk [vmem:[#allocation8 + $0x110] sm:$0xff] %vm240_vm1, %v4177_v62  ;;  %6011 = vmatmul.msk.f32.gmra.mxu3 %vm240_vm1, %v4690_v60  ;;  %v4313_v60 = vpop.f32.mrf.mxu1 }
 0xa21   :  { %v4314_v54 = vadd.f32 %v9081_v26, %v4313_v60 }
 0xa22   :  { %4418 = vadd.xlane.f32.xlu2 %v4417_v36 }
 0xa23   :  { %v4136_v38 = vpop.f32.mrf.mxu0 }
 0xa24   :  { %v4137_v2 = vadd.f32 %v9089_v20, %v4136_v38 }
 0xa26   :  { %v4178_v17 = vmax.f32 %v4137_v2, 0.0  ;;  %v9139_v3 = vpop.f32.mrf.mxu2 }
 0xa27   :  { %v4691_v12 = vld [vmem:[#allocation8 + $0x110] sm:$0xff] }
 0xa28   :  { %4195 = vst.msk [vmem:[#allocation8 + $0x118] sm:$0xff] %vm240_vm1, %v4178_v17  ;;  %6012 = vmatmul.msk.f32.gmra.mxu3 %vm240_vm1, %v4691_v12 }
 0xa2a   :  { %4391 = vadd.xlane.f32.xlu2 %v4390_v7 }
 0xa2b   :  { %v4139_v22 = vpop.f32.mrf.mxu0 }
 0xa2c   :  { %v4140_v42 = vadd.f32 %v9089_v20, %v4139_v22 }
 0xa2e   :  { %v4179_v10 = vmax.f32 %v4140_v42, 0.0  ;;  %v9146_v35 = vpop.f32.mrf.mxu2 }
 0xa2f   :  { %v4692_v15 = vld [vmem:[#allocation8 + $0x118] sm:$0xff]  ;;  %v4546_v43 = vadd.f32 %v9081_v26, %v9146_v35 }
 0xa30   :  { %4196 = vst.msk [vmem:[#allocation8 + $0x120] sm:$0xff] %vm240_vm1, %v4179_v10  ;;  %6013 = vmatmul.msk.f32.gmra.mxu3 %vm240_vm1, %v4692_v15 }
 0xa32   :  { %4406 = vadd.xlane.f32.xlu2 %v4405_v16  ;;  %v4338_v16 = vadd.f32 %v9081_v26, %v4337_v53 }
 0xa33   :  { %v4142_v4 = vpop.f32.mrf.mxu0 }
 0xa34   :  { %v4143_v21 = vadd.f32 %v9089_v20, %v4142_v4 }
 0xa36   :  { %v4180_v41 = vmax.f32 %v4143_v21, 0.0  ;;  %v4548_v57 = vpop.f32.mrf.mxu2 }
 0xa37   :  { %v4693_v49 = vld [vmem:[#allocation8 + $0x120] sm:$0xff]  ;;  %v4549_v6 = vadd.f32 %v9081_v26, %v4548_v57 }
 0xa38   :  { %4197 = vst.msk [vmem:[#allocation8 + $0x128] sm:$0xff] %vm240_vm1, %v4180_v41  ;;  %6014 = vmatmul.msk.f32.gmra.mxu3 %vm240_vm1, %v4693_v49  ;;  %v4540_v49 = vadd.f32 %v9081_v26, %v9130_v13  ;;  %v4543_v13 = vadd.f32 %v9081_v26, %v9139_v3 }
 0xa39   :  { %6457 = vtanh.f32 %v4549_v6 }
 0xa3a   :  { %4394 = vadd.xlane.f32.xlu2 %v4393_v48 }
 0xa3b   :  { %v4145_v44 = vpop.f32.mrf.mxu0 }
 0xa3c   :  { %v4146_v40 = vadd.f32 %v9089_v20, %v4145_v44 }
 0xa3e   :  { %v4181_v9 = vmax.f32 %v4146_v40, 0.0  ;;  %v4551_v52 = vpop.f32.mrf.mxu2 }
 0xa3f   :  { %v4694_v58 = vld [vmem:[#allocation8 + $0x128] sm:$0xff]  ;;  %v6458_v63 = vpop.eup %6457  ;;  %v4552_v31 = vadd.f32 %v9081_v26, %v4551_v52  ;;  %v4340_v52 = vpop.f32.mrf.mxu3 }
 0xa40   :  { %4198 = vst.msk [vmem:[#allocation8 + $0x130] sm:$0xff] %vm240_vm1, %v4181_v9  ;;  %6015 = vmatmul.msk.f32.gmra.mxu3 %vm240_vm1, %v4694_v58  ;;  %v4606_v62 = vmul.f32 %v6458_v63, %v9094_v29 }
 0xa41   :  { %6459 = vtanh.f32 %v4552_v31 }
 0xa42   :  { %v4628_v37 = vsel %vm240_vm1, %v4606_v62, 0.0  ;;  %6461 = vtanh.f32 %v4314_v54  ;;  %4409 = vadd.xlane.f32.xlu2 %v4408_v1  ;;  %v4341_v62 = vadd.f32 %v9081_v26, %v4340_v52 }
 0xa43   :  { %v4148_v8 = vpop.f32.mrf.mxu0  ;;  %4629 = vadd.xlane.f32.xlu0 %v4628_v37  ;;  %6463 = vtanh.f32 %v4329_v34 }
 0xa44   :  { %v4149_v25 = vadd.f32 %v9089_v20, %v4148_v8 }
 0xa46   :  { %v4182_v11 = vmax.f32 %v4149_v25, 0.0  ;;  %v4554_v61 = vpop.f32.mrf.mxu2 }
 0xa47   :  { %v4695_v28 = vld [vmem:[#allocation8 + $0x130] sm:$0xff]  ;;  %v6460_v5 = vpop.eup %6459  ;;  %v4555_v17 = vadd.f32 %v9081_v26, %v4554_v61 }
 0xa48   :  { %4199 = vst.msk [vmem:[#allocation8 + $0x138] sm:$0xff] %vm240_vm1, %v4182_v11  ;;  %6016 = vmatmul.msk.f32.gmra.mxu3 %vm240_vm1, %v4695_v28  ;;  %v4607_v45 = vmul.f32 %v6460_v5, %v9094_v29  ;;  %v6462_v19 = vpop.eup %6461 }
 0xa49   :  { %6465 = vtanh.f32 %v4555_v17  ;;  %v4370_v42 = vmul.f32 %v6462_v19, %v9094_v29  ;;  %v6464_v10 = vpop.eup %6463 }
 0xa4a   :  { %v4631_v22 = vsel %vm240_vm1, %v4607_v45, 0.0  ;;  %6467 = vtanh.f32 %v4546_v43  ;;  %v4375_v33 = vmul.f32 %v6464_v10, %v9094_v29 }
 0xa4b   :  { %v4151_v59 = vpop.f32.mrf.mxu0  ;;  %4632 = vadd.xlane.f32.xlu0 %v4631_v22  ;;  %v4396_v56 = vsel %vm240_vm1, %v4370_v42, 0.0 }
 0xa4c   :  { %v4152_v23 = vadd.f32 %v9089_v20, %v4151_v59  ;;  %4397 = vadd.xlane.f32.xlu2 %v4396_v56  ;;  %v4411_v27 = vsel %vm240_vm1, %v4375_v33, 0.0 }
 0xa4e   :  { %v4183_v38 = vmax.f32 %v4152_v23, 0.0  ;;  %v4557_v15 = vpop.f32.mrf.mxu2 }
 0xa4f   :  { %v9170_v2 = vld [vmem:[#allocation8 + $0x138] sm:$0xff]  ;;  %v6466_v36 = vpop.eup %6465  ;;  %v4558_v39 = vadd.f32 %v9081_v26, %v4557_v15 }
 0xa50   :  { %4200 = vst.msk [vmem:[#allocation8 + $0x140] sm:$0xff] %vm240_vm1, %v4183_v38  ;;  %6017 = vmatmul.msk.f32.gmra.mxu3 %vm240_vm1, %v9170_v2  ;;  %v4608_v21 = vmul.f32 %v6466_v36, %v9094_v29  ;;  %v6468_v44 = vpop.eup %6467 }
 0xa51   :  { %6469 = vtanh.f32 %v4558_v39  ;;  %v4605_v6 = vmul.f32 %v6468_v44, %v9094_v29 }
 0xa52   :  { %v4634_v41 = vsel %vm240_vm1, %v4608_v21, 0.0  ;;  %6471 = vtanh.f32 %v4540_v49 }
 0xa53   :  { %v4154_v12 = vpop.f32.mrf.mxu0  ;;  %4635 = vadd.xlane.f32.xlu0 %v4634_v41  ;;  %v4625_v3 = vsel %vm240_vm1, %v4605_v6, 0.0 }
 0xa54   :  { %v4155_v46 = vadd.f32 %v9089_v20, %v4154_v12  ;;  %4412 = vadd.xlane.f32.xlu2 %v4411_v27 }
 0xa56   :  { %v4184_v18 = vmax.f32 %v4155_v46, 0.0  ;;  %v4560_v40 = vpop.f32.mrf.mxu2  ;;  %v4343_v46 = vpop.f32.mrf.mxu3 }
 0xa57   :  { %v9183_v55 = vld [vmem:[#allocation8 + $0x140] sm:$0xff]  ;;  %v6470_v14 = vpop.eup %6469  ;;  %v4561_v32 = vadd.f32 %v9081_v26, %v4560_v40  ;;  %v4344_v42 = vadd.f32 %v9081_v26, %v4343_v46 }
 0xa58   :  { %4201 = vst.msk [vmem:[#allocation8 + $0x148] sm:$0xff] %vm240_vm1, %v4184_v18  ;;  %6018 = vmatmul.msk.f32.gmra.mxu3 %vm240_vm1, %v9183_v55  ;;  %v4609_v9 = vmul.f32 %v6470_v14, %v9094_v29  ;;  %v6472_v24 = vpop.eup %6471 }
 0xa59   :  { %6473 = vtanh.f32 %v4561_v32  ;;  %v4603_v63 = vmul.f32 %v6472_v24, %v9094_v29 }
 0xa5a   :  { %v4637_v57 = vsel %vm240_vm1, %v4609_v9, 0.0  ;;  %6475 = vtanh.f32 %v4338_v16 }
 0xa5b   :  { %v4157_v4 = vpop.f32.mrf.mxu0  ;;  %4638 = vadd.xlane.f32.xlu0 %v4637_v57  ;;  %6477 = vtanh.f32 %v4543_v13  ;;  %v4619_v37 = vsel %vm240_vm1, %v4603_v63, 0.0 }
 0xa5c   :  { %v4158_v51 = vadd.f32 %v9089_v20, %v4157_v4  ;;  %4626 = vadd.xlane.f32.xlu2 %v4625_v3  ;;  %4620 = vadd.xlane.f32.xlu1 %v4619_v37 }
 0xa5e   :  { %v4185_v7 = vmax.f32 %v4158_v51, 0.0  ;;  %v4563_v11 = vpop.f32.mrf.mxu2 }
 0xa5f   :  { %v9196_v35 = vld [vmem:[#allocation8 + $0x148] sm:$0xff]  ;;  %v6474_v0 = vpop.eup %6473  ;;  %v4564_v28 = vadd.f32 %v9081_v26, %v4563_v11 }
 0xa60   :  { %4202 = vst.msk [vmem:[#allocation8 + $0x150] sm:$0xff] %vm240_vm1, %v4185_v7  ;;  %6019 = vmatmul.msk.f32.gmra.mxu3 %vm240_vm1, %v9196_v35  ;;  %v4610_v47 = vmul.f32 %v6474_v0, %v9094_v29  ;;  %v6476_v31 = vpop.eup %6475 }
 0xa61   :  { %6479 = vtanh.f32 %v4564_v28  ;;  %v6478_v23 = vpop.eup %6477  ;;  %v4378_v54 = vmul.f32 %v6476_v31, %v9094_v29 }
 0xa62   :  { %v4640_v60 = vsel %vm240_vm1, %v4610_v47, 0.0  ;;  %6481 = vtanh.f32 %v4341_v62  ;;  %v4604_v1 = vmul.f32 %v6478_v23, %v9094_v29 }
 0xa63   :  { %v4160_v50 = vpop.f32.mrf.mxu0  ;;  %4641 = vadd.xlane.f32.xlu0 %v4640_v60  ;;  %v4420_v34 = vsel %vm240_vm1, %v4378_v54, 0.0 }
 0xa64   :  { %v4161_v58 = vadd.f32 %v9089_v20, %v4160_v50  ;;  %4421 = vadd.xlane.f32.xlu2 %v4420_v34  ;;  %v4622_v19 = vsel %vm240_vm1, %v4604_v1, 0.0 }
 0xa65   :  { %4623 = vadd.xlane.f32.xlu1 %v4622_v19 }
 0xa66   :  { %v4186_v8 = vmax.f32 %v4161_v58, 0.0  ;;  %v4566_v61 = vpop.f32.mrf.mxu2 }
 0xa67   :  { %v9210_v25 = vld [vmem:[#allocation8 + $0x150] sm:$0xff]  ;;  %v6480_v5 = vpop.eup %6479  ;;  %v4567_v17 = vadd.f32 %v9081_v26, %v4566_v61 }
 0xa68   :  { %4203 = vst.msk [vmem:[#allocation8 + $0x158] sm:$0xff] %vm240_vm1, %v4186_v8  ;;  %6020 = vmatmul.msk.f32.gmra.mxu3 %vm240_vm1, %v9210_v25  ;;  %v4611_v45 = vmul.f32 %v6480_v5, %v9094_v29  ;;  %v6482_v22 = vpop.eup %6481 }
 0xa69   :  { %6483 = vtanh.f32 %v4567_v17  ;;  %v4379_v56 = vmul.f32 %v6482_v22, %v9094_v29 }
 0xa6a   :  { %v4643_v43 = vsel %vm240_vm1, %v4611_v45, 0.0  ;;  %6485 = vtanh.f32 %v4344_v42 }
 0xa6b   :  { %v4163_v48 = vpop.f32.mrf.mxu0  ;;  %4644 = vadd.xlane.f32.xlu0 %v4643_v43  ;;  %v4423_v36 = vsel %vm240_vm1, %v4379_v56, 0.0 }
 0xa6c   :  { %v4164_v59 = vadd.f32 %v9089_v20, %v4163_v48  ;;  %4424 = vadd.xlane.f32.xlu2 %v4423_v36 }
 0xa6e   :  { %v4187_v30 = vmax.f32 %v4164_v59, 0.0  ;;  %v4569_v39 = vpop.f32.mrf.mxu2 }
 0xa6f   :  { %v9224_v38 = vld [vmem:[#allocation8 + $0x158] sm:$0xff]  ;;  %v6484_v4 = vpop.eup %6483  ;;  %v4570_v21 = vadd.f32 %v9081_v26, %v4569_v39 }
 0xa70   :  { %4204 = vst.msk [vmem:[#allocation8 + $0x160] sm:$0xff] %vm240_vm1, %v4187_v30  ;;  %6021 = vmatmul.msk.f32.gmra.mxu3 %vm240_vm1, %v9224_v38  ;;  %v4612_v41 = vmul.f32 %v6484_v4, %v9094_v29  ;;  %v6486_v33 = vpop.eup %6485 }
 0xa71   :  { %6487 = vtanh.f32 %v4570_v21  ;;  %v4380_v27 = vmul.f32 %v6486_v33, %v9094_v29 }
 0xa72   :  { %v4646_v7 = vsel %vm240_vm1, %v4612_v41, 0.0 }
 0xa73   :  { %v4166_v12 = vpop.f32.mrf.mxu0  ;;  %4647 = vadd.xlane.f32.xlu0 %v4646_v7  ;;  %v4426_v14 = vsel %vm240_vm1, %v4380_v27, 0.0 }
 0xa74   :  { %v4167_v18 = vadd.f32 %v9089_v20, %v4166_v12  ;;  %4427 = vadd.xlane.f32.xlu2 %v4426_v14 }
 0xa75   :  { %v9257_v58 = vpop.xlane.xlu2 %4400 }
 0xa76   :  { %v4188_v10 = vmax.f32 %v4167_v18, 0.0  ;;  %v4572_v32 = vpop.f32.mrf.mxu2 }
 0xa77   :  { %v9238_v15 = vld [vmem:[#allocation8 + $0x160] sm:$0xff]  ;;  %v6488_v13 = vpop.eup %6487  ;;  %v4573_v50 = vadd.f32 %v9081_v26, %v4572_v32 }
 0xa78   :  { %4205 = vst.msk [vmem:[#allocation8 + $0x168] sm:$0xff] %vm240_vm1, %v4188_v10  ;;  %6022 = vmatmul.msk.f32.gmra.mxu3 %vm240_vm1, %v9238_v15  ;;  %v4613_v53 = vmul.f32 %v6488_v13, %v9094_v29 }
 0xa79   :  { %6489 = vtanh.f32 %v4573_v50 }
 0xa7a   :  { %v4649_v57 = vsel %vm240_vm1, %v4613_v53, 0.0 }
 0xa7b   :  { %v4169_v51 = vpop.f32.mrf.mxu0  ;;  %4650 = vadd.xlane.f32.xlu0 %v4649_v57 }
 0xa7c   :  { %v4170_v49 = vadd.f32 %v9089_v20, %v4169_v51 }
 0xa7d   :  { %v9267_v0 = vpop.xlane.xlu2 %4415 }
 0xa7e   :  { %v4189_v44 = vmax.f32 %v4170_v49, 0.0  ;;  %v4575_v47 = vpop.f32.mrf.mxu2 }
 0xa7f   :  { %v9249_v40 = vld [vmem:[#allocation8 + $0x168] sm:$0xff]  ;;  %v6490_v3 = vpop.eup %6489  ;;  %v4576_v60 = vadd.f32 %v9081_v26, %v4575_v47  ;;  %v9307_v57 = vpop.xlane.xlu0 %4385 }
 0xa80   :  { %4206 = vst.msk [vmem:[#allocation8 + $0x170] sm:$0xff] %vm240_vm1, %v4189_v44  ;;  %6023 = vmatmul.msk.f32.gmra.mxu3 %vm240_vm1, %v9249_v40  ;;  %v4614_v11 = vmul.f32 %v6490_v3, %v9094_v29 }
 0xa82   :  { %v4652_v28 = vsel %vm240_vm1, %v4614_v11, 0.0 }
 0xa83   :  { %v4172_v9 = vpop.f32.mrf.mxu0  ;;  %4653 = vadd.xlane.f32.xlu0 %v4652_v28 }
 0xa84   :  { %v4173_v16 = vadd.f32 %v9089_v20, %v4172_v9 }
 0xa85   :  { %v9275_v63 = vpop.xlane.xlu2 %4388 }
 0xa86   :  { %v4190_v6 = vmax.f32 %v4173_v16, 0.0  ;;  %v4578_v54 = vpop.f32.mrf.mxu2 }
 0xa87   :  { %v9261_v8 = vld [vmem:[#allocation8 + $0x170] sm:$0xff]  ;;  %v4579_v61 = vadd.f32 %v9081_v26, %v4578_v54 }
 0xa88   :  { %4207 = vst.msk [vmem:[#allocation8 + $0x178] sm:$0xff] %vm240_vm1, %v4190_v6  ;;  %6024 = vmatmul.msk.f32.gmra.mxu3 %vm240_vm1, %v9261_v8 }
 0xa8b   :  { %v4298_v24 = vpop.f32.mrf.mxu0 }
 0xa8c   :  { %v4299_v20 = vadd.f32 %v9081_v26, %v4298_v24 }
 0xa8d   :  { %v9281_v37 = vpop.xlane.xlu2 %4403 }
 0xa8e   :  { %6491 = vtanh.f32 %v4299_v20  ;;  %v4581_v46 = vpop.f32.mrf.mxu2 }
 0xa8f   :  { %v9271_v48 = vld [vmem:[#allocation8 + $0x178] sm:$0xff]  ;;  %v4582_v43 = vadd.f32 %v9081_v26, %v4581_v46 }
 0xa90   :  { %6025 = vmatmul.msk.f32.gmra.mxu3 %vm240_vm1, %v9271_v48 }
 0xa94   :  { %v6492_v52 = vpop.eup %6491 }
 0xa95   :  { %v4365_v31 = vmul.f32 %v6492_v52, %v9094_v29  ;;  %v9286_v17 = vpop.xlane.xlu2 %4418 }
 0xa96   :  { %v4584_v51 = vpop.f32.mrf.mxu2 }
 0xa97   :  { %v4381_v59 = vsel %vm240_vm1, %v4365_v31, 0.0  ;;  %v4585_v7 = vadd.f32 %v9081_v26, %v4584_v51 }
 0xa98   :  { %4382 = vadd.xlane.f32.xlu0 %v4381_v59 }
 0xa9b   :  { %v4770_v62 = vpop.f32.mrf.mxu3 }
 0xa9c   :  { %v4771_v23 = vadd.f32 %v9081_v26, %v4770_v62 }
 0xa9d   :  { %v9295_v4 = vpop.xlane.xlu2 %4391 }
 0xa9e   :  { %6493 = vtanh.f32 %v4771_v23 }
 0xa9f   :  { %6495 = vtanh.f32 %v4576_v60 }
 0xaa3   :  { %v4773_v30 = vpop.f32.mrf.mxu3 }
 0xaa4   :  { %v6494_v34 = vpop.eup %6493  ;;  %v4774_v1 = vadd.f32 %v9081_v26, %v4773_v30 }
 0xaa5   :  { %v4834_v5 = vmul.f32 %v6494_v34, %v9094_v29  ;;  %v6496_v12 = vpop.eup %6495  ;;  %v9304_v50 = vpop.xlane.xlu2 %4406 }
 0xaa6   :  { %6497 = vtanh.f32 %v4774_v1  ;;  %v4615_v19 = vmul.f32 %v6496_v12, %v9094_v29 }
 0xaa7   :  { %v4850_v45 = vsel %vm240_vm1, %v4834_v5, 0.0  ;;  %6499 = vtanh.f32 %v4579_v61 }
 0xaa8   :  { %4851 = vadd.xlane.f32.xlu0 %v4850_v45  ;;  %v4655_v10 = vsel %vm240_vm1, %v4615_v19, 0.0 }
 0xaab   :  { %v4776_v22 = vpop.f32.mrf.mxu3 }
 0xaac   :  { %v6498_v18 = vpop.eup %6497  ;;  %v4777_v42 = vadd.f32 %v9081_v26, %v4776_v22 }
 0xaad   :  { %v4835_v56 = vmul.f32 %v6498_v18, %v9094_v29  ;;  %v6500_v36 = vpop.eup %6499  ;;  %v9313_v47 = vpop.xlane.xlu2 %4394 }
 0xaae   :  { %6501 = vtanh.f32 %v4777_v42  ;;  %v4616_v21 = vmul.f32 %v6500_v36, %v9094_v29 }
 0xaaf   :  { %v4853_v39 = vsel %vm240_vm1, %v4835_v56, 0.0  ;;  %6503 = vtanh.f32 %v4582_v43 }
 0xab0   :  { %4854 = vadd.xlane.f32.xlu1 %v4853_v39  ;;  %4656 = vadd.xlane.f32.xlu0 %v4655_v10  ;;  %v4658_v44 = vsel %vm240_vm1, %v4616_v21, 0.0 }
 0xab3   :  { %v4779_v41 = vpop.f32.mrf.mxu3 }
 0xab4   :  { %v6502_v33 = vpop.eup %6501  ;;  %v4780_v49 = vadd.f32 %v9081_v26, %v4779_v41 }
 0xab5   :  { %v4836_v27 = vmul.f32 %v6502_v33, %v9094_v29  ;;  %v6504_v14 = vpop.eup %6503  ;;  %v9321_v61 = vpop.xlane.xlu2 %4409 }
 0xab6   :  { %6505 = vtanh.f32 %v4780_v49  ;;  %v4617_v13 = vmul.f32 %v6504_v14, %v9094_v29  ;;  %v4630_v23 = vpop.xlane.xlu0 %4629 }
 0xab7   :  { %v4856_v32 = vsel %vm240_vm1, %v4836_v27, 0.0  ;;  %6507 = vtanh.f32 %v4585_v7 }
 0xab8   :  { %4857 = vadd.xlane.f32.xlu1 %v4856_v32  ;;  %4659 = vadd.xlane.f32.xlu0 %v4658_v44  ;;  %v4661_v3 = vsel %vm240_vm1, %v4617_v13, 0.0 }
 0xabb   :  { %v4782_v9 = vpop.f32.mrf.mxu3 }
 0xabc   :  { %v6506_v53 = vpop.eup %6505  ;;  %v4783_v16 = vadd.f32 %v9081_v26, %v4782_v9 }
 0xabd   :  { %v4837_v6 = vmul.f32 %v6506_v53, %v9094_v29  ;;  %v6508_v24 = vpop.eup %6507 }
 0xabe   :  { %6509 = vtanh.f32 %v4783_v16  ;;  %v4618_v20 = vmul.f32 %v6508_v24, %v9094_v29  ;;  %v4633_v12 = vpop.xlane.xlu0 %4632 }
 0xabf   :  { %v4859_v11 = vsel %vm240_vm1, %v4837_v6, 0.0  ;;  %v9327_v42 = vpop.xlane.xlu2 %4397 }
 0xac0   :  { %4860 = vadd.xlane.f32.xlu1 %v4859_v11  ;;  %4662 = vadd.xlane.f32.xlu0 %v4661_v3  ;;  %v4664_v62 = vsel %vm240_vm1, %v4618_v20, 0.0 }
 0xac3   :  { %v4785_v28 = vpop.f32.mrf.mxu3 }
 0xac4   :  { %v6510_v52 = vpop.eup %6509  ;;  %v4786_v31 = vadd.f32 %v9081_v26, %v4785_v28 }
 0xac5   :  { %v4838_v59 = vmul.f32 %v6510_v52, %v9094_v29 }
 0xac6   :  { %6511 = vtanh.f32 %v4786_v31  ;;  %v4636_v43 = vpop.xlane.xlu0 %4635 }
 0xac7   :  { %v4862_v60 = vsel %vm240_vm1, %v4838_v59, 0.0  ;;  %v9332_v51 = vpop.xlane.xlu2 %4412 }
 0xac8   :  { %4863 = vadd.xlane.f32.xlu1 %v4862_v60  ;;  %4665 = vadd.xlane.f32.xlu0 %v4664_v62 }
 0xacb   :  { %v4788_v54 = vpop.f32.mrf.mxu3 }
 0xacc   :  { %v6512_v30 = vpop.eup %6511  ;;  %v4789_v34 = vadd.f32 %v9081_v26, %v4788_v54 }
 0xacd   :  { %v4839_v1 = vmul.f32 %v6512_v30, %v9094_v29 }
 0xace   :  { %6513 = vtanh.f32 %v4789_v34  ;;  %v4639_v27 = vpop.xlane.xlu0 %4638 }
 0xacf   :  { %v4865_v5 = vsel %vm240_vm1, %v4839_v1, 0.0  ;;  %v4621_v41 = vpop.xlane.xlu1 %4620  ;;  %v4627_v53 = vpop.xlane.xlu2 %4626 }
 0xad0   :  { %4866 = vadd.xlane.f32.xlu1 %v4865_v5 }
 0xad3   :  { %v4791_v45 = vpop.f32.mrf.mxu3 }
 0xad4   :  { %v6514_v46 = vpop.eup %6513  ;;  %v4792_v19 = vadd.f32 %v9081_v26, %v4791_v45 }
 0xad5   :  { %v4840_v22 = vmul.f32 %v6514_v46, %v9094_v29 }
 0xad6   :  { %6515 = vtanh.f32 %v4792_v19  ;;  %v4642_v20 = vpop.xlane.xlu0 %4641 }
 0xad7   :  { %v4868_v18 = vsel %vm240_vm1, %v4840_v22, 0.0 }
 0xad8   :  { %4869 = vadd.xlane.f32.xlu1 %v4868_v18  ;;  %v4624_v32 = vpop.xlane.xlu1 %4623 }
 0xad9   :  { %v4667_v13 = vadd.f32 %v4624_v32, %v4621_v41 }
 0xadb   :  { %v4794_v56 = vpop.f32.mrf.mxu3  ;;  %v4668_v3 = vadd.f32 %v4667_v13, %v4627_v53 }
 0xadc   :  { %v6516_v10 = vpop.eup %6515  ;;  %v4795_v36 = vadd.f32 %v9081_v26, %v4794_v56 }
 0xadd   :  { %v4841_v39 = vmul.f32 %v6516_v10, %v9094_v29  ;;  %v4669_v11 = vadd.f32 %v4668_v3, %v4630_v23 }
 0xade   :  { %6517 = vtanh.f32 %v4795_v36  ;;  %v4645_v23 = vpop.xlane.xlu0 %4644 }
 0xadf   :  { %v4871_v21 = vsel %vm240_vm1, %v4841_v39, 0.0  ;;  %v4670_v52 = vadd.f32 %v4669_v11, %v4633_v12 }
 0xae0   :  { %4872 = vadd.xlane.f32.xlu1 %v4871_v21 }
 0xae1   :  { %v4671_v31 = vadd.f32 %v4670_v52, %v4636_v43 }
 0xae3   :  { %v4797_v33 = vpop.f32.mrf.mxu3  ;;  %v4672_v54 = vadd.f32 %v4671_v31, %v4639_v27 }
 0xae4   :  { %v6518_v49 = vpop.eup %6517  ;;  %v4798_v7 = vadd.f32 %v9081_v26, %v4797_v33 }
 0xae5   :  { %v4842_v44 = vmul.f32 %v6518_v49, %v9094_v29  ;;  %v9342_v34 = vadd.f32 %v4672_v54, %v4642_v20 }
 0xae6   :  { %6519 = vtanh.f32 %v4798_v7  ;;  %v4648_v22 = vpop.xlane.xlu0 %4647 }
 0xae7   :  { %v4874_v14 = vsel %vm240_vm1, %v4842_v44, 0.0 }
 0xae8   :  { %4875 = vadd.xlane.f32.xlu1 %v4874_v14 }
 0xaeb   :  { %v4800_v9 = vpop.f32.mrf.mxu3 }
 0xaec   :  { %v6520_v16 = vpop.eup %6519  ;;  %v4801_v6 = vadd.f32 %v9081_v26, %v4800_v9 }
 0xaed   :  { %v4843_v24 = vmul.f32 %v6520_v16, %v9094_v29 }
 0xaee   :  { %6521 = vtanh.f32 %v4801_v6  ;;  %v4651_v33 = vpop.xlane.xlu0 %4650 }
 0xaef   :  { %v4877_v28 = vsel %vm240_vm1, %v4843_v24, 0.0 }
 0xaf0   :  { %4878 = vadd.xlane.f32.xlu1 %v4877_v28 }
 0xaf3   :  { %v4803_v59 = vpop.f32.mrf.mxu3 }
 0xaf4   :  { %v6522_v62 = vpop.eup %6521  ;;  %v4804_v60 = vadd.f32 %v9081_v26, %v4803_v59 }
 0xaf5   :  { %v4844_v30 = vmul.f32 %v6522_v62, %v9094_v29 }
 0xaf6   :  { %6523 = vtanh.f32 %v4804_v60  ;;  %v4654_v13 = vpop.xlane.xlu0 %4653 }
 0xaf7   :  { %v4880_v1 = vsel %vm240_vm1, %v4844_v30, 0.0 }
 0xaf8   :  { %4881 = vadd.xlane.f32.xlu1 %v4880_v1 }
 0xafb   :  { %v4806_v5 = vpop.f32.mrf.mxu3 }
 0xafc   :  { %v6524_v45 = vpop.eup %6523  ;;  %v4807_v46 = vadd.f32 %v9081_v26, %v4806_v5 }
 0xafd   :  { %v4845_v12 = vmul.f32 %v6524_v45, %v9094_v29 }
 0xafe   :  { %6525 = vtanh.f32 %v4807_v46 }
 0xaff   :  { %v4883_v19 = vsel %vm240_vm1, %v4845_v12, 0.0 }
 0xb00   :  { %4884 = vadd.xlane.f32.xlu1 %v4883_v19 }
 0xb03   :  { %v4809_v18 = vpop.f32.mrf.mxu3 }
 0xb04   :  { %v6526_v43 = vpop.eup %6525  ;;  %v4810_v56 = vadd.f32 %v9081_v26, %v4809_v18 }
 0xb05   :  { %v4846_v10 = vmul.f32 %v6526_v43, %v9094_v29 }
 0xb06   :  { %6527 = vtanh.f32 %v4810_v56 }
 0xb07   :  { %v4886_v36 = vsel %vm240_vm1, %v4846_v10, 0.0 }
 0xb08   :  { %4887 = vadd.xlane.f32.xlu1 %v4886_v36  ;;  %v4674_v36 = vadd.f32 %v9342_v34, %v4645_v23 }
 0xb0b   :  { %v4812_v39 = vpop.f32.mrf.mxu3  ;;  %v4383_v3 = vpop.xlane.xlu0 %4382 }
 0xb0c   :  { %v6528_v21 = vpop.eup %6527  ;;  %v4813_v41 = vadd.f32 %v9081_v26, %v4812_v39  ;;  %v4429_v54 = vadd.f32 %v9307_v57, %v4383_v3  ;;  %v4675_v39 = vadd.f32 %v4674_v36, %v4648_v22 }
 0xb0d   :  { %v4847_v49 = vmul.f32 %v6528_v21, %v9094_v29 }
 0xb0e   :  { %6529 = vtanh.f32 %v4813_v41  ;;  %v4430_v30 = vadd.f32 %v4429_v54, %v9275_v63  ;;  %v4676_v41 = vadd.f32 %v4675_v39, %v4651_v33 }
 0xb0f   :  { %v4889_v7 = vsel %vm240_vm1, %v4847_v49, 0.0 }
 0xb10   :  { %4890 = vadd.xlane.f32.xlu1 %v4889_v7  ;;  %v4677_v7 = vadd.f32 %v4676_v41, %v4654_v13 }
 0xb13   :  { %v4815_v27 = vpop.f32.mrf.mxu3 }
 0xb14   :  { %v6530_v44 = vpop.eup %6529  ;;  %v4816_v14 = vadd.f32 %v9081_v26, %v4815_v27 }
 0xb15   :  { %v4848_v32 = vmul.f32 %v6530_v44, %v9094_v29 }
 0xb16   :  { %6531 = vtanh.f32 %v4816_v14 }
 0xb17   :  { %v4892_v9 = vsel %vm240_vm1, %v4848_v32, 0.0 }
 0xb18   :  { %4893 = vadd.xlane.f32.xlu1 %v4892_v9 }
 0xb1b   :  { %v4852_v11 = vpop.xlane.xlu0 %4851 }
 0xb1c   :  { %v6532_v53 = vpop.eup %6531 }
 0xb1d   :  { %v4849_v16 = vmul.f32 %v6532_v53, %v9094_v29  ;;  %v4431_v29 = vadd.f32 %v4430_v30, %v9295_v4  ;;  %v4422_v4 = vpop.xlane.xlu2 %4421 }
 0xb1f   :  { %v4895_v6 = vsel %vm240_vm1, %v4849_v16, 0.0  ;;  %v4432_v5 = vadd.f32 %v4431_v29, %v9313_v47  ;;  %v6677_v16 = vmov 128.0  }
 0xb20   :  { %4896 = vadd.xlane.f32.xlu2 %v4895_v6  ;;  %6533 = vrcp.f32 %v6677_v16 }
 0xb21   :  { %v4433_v46 = vadd.f32 %v4432_v5, %v9327_v42 }
 0xb23   :  { %v4855_v24 = vpop.xlane.xlu1 %4854  ;;  %v4434_v12 = vadd.f32 %v4433_v46, %v9257_v58  ;;  %v4657_v19 = vpop.xlane.xlu0 %4656 }
 0xb24   :  { %v4898_v20 = vadd.f32 %v4855_v24, %v4852_v11  ;;  %v4678_v44 = vadd.f32 %v4677_v7, %v4657_v19 }
 0xb25   :  { %v4435_v43 = vadd.f32 %v4434_v12, %v9281_v37  ;;  %v4425_v37 = vpop.xlane.xlu2 %4424 }
 0xb26   :  { %v6534_v11 = vpop.eup %6533 }
 0xb27   :  { %v4436_v56 = vadd.f32 %v4435_v43, %v9304_v50  ;;  %vm4455_vm5 = vweird.f32 %v6534_v11 }
 0xb29   :  { %v4437_v63 = vadd.f32 %v4436_v56, %v9321_v61 }
 0xb2b   :  { %v4858_v28 = vpop.xlane.xlu1 %4857  ;;  %v4660_v10 = vpop.xlane.xlu0 %4659  ;;  %v4438_v47 = vadd.f32 %v4437_v63, %v9332_v51 }
 0xb2c   :  { %v4899_v52 = vadd.f32 %v4898_v20, %v4858_v28  ;;  %v4679_v14 = vadd.f32 %v4678_v44, %v4660_v10 }
 0xb2d   :  { %v4439_v42 = vadd.f32 %v4438_v47, %v9267_v0  ;;  %v4428_v53 = vpop.xlane.xlu2 %4427 }
 0xb2f   :  { %v4440_v49 = vadd.f32 %v4439_v42, %v9286_v17 }
 0xb31   :  { %v4441_v27 = vadd.f32 %v4440_v49, %v4422_v4 }
 0xb33   :  { %v4861_v26 = vpop.xlane.xlu1 %4860  ;;  %v4663_v58 = vpop.xlane.xlu0 %4662  ;;  %v4442_v34 = vadd.f32 %v4441_v27, %v4425_v37 }
 0xb34   :  { %v4900_v31 = vadd.f32 %v4899_v52, %v4861_v26  ;;  %v4680_v23 = vadd.f32 %v4679_v14, %v4663_v58  ;;  %v5034_v14 = vld [vmem:[%s9599_s18 + $0x18] sm:$0xff] }
 0xb35   :  { %v4443_v0 = vadd.f32 %v4442_v34, %v4428_v53  ;;  %5099 = vmatpush.msrb.mxu1 %v5034_v14 }
 0xb37   :  { %v4444_v13 = vrot.slane %v4443_v0, 4 }
 0xb39   :  { %v4445_v52 = vadd.f32 %v4444_v13, %v4443_v0 }
 0xb3b   :  { %v4864_v59 = vpop.xlane.xlu1 %4863  ;;  %v4666_v32 = vpop.xlane.xlu0 %4665 }
 0xb3c   :  { %v4901_v61 = vadd.f32 %v4900_v31, %v4864_v59  ;;  %v4681_v51 = vadd.f32 %v4680_v23, %v4666_v32  ;;  %v4451_v31 = vmul.f32 128.0, %v6534_v11 }
 0xb3e   :  { %v4682_v17 = vrot.slane %v4681_v51, 4  ;;  %v4452_v29 = vsub.f32 1.0, %v4451_v31 }
 0xb40   :  { %v4683_v20 = vadd.f32 %v4682_v17, %v4681_v51  ;;  %v5031_v51 = vld [vmem:[%s9599_s18] sm:$0xff] }
 0xb42   :  { %v4684_v59 = vrot.slane %v4683_v20, 2 }
 0xb43   :  { %v4867_v62 = vpop.xlane.xlu1 %4866 }
 0xb44   :  { %v4902_v9 = vadd.f32 %v4901_v61, %v4867_v62  ;;  %v4685_v5 = vadd.f32 %v4684_v59, %v4683_v20  ;;  %v5033_v61 = vld [vmem:[%s9599_s18 + $0x10] sm:$0xff] }
 0xb45   :  { %5100 = vmatpush.msrb.mxu1 %v5033_v61  ;;  %v6556_v61 = vld [vmem:[#allocation8 + $0xa0] sm:$0xff] }
 0xb46   :  { %v4686_v43 = vrot.slane %v4685_v5, 1 }
 0xb48   :  { %v4687_v63 = vadd.f32 %v4686_v43, %v4685_v5  ;;  %v6545_v5 = vld [vmem:[#allocation8 + $0x8] sm:$0xff]  ;;  %v6548_v43 = vld [vmem:[#allocation8 + $0x10] sm:$0xff] }
 0xb4b   :  { %v4870_v60 = vpop.xlane.xlu1 %4869 }
 0xb4c   :  { %v4903_v22 = vadd.f32 %v4902_v9, %v4870_v60  ;;  %v4446_v60 = vrot.slane %v4445_v52, 2  ;;  %v5032_v9 = vld [vmem:[%s9599_s18 + $0x8] sm:$0xff] }
 0xb4d   :  { %5101 = vmatpush.msrb.mxu1 %v5032_v9  ;;  %v6557_v9 = vld [vmem:[#allocation8 + $0x28] sm:$0xff] }
 0xb4e   :  { %v4447_v12 = vadd.f32 %v4446_v60, %v4445_v52 }
 0xb4f   :  { %5102 = vmatpush.msrb.mxu1 %v5031_v51 }
 0xb50   :  { %v4448_v56 = vrot.slane %v4447_v12, 1 }
 0xb52   :  { %v4449_v4 = vadd.f32 %v4448_v56, %v4447_v12  ;;  %v6549_v56 = vld [vmem:[#allocation8 + $0x90] sm:$0xff] }
 0xb53   :  { %v4873_v1 = vpop.xlane.xlu1 %4872 }
 0xb54   :  { %v4904_v33 = vadd.f32 %v4903_v22, %v4873_v1 }
 0xb5b   :  { %v4876_v45 = vpop.xlane.xlu1 %4875 }
 0xb5c   :  { %v4905_v3 = vadd.f32 %v4904_v33, %v4876_v45  ;;  %v4453_v45 = vmul.f32 %v6534_v11, %v4452_v29 }
 0xb63   :  { %v4879_v18 = vpop.xlane.xlu1 %4878 }
 0xb64   :  { %v4906_v24 = vadd.f32 %v4905_v3, %v4879_v18 }
 0xb6b   :  { %v4882_v57 = vpop.xlane.xlu1 %4881 }
 0xb6c   :  { %v4907_v28 = vadd.f32 %v4906_v24, %v4882_v57  ;;  %v4454_v57 = vadd.f32 %v6534_v11, %v4453_v45 }
 0xb6e   :  { %v4456_v39 = vsel %vm4455_vm5, %v6534_v11, %v4454_v57 }
 0xb6f   :  { %v4457_v58 = vmul.f32 %v4456_v39, %v4449_v4  ;;  %v6551_v4 = vld [vmem:[#allocation8 + $0x18] sm:$0xff] }
 0xb73   :  { %v4885_v21 = vpop.xlane.xlu1 %4884 }
 0xb74   :  { %v4908_v26 = vadd.f32 %v4907_v28, %v4885_v21  ;;  %v4688_v21 = vmul.f32 %v4687_v63, %v4456_v39  ;;  %v6550_v63 = vld [vmem:[#allocation8 + $0x108] sm:$0xff] }
 0xb76   :  { %v4920_v49 = vmax.f32 %v4457_v58, %v4688_v21 }
 0xb7b   :  { %v4888_v50 = vpop.xlane.xlu1 %4887 }
 0xb7c   :  { %v4909_v62 = vadd.f32 %v4908_v26, %v4888_v50 }
 0xb83   :  { %v4891_v6 = vpop.xlane.xlu1 %4890 }
 0xb84   :  { %v4910_v30 = vadd.f32 %v4909_v62, %v4891_v6 }
 0xb8b   :  { %v4894_v54 = vpop.xlane.xlu1 %4893 }
 0xb8c   :  { %v4911_v46 = vadd.f32 %v4910_v30, %v4894_v54  ;;  %v6543_v54 = vld [vmem:[#allocation8] sm:$0xff] }
 0xb8d   :  { %v6544_v30 = vld [vmem:[#allocation8 + $0x80] sm:$0xff] }
 0xb93   :  { %v4897_v1 = vpop.xlane.xlu2 %4896 }
 0xb94   :  { %v4912_v19 = vadd.f32 %v4911_v46, %v4897_v1  ;;  %v6546_v1 = vld [vmem:[#allocation8 + $0x100] sm:$0xff] }
 0xb96   :  { %v4913_v18 = vrot.slane %v4912_v19, 4 }
 0xb98   :  { %v4914_v10 = vadd.f32 %v4913_v18, %v4912_v19  ;;  %v6547_v19 = vld [vmem:[#allocation8 + $0x88] sm:$0xff] }
 0xb9a   :  { %v4915_v36 = vrot.slane %v4914_v10, 2 }
 0xb9c   :  { %v4916_v47 = vadd.f32 %v4915_v36, %v4914_v10 }
 0xb9e   :  { %v4917_v42 = vrot.slane %v4916_v47, 1 }
 0xba0   :  { %v4918_v41 = vadd.f32 %v4917_v42, %v4916_v47 }
 0xba2   :  { %v4919_v37 = vmul.f32 %v4918_v41, %v4456_v39  ;;  %v6552_v39 = vld [vmem:[#allocation8 + $0x98] sm:$0xff]  ;;  %v6553_v41 = vld [vmem:[#allocation8 + $0x110] sm:$0xff] }
 0xba4   :  { %v4921_v7 = vmax.f32 %v4920_v49, %v4919_v37 }
 0xba6   :  { %v4922_v50 = vsub.f32 %v4457_v58, %v4921_v7  ;;  %v4925_v27 = vsub.f32 %v4688_v21, %v4921_v7  ;;  %v4928_v44 = vsub.f32 %v4919_v37, %v4921_v7  ;;  %v6554_v37 = vld [vmem:[#allocation8 + $0x20] sm:$0xff] }
 0xba8   :  { %v4923_v32 = vmul.f32 1.442695, %v4922_v50  ;;  %v4926_v34 = vmul.f32 1.442695, %v4925_v27  ;;  %v4929_v23 = vmul.f32 1.442695, %v4928_v44 }
 0xba9   :  { %v6555_v44 = vld [vmem:[#allocation8 + $0x118] sm:$0xff] }
 0xbaa   :  { %6535 = vpow2.f32 %v4923_v32 }
 0xbab   :  { %6537 = vpow2.f32 %v4926_v34 }
 0xbac   :  { %6539 = vpow2.f32 %v4929_v23 }
 0xbb0   :  { %v6536_v22 = vpop.eup %6535 }
 0xbb1   :  { %v6538_v53 = vpop.eup %6537 }
 0xbb2   :  { %v4931_v16 = vadd.f32 %v6538_v53, %v6536_v22  ;;  %v6540_v0 = vpop.eup %6539 }
 0xbb4   :  { %v4932_v33 = vadd.f32 %v6540_v0, %v4931_v16 }
 0xbb6   :  { %6541 = vrcp.f32 %v4932_v33  ;;  %v4944_v13 = vand.u32 2147483648, %v4932_v33  ;;  %v4942_v11 = vand.u32 2147483647, %v4932_v33  ;;  %vm4938_vm7 = vweird.f32 %v4932_v33 }
 0xbb8   :  { %v4945_v28 = vor.u32 1.1754944e-38, %v4944_v13  ;;  %vm4943_vm9 = vcmp.eq.f32.partialorder %v4942_v11, 8.507059e+37 }
 0xbbc   :  { %v6542_v6 = vpop.eup %6541 }
 0xbbd   :  { %v4934_v17 = vmul.f32 %v6542_v6, %v4932_v33  ;;  %vm4939_vm6 = vweird.f32 %v6542_v6  ;;  %v6559_v33 = vld [vmem:[#allocation8 + $0x120] sm:$0xff] }
 0xbbe   :  { %vm4940_vm8 = vmor %vm4938_vm7, %vm4939_vm6 }
 0xbbf   :  { %v4935_v3 = vsub.f32 1.0, %v4934_v17  ;;  %v6560_v17 = vld [vmem:[#allocation8 + $0x30] sm:$0xff] }
 0xbc1   :  { %v4936_v24 = vmul.f32 %v6542_v6, %v4935_v3 }
 0xbc3   :  { %v4937_v20 = vadd.f32 %v6542_v6, %v4936_v24  ;;  %v6561_v24 = vld [vmem:[#allocation8 + $0x128] sm:$0xff] }
 0xbc5   :  { %v4941_v52 = vsel %vm4940_vm8, %v6542_v6, %v4937_v20  ;;  %v6562_v20 = vld [vmem:[#allocation8 + $0xb0] sm:$0xff] }
 0xbc6   :  { %v4946_v26 = vsel %vm4943_vm9, %v4945_v28, %v4941_v52  ;;  %v6563_v52 = vld [vmem:[#allocation8 + $0x38] sm:$0xff] }
 0xbc7   :  { %v9384_v31 = vmul.f32 %v6536_v22, %v4946_v26  ;;  %v9386_v59 = vmul.f32 %v6538_v53, %v4946_v26  ;;  %v9388_v62 = vmul.f32 %v6540_v0, %v4946_v26  ;;  %v6558_v22 = vld [vmem:[#allocation8 + $0xa8] sm:$0xff] }
 0xbc9   :  { %v4949_v60 = vmul.f32 %v6543_v54, %v9384_v31  ;;  %v4966_v29 = vmul.f32 %v6544_v30, %v9386_v59  ;;  %v4950_v46 = vmul.f32 %v6545_v5, %v9384_v31  ;;  %v4999_v12 = vmul.f32 %v6546_v1, %v9388_v62 }
 0xbca   :  { %v4967_v45 = vmul.f32 %v6547_v19, %v9386_v59  ;;  %v4951_v18 = vmul.f32 %v6548_v43, %v9384_v31  ;;  %v4968_v10 = vmul.f32 %v6549_v56, %v9386_v59  ;;  %v5000_v36 = vmul.f32 %v6550_v63, %v9388_v62  ;;  %v6567_v43 = vld [vmem:[#allocation8 + $0xc0] sm:$0xff] }
 0xbcb   :  { %v4982_v57 = vadd.f32 %v4966_v29, %v4949_v60  ;;  %v4952_v47 = vmul.f32 %v6551_v4, %v9384_v31  ;;  %v4969_v21 = vmul.f32 %v6552_v39, %v9386_v59  ;;  %v5001_v49 = vmul.f32 %v6553_v41, %v9388_v62  ;;  %v6564_v60 = vld [vmem:[#allocation8 + $0x130] sm:$0xff]  ;;  %v6565_v29 = vld [vmem:[#allocation8 + $0xb8] sm:$0xff] }
 0xbcc   :  { %v4983_v42 = vadd.f32 %v4967_v45, %v4950_v46  ;;  %v4984_v58 = vadd.f32 %v4968_v10, %v4951_v18  ;;  %v4953_v7 = vmul.f32 %v6554_v37, %v9384_v31  ;;  %v5002_v14 = vmul.f32 %v6555_v44, %v9388_v62  ;;  %v6566_v46 = vld [vmem:[#allocation8 + $0x40] sm:$0xff]  ;;  %v6572_v37 = vld [vmem:[#allocation8 + $0x58] sm:$0xff] }
 0xbcd   :  { %v9402_v50 = vadd.f32 %v4999_v12, %v4982_v57  ;;  %v4985_v27 = vadd.f32 %v4969_v21, %v4952_v47  ;;  %v4970_v32 = vmul.f32 %v6556_v61, %v9386_v59  ;;  %v4954_v51 = vmul.f32 %v6557_v9, %v9384_v31  ;;  %v6568_v57 = vld [vmem:[#allocation8 + $0x48] sm:$0xff]  ;;  %v6570_v21 = vld [vmem:[#allocation8 + $0x50] sm:$0xff]  ;;  %v6573_v61 = vld [vmem:[#allocation8 + $0xd8] sm:$0xff] }
 0xbce   :  { %v9406_v34 = vadd.f32 %v5000_v36, %v4983_v42  ;;  %v9408_v23 = vadd.f32 %v5001_v49, %v4984_v58  ;;  %v4971_v53 = vmul.f32 %v6558_v22, %v9386_v59  ;;  %v5003_v6 = vmul.f32 %v6559_v33, %v9388_v62  ;;  %v6569_v36 = vld [vmem:[#allocation8 + $0xc8] sm:$0xff] }
 0xbcf   :  { %6026 = vmatmul.msk.f32.vlgmr.msrb.gmra.mxu1 %vm240_vm1, %v9402_v50  ;;  %v9414_v16 = vadd.f32 %v5002_v14, %v4985_v27  ;;  %v4986_v0 = vadd.f32 %v4970_v32, %v4953_v7  ;;  %v4955_v3 = vmul.f32 %v6560_v17, %v9384_v31  ;;  %v5004_v11 = vmul.f32 %v6561_v24, %v9388_v62 }
 0xbd0   :  { %v4987_v13 = vadd.f32 %v4971_v53, %v4954_v51  ;;  %v4972_v28 = vmul.f32 %v6562_v20, %v9386_v59  ;;  %v4956_v26 = vmul.f32 %v6563_v52, %v9384_v31  ;;  %v5005_v30 = vmul.f32 %v6564_v60, %v9388_v62  ;;  %v6574_v51 = vld [vmem:[#allocation8 + $0x60] sm:$0xff] }
 0xbd1   :  { %v9421_v54 = vadd.f32 %v5003_v6, %v4986_v0  ;;  %v4973_v5 = vmul.f32 %v6565_v29, %v9386_v59  ;;  %v4957_v1 = vmul.f32 %v6566_v46, %v9384_v31  ;;  %v5006_v45 = vmul.f32 %v9388_v62, %v9170_v2  ;;  %v6571_v2 = vld [vmem:[#allocation8 + $0xd0] sm:$0xff]  ;;  %v6575_v53 = vld [vmem:[#allocation8 + $0xe0] sm:$0xff]  ;;  %v6576_v6 = vld [vmem:[#allocation8 + $0x68] sm:$0xff] }
 0xbd2   :  { %v9426_v12 = vadd.f32 %v5004_v11, %v4987_v13  ;;  %v4988_v19 = vadd.f32 %v4972_v28, %v4955_v3  ;;  %v4974_v18 = vmul.f32 %v6567_v43, %v9386_v59  ;;  %v5007_v10 = vmul.f32 %v9388_v62, %v9183_v55  ;;  %v6577_v3 = vld [vmem:[#allocation8 + $0xe8] sm:$0xff]  ;;  %v6579_v28 = vld [vmem:[#allocation8 + $0xf0] sm:$0xff]  ;;  %v6580_v29 = vld [vmem:[#allocation8 + $0x78] sm:$0xff] }
 0xbd3   :  { %v4989_v56 = vadd.f32 %v4973_v5, %v4956_v26  ;;  %v4958_v63 = vmul.f32 %v6568_v57, %v9384_v31  ;;  %v4975_v4 = vmul.f32 %v6569_v36, %v9386_v59  ;;  %v4959_v42 = vmul.f32 %v6570_v21, %v9384_v31 }
 0xbd4   :  { %v9435_v47 = vadd.f32 %v5005_v30, %v4988_v19  ;;  %v4990_v39 = vadd.f32 %v4974_v18, %v4957_v1  ;;  %v4976_v58 = vmul.f32 %v6571_v2, %v9386_v59  ;;  %v5008_v55 = vmul.f32 %v9388_v62, %v9196_v35  ;;  %v6581_v19 = vld [vmem:[#allocation8 + $0xf8] sm:$0xff] }
 0xbd5   :  { %v9439_v41 = vadd.f32 %v5006_v45, %v4989_v56  ;;  %v4991_v49 = vadd.f32 %v4975_v4, %v4958_v63  ;;  %v4960_v7 = vmul.f32 %v6572_v37, %v9384_v31  ;;  %v5009_v14 = vmul.f32 %v9388_v62, %v9210_v25 }
 0xbd6   :  { %v9444_v27 = vadd.f32 %v5007_v10, %v4990_v39  ;;  %v4992_v44 = vadd.f32 %v4976_v58, %v4959_v42  ;;  %v4977_v32 = vmul.f32 %v6573_v61, %v9386_v59  ;;  %v5010_v35 = vmul.f32 %v9388_v62, %v9224_v38  ;;  %v6578_v38 = vld [vmem:[#allocation8 + $0x70] sm:$0xff] }
 0xbd7   :  { %6027 = vmatmul.msk.f32.gmra.mxu1 %vm240_vm1, %v9406_v34  ;;  %v9451_v9 = vadd.f32 %v5008_v55, %v4991_v49  ;;  %v4961_v22 = vmul.f32 %v6574_v51, %v9384_v31  ;;  %v4978_v0 = vmul.f32 %v6575_v53, %v9386_v59  ;;  %v4962_v17 = vmul.f32 %v6576_v6, %v9384_v31 }
 0xbd8   :  { %v9457_v33 = vadd.f32 %v5009_v14, %v4992_v44  ;;  %v4993_v25 = vadd.f32 %v4977_v32, %v4960_v7  ;;  %v4979_v13 = vmul.f32 %v6577_v3, %v9386_v59  ;;  %v5011_v11 = vmul.f32 %v9388_v62, %v9238_v15 }
 0xbd9   :  { %v4994_v24 = vadd.f32 %v4978_v0, %v4961_v22  ;;  %v4963_v20 = vmul.f32 %v6578_v38, %v9384_v31  ;;  %v4980_v52 = vmul.f32 %v6579_v28, %v9386_v59  ;;  %v5012_v30 = vmul.f32 %v9388_v62, %v9249_v40 }
 0xbda   :  { %v9465_v26 = vadd.f32 %v5010_v35, %v4993_v25  ;;  %v4995_v60 = vadd.f32 %v4979_v13, %v4962_v17  ;;  %v4964_v5 = vmul.f32 %v6580_v29, %v9384_v31  ;;  %v5013_v15 = vmul.f32 %v9388_v62, %v9261_v8  ;;  %v6436_v8 = vld [vmem:[%s9600_s19] ss:$0 sm:$0xff]  ;;  %s6678_s19 = smov [#allocation9]  }
 0xbdb   :  { %v9470_v46 = vadd.f32 %v5011_v11, %v4994_v24  ;;  %v4996_v1 = vadd.f32 %v4980_v52, %v4963_v20  ;;  %v4981_v45 = vmul.f32 %v6581_v19, %v9386_v59  ;;  %v5014_v40 = vmul.f32 %v9388_v62, %v9271_v48 }
 0xbdc   :  { %v9475_v43 = vadd.f32 %v5012_v30, %v4995_v60 }
 0xbdd   :  { %v9477_v18 = vadd.f32 %v5013_v15, %v4996_v1  ;;  %v4997_v56 = vadd.f32 %v4981_v45, %v4964_v5 }
 0xbdf   :  { %6028 = vmatmul.msk.f32.gmra.mxu1 %vm240_vm1, %v9408_v23  ;;  %v9483_v31 = vadd.f32 %v5014_v40, %v4997_v56 }
 0xbe7   :  { %6029 = vmatmul.msk.f32.gmra.mxu1 %vm240_vm1, %v9414_v16 }
 0xbef   :  { %6030 = vmatmul.msk.f32.gmra.mxu1 %vm240_vm1, %v9421_v54 }
 0xbf7   :  { %6031 = vmatmul.msk.f32.gmra.mxu1 %vm240_vm1, %v9426_v12 }
 0xbff   :  { %6032 = vmatmul.msk.f32.gmra.mxu1 %vm240_vm1, %v9435_v47 }
 0xc07   :  { %6033 = vmatmul.msk.f32.gmra.mxu1 %vm240_vm1, %v9439_v41 }
 0xc0f   :  { %6034 = vmatmul.msk.f32.gmra.mxu1 %vm240_vm1, %v9444_v27 }
 0xc17   :  { %6035 = vmatmul.msk.f32.gmra.mxu1 %vm240_vm1, %v9451_v9 }
 0xc1f   :  { %6036 = vmatmul.msk.f32.gmra.mxu1 %vm240_vm1, %v9457_v33 }
 0xc27   :  { %6037 = vmatmul.msk.f32.gmra.mxu1 %vm240_vm1, %v9465_v26 }
 0xc2f   :  { %6038 = vmatmul.msk.f32.gmra.mxu1 %vm240_vm1, %v9470_v46 }
 0xc37   :  { %6039 = vmatmul.msk.f32.gmra.mxu1 %vm240_vm1, %v9475_v43 }
 0xc3f   :  { %6040 = vmatmul.msk.f32.gmra.mxu1 %vm240_vm1, %v9477_v18 }
 0xc47   :  { %6041 = vmatmul.msk.f32.gmra.mxu1 %vm240_vm1, %v9483_v31 }
 0xc4c   :  { %v5104_v48 = vpop.f32.mrf.mxu1 }
 0xc4d   :  { %v5105_v59 = vadd.f32 %v6436_v8, %v5104_v48 }
 0xc4f   :  { %5168 = vrot.lane.b32.xlu0 %v5105_v59, %s6668_s29 }
 0xc54   :  { %v5107_v62 = vpop.f32.mrf.mxu1 }
 0xc55   :  { %v5108_v10 = vadd.f32 %v6436_v8, %v5107_v62 }
 0xc57   :  { %5170 = vrot.lane.b32.xlu1 %v5108_v10, %s6668_s29 }
 0xc5c   :  { %v5110_v57 = vpop.f32.mrf.mxu1 }
 0xc5d   :  { %v5111_v63 = vadd.f32 %v6436_v8, %v5110_v57 }
 0xc5f   :  { %5172 = vrot.lane.b32.xlu2 %v5111_v63, %s6668_s29 }
 0xc64   :  { %v5113_v36 = vpop.f32.mrf.mxu1 }
 0xc65   :  { %v5114_v4 = vadd.f32 %v6436_v8, %v5113_v36 }
 0xc67   :  { %5174 = vrot.lane.b32.xlu0 %v5114_v4, %s6668_s29 }
 0xc6c   :  { %v5116_v39 = vpop.f32.mrf.mxu1 }
 0xc6d   :  { %v5117_v21 = vadd.f32 %v6436_v8, %v5116_v39 }
 0xc6f   :  { %5176 = vrot.lane.b32.xlu2 %v5117_v21, %s6668_s29 }
 0xc74   :  { %v5119_v42 = vpop.f32.mrf.mxu1 }
 0xc75   :  { %v5120_v2 = vadd.f32 %v6436_v8, %v5119_v42 }
 0xc77   :  { %5178 = vrot.lane.b32.xlu1 %v5120_v2, %s6668_s29 }
 0xc7c   :  { %v5122_v58 = vpop.f32.mrf.mxu1 }
 0xc7d   :  { %v5123_v49 = vadd.f32 %v6436_v8, %v5122_v58 }
 0xc7f   :  { %5180 = vrot.lane.b32.xlu0 %v5123_v49, %s6668_s29 }
 0xc84   :  { %v5125_v55 = vpop.f32.mrf.mxu1 }
 0xc85   :  { %v5126_v37 = vadd.f32 %v6436_v8, %v5125_v55 }
 0xc87   :  { %5182 = vrot.lane.b32.xlu2 %v5126_v37, %s6668_s29 }
 0xc8c   :  { %v5128_v7 = vpop.f32.mrf.mxu1 }
 0xc8d   :  { %v5129_v44 = vadd.f32 %v6436_v8, %v5128_v7 }
 0xc8f   :  { %5184 = vrot.lane.b32.xlu1 %v5129_v44, %s6668_s29 }
 0xc94   :  { %v5131_v14 = vpop.f32.mrf.mxu1 }
 0xc95   :  { %v5132_v61 = vadd.f32 %v6436_v8, %v5131_v14 }
 0xc97   :  { %5186 = vrot.lane.b32.xlu0 %v5132_v61, %s6668_s29 }
 0xc9c   :  { %v5134_v32 = vpop.f32.mrf.mxu1 }
 0xc9d   :  { %v5135_v35 = vadd.f32 %v6436_v8, %v5134_v32 }
 0xc9f   :  { %5188 = vrot.lane.b32.xlu2 %v5135_v35, %s6668_s29 }
 0xca4   :  { %v5137_v51 = vpop.f32.mrf.mxu1 }
 0xca5   :  { %v5138_v22 = vadd.f32 %v6436_v8, %v5137_v51 }
 0xca7   :  { %5190 = vrot.lane.b32.xlu1 %v5138_v22, %s6668_s29 }
 0xcac   :  { %v5140_v53 = vpop.f32.mrf.mxu1 }
 0xcad   :  { %v5141_v0 = vadd.f32 %v6436_v8, %v5140_v53 }
 0xcaf   :  { %5192 = vrot.lane.b32.xlu0 %v5141_v0, %s6668_s29 }
 0xcb4   :  { %v5143_v25 = vpop.f32.mrf.mxu1 }
 0xcb5   :  { %v5144_v6 = vadd.f32 %v6436_v8, %v5143_v25 }
 0xcb7   :  { %5194 = vrot.lane.b32.xlu2 %v5144_v6, %s6668_s29 }
 0xcb9   :  { %v5173_v17 = vpop.permute.xlu2 %5172 }
 0xcba   :  { %v5218_v3 = vsel %vm240_vm1, %v9408_v23, %v5173_v17 }
 0xcbb   :  { %v5235_v13 = vsel %vm5232_vm10, %v5218_v3, 0.0 }
 0xcbc   :  { %5251 = vst [vmem:[#allocation9 + $0x10] sm:$0xff] %v5235_v13  ;;  %v5146_v24 = vpop.f32.mrf.mxu1 }
 0xcbd   :  { %v5147_v11 = vadd.f32 %v6436_v8, %v5146_v24 }
 0xcbf   :  { %5196 = vrot.lane.b32.xlu1 %v5147_v11, %s6668_s29 }
 0xcc1   :  { %v5169_v38 = vpop.permute.xlu0 %5168 }
 0xcc2   :  { %v5216_v20 = vsel %vm240_vm1, %v9402_v50, %v5169_v38 }
 0xcc3   :  { %v5233_v28 = vsel %vm5232_vm10, %v5216_v20, 0.0 }
 0xcc4   :  { %5249 = vst [vmem:[#allocation9] sm:$0xff] %v5233_v28  ;;  %v5149_v52 = vpop.f32.mrf.mxu1 }
 0xcc5   :  { %v5150_v60 = vadd.f32 %v6436_v8, %v5149_v52 }
 0xcc7   :  { %5198 = vrot.lane.b32.xlu0 %v5150_v60, %s6668_s29  ;;  %s5269_s29 = sshll.u32 %s6678_s19, 4  ;;  %s5270_s29 = int_to_ptr.vmem [resolvable:$true] %s5269_s29 }
 0xcc9   :  { %v5177_v30 = vpop.permute.xlu2 %5176  ;;  %v5171_v23 = vpop.permute.xlu1 %5170 }
 0xcca   :  { %v5220_v29 = vsel %vm240_vm1, %v9421_v54, %v5177_v30  ;;  %v5217_v5 = vsel %vm240_vm1, %v9406_v34, %v5171_v23 }
 0xccb   :  { %v5237_v1 = vsel %vm5232_vm10, %v5220_v29, 0.0  ;;  %v5234_v15 = vsel %vm5232_vm10, %v5217_v5, 0.0 }
 0xccc   :  { %5253 = vst [vmem:[#allocation9 + $0x20] sm:$0xff] %v5237_v1 }
 0xccd   :  { %5250 = vst [vmem:[#allocation9 + $0x8] sm:$0xff] %v5234_v15 }
 0xcd9   :  { %v5175_v50 = vpop.permute.xlu0 %5174 }
 0xcda   :  { %v5219_v19 = vsel %vm240_vm1, %v9414_v16, %v5175_v50 }
 0xcdb   :  { %v5236_v45 = vsel %vm5232_vm10, %v5219_v19, 0.0 }
 0xcdc   :  { %5252 = vst [vmem:[#allocation9 + $0x18] sm:$0xff] %v5236_v45 }
 0xce1   :  { %v5183_v56 = vpop.permute.xlu2 %5182 }
 0xce2   :  { %v5223_v54 = vsel %vm240_vm1, %v9439_v41, %v5183_v56 }
 0xce3   :  { %v5240_v40 = vsel %vm5232_vm10, %v5223_v54, 0.0 }
 0xce4   :  { %5256 = vst [vmem:[#allocation9 + $0x38] sm:$0xff] %v5240_v40 }
 0xce9   :  { %v5179_v34 = vpop.permute.xlu1 %5178 }
 0xcea   :  { %v5221_v8 = vsel %vm240_vm1, %v9426_v12, %v5179_v34 }
 0xceb   :  { %v5238_v48 = vsel %vm5232_vm10, %v5221_v8, 0.0 }
 0xcec   :  { %5254 = vst [vmem:[#allocation9 + $0x28] sm:$0xff] %v5238_v48 }
 0xcf1   :  { %v5181_v59 = vpop.permute.xlu0 %5180 }
 0xcf2   :  { %v5222_v16 = vsel %vm240_vm1, %v9435_v47, %v5181_v59 }
 0xcf3   :  { %v5239_v62 = vsel %vm5232_vm10, %v5222_v16, 0.0 }
 0xcf4   :  { %5255 = vst [vmem:[#allocation9 + $0x30] sm:$0xff] %v5239_v62 }
 0xcf9   :  { %v5189_v10 = vpop.permute.xlu2 %5188 }
 0xcfa   :  { %v5226_v41 = vsel %vm240_vm1, %v9457_v33, %v5189_v10 }
 0xcfb   :  { %v5243_v57 = vsel %vm5232_vm10, %v5226_v41, 0.0 }
 0xcfc   :  { %5259 = vst [vmem:[#allocation9 + $0x50] sm:$0xff] %v5243_v57 }
 0xd01   :  { %v5185_v63 = vpop.permute.xlu1 %5184 }
 0xd02   :  { %v5224_v12 = vsel %vm240_vm1, %v9444_v27, %v5185_v63 }
 0xd03   :  { %v5241_v36 = vsel %vm5232_vm10, %v5224_v12, 0.0 }
 0xd04   :  { %5257 = vst [vmem:[#allocation9 + $0x40] sm:$0xff] %v5241_v36 }
 0xd09   :  { %v5187_v4 = vpop.permute.xlu0 %5186 }
 0xd0a   :  { %v5225_v47 = vsel %vm240_vm1, %v9451_v9, %v5187_v4 }
 0xd0b   :  { %v5242_v39 = vsel %vm5232_vm10, %v5225_v47, 0.0 }
 0xd0c   :  { %5258 = vst [vmem:[#allocation9 + $0x48] sm:$0xff] %v5242_v39 }
 0xd11   :  { %v5195_v21 = vpop.permute.xlu2 %5194 }
 0xd12   :  { %v5229_v33 = vsel %vm240_vm1, %v9475_v43, %v5195_v21 }
 0xd13   :  { %v5246_v42 = vsel %vm5232_vm10, %v5229_v33, 0.0 }
 0xd14   :  { %5262 = vst [vmem:[#allocation9 + $0x68] sm:$0xff] %v5246_v42 }
 0xd19   :  { %v5191_v2 = vpop.permute.xlu1 %5190 }
 0xd1a   :  { %v5227_v27 = vsel %vm240_vm1, %v9465_v26, %v5191_v2 }
 0xd1b   :  { %v5244_v58 = vsel %vm5232_vm10, %v5227_v27, 0.0 }
 0xd1c   :  { %5260 = vst [vmem:[#allocation9 + $0x58] sm:$0xff] %v5244_v58 }
 0xd21   :  { %v5193_v49 = vpop.permute.xlu0 %5192 }
 0xd22   :  { %v5228_v9 = vsel %vm240_vm1, %v9470_v46, %v5193_v49 }
 0xd23   :  { %v5245_v55 = vsel %vm5232_vm10, %v5228_v9, 0.0 }
 0xd24   :  { %5261 = vst [vmem:[#allocation9 + $0x60] sm:$0xff] %v5245_v55 }
 0xd31   :  { %v5197_v37 = vpop.permute.xlu1 %5196 }
 0xd32   :  { %v5230_v43 = vsel %vm240_vm1, %v9477_v18, %v5197_v37 }
 0xd33   :  { %v5247_v7 = vsel %vm5232_vm10, %v5230_v43, 0.0 }
 0xd34   :  { %5263 = vst [vmem:[#allocation9 + $0x70] sm:$0xff] %v5247_v7 }
 0xd39   :  { %v5199_v26 = vpop.permute.xlu0 %5198 }
 0xd3a   :  { %v5231_v46 = vsel %vm240_vm1, %v9483_v31, %v5199_v26 }
 0xd3b   :  { %v5248_v44 = vsel %vm5232_vm10, %v5231_v46, 0.0 }
 0xd3c   :  { %5264 = vst [vmem:[#allocation9 + $0x78] sm:$0xff] %v5248_v44 }
 0xd3d   :  { %5277 = dma.vmem_to_hbm [thread:$0]  %s5270_s29, 2048, %s5272_s3, [#allocation10], %s6679_s4, %s6679_s4, %s6680_s2  }
 0xd3e   :  { %6642 = dma.done.wait [#allocation10], 2048  }
 0xd3f   :  { %6643 = vsyncadd [#allocation10], 4294965248 }
 0xd40   :  { %5282 = vsyncpa [#allocation10], 1 }
 0xd41   :  { %5283 = vsyncmov [#allocation3] }
 0xd44   :  { %s5284_s22 = vpop.sfrf %5283 }
 0xd45   :  { %p6042_p12 = scmp.ne.s32.totalorder %s5284_s22, 0 }
 0xd47   :  { %5288 = shalt.err (%p6042_p12)  }
 0xd48   :  { %5290 = vsyncmov [#allocation3 + $0x1] }
 0xd4b   :  { %s5291_s20 = vpop.sfrf %5290 }
 0xd4c   :  { %p6043_p13 = scmp.ne.s32.totalorder %s5291_s20, 0 }
 0xd4e   :  { %5295 = shalt.err (%p6043_p13)  }

</bundles_post_ra>
